<compile_context>
chip_gen: v5e
topology: v5e:2x2
jax: 0.10.0
libtpu: 0.0.40
codegen_flags: <defaults>
</compile_context>

<pallas_src>
import functools

import jax
import jax.numpy as jnp
import numpy as np
from jax.experimental import pallas as pl
from jax.experimental.pallas import tpu as pltpu

EPS = 1e-5  # nn.BatchNorm2d default eps


# ------------------------------ in-kernel helpers ------------------------------

def _flat_position_indices(h, w, cin):
    """Row / column index of every flattened (row-major) pixel, shape (h*w, cin)."""
    r = jax.lax.broadcasted_iota(jnp.int32, (h, w, cin), 0).reshape(h * w, cin)
    c = jax.lax.broadcasted_iota(jnp.int32, (h, w, cin), 1).reshape(h * w, cin)
    return r, c


def _accumulate_conv3x3(a_flat, w_ref, acc_ref, r_idx, c_idx, h, w):
    """3x3 / stride-1 / pad-1 conv of one image, accumulated into a VMEM scratch.

    a_flat : (h*w, cin) f32 value, the input feature map flattened row-major.
    w_ref  : (3, 3, cin, cout) bf16 resident weights.
    acc_ref: (h*w, cout) f32 VMEM scratch accumulator (overwritten here).
    r_idx / c_idx : (h*w, cin) int32 pixel coordinates (for border masks).

    Spatial zero padding is synthesized: each tap is a circular shift of the
    flattened operand (pltpu.roll along the sublane axis) with the wrapped /
    out-of-image positions masked to zero, so no padded copy is ever built.
    """
    m = h * w
    # Center tap (dy=dx=1): no shift, no mask.
    acc_ref[...] = jnp.dot(a_flat.astype(jnp.bfloat16), w_ref[1, 1],
                           preferred_element_type=jnp.float32)
    for dy in range(3):
        for dx in range(3):
            if dy == 1 and dx == 1:
                continue
            delta = (dy - 1) * w + (dx - 1)          # flat-index offset of tap
            shifted = pltpu.roll(a_flat, shift=(-delta) % m, axis=0)
            # Zero positions whose true source pixel lies outside the image
            # (the circular roll wrapped some other pixel in there).  Only the
            # border conditions that can actually trigger are materialized.
            valid = None
            if dy == 0:
                valid = r_idx >= 1
            elif dy == 2:
                valid = r_idx <= h - 2
            if dx == 0:
                cm = c_idx >= 1
                valid = cm if valid is None else (valid & cm)
            elif dx == 2:
                cm = c_idx <= w - 2
                valid = cm if valid is None else (valid & cm)
            shifted = jnp.where(valid, shifted, 0.0)
            acc_ref[...] += jnp.dot(shifted.astype(jnp.bfloat16), w_ref[dy, dx],
                                    preferred_element_type=jnp.float32)


def _emit_raw_and_stats(acc_ref, raw_ref, st_ref, h, w):
    """Store the raw conv output (bf16) and per-block BN partial statistics.

    Partials are [sum, centered sum-of-squares] so the host-side reduction can
    use Chan's parallel-variance combination (no E[x^2]-E[x]^2 cancellation).
    """
    acc = acc_ref[...]
    cout = acc.shape[-1]
    raw_ref[...] = acc.reshape(1, h, w, cout).astype(raw_ref.dtype)
    s = jnp.sum(acc, axis=0, keepdims=True)                    # (1, cout)
    mu = s * (1.0 / (h * w))
    m2 = jnp.sum((acc - mu) ** 2, axis=0, keepdims=True)       # (1, cout)
    st_ref[...] = jnp.concatenate([s, m2], axis=0).reshape(1, 2, cout)


# ------------------------------ Pallas kernels --------------------------------

def _conv1_stats_kernel(x_ref, w_ref, raw_ref, st_ref, acc_ref, *, h, w):
    """conv1 on one whole image + partial BN1 stats.

    x_ref  : (1, h, w, cin) f32   input image (read directly, cast here)
    w_ref  : (3, 3, cin, cout) bf16 resident weights
    raw_ref: (1, h, w, cout) bf16 raw conv1 output (pre-BN)
    st_ref : (1, 2, cout) f32     per-image [sum, centered sumsq]
    acc_ref: (h*w, cout) f32      VMEM accumulator scratch
    """
    cin = x_ref.shape[-1]
    a = x_ref[0].reshape(h * w, cin).astype(jnp.float32)
    r_idx, c_idx = _flat_position_indices(h, w, cin)
    _accumulate_conv3x3(a, w_ref, acc_ref, r_idx, c_idx, h, w)
    _emit_raw_and_stats(acc_ref, raw_ref, st_ref, h, w)


def _bn_relu_conv2_stats_kernel(r1_ref, sc_ref, sh_ref, w_ref,
                                raw_ref, st_ref, acc_ref, *, h, w):
    """Fused BN1(scale/shift)+ReLU -> conv2 on one whole image + BN2 partials.

    r1_ref : (1, h, w, c) bf16  raw conv1 output for this image
    sc_ref / sh_ref : (1, c) f32 folded BN1 scale / shift (resident)
    w_ref  : (3, 3, c, c) bf16  conv2 weights (resident)
    raw_ref: (1, h, w, c) bf16  raw conv2 output
    st_ref : (1, 2, c) f32      partial [sum, centered sumsq] of conv2 output
    acc_ref: (h*w, c) f32       VMEM accumulator scratch
    """
    cin = r1_ref.shape[-1]
    a = jnp.maximum(
        r1_ref[0].reshape(h * w, cin).astype(jnp.float32)
        * sc_ref[...] + sh_ref[...], 0.0)
    r_idx, c_idx = _flat_position_indices(h, w, cin)
    _accumulate_conv3x3(a, w_ref, acc_ref, r_idx, c_idx, h, w)
    _emit_raw_and_stats(acc_ref, raw_ref, st_ref, h, w)


def _bn_add_relu_kernel(r2_ref, sc_ref, sh_ref, res_ref, o_ref):
    """Fused BN2(scale/shift) + identity residual add + ReLU (elementwise)."""
    y = r2_ref[...].astype(jnp.float32) * sc_ref[...] + sh_ref[...] + res_ref[...]
    o_ref[...] = jnp.maximum(y, 0.0)


# --------------------------------- JAX glue ------------------------------------

def _bn_scale_shift(partial_stats, gamma, beta, block_count, total_count):
    """Chan-combine per-block [sum, centered sumsq] -> folded BN scale/shift."""
    sums = partial_stats[:, 0, :]                       # (steps, C)
    m2s = partial_stats[:, 1, :]                        # (steps, C)
    mean_b = sums / block_count
    mean = jnp.sum(sums, axis=0) / total_count
    m2 = jnp.sum(m2s, axis=0) + block_count * jnp.sum((mean_b - mean) ** 2, axis=0)
    var = jnp.maximum(m2 / total_count, 0.0)            # biased var (PyTorch BN)
    scale = gamma.astype(jnp.float32) * jax.lax.rsqrt(var + EPS)
    shift = beta.astype(jnp.float32) - mean * scale
    return scale.reshape(1, -1), shift.reshape(1, -1)


def _compiler_params():
    # 32 MiB is safe on every generation (v7x has only 64 MiB physical VMEM per
    # core); our per-step footprint here is well under 1 MiB.
    return pltpu.CompilerParams(
        dimension_semantics=("parallel",),
        vmem_limit_bytes=32 * 1024 * 1024)


@jax.jit
def residual_block_forward(x_nchw, w1_oihw, g1, b1, w2_oihw, g2, b2):
    """ResidualBlock(inC, outC, stride=1, shortcut=None).forward (training-mode BN)."""
    n, c, h, w = x_nchw.shape
    cout = w1_oihw.shape[0]
    assert c == cout, "identity shortcut requires inchannel == outchannel"
    assert (h * w) % 8 == 0, "H*W should be a multiple of 8 for tile-friendly reshapes"
    m = h * w
    count = float(n * h * w)                            # BN batch-stat count

    x_nhwc = jnp.transpose(x_nchw, (0, 2, 3, 1)).astype(jnp.float32)

    # OIHW -> (ky, kx, cin, cout), bf16, NO channel padding (kept at true cout).
    w1t = jnp.transpose(w1_oihw, (2, 3, 1, 0)).astype(jnp.bfloat16)
    w2t = jnp.transpose(w2_oihw, (2, 3, 1, 0)).astype(jnp.bfloat16)

    cparams = _compiler_params()

    # -------------------- pass 1: conv1 + partial BN1 stats --------------------
    raw1, st1 = pl.pallas_call(
        functools.partial(_conv1_stats_kernel, h=h, w=w),
        grid=(n,),
        in_specs=[
            pl.BlockSpec((1, h, w, c), lambda b: (b, 0, 0, 0)),
            pl.BlockSpec((3, 3, c, cout), lambda b: (0, 0, 0, 0)),    # resident
        ],
        out_specs=(
            pl.BlockSpec((1, h, w, cout), lambda b: (b, 0, 0, 0)),
            pl.BlockSpec((1, 2, cout), lambda b: (b, 0, 0)),
        ),
        out_shape=(
            jax.ShapeDtypeStruct((n, h, w, cout), jnp.bfloat16),
            jax.ShapeDtypeStruct((n, 2, cout), jnp.float32),
        ),
        scratch_shapes=[pltpu.VMEM((m, cout), jnp.float32)],
        compiler_params=cparams,
    )(x_nhwc, w1t)

    # ------------ pass 2: BN1+ReLU fused into conv2 + partial BN2 stats --------
    scale1, shift1 = _bn_scale_shift(st1, g1, b1, float(m), count)
    raw2, st2 = pl.pallas_call(
        functools.partial(_bn_relu_conv2_stats_kernel, h=h, w=w),
        grid=(n,),
        in_specs=[
            pl.BlockSpec((1, h, w, cout), lambda b: (b, 0, 0, 0)),
            pl.BlockSpec((1, cout), lambda b: (0, 0)),                # resident
            pl.BlockSpec((1, cout), lambda b: (0, 0)),                # resident
            pl.BlockSpec((3, 3, cout, cout), lambda b: (0, 0, 0, 0)), # resident
        ],
        out_specs=(
            pl.BlockSpec((1, h, w, cout), lambda b: (b, 0, 0, 0)),
            pl.BlockSpec((1, 2, cout), lambda b: (b, 0, 0)),
        ),
        out_shape=(
            jax.ShapeDtypeStruct((n, h, w, cout), jnp.bfloat16),
            jax.ShapeDtypeStruct((n, 2, cout), jnp.float32),
        ),
        scratch_shapes=[pltpu.VMEM((m, cout), jnp.float32)],
        compiler_params=cparams,
    )(raw1, scale1, shift1, w2t)

    # -------------------- pass 3: BN2 + residual + ReLU ------------------------
    scale2, shift2 = _bn_scale_shift(st2, g2, b2, float(m), count)
    y = pl.pallas_call(
        _bn_add_relu_kernel,
        grid=(n,),
        in_specs=[
            pl.BlockSpec((1, h, w, cout), lambda b: (b, 0, 0, 0)),
            pl.BlockSpec((1, cout), lambda b: (0, 0)),                # resident
            pl.BlockSpec((1, cout), lambda b: (0, 0)),                # resident
            pl.BlockSpec((1, h, w, c), lambda b: (b, 0, 0, 0)),       # residual
        ],
        out_specs=pl.BlockSpec((1, h, w, cout), lambda b: (b, 0, 0, 0)),
        out_shape=jax.ShapeDtypeStruct((n, h, w, cout), jnp.float32),
        compiler_params=cparams,
    )(raw2, scale2, shift2, x_nhwc)

    return jnp.transpose(y, (0, 3, 1, 2))               # back to NCHW


# ------------------------------ pure-JAX reference ------------------------------

def _reference(x_nchw, w1_oihw, g1, b1, w2_oihw, g2, b2):
    x = jnp.transpose(x_nchw, (0, 2, 3, 1)).astype(jnp.float32)

    def conv(inp, w_oihw):
        wt = jnp.transpose(w_oihw, (2, 3, 1, 0)).astype(jnp.float32)
        return jax.lax.conv_general_dilated(
            inp, wt, (1, 1), 'SAME', dimension_numbers=('NHWC', 'HWIO', 'NHWC'))

    def bn(inp, g, b):
        mu = jnp.mean(inp, axis=(0, 1, 2), keepdims=True)
        v = jnp.mean((inp - mu) ** 2, axis=(0, 1, 2), keepdims=True)
        return (inp - mu) * jax.lax.rsqrt(v + EPS) * g + b

    y = jax.nn.relu(bn(conv(x, w1_oihw), g1, b1))
    y = bn(conv(y, w2_oihw), g2, b2) + x
    return jnp.transpose(jax.nn.relu(y), (0, 3, 1, 2))


# --------------------------------------- main -----------------------------------

if __name__ == "__main__":
    N, C, H, W = 2, 8, 16, 16    # inchannel == outchannel, stride=1, shortcut=None
    key = jax.random.PRNGKey(0)
    kx, kw1, kw2, kg1, kb1, kg2, kb2 = jax.random.split(key, 7)

    x = jax.random.normal(kx, (N, C, H, W), jnp.float32)
    w1 = jax.random.normal(kw1, (C, C, 3, 3), jnp.float32) * 0.1  # Conv2d(C,C,3,1,1,bias=False)
    w2 = jax.random.normal(kw2, (C, C, 3, 3), jnp.float32) * 0.1
    g1 = 1.0 + 0.1 * jax.random.normal(kg1, (C,), jnp.float32)    # BN affine params
    b1 = 0.1 * jax.random.normal(kb1, (C,), jnp.float32)
    g2 = 1.0 + 0.1 * jax.random.normal(kg2, (C,), jnp.float32)
    b2 = 0.1 * jax.random.normal(kb2, (C,), jnp.float32)

    out = jax.block_until_ready(
        residual_block_forward(x, w1, g1, b1, w2, g2, b2))

    ref = jax.block_until_ready(_reference(x, w1, g1, b1, w2, g2, b2))
    # bf16 MXU matmuls + bf16 inter-conv activation vs. an f32 reference.
    np.testing.assert_allclose(np.asarray(out), np.asarray(ref),
                               atol=7.5e-2, rtol=7.5e-2)

    print("KERNEL_OK")
</pallas_src>

<mosaic_0001>
module attributes {stable_mosaic.version = 11 : i64} {
  func.func @_conv1_stats_kernel(%arg0: i32, %arg1: memref<1x16x16x8xf32, #tpu.memory_space<vmem>>, %arg2: memref<3x3x8x8xbf16, #tpu.memory_space<vmem>>, %arg3: memref<1x16x16x8xbf16, #tpu.memory_space<vmem>>, %arg4: memref<1x2x8xf32, #tpu.memory_space<vmem>>, %arg5: memref<256x8xf32, #tpu.memory_space<vmem>>) attributes {dimension_semantics = [#tpu.dimension_semantics<parallel>], iteration_bounds = array<i64: 2>, scalar_prefetch = 0 : i64, scratch_operands = 1 : i64, tpu.core_type = #tpu.core_type<tc>, window_params = [{transform_indices = @transform_0, window_bounds = array<i64: 1, 16, 16, 8>}, {pipeline_mode = #tpu.pipeline_mode<synchronous>, transform_indices = @transform_1, window_bounds = array<i64: 3, 3, 8, 8>}, {transform_indices = @transform_2, window_bounds = array<i64: 1, 16, 16, 8>}, {transform_indices = @transform_3, window_bounds = array<i64: 1, 2, 8>}]} {
    %c0 = arith.constant 0 : index
    %c0_0 = arith.constant 0 : index
    %c0_1 = arith.constant 0 : index
    %c0_2 = arith.constant 0 : index
    %0 = vector.load %arg1[%c0, %c0_0, %c0_1, %c0_2] : memref<1x16x16x8xf32, #tpu.memory_space<vmem>>, vector<1x16x16x8xf32>
    %1 = vector.shape_cast %0 : vector<1x16x16x8xf32> to vector<16x16x8xf32>
    %2 = vector.shape_cast %1 : vector<16x16x8xf32> to vector<256x8xf32>
    %3 = tpu.iota {dimensions = array<i32: 0>} : vector<16x16x8xi32>
    %4 = vector.shape_cast %3 : vector<16x16x8xi32> to vector<256x8xi32>
    %5 = tpu.iota {dimensions = array<i32: 1>} : vector<16x16x8xi32>
    %6 = vector.shape_cast %5 : vector<16x16x8xi32> to vector<256x8xi32>
    %7 = arith.truncf %2 : vector<256x8xf32> to vector<256x8xbf16>
    %c1 = arith.constant 1 : index
    %c1_3 = arith.constant 1 : index
    %c0_4 = arith.constant 0 : index
    %c0_5 = arith.constant 0 : index
    %8 = vector.load %arg2[%c1, %c1_3, %c0_4, %c0_5] : memref<3x3x8x8xbf16, #tpu.memory_space<vmem>>, vector<1x1x8x8xbf16>
    %9 = vector.shape_cast %8 : vector<1x1x8x8xbf16> to vector<8x8xbf16>
    %cst = arith.constant dense<0.000000e+00> : vector<256x8xf32>
    %10 = tpu.matmul %7, %9, %cst {dimension_numbers = #tpu.dot_dimension_numbers<[1], [0], [0], [1], [0, 0, 1, 1], [], []>} : vector<256x8xbf16>, vector<8x8xbf16>, vector<256x8xf32> -> vector<256x8xf32>
    %c0_6 = arith.constant 0 : index
    %c0_7 = arith.constant 0 : index
    %11 = vector.load %arg5[%c0_6, %c0_7] : memref<256x8xf32, #tpu.memory_space<vmem>>, vector<256x8xf32>
    tpu.vector_store %arg5[%c0_6, %c0_7], %10 {strides = array<i32>} : memref<256x8xf32, #tpu.memory_space<vmem>>, vector<256x8xf32>,
    %c17_i32 = arith.constant 17 : i32
    %12 = tpu.dynamic_rotate %2 by %c17_i32 dim 0 : vector<256x8xf32>, i32 -> vector<256x8xf32>
    %c1_i32 = arith.constant 1 : i32
    %13 = vector.broadcast %c1_i32 : i32 to vector<256x8xi32>
    %14 = arith.cmpi sge, %4, %13 : vector<256x8xi32>
    %c1_i32_8 = arith.constant 1 : i32
    %15 = vector.broadcast %c1_i32_8 : i32 to vector<256x8xi32>
    %16 = arith.cmpi sge, %6, %15 : vector<256x8xi32>
    %17 = arith.andi %14, %16 : vector<256x8xi1>
    %cst_9 = arith.constant 0.000000e+00 : f32
    %18 = vector.broadcast %cst_9 : f32 to vector<256x8xf32>
    %19 = arith.select %17, %12, %18 : vector<256x8xi1>, vector<256x8xf32>
    %c0_10 = arith.constant 0 : index
    %c0_11 = arith.constant 0 : index
    %20 = vector.load %arg5[%c0_10, %c0_11] : memref<256x8xf32, #tpu.memory_space<vmem>>, vector<256x8xf32>
    %21 = arith.truncf %19 : vector<256x8xf32> to vector<256x8xbf16>
    %c0_12 = arith.constant 0 : index
    %c0_13 = arith.constant 0 : index
    %c0_14 = arith.constant 0 : index
    %c0_15 = arith.constant 0 : index
    %22 = vector.load %arg2[%c0_12, %c0_13, %c0_14, %c0_15] : memref<3x3x8x8xbf16, #tpu.memory_space<vmem>>, vector<1x1x8x8xbf16>
    %23 = vector.shape_cast %22 : vector<1x1x8x8xbf16> to vector<8x8xbf16>
    %cst_16 = arith.constant dense<0.000000e+00> : vector<256x8xf32>
    %24 = tpu.matmul %21, %23, %cst_16 {dimension_numbers = #tpu.dot_dimension_numbers<[1], [0], [0], [1], [0, 0, 1, 1], [], []>} : vector<256x8xbf16>, vector<8x8xbf16>, vector<256x8xf32> -> vector<256x8xf32>
    %25 = arith.addf %20, %24 : vector<256x8xf32>
    %c0_17 = arith.constant 0 : index
    %c0_18 = arith.constant 0 : index
    %26 = vector.load %arg5[%c0_17, %c0_18] : memref<256x8xf32, #tpu.memory_space<vmem>>, vector<256x8xf32>
    tpu.vector_store %arg5[%c0_17, %c0_18], %25 {strides = array<i32>} : memref<256x8xf32, #tpu.memory_space<vmem>>, vector<256x8xf32>,
    %c16_i32 = arith.constant 16 : i32
    %27 = tpu.dynamic_rotate %2 by %c16_i32 dim 0 : vector<256x8xf32>, i32 -> vector<256x8xf32>
    %c1_i32_19 = arith.constant 1 : i32
    %28 = vector.broadcast %c1_i32_19 : i32 to vector<256x8xi32>
    %29 = arith.cmpi sge, %4, %28 : vector<256x8xi32>
    %cst_20 = arith.constant 0.000000e+00 : f32
    %30 = vector.broadcast %cst_20 : f32 to vector<256x8xf32>
    %31 = arith.select %29, %27, %30 : vector<256x8xi1>, vector<256x8xf32>
    %c0_21 = arith.constant 0 : index
    %c0_22 = arith.constant 0 : index
    %32 = vector.load %arg5[%c0_21, %c0_22] : memref<256x8xf32, #tpu.memory_space<vmem>>, vector<256x8xf32>
    %33 = arith.truncf %31 : vector<256x8xf32> to vector<256x8xbf16>
    %c0_23 = arith.constant 0 : index
    %c1_24 = arith.constant 1 : index
    %c0_25 = arith.constant 0 : index
    %c0_26 = arith.constant 0 : index
    %34 = vector.load %arg2[%c0_23, %c1_24, %c0_25, %c0_26] : memref<3x3x8x8xbf16, #tpu.memory_space<vmem>>, vector<1x1x8x8xbf16>
    %35 = vector.shape_cast %34 : vector<1x1x8x8xbf16> to vector<8x8xbf16>
    %cst_27 = arith.constant dense<0.000000e+00> : vector<256x8xf32>
    %36 = tpu.matmul %33, %35, %cst_27 {dimension_numbers = #tpu.dot_dimension_numbers<[1], [0], [0], [1], [0, 0, 1, 1], [], []>} : vector<256x8xbf16>, vector<8x8xbf16>, vector<256x8xf32> -> vector<256x8xf32>
    %37 = arith.addf %32, %36 : vector<256x8xf32>
    %c0_28 = arith.constant 0 : index
    %c0_29 = arith.constant 0 : index
    %38 = vector.load %arg5[%c0_28, %c0_29] : memref<256x8xf32, #tpu.memory_space<vmem>>, vector<256x8xf32>
    tpu.vector_store %arg5[%c0_28, %c0_29], %37 {strides = array<i32>} : memref<256x8xf32, #tpu.memory_space<vmem>>, vector<256x8xf32>,
    %c15_i32 = arith.constant 15 : i32
    %39 = tpu.dynamic_rotate %2 by %c15_i32 dim 0 : vector<256x8xf32>, i32 -> vector<256x8xf32>
    %c1_i32_30 = arith.constant 1 : i32
    %40 = vector.broadcast %c1_i32_30 : i32 to vector<256x8xi32>
    %41 = arith.cmpi sge, %4, %40 : vector<256x8xi32>
    %c14_i32 = arith.constant 14 : i32
    %42 = vector.broadcast %c14_i32 : i32 to vector<256x8xi32>
    %43 = arith.cmpi sle, %6, %42 : vector<256x8xi32>
    %44 = arith.andi %41, %43 : vector<256x8xi1>
    %cst_31 = arith.constant 0.000000e+00 : f32
    %45 = vector.broadcast %cst_31 : f32 to vector<256x8xf32>
    %46 = arith.select %44, %39, %45 : vector<256x8xi1>, vector<256x8xf32>
    %c0_32 = arith.constant 0 : index
    %c0_33 = arith.constant 0 : index
    %47 = vector.load %arg5[%c0_32, %c0_33] : memref<256x8xf32, #tpu.memory_space<vmem>>, vector<256x8xf32>
    %48 = arith.truncf %46 : vector<256x8xf32> to vector<256x8xbf16>
    %c0_34 = arith.constant 0 : index
    %c2 = arith.constant 2 : index
    %c0_35 = arith.constant 0 : index
    %c0_36 = arith.constant 0 : index
    %49 = vector.load %arg2[%c0_34, %c2, %c0_35, %c0_36] : memref<3x3x8x8xbf16, #tpu.memory_space<vmem>>, vector<1x1x8x8xbf16>
    %50 = vector.shape_cast %49 : vector<1x1x8x8xbf16> to vector<8x8xbf16>
    %cst_37 = arith.constant dense<0.000000e+00> : vector<256x8xf32>
    %51 = tpu.matmul %48, %50, %cst_37 {dimension_numbers = #tpu.dot_dimension_numbers<[1], [0], [0], [1], [0, 0, 1, 1], [], []>} : vector<256x8xbf16>, vector<8x8xbf16>, vector<256x8xf32> -> vector<256x8xf32>
    %52 = arith.addf %47, %51 : vector<256x8xf32>
    %c0_38 = arith.constant 0 : index
    %c0_39 = arith.constant 0 : index
    %53 = vector.load %arg5[%c0_38, %c0_39] : memref<256x8xf32, #tpu.memory_space<vmem>>, vector<256x8xf32>
    tpu.vector_store %arg5[%c0_38, %c0_39], %52 {strides = array<i32>} : memref<256x8xf32, #tpu.memory_space<vmem>>, vector<256x8xf32>,
    %c1_i32_40 = arith.constant 1 : i32
    %54 = tpu.dynamic_rotate %2 by %c1_i32_40 dim 0 : vector<256x8xf32>, i32 -> vector<256x8xf32>
    %c1_i32_41 = arith.constant 1 : i32
    %55 = vector.broadcast %c1_i32_41 : i32 to vector<256x8xi32>
    %56 = arith.cmpi sge, %6, %55 : vector<256x8xi32>
    %cst_42 = arith.constant 0.000000e+00 : f32
    %57 = vector.broadcast %cst_42 : f32 to vector<256x8xf32>
    %58 = arith.select %56, %54, %57 : vector<256x8xi1>, vector<256x8xf32>
    %c0_43 = arith.constant 0 : index
    %c0_44 = arith.constant 0 : index
    %59 = vector.load %arg5[%c0_43, %c0_44] : memref<256x8xf32, #tpu.memory_space<vmem>>, vector<256x8xf32>
    %60 = arith.truncf %58 : vector<256x8xf32> to vector<256x8xbf16>
    %c1_45 = arith.constant 1 : index
    %c0_46 = arith.constant 0 : index
    %c0_47 = arith.constant 0 : index
    %c0_48 = arith.constant 0 : index
    %61 = vector.load %arg2[%c1_45, %c0_46, %c0_47, %c0_48] : memref<3x3x8x8xbf16, #tpu.memory_space<vmem>>, vector<1x1x8x8xbf16>
    %62 = vector.shape_cast %61 : vector<1x1x8x8xbf16> to vector<8x8xbf16>
    %cst_49 = arith.constant dense<0.000000e+00> : vector<256x8xf32>
    %63 = tpu.matmul %60, %62, %cst_49 {dimension_numbers = #tpu.dot_dimension_numbers<[1], [0], [0], [1], [0, 0, 1, 1], [], []>} : vector<256x8xbf16>, vector<8x8xbf16>, vector<256x8xf32> -> vector<256x8xf32>
    %64 = arith.addf %59, %63 : vector<256x8xf32>
    %c0_50 = arith.constant 0 : index
    %c0_51 = arith.constant 0 : index
    %65 = vector.load %arg5[%c0_50, %c0_51] : memref<256x8xf32, #tpu.memory_space<vmem>>, vector<256x8xf32>
    tpu.vector_store %arg5[%c0_50, %c0_51], %64 {strides = array<i32>} : memref<256x8xf32, #tpu.memory_space<vmem>>, vector<256x8xf32>,
    %c255_i32 = arith.constant 255 : i32
    %66 = tpu.dynamic_rotate %2 by %c255_i32 dim 0 : vector<256x8xf32>, i32 -> vector<256x8xf32>
    %c14_i32_52 = arith.constant 14 : i32
    %67 = vector.broadcast %c14_i32_52 : i32 to vector<256x8xi32>
    %68 = arith.cmpi sle, %6, %67 : vector<256x8xi32>
    %cst_53 = arith.constant 0.000000e+00 : f32
    %69 = vector.broadcast %cst_53 : f32 to vector<256x8xf32>
    %70 = arith.select %68, %66, %69 : vector<256x8xi1>, vector<256x8xf32>
    %c0_54 = arith.constant 0 : index
    %c0_55 = arith.constant 0 : index
    %71 = vector.load %arg5[%c0_54, %c0_55] : memref<256x8xf32, #tpu.memory_space<vmem>>, vector<256x8xf32>
    %72 = arith.truncf %70 : vector<256x8xf32> to vector<256x8xbf16>
    %c1_56 = arith.constant 1 : index
    %c2_57 = arith.constant 2 : index
    %c0_58 = arith.constant 0 : index
    %c0_59 = arith.constant 0 : index
    %73 = vector.load %arg2[%c1_56, %c2_57, %c0_58, %c0_59] : memref<3x3x8x8xbf16, #tpu.memory_space<vmem>>, vector<1x1x8x8xbf16>
    %74 = vector.shape_cast %73 : vector<1x1x8x8xbf16> to vector<8x8xbf16>
    %cst_60 = arith.constant dense<0.000000e+00> : vector<256x8xf32>
    %75 = tpu.matmul %72, %74, %cst_60 {dimension_numbers = #tpu.dot_dimension_numbers<[1], [0], [0], [1], [0, 0, 1, 1], [], []>} : vector<256x8xbf16>, vector<8x8xbf16>, vector<256x8xf32> -> vector<256x8xf32>
    %76 = arith.addf %71, %75 : vector<256x8xf32>
    %c0_61 = arith.constant 0 : index
    %c0_62 = arith.constant 0 : index
    %77 = vector.load %arg5[%c0_61, %c0_62] : memref<256x8xf32, #tpu.memory_space<vmem>>, vector<256x8xf32>
    tpu.vector_store %arg5[%c0_61, %c0_62], %76 {strides = array<i32>} : memref<256x8xf32, #tpu.memory_space<vmem>>, vector<256x8xf32>,
    %c241_i32 = arith.constant 241 : i32
    %78 = tpu.dynamic_rotate %2 by %c241_i32 dim 0 : vector<256x8xf32>, i32 -> vector<256x8xf32>
    %c14_i32_63 = arith.constant 14 : i32
    %79 = vector.broadcast %c14_i32_63 : i32 to vector<256x8xi32>
    %80 = arith.cmpi sle, %4, %79 : vector<256x8xi32>
    %c1_i32_64 = arith.constant 1 : i32
    %81 = vector.broadcast %c1_i32_64 : i32 to vector<256x8xi32>
    %82 = arith.cmpi sge, %6, %81 : vector<256x8xi32>
    %83 = arith.andi %80, %82 : vector<256x8xi1>
    %cst_65 = arith.constant 0.000000e+00 : f32
    %84 = vector.broadcast %cst_65 : f32 to vector<256x8xf32>
    %85 = arith.select %83, %78, %84 : vector<256x8xi1>, vector<256x8xf32>
    %c0_66 = arith.constant 0 : index
    %c0_67 = arith.constant 0 : index
    %86 = vector.load %arg5[%c0_66, %c0_67] : memref<256x8xf32, #tpu.memory_space<vmem>>, vector<256x8xf32>
    %87 = arith.truncf %85 : vector<256x8xf32> to vector<256x8xbf16>
    %c2_68 = arith.constant 2 : index
    %c0_69 = arith.constant 0 : index
    %c0_70 = arith.constant 0 : index
    %c0_71 = arith.constant 0 : index
    %88 = vector.load %arg2[%c2_68, %c0_69, %c0_70, %c0_71] : memref<3x3x8x8xbf16, #tpu.memory_space<vmem>>, vector<1x1x8x8xbf16>
    %89 = vector.shape_cast %88 : vector<1x1x8x8xbf16> to vector<8x8xbf16>
    %cst_72 = arith.constant dense<0.000000e+00> : vector<256x8xf32>
    %90 = tpu.matmul %87, %89, %cst_72 {dimension_numbers = #tpu.dot_dimension_numbers<[1], [0], [0], [1], [0, 0, 1, 1], [], []>} : vector<256x8xbf16>, vector<8x8xbf16>, vector<256x8xf32> -> vector<256x8xf32>
    %91 = arith.addf %86, %90 : vector<256x8xf32>
    %c0_73 = arith.constant 0 : index
    %c0_74 = arith.constant 0 : index
    %92 = vector.load %arg5[%c0_73, %c0_74] : memref<256x8xf32, #tpu.memory_space<vmem>>, vector<256x8xf32>
    tpu.vector_store %arg5[%c0_73, %c0_74], %91 {strides = array<i32>} : memref<256x8xf32, #tpu.memory_space<vmem>>, vector<256x8xf32>,
    %c240_i32 = arith.constant 240 : i32
    %93 = tpu.dynamic_rotate %2 by %c240_i32 dim 0 : vector<256x8xf32>, i32 -> vector<256x8xf32>
    %c14_i32_75 = arith.constant 14 : i32
    %94 = vector.broadcast %c14_i32_75 : i32 to vector<256x8xi32>
    %95 = arith.cmpi sle, %4, %94 : vector<256x8xi32>
    %cst_76 = arith.constant 0.000000e+00 : f32
    %96 = vector.broadcast %cst_76 : f32 to vector<256x8xf32>
    %97 = arith.select %95, %93, %96 : vector<256x8xi1>, vector<256x8xf32>
    %c0_77 = arith.constant 0 : index
    %c0_78 = arith.constant 0 : index
    %98 = vector.load %arg5[%c0_77, %c0_78] : memref<256x8xf32, #tpu.memory_space<vmem>>, vector<256x8xf32>
    %99 = arith.truncf %97 : vector<256x8xf32> to vector<256x8xbf16>
    %c2_79 = arith.constant 2 : index
    %c1_80 = arith.constant 1 : index
    %c0_81 = arith.constant 0 : index
    %c0_82 = arith.constant 0 : index
    %100 = vector.load %arg2[%c2_79, %c1_80, %c0_81, %c0_82] : memref<3x3x8x8xbf16, #tpu.memory_space<vmem>>, vector<1x1x8x8xbf16>
    %101 = vector.shape_cast %100 : vector<1x1x8x8xbf16> to vector<8x8xbf16>
    %cst_83 = arith.constant dense<0.000000e+00> : vector<256x8xf32>
    %102 = tpu.matmul %99, %101, %cst_83 {dimension_numbers = #tpu.dot_dimension_numbers<[1], [0], [0], [1], [0, 0, 1, 1], [], []>} : vector<256x8xbf16>, vector<8x8xbf16>, vector<256x8xf32> -> vector<256x8xf32>
    %103 = arith.addf %98, %102 : vector<256x8xf32>
    %c0_84 = arith.constant 0 : index
    %c0_85 = arith.constant 0 : index
    %104 = vector.load %arg5[%c0_84, %c0_85] : memref<256x8xf32, #tpu.memory_space<vmem>>, vector<256x8xf32>
    tpu.vector_store %arg5[%c0_84, %c0_85], %103 {strides = array<i32>} : memref<256x8xf32, #tpu.memory_space<vmem>>, vector<256x8xf32>,
    %c239_i32 = arith.constant 239 : i32
    %105 = tpu.dynamic_rotate %2 by %c239_i32 dim 0 : vector<256x8xf32>, i32 -> vector<256x8xf32>
    %c14_i32_86 = arith.constant 14 : i32
    %106 = vector.broadcast %c14_i32_86 : i32 to vector<256x8xi32>
    %107 = arith.cmpi sle, %4, %106 : vector<256x8xi32>
    %c14_i32_87 = arith.constant 14 : i32
    %108 = vector.broadcast %c14_i32_87 : i32 to vector<256x8xi32>
    %109 = arith.cmpi sle, %6, %108 : vector<256x8xi32>
    %110 = arith.andi %107, %109 : vector<256x8xi1>
    %cst_88 = arith.constant 0.000000e+00 : f32
    %111 = vector.broadcast %cst_88 : f32 to vector<256x8xf32>
    %112 = arith.select %110, %105, %111 : vector<256x8xi1>, vector<256x8xf32>
    %c0_89 = arith.constant 0 : index
    %c0_90 = arith.constant 0 : index
    %113 = vector.load %arg5[%c0_89, %c0_90] : memref<256x8xf32, #tpu.memory_space<vmem>>, vector<256x8xf32>
    %114 = arith.truncf %112 : vector<256x8xf32> to vector<256x8xbf16>
    %c2_91 = arith.constant 2 : index
    %c2_92 = arith.constant 2 : index
    %c0_93 = arith.constant 0 : index
    %c0_94 = arith.constant 0 : index
    %115 = vector.load %arg2[%c2_91, %c2_92, %c0_93, %c0_94] : memref<3x3x8x8xbf16, #tpu.memory_space<vmem>>, vector<1x1x8x8xbf16>
    %116 = vector.shape_cast %115 : vector<1x1x8x8xbf16> to vector<8x8xbf16>
    %cst_95 = arith.constant dense<0.000000e+00> : vector<256x8xf32>
    %117 = tpu.matmul %114, %116, %cst_95 {dimension_numbers = #tpu.dot_dimension_numbers<[1], [0], [0], [1], [0, 0, 1, 1], [], []>} : vector<256x8xbf16>, vector<8x8xbf16>, vector<256x8xf32> -> vector<256x8xf32>
    %118 = arith.addf %113, %117 : vector<256x8xf32>
    %c0_96 = arith.constant 0 : index
    %c0_97 = arith.constant 0 : index
    %119 = vector.load %arg5[%c0_96, %c0_97] : memref<256x8xf32, #tpu.memory_space<vmem>>, vector<256x8xf32>
    tpu.vector_store %arg5[%c0_96, %c0_97], %118 {strides = array<i32>} : memref<256x8xf32, #tpu.memory_space<vmem>>, vector<256x8xf32>,
    %c0_98 = arith.constant 0 : index
    %c0_99 = arith.constant 0 : index
    %120 = vector.load %arg5[%c0_98, %c0_99] : memref<256x8xf32, #tpu.memory_space<vmem>>, vector<256x8xf32>
    %121 = vector.shape_cast %120 : vector<256x8xf32> to vector<1x16x16x8xf32>
    %122 = arith.truncf %121 : vector<1x16x16x8xf32> to vector<1x16x16x8xbf16>
    %c0_100 = arith.constant 0 : index
    %c0_101 = arith.constant 0 : index
    %c0_102 = arith.constant 0 : index
    %c0_103 = arith.constant 0 : index
    %123 = vector.load %arg3[%c0_100, %c0_101, %c0_102, %c0_103] : memref<1x16x16x8xbf16, #tpu.memory_space<vmem>>, vector<1x16x16x8xbf16>
    tpu.vector_store %arg3[%c0_100, %c0_101, %c0_102, %c0_103], %122 {strides = array<i32>} : memref<1x16x16x8xbf16, #tpu.memory_space<vmem>>, vector<1x16x16x8xbf16>,
    %cst_104 = arith.constant dense<0.000000e+00> : vector<8xf32>
    %124 = vector.multi_reduction <add>, %120, %cst_104 [0] : vector<256x8xf32> to vector<8xf32>
    %125 = vector.shape_cast %124 : vector<8xf32> to vector<1x8xf32>
    %cst_105 = arith.constant 3.906250e-03 : f32
    %126 = vector.broadcast %cst_105 : f32 to vector<1x8xf32>
    %127 = arith.mulf %125, %126 : vector<1x8xf32>
    %128 = vector.broadcast %127 : vector<1x8xf32> to vector<256x8xf32>
    %129 = arith.subf %120, %128 : vector<256x8xf32>
    %130 = arith.mulf %129, %129 : vector<256x8xf32>
    %cst_106 = arith.constant dense<0.000000e+00> : vector<8xf32>
    %131 = vector.multi_reduction <add>, %130, %cst_106 [0] : vector<256x8xf32> to vector<8xf32>
    %132 = vector.shape_cast %131 : vector<8xf32> to vector<1x8xf32>
    %133 = tpu.concatenate %125, %132 in 0 : vector<1x8xf32>, vector<1x8xf32> -> vector<2x8xf32>
    %134 = vector.shape_cast %133 : vector<2x8xf32> to vector<1x2x8xf32>
    %c0_107 = arith.constant 0 : index
    %c0_108 = arith.constant 0 : index
    %c0_109 = arith.constant 0 : index
    %135 = vector.load %arg4[%c0_107, %c0_108, %c0_109] : memref<1x2x8xf32, #tpu.memory_space<vmem>>, vector<1x2x8xf32>
    tpu.vector_store %arg4[%c0_107, %c0_108, %c0_109], %134 {strides = array<i32>} : memref<1x2x8xf32, #tpu.memory_space<vmem>>, vector<1x2x8xf32>,
    return
  }
  func.func @transform_0(%arg0: i32) -> (i32, i32, i32, i32) {
    %c0_i32 = arith.constant 0 : i32
    %c0_i32_0 = arith.constant 0 : i32
    %c0_i32_1 = arith.constant 0 : i32
    %c0_i32_2 = arith.constant 0 : i32
    return %arg0, %c0_i32, %c0_i32_0, %c0_i32_1 : i32, i32, i32, i32
  }
  func.func @transform_1(%arg0: i32) -> (i32, i32, i32, i32) {
    %c0_i32 = arith.constant 0 : i32
    %c0_i32_0 = arith.constant 0 : i32
    %c0_i32_1 = arith.constant 0 : i32
    %c0_i32_2 = arith.constant 0 : i32
    %c0_i32_3 = arith.constant 0 : i32
    return %c0_i32, %c0_i32_0, %c0_i32_1, %c0_i32_2 : i32, i32, i32, i32
  }
  func.func @transform_2(%arg0: i32) -> (i32, i32, i32, i32) {
    %c0_i32 = arith.constant 0 : i32
    %c0_i32_0 = arith.constant 0 : i32
    %c0_i32_1 = arith.constant 0 : i32
    %c0_i32_2 = arith.constant 0 : i32
    return %arg0, %c0_i32, %c0_i32_0, %c0_i32_1 : i32, i32, i32, i32
  }
  func.func @transform_3(%arg0: i32) -> (i32, i32, i32) {
    %c0_i32 = arith.constant 0 : i32
    %c0_i32_0 = arith.constant 0 : i32
    %c0_i32_1 = arith.constant 0 : i32
    return %arg0, %c0_i32, %c0_i32_0 : i32, i32, i32
  }
}

module attributes {stable_mosaic.version = 11 : i64} {
  func.func @_bn_add_relu_kernel(%arg0: i32, %arg1: memref<1x16x16x8xbf16, #tpu.memory_space<vmem>>, %arg2: memref<1x8xf32, #tpu.memory_space<vmem>>, %arg3: memref<1x8xf32, #tpu.memory_space<vmem>>, %arg4: memref<1x16x16x8xf32, #tpu.memory_space<vmem>>, %arg5: memref<1x16x16x8xf32, #tpu.memory_space<vmem>>) attributes {dimension_semantics = [#tpu.dimension_semantics<parallel>], iteration_bounds = array<i64: 2>, scalar_prefetch = 0 : i64, scratch_operands = 0 : i64, tpu.core_type = #tpu.core_type<tc>, window_params = [{transform_indices = @transform_0, window_bounds = array<i64: 1, 16, 16, 8>}, {pipeline_mode = #tpu.pipeline_mode<synchronous>, transform_indices = @transform_1, window_bounds = array<i64: 1, 8>}, {pipeline_mode = #tpu.pipeline_mode<synchronous>, transform_indices = @transform_2, window_bounds = array<i64: 1, 8>}, {transform_indices = @transform_3, window_bounds = array<i64: 1, 16, 16, 8>}, {transform_indices = @transform_4, window_bounds = array<i64: 1, 16, 16, 8>}]} {
    %c0 = arith.constant 0 : index
    %c0_0 = arith.constant 0 : index
    %c0_1 = arith.constant 0 : index
    %c0_2 = arith.constant 0 : index
    %0 = vector.load %arg1[%c0, %c0_0, %c0_1, %c0_2] : memref<1x16x16x8xbf16, #tpu.memory_space<vmem>>, vector<1x16x16x8xbf16>
    %1 = arith.extf %0 : vector<1x16x16x8xbf16> to vector<1x16x16x8xf32>
    %c0_3 = arith.constant 0 : index
    %c0_4 = arith.constant 0 : index
    %2 = vector.load %arg2[%c0_3, %c0_4] : memref<1x8xf32, #tpu.memory_space<vmem>>, vector<1x8xf32>
    %3 = vector.shape_cast %2 : vector<1x8xf32> to vector<1x1x1x8xf32>
    %4 = vector.broadcast %3 : vector<1x1x1x8xf32> to vector<1x16x16x8xf32>
    %5 = arith.mulf %1, %4 : vector<1x16x16x8xf32>
    %c0_5 = arith.constant 0 : index
    %c0_6 = arith.constant 0 : index
    %6 = vector.load %arg3[%c0_5, %c0_6] : memref<1x8xf32, #tpu.memory_space<vmem>>, vector<1x8xf32>
    %7 = vector.shape_cast %6 : vector<1x8xf32> to vector<1x1x1x8xf32>
    %8 = vector.broadcast %7 : vector<1x1x1x8xf32> to vector<1x16x16x8xf32>
    %9 = arith.addf %5, %8 : vector<1x16x16x8xf32>
    %c0_7 = arith.constant 0 : index
    %c0_8 = arith.constant 0 : index
    %c0_9 = arith.constant 0 : index
    %c0_10 = arith.constant 0 : index
    %10 = vector.load %arg4[%c0_7, %c0_8, %c0_9, %c0_10] : memref<1x16x16x8xf32, #tpu.memory_space<vmem>>, vector<1x16x16x8xf32>
    %11 = arith.addf %9, %10 : vector<1x16x16x8xf32>
    %cst = arith.constant 0.000000e+00 : f32
    %12 = vector.broadcast %cst : f32 to vector<1x16x16x8xf32>
    %13 = arith.maximumf %11, %12 : vector<1x16x16x8xf32>
    %c0_11 = arith.constant 0 : index
    %c0_12 = arith.constant 0 : index
    %c0_13 = arith.constant 0 : index
    %c0_14 = arith.constant 0 : index
    %14 = vector.load %arg5[%c0_11, %c0_12, %c0_13, %c0_14] : memref<1x16x16x8xf32, #tpu.memory_space<vmem>>, vector<1x16x16x8xf32>
    tpu.vector_store %arg5[%c0_11, %c0_12, %c0_13, %c0_14], %13 {strides = array<i32>} : memref<1x16x16x8xf32, #tpu.memory_space<vmem>>, vector<1x16x16x8xf32>,
    return
  }
  func.func @transform_0(%arg0: i32) -> (i32, i32, i32, i32) {
    %c0_i32 = arith.constant 0 : i32
    %c0_i32_0 = arith.constant 0 : i32
    %c0_i32_1 = arith.constant 0 : i32
    %c0_i32_2 = arith.constant 0 : i32
    return %arg0, %c0_i32, %c0_i32_0, %c0_i32_1 : i32, i32, i32, i32
  }
  func.func @transform_1(%arg0: i32) -> (i32, i32) {
    %c0_i32 = arith.constant 0 : i32
    %c0_i32_0 = arith.constant 0 : i32
    %c0_i32_1 = arith.constant 0 : i32
    return %c0_i32, %c0_i32_0 : i32, i32
  }
  func.func @transform_2(%arg0: i32) -> (i32, i32) {
    %c0_i32 = arith.constant 0 : i32
    %c0_i32_0 = arith.constant 0 : i32
    %c0_i32_1 = arith.constant 0 : i32
    return %c0_i32, %c0_i32_0 : i32, i32
  }
  func.func @transform_3(%arg0: i32) -> (i32, i32, i32, i32) {
    %c0_i32 = arith.constant 0 : i32
    %c0_i32_0 = arith.constant 0 : i32
    %c0_i32_1 = arith.constant 0 : i32
    %c0_i32_2 = arith.constant 0 : i32
    return %arg0, %c0_i32, %c0_i32_0, %c0_i32_1 : i32, i32, i32, i32
  }
  func.func @transform_4(%arg0: i32) -> (i32, i32, i32, i32) {
    %c0_i32 = arith.constant 0 : i32
    %c0_i32_0 = arith.constant 0 : i32
    %c0_i32_1 = arith.constant 0 : i32
    %c0_i32_2 = arith.constant 0 : i32
    return %arg0, %c0_i32, %c0_i32_0, %c0_i32_1 : i32, i32, i32, i32
  }
}

module attributes {stable_mosaic.version = 11 : i64} {
  func.func @_bn_relu_conv2_stats_kernel(%arg0: i32, %arg1: memref<1x16x16x8xbf16, #tpu.memory_space<vmem>>, %arg2: memref<1x8xf32, #tpu.memory_space<vmem>>, %arg3: memref<1x8xf32, #tpu.memory_space<vmem>>, %arg4: memref<3x3x8x8xbf16, #tpu.memory_space<vmem>>, %arg5: memref<1x16x16x8xbf16, #tpu.memory_space<vmem>>, %arg6: memref<1x2x8xf32, #tpu.memory_space<vmem>>, %arg7: memref<256x8xf32, #tpu.memory_space<vmem>>) attributes {dimension_semantics = [#tpu.dimension_semantics<parallel>], iteration_bounds = array<i64: 2>, scalar_prefetch = 0 : i64, scratch_operands = 1 : i64, tpu.core_type = #tpu.core_type<tc>, window_params = [{transform_indices = @transform_0, window_bounds = array<i64: 1, 16, 16, 8>}, {pipeline_mode = #tpu.pipeline_mode<synchronous>, transform_indices = @transform_1, window_bounds = array<i64: 1, 8>}, {pipeline_mode = #tpu.pipeline_mode<synchronous>, transform_indices = @transform_2, window_bounds = array<i64: 1, 8>}, {pipeline_mode = #tpu.pipeline_mode<synchronous>, transform_indices = @transform_3, window_bounds = array<i64: 3, 3, 8, 8>}, {transform_indices = @transform_4, window_bounds = array<i64: 1, 16, 16, 8>}, {transform_indices = @transform_5, window_bounds = array<i64: 1, 2, 8>}]} {
    %c0 = arith.constant 0 : index
    %c0_0 = arith.constant 0 : index
    %c0_1 = arith.constant 0 : index
    %c0_2 = arith.constant 0 : index
    %0 = vector.load %arg1[%c0, %c0_0, %c0_1, %c0_2] : memref<1x16x16x8xbf16, #tpu.memory_space<vmem>>, vector<1x16x16x8xbf16>
    %1 = vector.shape_cast %0 : vector<1x16x16x8xbf16> to vector<16x16x8xbf16>
    %2 = vector.shape_cast %1 : vector<16x16x8xbf16> to vector<256x8xbf16>
    %3 = arith.extf %2 : vector<256x8xbf16> to vector<256x8xf32>
    %c0_3 = arith.constant 0 : index
    %c0_4 = arith.constant 0 : index
    %4 = vector.load %arg2[%c0_3, %c0_4] : memref<1x8xf32, #tpu.memory_space<vmem>>, vector<1x8xf32>
    %5 = vector.broadcast %4 : vector<1x8xf32> to vector<256x8xf32>
    %6 = arith.mulf %3, %5 : vector<256x8xf32>
    %c0_5 = arith.constant 0 : index
    %c0_6 = arith.constant 0 : index
    %7 = vector.load %arg3[%c0_5, %c0_6] : memref<1x8xf32, #tpu.memory_space<vmem>>, vector<1x8xf32>
    %8 = vector.broadcast %7 : vector<1x8xf32> to vector<256x8xf32>
    %9 = arith.addf %6, %8 : vector<256x8xf32>
    %cst = arith.constant 0.000000e+00 : f32
    %10 = vector.broadcast %cst : f32 to vector<256x8xf32>
    %11 = arith.maximumf %9, %10 : vector<256x8xf32>
    %12 = tpu.iota {dimensions = array<i32: 0>} : vector<16x16x8xi32>
    %13 = vector.shape_cast %12 : vector<16x16x8xi32> to vector<256x8xi32>
    %14 = tpu.iota {dimensions = array<i32: 1>} : vector<16x16x8xi32>
    %15 = vector.shape_cast %14 : vector<16x16x8xi32> to vector<256x8xi32>
    %16 = arith.truncf %11 : vector<256x8xf32> to vector<256x8xbf16>
    %c1 = arith.constant 1 : index
    %c1_7 = arith.constant 1 : index
    %c0_8 = arith.constant 0 : index
    %c0_9 = arith.constant 0 : index
    %17 = vector.load %arg4[%c1, %c1_7, %c0_8, %c0_9] : memref<3x3x8x8xbf16, #tpu.memory_space<vmem>>, vector<1x1x8x8xbf16>
    %18 = vector.shape_cast %17 : vector<1x1x8x8xbf16> to vector<8x8xbf16>
    %cst_10 = arith.constant dense<0.000000e+00> : vector<256x8xf32>
    %19 = tpu.matmul %16, %18, %cst_10 {dimension_numbers = #tpu.dot_dimension_numbers<[1], [0], [0], [1], [0, 0, 1, 1], [], []>} : vector<256x8xbf16>, vector<8x8xbf16>, vector<256x8xf32> -> vector<256x8xf32>
    %c0_11 = arith.constant 0 : index
    %c0_12 = arith.constant 0 : index
    %20 = vector.load %arg7[%c0_11, %c0_12] : memref<256x8xf32, #tpu.memory_space<vmem>>, vector<256x8xf32>
    tpu.vector_store %arg7[%c0_11, %c0_12], %19 {strides = array<i32>} : memref<256x8xf32, #tpu.memory_space<vmem>>, vector<256x8xf32>,
    %c17_i32 = arith.constant 17 : i32
    %21 = tpu.dynamic_rotate %11 by %c17_i32 dim 0 : vector<256x8xf32>, i32 -> vector<256x8xf32>
    %c1_i32 = arith.constant 1 : i32
    %22 = vector.broadcast %c1_i32 : i32 to vector<256x8xi32>
    %23 = arith.cmpi sge, %13, %22 : vector<256x8xi32>
    %c1_i32_13 = arith.constant 1 : i32
    %24 = vector.broadcast %c1_i32_13 : i32 to vector<256x8xi32>
    %25 = arith.cmpi sge, %15, %24 : vector<256x8xi32>
    %26 = arith.andi %23, %25 : vector<256x8xi1>
    %cst_14 = arith.constant 0.000000e+00 : f32
    %27 = vector.broadcast %cst_14 : f32 to vector<256x8xf32>
    %28 = arith.select %26, %21, %27 : vector<256x8xi1>, vector<256x8xf32>
    %c0_15 = arith.constant 0 : index
    %c0_16 = arith.constant 0 : index
    %29 = vector.load %arg7[%c0_15, %c0_16] : memref<256x8xf32, #tpu.memory_space<vmem>>, vector<256x8xf32>
    %30 = arith.truncf %28 : vector<256x8xf32> to vector<256x8xbf16>
    %c0_17 = arith.constant 0 : index
    %c0_18 = arith.constant 0 : index
    %c0_19 = arith.constant 0 : index
    %c0_20 = arith.constant 0 : index
    %31 = vector.load %arg4[%c0_17, %c0_18, %c0_19, %c0_20] : memref<3x3x8x8xbf16, #tpu.memory_space<vmem>>, vector<1x1x8x8xbf16>
    %32 = vector.shape_cast %31 : vector<1x1x8x8xbf16> to vector<8x8xbf16>
    %cst_21 = arith.constant dense<0.000000e+00> : vector<256x8xf32>
    %33 = tpu.matmul %30, %32, %cst_21 {dimension_numbers = #tpu.dot_dimension_numbers<[1], [0], [0], [1], [0, 0, 1, 1], [], []>} : vector<256x8xbf16>, vector<8x8xbf16>, vector<256x8xf32> -> vector<256x8xf32>
    %34 = arith.addf %29, %33 : vector<256x8xf32>
    %c0_22 = arith.constant 0 : index
    %c0_23 = arith.constant 0 : index
    %35 = vector.load %arg7[%c0_22, %c0_23] : memref<256x8xf32, #tpu.memory_space<vmem>>, vector<256x8xf32>
    tpu.vector_store %arg7[%c0_22, %c0_23], %34 {strides = array<i32>} : memref<256x8xf32, #tpu.memory_space<vmem>>, vector<256x8xf32>,
    %c16_i32 = arith.constant 16 : i32
    %36 = tpu.dynamic_rotate %11 by %c16_i32 dim 0 : vector<256x8xf32>, i32 -> vector<256x8xf32>
    %c1_i32_24 = arith.constant 1 : i32
    %37 = vector.broadcast %c1_i32_24 : i32 to vector<256x8xi32>
    %38 = arith.cmpi sge, %13, %37 : vector<256x8xi32>
    %cst_25 = arith.constant 0.000000e+00 : f32
    %39 = vector.broadcast %cst_25 : f32 to vector<256x8xf32>
    %40 = arith.select %38, %36, %39 : vector<256x8xi1>, vector<256x8xf32>
    %c0_26 = arith.constant 0 : index
    %c0_27 = arith.constant 0 : index
    %41 = vector.load %arg7[%c0_26, %c0_27] : memref<256x8xf32, #tpu.memory_space<vmem>>, vector<256x8xf32>
    %42 = arith.truncf %40 : vector<256x8xf32> to vector<256x8xbf16>
    %c0_28 = arith.constant 0 : index
    %c1_29 = arith.constant 1 : index
    %c0_30 = arith.constant 0 : index
    %c0_31 = arith.constant 0 : index
    %43 = vector.load %arg4[%c0_28, %c1_29, %c0_30, %c0_31] : memref<3x3x8x8xbf16, #tpu.memory_space<vmem>>, vector<1x1x8x8xbf16>
    %44 = vector.shape_cast %43 : vector<1x1x8x8xbf16> to vector<8x8xbf16>
    %cst_32 = arith.constant dense<0.000000e+00> : vector<256x8xf32>
    %45 = tpu.matmul %42, %44, %cst_32 {dimension_numbers = #tpu.dot_dimension_numbers<[1], [0], [0], [1], [0, 0, 1, 1], [], []>} : vector<256x8xbf16>, vector<8x8xbf16>, vector<256x8xf32> -> vector<256x8xf32>
    %46 = arith.addf %41, %45 : vector<256x8xf32>
    %c0_33 = arith.constant 0 : index
    %c0_34 = arith.constant 0 : index
    %47 = vector.load %arg7[%c0_33, %c0_34] : memref<256x8xf32, #tpu.memory_space<vmem>>, vector<256x8xf32>
    tpu.vector_store %arg7[%c0_33, %c0_34], %46 {strides = array<i32>} : memref<256x8xf32, #tpu.memory_space<vmem>>, vector<256x8xf32>,
    %c15_i32 = arith.constant 15 : i32
    %48 = tpu.dynamic_rotate %11 by %c15_i32 dim 0 : vector<256x8xf32>, i32 -> vector<256x8xf32>
    %c1_i32_35 = arith.constant 1 : i32
    %49 = vector.broadcast %c1_i32_35 : i32 to vector<256x8xi32>
    %50 = arith.cmpi sge, %13, %49 : vector<256x8xi32>
    %c14_i32 = arith.constant 14 : i32
    %51 = vector.broadcast %c14_i32 : i32 to vector<256x8xi32>
    %52 = arith.cmpi sle, %15, %51 : vector<256x8xi32>
    %53 = arith.andi %50, %52 : vector<256x8xi1>
    %cst_36 = arith.constant 0.000000e+00 : f32
    %54 = vector.broadcast %cst_36 : f32 to vector<256x8xf32>
    %55 = arith.select %53, %48, %54 : vector<256x8xi1>, vector<256x8xf32>
    %c0_37 = arith.constant 0 : index
    %c0_38 = arith.constant 0 : index
    %56 = vector.load %arg7[%c0_37, %c0_38] : memref<256x8xf32, #tpu.memory_space<vmem>>, vector<256x8xf32>
    %57 = arith.truncf %55 : vector<256x8xf32> to vector<256x8xbf16>
    %c0_39 = arith.constant 0 : index
    %c2 = arith.constant 2 : index
    %c0_40 = arith.constant 0 : index
    %c0_41 = arith.constant 0 : index
    %58 = vector.load %arg4[%c0_39, %c2, %c0_40, %c0_41] : memref<3x3x8x8xbf16, #tpu.memory_space<vmem>>, vector<1x1x8x8xbf16>
    %59 = vector.shape_cast %58 : vector<1x1x8x8xbf16> to vector<8x8xbf16>
    %cst_42 = arith.constant dense<0.000000e+00> : vector<256x8xf32>
    %60 = tpu.matmul %57, %59, %cst_42 {dimension_numbers = #tpu.dot_dimension_numbers<[1], [0], [0], [1], [0, 0, 1, 1], [], []>} : vector<256x8xbf16>, vector<8x8xbf16>, vector<256x8xf32> -> vector<256x8xf32>
    %61 = arith.addf %56, %60 : vector<256x8xf32>
    %c0_43 = arith.constant 0 : index
    %c0_44 = arith.constant 0 : index
    %62 = vector.load %arg7[%c0_43, %c0_44] : memref<256x8xf32, #tpu.memory_space<vmem>>, vector<256x8xf32>
    tpu.vector_store %arg7[%c0_43, %c0_44], %61 {strides = array<i32>} : memref<256x8xf32, #tpu.memory_space<vmem>>, vector<256x8xf32>,
    %c1_i32_45 = arith.constant 1 : i32
    %63 = tpu.dynamic_rotate %11 by %c1_i32_45 dim 0 : vector<256x8xf32>, i32 -> vector<256x8xf32>
    %c1_i32_46 = arith.constant 1 : i32
    %64 = vector.broadcast %c1_i32_46 : i32 to vector<256x8xi32>
    %65 = arith.cmpi sge, %15, %64 : vector<256x8xi32>
    %cst_47 = arith.constant 0.000000e+00 : f32
    %66 = vector.broadcast %cst_47 : f32 to vector<256x8xf32>
    %67 = arith.select %65, %63, %66 : vector<256x8xi1>, vector<256x8xf32>
    %c0_48 = arith.constant 0 : index
    %c0_49 = arith.constant 0 : index
    %68 = vector.load %arg7[%c0_48, %c0_49] : memref<256x8xf32, #tpu.memory_space<vmem>>, vector<256x8xf32>
    %69 = arith.truncf %67 : vector<256x8xf32> to vector<256x8xbf16>
    %c1_50 = arith.constant 1 : index
    %c0_51 = arith.constant 0 : index
    %c0_52 = arith.constant 0 : index
    %c0_53 = arith.constant 0 : index
    %70 = vector.load %arg4[%c1_50, %c0_51, %c0_52, %c0_53] : memref<3x3x8x8xbf16, #tpu.memory_space<vmem>>, vector<1x1x8x8xbf16>
    %71 = vector.shape_cast %70 : vector<1x1x8x8xbf16> to vector<8x8xbf16>
    %cst_54 = arith.constant dense<0.000000e+00> : vector<256x8xf32>
    %72 = tpu.matmul %69, %71, %cst_54 {dimension_numbers = #tpu.dot_dimension_numbers<[1], [0], [0], [1], [0, 0, 1, 1], [], []>} : vector<256x8xbf16>, vector<8x8xbf16>, vector<256x8xf32> -> vector<256x8xf32>
    %73 = arith.addf %68, %72 : vector<256x8xf32>
    %c0_55 = arith.constant 0 : index
    %c0_56 = arith.constant 0 : index
    %74 = vector.load %arg7[%c0_55, %c0_56] : memref<256x8xf32, #tpu.memory_space<vmem>>, vector<256x8xf32>
    tpu.vector_store %arg7[%c0_55, %c0_56], %73 {strides = array<i32>} : memref<256x8xf32, #tpu.memory_space<vmem>>, vector<256x8xf32>,
    %c255_i32 = arith.constant 255 : i32
    %75 = tpu.dynamic_rotate %11 by %c255_i32 dim 0 : vector<256x8xf32>, i32 -> vector<256x8xf32>
    %c14_i32_57 = arith.constant 14 : i32
    %76 = vector.broadcast %c14_i32_57 : i32 to vector<256x8xi32>
    %77 = arith.cmpi sle, %15, %76 : vector<256x8xi32>
    %cst_58 = arith.constant 0.000000e+00 : f32
    %78 = vector.broadcast %cst_58 : f32 to vector<256x8xf32>
    %79 = arith.select %77, %75, %78 : vector<256x8xi1>, vector<256x8xf32>
    %c0_59 = arith.constant 0 : index
    %c0_60 = arith.constant 0 : index
    %80 = vector.load %arg7[%c0_59, %c0_60] : memref<256x8xf32, #tpu.memory_space<vmem>>, vector<256x8xf32>
    %81 = arith.truncf %79 : vector<256x8xf32> to vector<256x8xbf16>
    %c1_61 = arith.constant 1 : index
    %c2_62 = arith.constant 2 : index
    %c0_63 = arith.constant 0 : index
    %c0_64 = arith.constant 0 : index
    %82 = vector.load %arg4[%c1_61, %c2_62, %c0_63, %c0_64] : memref<3x3x8x8xbf16, #tpu.memory_space<vmem>>, vector<1x1x8x8xbf16>
    %83 = vector.shape_cast %82 : vector<1x1x8x8xbf16> to vector<8x8xbf16>
    %cst_65 = arith.constant dense<0.000000e+00> : vector<256x8xf32>
    %84 = tpu.matmul %81, %83, %cst_65 {dimension_numbers = #tpu.dot_dimension_numbers<[1], [0], [0], [1], [0, 0, 1, 1], [], []>} : vector<256x8xbf16>, vector<8x8xbf16>, vector<256x8xf32> -> vector<256x8xf32>
    %85 = arith.addf %80, %84 : vector<256x8xf32>
    %c0_66 = arith.constant 0 : index
    %c0_67 = arith.constant 0 : index
    %86 = vector.load %arg7[%c0_66, %c0_67] : memref<256x8xf32, #tpu.memory_space<vmem>>, vector<256x8xf32>
    tpu.vector_store %arg7[%c0_66, %c0_67], %85 {strides = array<i32>} : memref<256x8xf32, #tpu.memory_space<vmem>>, vector<256x8xf32>,
    %c241_i32 = arith.constant 241 : i32
    %87 = tpu.dynamic_rotate %11 by %c241_i32 dim 0 : vector<256x8xf32>, i32 -> vector<256x8xf32>
    %c14_i32_68 = arith.constant 14 : i32
    %88 = vector.broadcast %c14_i32_68 : i32 to vector<256x8xi32>
    %89 = arith.cmpi sle, %13, %88 : vector<256x8xi32>
    %c1_i32_69 = arith.constant 1 : i32
    %90 = vector.broadcast %c1_i32_69 : i32 to vector<256x8xi32>
    %91 = arith.cmpi sge, %15, %90 : vector<256x8xi32>
    %92 = arith.andi %89, %91 : vector<256x8xi1>
    %cst_70 = arith.constant 0.000000e+00 : f32
    %93 = vector.broadcast %cst_70 : f32 to vector<256x8xf32>
    %94 = arith.select %92, %87, %93 : vector<256x8xi1>, vector<256x8xf32>
    %c0_71 = arith.constant 0 : index
    %c0_72 = arith.constant 0 : index
    %95 = vector.load %arg7[%c0_71, %c0_72] : memref<256x8xf32, #tpu.memory_space<vmem>>, vector<256x8xf32>
    %96 = arith.truncf %94 : vector<256x8xf32> to vector<256x8xbf16>
    %c2_73 = arith.constant 2 : index
    %c0_74 = arith.constant 0 : index
    %c0_75 = arith.constant 0 : index
    %c0_76 = arith.constant 0 : index
    %97 = vector.load %arg4[%c2_73, %c0_74, %c0_75, %c0_76] : memref<3x3x8x8xbf16, #tpu.memory_space<vmem>>, vector<1x1x8x8xbf16>
    %98 = vector.shape_cast %97 : vector<1x1x8x8xbf16> to vector<8x8xbf16>
    %cst_77 = arith.constant dense<0.000000e+00> : vector<256x8xf32>
    %99 = tpu.matmul %96, %98, %cst_77 {dimension_numbers = #tpu.dot_dimension_numbers<[1], [0], [0], [1], [0, 0, 1, 1], [], []>} : vector<256x8xbf16>, vector<8x8xbf16>, vector<256x8xf32> -> vector<256x8xf32>
    %100 = arith.addf %95, %99 : vector<256x8xf32>
    %c0_78 = arith.constant 0 : index
    %c0_79 = arith.constant 0 : index
    %101 = vector.load %arg7[%c0_78, %c0_79] : memref<256x8xf32, #tpu.memory_space<vmem>>, vector<256x8xf32>
    tpu.vector_store %arg7[%c0_78, %c0_79], %100 {strides = array<i32>} : memref<256x8xf32, #tpu.memory_space<vmem>>, vector<256x8xf32>,
    %c240_i32 = arith.constant 240 : i32
    %102 = tpu.dynamic_rotate %11 by %c240_i32 dim 0 : vector<256x8xf32>, i32 -> vector<256x8xf32>
    %c14_i32_80 = arith.constant 14 : i32
    %103 = vector.broadcast %c14_i32_80 : i32 to vector<256x8xi32>
    %104 = arith.cmpi sle, %13, %103 : vector<256x8xi32>
    %cst_81 = arith.constant 0.000000e+00 : f32
    %105 = vector.broadcast %cst_81 : f32 to vector<256x8xf32>
    %106 = arith.select %104, %102, %105 : vector<256x8xi1>, vector<256x8xf32>
    %c0_82 = arith.constant 0 : index
    %c0_83 = arith.constant 0 : index
    %107 = vector.load %arg7[%c0_82, %c0_83] : memref<256x8xf32, #tpu.memory_space<vmem>>, vector<256x8xf32>
    %108 = arith.truncf %106 : vector<256x8xf32> to vector<256x8xbf16>
    %c2_84 = arith.constant 2 : index
    %c1_85 = arith.constant 1 : index
    %c0_86 = arith.constant 0 : index
    %c0_87 = arith.constant 0 : index
    %109 = vector.load %arg4[%c2_84, %c1_85, %c0_86, %c0_87] : memref<3x3x8x8xbf16, #tpu.memory_space<vmem>>, vector<1x1x8x8xbf16>
    %110 = vector.shape_cast %109 : vector<1x1x8x8xbf16> to vector<8x8xbf16>
    %cst_88 = arith.constant dense<0.000000e+00> : vector<256x8xf32>
    %111 = tpu.matmul %108, %110, %cst_88 {dimension_numbers = #tpu.dot_dimension_numbers<[1], [0], [0], [1], [0, 0, 1, 1], [], []>} : vector<256x8xbf16>, vector<8x8xbf16>, vector<256x8xf32> -> vector<256x8xf32>
    %112 = arith.addf %107, %111 : vector<256x8xf32>
    %c0_89 = arith.constant 0 : index
    %c0_90 = arith.constant 0 : index
    %113 = vector.load %arg7[%c0_89, %c0_90] : memref<256x8xf32, #tpu.memory_space<vmem>>, vector<256x8xf32>
    tpu.vector_store %arg7[%c0_89, %c0_90], %112 {strides = array<i32>} : memref<256x8xf32, #tpu.memory_space<vmem>>, vector<256x8xf32>,
    %c239_i32 = arith.constant 239 : i32
    %114 = tpu.dynamic_rotate %11 by %c239_i32 dim 0 : vector<256x8xf32>, i32 -> vector<256x8xf32>
    %c14_i32_91 = arith.constant 14 : i32
    %115 = vector.broadcast %c14_i32_91 : i32 to vector<256x8xi32>
    %116 = arith.cmpi sle, %13, %115 : vector<256x8xi32>
    %c14_i32_92 = arith.constant 14 : i32
    %117 = vector.broadcast %c14_i32_92 : i32 to vector<256x8xi32>
    %118 = arith.cmpi sle, %15, %117 : vector<256x8xi32>
    %119 = arith.andi %116, %118 : vector<256x8xi1>
    %cst_93 = arith.constant 0.000000e+00 : f32
    %120 = vector.broadcast %cst_93 : f32 to vector<256x8xf32>
    %121 = arith.select %119, %114, %120 : vector<256x8xi1>, vector<256x8xf32>
    %c0_94 = arith.constant 0 : index
    %c0_95 = arith.constant 0 : index
    %122 = vector.load %arg7[%c0_94, %c0_95] : memref<256x8xf32, #tpu.memory_space<vmem>>, vector<256x8xf32>
    %123 = arith.truncf %121 : vector<256x8xf32> to vector<256x8xbf16>
    %c2_96 = arith.constant 2 : index
    %c2_97 = arith.constant 2 : index
    %c0_98 = arith.constant 0 : index
    %c0_99 = arith.constant 0 : index
    %124 = vector.load %arg4[%c2_96, %c2_97, %c0_98, %c0_99] : memref<3x3x8x8xbf16, #tpu.memory_space<vmem>>, vector<1x1x8x8xbf16>
    %125 = vector.shape_cast %124 : vector<1x1x8x8xbf16> to vector<8x8xbf16>
    %cst_100 = arith.constant dense<0.000000e+00> : vector<256x8xf32>
    %126 = tpu.matmul %123, %125, %cst_100 {dimension_numbers = #tpu.dot_dimension_numbers<[1], [0], [0], [1], [0, 0, 1, 1], [], []>} : vector<256x8xbf16>, vector<8x8xbf16>, vector<256x8xf32> -> vector<256x8xf32>
    %127 = arith.addf %122, %126 : vector<256x8xf32>
    %c0_101 = arith.constant 0 : index
    %c0_102 = arith.constant 0 : index
    %128 = vector.load %arg7[%c0_101, %c0_102] : memref<256x8xf32, #tpu.memory_space<vmem>>, vector<256x8xf32>
    tpu.vector_store %arg7[%c0_101, %c0_102], %127 {strides = array<i32>} : memref<256x8xf32, #tpu.memory_space<vmem>>, vector<256x8xf32>,
    %c0_103 = arith.constant 0 : index
    %c0_104 = arith.constant 0 : index
    %129 = vector.load %arg7[%c0_103, %c0_104] : memref<256x8xf32, #tpu.memory_space<vmem>>, vector<256x8xf32>
    %130 = vector.shape_cast %129 : vector<256x8xf32> to vector<1x16x16x8xf32>
    %131 = arith.truncf %130 : vector<1x16x16x8xf32> to vector<1x16x16x8xbf16>
    %c0_105 = arith.constant 0 : index
    %c0_106 = arith.constant 0 : index
    %c0_107 = arith.constant 0 : index
    %c0_108 = arith.constant 0 : index
    %132 = vector.load %arg5[%c0_105, %c0_106, %c0_107, %c0_108] : memref<1x16x16x8xbf16, #tpu.memory_space<vmem>>, vector<1x16x16x8xbf16>
    tpu.vector_store %arg5[%c0_105, %c0_106, %c0_107, %c0_108], %131 {strides = array<i32>} : memref<1x16x16x8xbf16, #tpu.memory_space<vmem>>, vector<1x16x16x8xbf16>,
    %cst_109 = arith.constant dense<0.000000e+00> : vector<8xf32>
    %133 = vector.multi_reduction <add>, %129, %cst_109 [0] : vector<256x8xf32> to vector<8xf32>
    %134 = vector.shape_cast %133 : vector<8xf32> to vector<1x8xf32>
    %cst_110 = arith.constant 3.906250e-03 : f32
    %135 = vector.broadcast %cst_110 : f32 to vector<1x8xf32>
    %136 = arith.mulf %134, %135 : vector<1x8xf32>
    %137 = vector.broadcast %136 : vector<1x8xf32> to vector<256x8xf32>
    %138 = arith.subf %129, %137 : vector<256x8xf32>
    %139 = arith.mulf %138, %138 : vector<256x8xf32>
    %cst_111 = arith.constant dense<0.000000e+00> : vector<8xf32>
    %140 = vector.multi_reduction <add>, %139, %cst_111 [0] : vector<256x8xf32> to vector<8xf32>
    %141 = vector.shape_cast %140 : vector<8xf32> to vector<1x8xf32>
    %142 = tpu.concatenate %134, %141 in 0 : vector<1x8xf32>, vector<1x8xf32> -> vector<2x8xf32>
    %143 = vector.shape_cast %142 : vector<2x8xf32> to vector<1x2x8xf32>
    %c0_112 = arith.constant 0 : index
    %c0_113 = arith.constant 0 : index
    %c0_114 = arith.constant 0 : index
    %144 = vector.load %arg6[%c0_112, %c0_113, %c0_114] : memref<1x2x8xf32, #tpu.memory_space<vmem>>, vector<1x2x8xf32>
    tpu.vector_store %arg6[%c0_112, %c0_113, %c0_114], %143 {strides = array<i32>} : memref<1x2x8xf32, #tpu.memory_space<vmem>>, vector<1x2x8xf32>,
    return
  }
  func.func @transform_0(%arg0: i32) -> (i32, i32, i32, i32) {
    %c0_i32 = arith.constant 0 : i32
    %c0_i32_0 = arith.constant 0 : i32
    %c0_i32_1 = arith.constant 0 : i32
    %c0_i32_2 = arith.constant 0 : i32
    return %arg0, %c0_i32, %c0_i32_0, %c0_i32_1 : i32, i32, i32, i32
  }
  func.func @transform_1(%arg0: i32) -> (i32, i32) {
    %c0_i32 = arith.constant 0 : i32
    %c0_i32_0 = arith.constant 0 : i32
    %c0_i32_1 = arith.constant 0 : i32
    return %c0_i32, %c0_i32_0 : i32, i32
  }
  func.func @transform_2(%arg0: i32) -> (i32, i32) {
    %c0_i32 = arith.constant 0 : i32
    %c0_i32_0 = arith.constant 0 : i32
    %c0_i32_1 = arith.constant 0 : i32
    return %c0_i32, %c0_i32_0 : i32, i32
  }
  func.func @transform_3(%arg0: i32) -> (i32, i32, i32, i32) {
    %c0_i32 = arith.constant 0 : i32
    %c0_i32_0 = arith.constant 0 : i32
    %c0_i32_1 = arith.constant 0 : i32
    %c0_i32_2 = arith.constant 0 : i32
    %c0_i32_3 = arith.constant 0 : i32
    return %c0_i32, %c0_i32_0, %c0_i32_1, %c0_i32_2 : i32, i32, i32, i32
  }
  func.func @transform_4(%arg0: i32) -> (i32, i32, i32, i32) {
    %c0_i32 = arith.constant 0 : i32
    %c0_i32_0 = arith.constant 0 : i32
    %c0_i32_1 = arith.constant 0 : i32
    %c0_i32_2 = arith.constant 0 : i32
    return %arg0, %c0_i32, %c0_i32_0, %c0_i32_1 : i32, i32, i32, i32
  }
  func.func @transform_5(%arg0: i32) -> (i32, i32, i32) {
    %c0_i32 = arith.constant 0 : i32
    %c0_i32_0 = arith.constant 0 : i32
    %c0_i32_1 = arith.constant 0 : i32
    return %arg0, %c0_i32, %c0_i32_0 : i32, i32, i32
  }
}

</mosaic_0001>

<bundles_post_ra>
// kernel: residual_block_forward.5
= control target key start
LH: loop header
LB: loop body
LE: loop exit
PB: predicated region body
PF: predicated region fallthrough
CT: control target
= control target key end

     0   :  { %s688_s15 = smov 0   ;;  %s908_s0 = inlined_call_operand.vmem [shape: bf16[2,16,16,8], index: 0, kind: input, shape index: {}]   ;;  %s909_s1 = inlined_call_operand.vmem [shape: f32[1,8], index: 1, kind: input, shape index: {}]   ;;  %s910_s2 = inlined_call_operand.vmem [shape: f32[1,8], index: 2, kind: input, shape index: {}]   ;;  %s911_s3 = inlined_call_operand.vmem [shape: f32[2,16,16,8], index: 3, kind: input, shape index: {}]   ;;  %s912_s4 = inlined_call_operand.vmem [shape: f32[2,16,16,8], index: 4, kind: output, shape index: {}]  }
   0x1 LB: > { %s550_s16 = sadd.s32 4294967295, %s661_s15   ;;  %p554_p0 = scmp.ge.s32.totalorder %s661_s15, 1  ;;  %s661_s15 = sphi %s688_s15, %s14_s15  }
   0x2   : > { %p172_p1 = scmp.lt.s32.totalorder %s661_s15, 3 }
   0x4   : > { %p173_p2 = pnand %p554_p0, %p172_p1 }
   0x5   : > { %p203_p3 = scmp.lt.s32.totalorder (!%p173_p2), %s550_s16, 1 }
   0x6   : > { %176 = sbr.rel (%p173_p2) target bundleno = 62 (0x3e), region = 36 }
   0xb   : > { %s914_s16 = smov (!%p203_p3, %s550_s16), 1  ;;  %v708_v0 = vld [vmem:[%s909_s1] ss:$0 sm:$0xff]  ;;  %vm450_vm0 = vcmask 64512  }
   0xc   : > { %s563_s17 = sshll.u32 %s914_s16, 7  ;;  %s564_s18 = sshll.u32 %s914_s16, 8  ;;  %v721_v3 = vld [vmem:[%s910_s2] ss:$0 sm:$0xff] }
   0xd   : > { %s703_s21 = scalar_lea.vmem %s908_s0, %s563_s17  ;;  %s716_s26 = scalar_lea.vmem %s911_s3, %s564_s18 }
   0xe   : > { %v567_v1 = vld [vmem:[%s703_s21] sm:$0xff]   ;;  %v630_v5 = vld [vmem:[%s703_s21 + $0x8] sm:$0xff]   ;;  %v631_v8 = vld [vmem:[%s703_s21 + $0x10] sm:$0xff]   ;;  %s753_s5 = scalar_lea.vmem %s912_s4, %s564_s18 }
   0xf   : > { %v568_v2 = vunpack.c.l.bf16 %v567_v1  ;;  %v569_v4 = vunpack.c.h.bf16 %v567_v1  ;;  %v572_v6 = vunpack.c.l.bf16 %v630_v5  ;;  %v573_v7 = vunpack.c.h.bf16 %v630_v5  ;;  %v632_v13 = vld [vmem:[%s703_s21 + $0x18] sm:$0xff]   ;;  %v354_v14 = vld [vmem:[%s716_s26] sm:$0xff]  ;;  %v355_v15 = vld [vmem:[%s716_s26 + $0x8] sm:$0xff] }
  0x10   : > { %v576_v11 = vunpack.c.l.bf16 %v631_v8  ;;  %v577_v12 = vunpack.c.h.bf16 %v631_v8  ;;  %v580_v18 = vunpack.c.l.bf16 %v632_v13  ;;  %v581_v19 = vunpack.c.h.bf16 %v632_v13  ;;  %v356_v22 = vld [vmem:[%s716_s26 + $0x10] sm:$0xff]  ;;  %v357_v23 = vld [vmem:[%s716_s26 + $0x18] sm:$0xff]  ;;  %v358_v28 = vld [vmem:[%s716_s26 + $0x20] sm:$0xff] }
  0x11   : > { %v286_v9 = vmul.f32 %v708_v0, %v568_v2  ;;  %v287_v10 = vmul.f32 %v708_v0, %v569_v4  ;;  %v288_v16 = vmul.f32 %v708_v0, %v572_v6  ;;  %v289_v17 = vmul.f32 %v708_v0, %v573_v7  ;;  %v359_v29 = vld [vmem:[%s716_s26 + $0x28] sm:$0xff]  ;;  %v360_v36 = vld [vmem:[%s716_s26 + $0x30] sm:$0xff]  ;;  %v361_v37 = vld [vmem:[%s716_s26 + $0x38] sm:$0xff] }
  0x12   : > { %v290_v24 = vmul.f32 %v708_v0, %v576_v11  ;;  %v291_v25 = vmul.f32 %v708_v0, %v577_v12  ;;  %v292_v30 = vmul.f32 %v708_v0, %v580_v18  ;;  %v293_v31 = vmul.f32 %v708_v0, %v581_v19  ;;  %v633_v42 = vld [vmem:[%s703_s21 + $0x20] sm:$0xff]   ;;  %v634_v47 = vld [vmem:[%s703_s21 + $0x28] sm:$0xff]   ;;  %v635_v52 = vld [vmem:[%s703_s21 + $0x30] sm:$0xff]  }
  0x13   : > { %v322_v20 = vadd.f32 %v721_v3, %v286_v9  ;;  %v323_v21 = vadd.f32 %v721_v3, %v287_v10  ;;  %v324_v26 = vadd.f32 %v721_v3, %v288_v16  ;;  %v325_v27 = vadd.f32 %v721_v3, %v289_v17  ;;  %v636_v57 = vld [vmem:[%s703_s21 + $0x38] sm:$0xff]   ;;  %v362_v4 = vld [vmem:[%s716_s26 + $0x40] sm:$0xff]  ;;  %v363_v5 = vld [vmem:[%s716_s26 + $0x48] sm:$0xff] }
  0x14   : > { %v326_v34 = vadd.f32 %v721_v3, %v290_v24  ;;  %v327_v35 = vadd.f32 %v721_v3, %v291_v25  ;;  %v328_v40 = vadd.f32 %v721_v3, %v292_v30  ;;  %v329_v41 = vadd.f32 %v721_v3, %v293_v31  ;;  %v364_v12 = vld [vmem:[%s716_s26 + $0x50] sm:$0xff]  ;;  %v365_v13 = vld [vmem:[%s716_s26 + $0x58] sm:$0xff]  ;;  %v366_v18 = vld [vmem:[%s716_s26 + $0x60] sm:$0xff] }
  0x15   : > { %v386_v32 = vadd.f32 %v354_v14, %v322_v20  ;;  %v387_v33 = vadd.f32 %v355_v15, %v323_v21  ;;  %v388_v38 = vadd.f32 %v356_v22, %v324_v26  ;;  %v389_v39 = vadd.f32 %v357_v23, %v325_v27  ;;  %v367_v19 = vld [vmem:[%s716_s26 + $0x68] sm:$0xff]  ;;  %v368_v26 = vld [vmem:[%s716_s26 + $0x70] sm:$0xff]  ;;  %v369_v27 = vld [vmem:[%s716_s26 + $0x78] sm:$0xff] }
  0x16   : > { %v390_v45 = vadd.f32 %v358_v28, %v326_v34  ;;  %v391_v46 = vadd.f32 %v359_v29, %v327_v35  ;;  %v392_v50 = vadd.f32 %v360_v36, %v328_v40  ;;  %v393_v51 = vadd.f32 %v361_v37, %v329_v41  ;;  %v638_v37 = vld [vmem:[%s703_s21 + $0x48] sm:$0xff]  }
  0x17   : > { %v418_v43 = vmax.f32 %v386_v32, 0.0  ;;  %v419_v44 = vmax.f32 %v387_v33, 0.0  ;;  %v420_v48 = vmax.f32 %v388_v38, 0.0  ;;  %v421_v49 = vmax.f32 %v389_v39, 0.0  ;;  %v637_v32 = vld [vmem:[%s703_s21 + $0x40] sm:$0xff]  }
  0x18   : > { %v422_v53 = vmax.f32 %v390_v45, 0.0  ;;  %v423_v54 = vmax.f32 %v391_v46, 0.0  ;;  %v584_v55 = vunpack.c.l.bf16 %v633_v42  ;;  %v585_v56 = vunpack.c.h.bf16 %v633_v42  ;;  %v639_v42 = vld [vmem:[%s703_s21 + $0x50] sm:$0xff]  }
  0x19   : > { %451 = vst.msk [vmem:[%s753_s5] sm:$0xff] %vm450_vm0, %v418_v43  ;;  %v424_v58 = vmax.f32 %v392_v50, 0.0  ;;  %v425_v59 = vmax.f32 %v393_v51, 0.0  ;;  %v588_v60 = vunpack.c.l.bf16 %v634_v47  ;;  %v589_v61 = vunpack.c.h.bf16 %v634_v47  ;;  %v640_v47 = vld [vmem:[%s703_s21 + $0x58] sm:$0xff]  }
  0x1a   : > { %452 = vst.msk [vmem:[%s753_s5 + $0x8] sm:$0xff] %vm450_vm0, %v419_v44  ;;  %v294_v62 = vmul.f32 %v708_v0, %v584_v55  ;;  %v295_v63 = vmul.f32 %v708_v0, %v585_v56  ;;  %v592_v1 = vunpack.c.l.bf16 %v635_v52  ;;  %v593_v2 = vunpack.c.h.bf16 %v635_v52  ;;  %v370_v56 = vld [vmem:[%s716_s26 + $0x80] sm:$0xff] }
  0x1b   : > { %453 = vst.msk [vmem:[%s753_s5 + $0x10] sm:$0xff] %vm450_vm0, %v420_v48  ;;  %v296_v6 = vmul.f32 %v708_v0, %v588_v60  ;;  %v297_v7 = vmul.f32 %v708_v0, %v589_v61  ;;  %v596_v8 = vunpack.c.l.bf16 %v636_v57  ;;  %v597_v9 = vunpack.c.h.bf16 %v636_v57  ;;  %v371_v57 = vld [vmem:[%s716_s26 + $0x88] sm:$0xff] }
  0x1c   : > { %454 = vst.msk [vmem:[%s753_s5 + $0x18] sm:$0xff] %vm450_vm0, %v421_v49  ;;  %v330_v10 = vadd.f32 %v721_v3, %v294_v62  ;;  %v331_v11 = vadd.f32 %v721_v3, %v295_v63  ;;  %v298_v14 = vmul.f32 %v708_v0, %v592_v1  ;;  %v299_v15 = vmul.f32 %v708_v0, %v593_v2  ;;  %v372_v1 = vld [vmem:[%s716_s26 + $0x90] sm:$0xff]  ;;  %v373_v2 = vld [vmem:[%s716_s26 + $0x98] sm:$0xff] }
  0x1d   : > { %455 = vst.msk [vmem:[%s753_s5 + $0x20] sm:$0xff] %vm450_vm0, %v422_v53  ;;  %v332_v16 = vadd.f32 %v721_v3, %v296_v6  ;;  %v333_v17 = vadd.f32 %v721_v3, %v297_v7  ;;  %v300_v20 = vmul.f32 %v708_v0, %v596_v8  ;;  %v301_v21 = vmul.f32 %v708_v0, %v597_v9  ;;  %v374_v8 = vld [vmem:[%s716_s26 + $0xa0] sm:$0xff]  ;;  %v375_v9 = vld [vmem:[%s716_s26 + $0xa8] sm:$0xff] }
  0x1e   : > { %456 = vst.msk [vmem:[%s753_s5 + $0x28] sm:$0xff] %vm450_vm0, %v423_v54  ;;  %v394_v22 = vadd.f32 %v362_v4, %v330_v10  ;;  %v395_v23 = vadd.f32 %v363_v5, %v331_v11  ;;  %v334_v24 = vadd.f32 %v721_v3, %v298_v14  ;;  %v335_v25 = vadd.f32 %v721_v3, %v299_v15 }
  0x1f   : > { %457 = vst.msk [vmem:[%s753_s5 + $0x30] sm:$0xff] %vm450_vm0, %v424_v58  ;;  %v396_v28 = vadd.f32 %v364_v12, %v332_v16  ;;  %v397_v29 = vadd.f32 %v365_v13, %v333_v17  ;;  %v336_v30 = vadd.f32 %v721_v3, %v300_v20  ;;  %v337_v31 = vadd.f32 %v721_v3, %v301_v21  ;;  %v376_v16 = vld [vmem:[%s716_s26 + $0xb0] sm:$0xff]  ;;  %v377_v17 = vld [vmem:[%s716_s26 + $0xb8] sm:$0xff] }
  0x20   : > { %458 = vst.msk [vmem:[%s753_s5 + $0x38] sm:$0xff] %vm450_vm0, %v425_v59  ;;  %v426_v33 = vmax.f32 %v394_v22, 0.0  ;;  %v427_v34 = vmax.f32 %v395_v23, 0.0  ;;  %v398_v35 = vadd.f32 %v366_v18, %v334_v24  ;;  %v399_v36 = vadd.f32 %v367_v19, %v335_v25  ;;  %v641_v22 = vld [vmem:[%s703_s21 + $0x60] sm:$0xff]  }
  0x21   : > { %v428_v38 = vmax.f32 %v396_v28, 0.0  ;;  %v429_v39 = vmax.f32 %v397_v29, 0.0  ;;  %v400_v40 = vadd.f32 %v368_v26, %v336_v30  ;;  %v401_v41 = vadd.f32 %v369_v27, %v337_v31  ;;  %v642_v27 = vld [vmem:[%s703_s21 + $0x68] sm:$0xff]  }
  0x22   : > { %459 = vst.msk [vmem:[%s753_s5 + $0x40] sm:$0xff] %vm450_vm0, %v426_v33  ;;  %v430_v43 = vmax.f32 %v398_v35, 0.0  ;;  %v431_v44 = vmax.f32 %v399_v36, 0.0  ;;  %v600_v45 = vunpack.c.l.bf16 %v637_v32  ;;  %v601_v46 = vunpack.c.h.bf16 %v637_v32  ;;  %v643_v32 = vld [vmem:[%s703_s21 + $0x70] sm:$0xff]  }
  0x23   : > { %460 = vst.msk [vmem:[%s753_s5 + $0x48] sm:$0xff] %vm450_vm0, %v427_v34  ;;  %v432_v48 = vmax.f32 %v400_v40, 0.0  ;;  %v433_v49 = vmax.f32 %v401_v41, 0.0  ;;  %v604_v50 = vunpack.c.l.bf16 %v638_v37  ;;  %v605_v51 = vunpack.c.h.bf16 %v638_v37  ;;  %v644_v37 = vld [vmem:[%s703_s21 + $0x78] sm:$0xff]  }
  0x24   : > { %461 = vst.msk [vmem:[%s753_s5 + $0x50] sm:$0xff] %vm450_vm0, %v428_v38  ;;  %v302_v52 = vmul.f32 %v708_v0, %v600_v45  ;;  %v303_v53 = vmul.f32 %v708_v0, %v601_v46  ;;  %v608_v54 = vunpack.c.l.bf16 %v639_v42  ;;  %v609_v55 = vunpack.c.h.bf16 %v639_v42  ;;  %v378_v46 = vld [vmem:[%s716_s26 + $0xc0] sm:$0xff] }
  0x25   : > { %462 = vst.msk [vmem:[%s753_s5 + $0x58] sm:$0xff] %vm450_vm0, %v429_v39  ;;  %v304_v58 = vmul.f32 %v708_v0, %v604_v50  ;;  %v305_v59 = vmul.f32 %v708_v0, %v605_v51  ;;  %v612_v60 = vunpack.c.l.bf16 %v640_v47  ;;  %v613_v61 = vunpack.c.h.bf16 %v640_v47  ;;  %v379_v47 = vld [vmem:[%s716_s26 + $0xc8] sm:$0xff] }
  0x26   : > { %463 = vst.msk [vmem:[%s753_s5 + $0x60] sm:$0xff] %vm450_vm0, %v430_v43  ;;  %v338_v62 = vadd.f32 %v721_v3, %v302_v52  ;;  %v339_v63 = vadd.f32 %v721_v3, %v303_v53  ;;  %v306_v4 = vmul.f32 %v708_v0, %v608_v54  ;;  %v307_v5 = vmul.f32 %v708_v0, %v609_v55  ;;  %v380_v54 = vld [vmem:[%s716_s26 + $0xd0] sm:$0xff]  ;;  %v381_v55 = vld [vmem:[%s716_s26 + $0xd8] sm:$0xff] }
  0x27   : > { %464 = vst.msk [vmem:[%s753_s5 + $0x68] sm:$0xff] %vm450_vm0, %v431_v44  ;;  %v340_v6 = vadd.f32 %v721_v3, %v304_v58  ;;  %v341_v7 = vadd.f32 %v721_v3, %v305_v59  ;;  %v308_v10 = vmul.f32 %v708_v0, %v612_v60  ;;  %v309_v11 = vmul.f32 %v708_v0, %v613_v61  ;;  %v382_v60 = vld [vmem:[%s716_s26 + $0xe0] sm:$0xff]  ;;  %v383_v61 = vld [vmem:[%s716_s26 + $0xe8] sm:$0xff] }
  0x28   : > { %465 = vst.msk [vmem:[%s753_s5 + $0x70] sm:$0xff] %vm450_vm0, %v432_v48  ;;  %v402_v12 = vadd.f32 %v370_v56, %v338_v62  ;;  %v403_v13 = vadd.f32 %v371_v57, %v339_v63  ;;  %v342_v14 = vadd.f32 %v721_v3, %v306_v4  ;;  %v343_v15 = vadd.f32 %v721_v3, %v307_v5 }
  0x29   : > { %466 = vst.msk [vmem:[%s753_s5 + $0x78] sm:$0xff] %vm450_vm0, %v433_v49  ;;  %v404_v18 = vadd.f32 %v372_v1, %v340_v6  ;;  %v405_v19 = vadd.f32 %v373_v2, %v341_v7  ;;  %v344_v20 = vadd.f32 %v721_v3, %v308_v10  ;;  %v345_v21 = vadd.f32 %v721_v3, %v309_v11  ;;  %v384_v6 = vld [vmem:[%s716_s26 + $0xf0] sm:$0xff]  ;;  %v385_v7 = vld [vmem:[%s716_s26 + $0xf8] sm:$0xff] }
  0x2a   : > { %v434_v23 = vmax.f32 %v402_v12, 0.0  ;;  %v435_v24 = vmax.f32 %v403_v13, 0.0  ;;  %v406_v25 = vadd.f32 %v374_v8, %v342_v14  ;;  %v407_v26 = vadd.f32 %v375_v9, %v343_v15 }
  0x2b   : > { %v436_v28 = vmax.f32 %v404_v18, 0.0  ;;  %v437_v29 = vmax.f32 %v405_v19, 0.0  ;;  %v408_v30 = vadd.f32 %v376_v16, %v344_v20  ;;  %v409_v31 = vadd.f32 %v377_v17, %v345_v21 }
  0x2c   : > { %467 = vst.msk [vmem:[%s753_s5 + $0x80] sm:$0xff] %vm450_vm0, %v434_v23  ;;  %v438_v33 = vmax.f32 %v406_v25, 0.0  ;;  %v439_v34 = vmax.f32 %v407_v26, 0.0  ;;  %v616_v35 = vunpack.c.l.bf16 %v641_v22  ;;  %v617_v36 = vunpack.c.h.bf16 %v641_v22 }
  0x2d   : > { %468 = vst.msk [vmem:[%s753_s5 + $0x88] sm:$0xff] %vm450_vm0, %v435_v24  ;;  %v440_v38 = vmax.f32 %v408_v30, 0.0  ;;  %v441_v39 = vmax.f32 %v409_v31, 0.0  ;;  %v620_v40 = vunpack.c.l.bf16 %v642_v27  ;;  %v621_v41 = vunpack.c.h.bf16 %v642_v27 }
  0x2e   : > { %469 = vst.msk [vmem:[%s753_s5 + $0x90] sm:$0xff] %vm450_vm0, %v436_v28  ;;  %v310_v42 = vmul.f32 %v708_v0, %v616_v35  ;;  %v311_v43 = vmul.f32 %v708_v0, %v617_v36  ;;  %v624_v44 = vunpack.c.l.bf16 %v643_v32  ;;  %v625_v45 = vunpack.c.h.bf16 %v643_v32 }
  0x2f   : > { %470 = vst.msk [vmem:[%s753_s5 + $0x98] sm:$0xff] %vm450_vm0, %v437_v29  ;;  %v312_v48 = vmul.f32 %v708_v0, %v620_v40  ;;  %v313_v49 = vmul.f32 %v708_v0, %v621_v41  ;;  %v628_v50 = vunpack.c.l.bf16 %v644_v37  ;;  %v629_v51 = vunpack.c.h.bf16 %v644_v37 }
  0x30   : > { %471 = vst.msk [vmem:[%s753_s5 + $0xa0] sm:$0xff] %vm450_vm0, %v438_v33  ;;  %v346_v52 = vadd.f32 %v721_v3, %v310_v42  ;;  %v347_v53 = vadd.f32 %v721_v3, %v311_v43  ;;  %v314_v56 = vmul.f32 %v708_v0, %v624_v44  ;;  %v315_v57 = vmul.f32 %v708_v0, %v625_v45 }
  0x31   : > { %472 = vst.msk [vmem:[%s753_s5 + $0xa8] sm:$0xff] %vm450_vm0, %v439_v34  ;;  %v348_v58 = vadd.f32 %v721_v3, %v312_v48  ;;  %v349_v59 = vadd.f32 %v721_v3, %v313_v49  ;;  %v316_v62 = vmul.f32 %v708_v0, %v628_v50  ;;  %v317_v63 = vmul.f32 %v708_v0, %v629_v51 }
  0x32   : > { %473 = vst.msk [vmem:[%s753_s5 + $0xb0] sm:$0xff] %vm450_vm0, %v440_v38  ;;  %v410_v1 = vadd.f32 %v378_v46, %v346_v52  ;;  %v411_v2 = vadd.f32 %v379_v47, %v347_v53  ;;  %v350_v4 = vadd.f32 %v721_v3, %v314_v56  ;;  %v351_v5 = vadd.f32 %v721_v3, %v315_v57 }
  0x33   : > { %474 = vst.msk [vmem:[%s753_s5 + $0xb8] sm:$0xff] %vm450_vm0, %v441_v39  ;;  %v412_v8 = vadd.f32 %v380_v54, %v348_v58  ;;  %v413_v9 = vadd.f32 %v381_v55, %v349_v59  ;;  %v352_v10 = vadd.f32 %v721_v3, %v316_v62  ;;  %v353_v0 = vadd.f32 %v721_v3, %v317_v63 }
  0x34   : > { %v442_v11 = vmax.f32 %v410_v1, 0.0  ;;  %v443_v12 = vmax.f32 %v411_v2, 0.0  ;;  %v414_v13 = vadd.f32 %v382_v60, %v350_v4  ;;  %v415_v14 = vadd.f32 %v383_v61, %v351_v5 }
  0x35   : > { %v444_v15 = vmax.f32 %v412_v8, 0.0  ;;  %v445_v16 = vmax.f32 %v413_v9, 0.0  ;;  %v416_v17 = vadd.f32 %v384_v6, %v352_v10  ;;  %v417_v18 = vadd.f32 %v385_v7, %v353_v0 }
  0x36   : > { %475 = vst.msk [vmem:[%s753_s5 + $0xc0] sm:$0xff] %vm450_vm0, %v442_v11  ;;  %v446_v19 = vmax.f32 %v414_v13, 0.0  ;;  %v447_v20 = vmax.f32 %v415_v14, 0.0 }
  0x37   : > { %476 = vst.msk [vmem:[%s753_s5 + $0xc8] sm:$0xff] %vm450_vm0, %v443_v12  ;;  %v448_v3 = vmax.f32 %v416_v17, 0.0  ;;  %v449_v21 = vmax.f32 %v417_v18, 0.0 }
  0x38   : > { %477 = vst.msk [vmem:[%s753_s5 + $0xd0] sm:$0xff] %vm450_vm0, %v444_v15 }
  0x39   : > { %478 = vst.msk [vmem:[%s753_s5 + $0xd8] sm:$0xff] %vm450_vm0, %v445_v16 }
  0x3a   : > { %479 = vst.msk [vmem:[%s753_s5 + $0xe0] sm:$0xff] %vm450_vm0, %v446_v19 }
  0x3b   : > { %480 = vst.msk [vmem:[%s753_s5 + $0xe8] sm:$0xff] %vm450_vm0, %v447_v20 }
  0x3c   : > { %481 = vst.msk [vmem:[%s753_s5 + $0xf0] sm:$0xff] %vm450_vm0, %v448_v3 }
  0x3d   : > { %482 = vst.msk [vmem:[%s753_s5 + $0xf8] sm:$0xff] %vm450_vm0, %v449_v21 }
  0x3e PF: > { %s14_s15 = sadd.s32 1, %s661_s15  }
  0x3f   : > { %p11_p4 = scmp.ge.s32.totalorder %s14_s15, 4  }
  0x41   :  { %13 = sbr.rel (!%p11_p4) target bundleno = 1 (0x1), region = 69 }

// kernel: residual_block_forward.3
= control target key start
LH: loop header
LB: loop body
LE: loop exit
PB: predicated region body
PF: predicated region fallthrough
CT: control target
= control target key end

     0   :  { %s2858_s12 = smov 0   ;;  %s4420_s0 = inlined_call_operand.vmem [shape: f32[2,16,16,8], index: 0, kind: input, shape index: {}]   ;;  %s4421_s1 = inlined_call_operand.vmem [shape: bf16[3,3,8,8], index: 1, kind: input, shape index: {}]   ;;  %s4422_s2 = inlined_call_operand.vmem [shape: bf16[2,16,16,8], index: 2, kind: output, shape index: {0}]   ;;  %s4423_s3 = inlined_call_operand.vmem [shape: f32[2,2,8], index: 3, kind: output, shape index: {1}]  }
   0x1 LB: > { %s2649_s13 = sadd.s32 4294967295, %s2835_s12   ;;  %p2653_p0 = scmp.ge.s32.totalorder %s2835_s12, 1  ;;  %s2835_s12 = sphi %s2858_s12, %s14_s12  }
   0x2   : > { %p140_p1 = scmp.lt.s32.totalorder %s2835_s12, 3 }
   0x4   : > { %p141_p2 = pnand %p2653_p0, %p140_p1 }
   0x6   : > { %144 = sbr.rel (%p141_p2) target bundleno = 851 (0x353), region = 28 }
   0xb   : > { %v2659_v0 = vld [vmem:[%s4421_s1 + $0x10] sm:$0xf]  ;;  %vm285_vm0 = vcmask 1043456   ;;  %p168_p3 = scmp.lt.s32.totalorder %s2649_s13, 1  ;;  %v552_v2 = vld [vmem:[%s4421_s1] sm:$0xf] }
   0xc   : > { %v287_v1 = vsel %vm285_vm0, %v2659_v0, 0  ;;  %v2691_v3 = vld [vmem:[%s4421_s1 + $0x4] sm:$0xf]  ;;  %v602_v4 = vsel %vm285_vm0, %v552_v2, 0  ;;  %v2707_v6 = vld [vmem:[%s4421_s1 + $0x8] sm:$0xf] }
   0xd   : > { %2809 = vmatpush.bf16.msra.mxu1 %v287_v1  ;;  %2810 = vmatpush.bf16.msra.mxu2 %v287_v1  ;;  %s4462_s13 = smov (!%p168_p3, %s2649_s13), 1  ;;  %v792_v5 = vsel %vm285_vm0, %v2691_v3, 0  ;;  %v1136_v7 = vsel %vm285_vm0, %v2707_v6, 0  ;;  %v2723_v8 = vld [vmem:[%s4421_s1 + $0xc] sm:$0xf]  ;;  %vm236_vm1 = vcmask 64512  }
   0xe   : > { %2811 = vmatpush.bf16.msra.mxu3 %v287_v1  ;;  %s2807_s24 = sshll.u32 %s4462_s13, 8  ;;  %v1335_v9 = vsel %vm285_vm0, %v2723_v8, 0  ;;  %296 = vmatpush.bf16.msra.mxu0 %v287_v1  ;;  %v2740_v45 = vld [vmem:[%s4421_s1 + $0x14] sm:$0xf]  ;;  %v2757_v46 = vld [vmem:[%s4421_s1 + $0x18] sm:$0xf]  ;;  %v215_v1 = vlaneseq }
   0xf   : > { %s2892_s27 = scalar_lea.vmem %s4420_s0, %s2807_s24  ;;  %v1534_v48 = vsel %vm285_vm0, %v2740_v45, 0  ;;  %v1724_v49 = vsel %vm285_vm0, %v2757_v46, 0  ;;  %v2773_v50 = vld [vmem:[%s4421_s1 + $0x1c] sm:$0xf]  ;;  %v2789_v0 = vld [vmem:[%s4421_s1 + $0x20] sm:$0xf] }
  0x10   : > { %v2895_v10 = vld [vmem:[%s2892_s27 + $0x40] sm:$0xff]  ;;  %v2898_v11 = vld [vmem:[%s2892_s27 + $0x48] sm:$0xff]  ;;  %v2943_v22 = vld [vmem:[%s2892_s27 + $0x50] sm:$0xff]  ;;  %v1914_v51 = vsel %vm285_vm0, %v2773_v50, 0  ;;  %v2104_v2 = vsel %vm285_vm0, %v2789_v0, 0  ;;  %v3102_v3 = vshrl.u32 %v215_v1, 7 }
  0x11   : > { %611 = vmatpush.bf16.msrb.mxu1 %v602_v4  ;;  %801 = vmatpush.bf16.msrb.mxu2 %v792_v5  ;;  %v2901_v12 = vld [vmem:[%s2892_s27 + $0x80] sm:$0xff]  ;;  %v2905_v13 = vpack.c.bf16 %v2898_v11, %v2895_v10  ;;  %v2908_v14 = vld [vmem:[%s2892_s27 + $0x88] sm:$0xff]  ;;  %v2946_v23 = vld [vmem:[%s2892_s27 + $0x58] sm:$0xff]  ;;  %v4424_v8 = vmov 0.0|0.0   ;;  %s2808_s9 = sshll.u32 %s4462_s13, 7  ;;  %vm2323_vm6 = vcmask 60416  }
  0x12   : > { %1145 = vmatpush.bf16.msrb.mxu3 %v1136_v7  ;;  %1344 = vmatpush.bf16.msrb.mxu0 %v1335_v9  ;;  %v2911_v15 = vld [vmem:[%s2892_s27 + $0xc0] sm:$0xff]  ;;  %v2914_v16 = vld [vmem:[%s2892_s27 + $0xc8] sm:$0xff]  ;;  %v2918_v17 = vpack.c.bf16 %v2908_v14, %v2901_v12  ;;  %v2949_v24 = vld [vmem:[%s2892_s27 + $0x90] sm:$0xff]  ;;  %v2962_v28 = vpack.c.bf16 %v2946_v23, %v2943_v22  ;;  %vm441_vm2 = vcmp.lt.s32.totalorder %v3102_v3, 1  ;;  %vm472_vm3 = vcmp.ge.s32.totalorder %v3102_v3, 1  ;;  %s3868_s14 = scalar_lea.vmem %s4422_s2, %s2808_s9  ;;  %s2658_s15 = sshll.u32 %s4462_s13, 1 }
  0x13   : > { %2664 = vmatmul.msk.bf16.vlgmr.msra.gmra.mxu1 %vm236_vm1, %v2905_v13  ;;  %v2924_v18 = vpack.c.bf16 %v2914_v16, %v2911_v15  ;;  %v2929_v19 = vld [vmem:[%s2892_s27] sm:$0xff]  ;;  %v2932_v20 = vld [vmem:[%s2892_s27 + $0x8] sm:$0xff]  ;;  %v2952_v25 = vld [vmem:[%s2892_s27 + $0x98] sm:$0xff]  ;;  %v3123_v50 = vadd.s32 8, %v3102_v3  ;;  %vm978_vm4 = vcmp.lt.s32.totalorder %v3102_v3, 7  ;;  %vm2559_vm7 = vcmask 1040384   ;;  %s181_s18 = scalar_lea.vmem %s4423_s3, %s2658_s15 }
  0x14   : > { %4441 = vst [vmem:[#allocation3_spill] sm:$0xff] %v2918_v17  ;;  %2668 = vmatmul.msk.bf16.vlgmr.msra.gmra.mxu2 %vm236_vm1, %v2918_v17  ;;  %v2938_v21 = vpack.c.bf16 %v2932_v20, %v2929_v19  ;;  %v2955_v26 = vld [vmem:[%s2892_s27 + $0xd0] sm:$0xff]  ;;  %v2958_v27 = vld [vmem:[%s2892_s27 + $0xd8] sm:$0xff]  ;;  %v2966_v29 = vpack.c.bf16 %v2952_v25, %v2949_v24  ;;  %v2991_v34 = vld [vmem:[%s2892_s27 + $0x60] sm:$0xff]  ;;  %v410_v4 = vrot.slane %v2929_v19, 7  ;;  %v411_v6 = vrot.slane %v2932_v20, 7 }
  0x15   : > { %4442 = vst [vmem:[#allocation4_spill] sm:$0xff] %v2929_v19  ;;  %2672 = vmatmul.msk.bf16.vlgmr.msra.gmra.mxu3 %vm236_vm1, %v2924_v18  ;;  %v2970_v30 = vpack.c.bf16 %v2958_v27, %v2955_v26  ;;  %v2973_v31 = vld [vmem:[%s2892_s27 + $0x10] sm:$0xff]  ;;  %v2976_v32 = vld [vmem:[%s2892_s27 + $0x18] sm:$0xff]  ;;  %v2994_v35 = vld [vmem:[%s2892_s27 + $0x68] sm:$0xff]  ;;  %1543 = vmatpush.bf16.msra.mxu1 %v1534_v48  ;;  %v948_v46 = vrot.slane %v2932_v20, 1  ;;  %vm1010_vm5 = vcmp.le.s32.totalorder %v3123_v50, 14 }
  0x16   : > { %2660 = vmatmul.msk.bf16.vlgmr.msra.gmra.mxu0 %vm236_vm1, %v2938_v21  ;;  %v2986_v33 = vpack.c.bf16 %v2976_v32, %v2973_v31  ;;  %v2997_v36 = vld [vmem:[%s2892_s27 + $0xa0] sm:$0xff]  ;;  %v3000_v37 = vld [vmem:[%s2892_s27 + $0xa8] sm:$0xff]  ;;  %v3010_v40 = vpack.c.bf16 %v2994_v35, %v2991_v34  ;;  %1733 = vmatpush.bf16.msra.mxu2 %v1724_v49  ;;  %v3051_v52 = vld [vmem:[%s2892_s27 + $0x70] sm:$0xff]  ;;  %v470_v9 = vsel %vm441_vm2, %v410_v4, %v411_v6  ;;  %v949_v48 = vrot.slane %v2973_v31, 1 }
  0x17   : > { %v3003_v38 = vld [vmem:[%s2892_s27 + $0xe0] sm:$0xff]  ;;  %v3006_v39 = vld [vmem:[%s2892_s27 + $0xe8] sm:$0xff]  ;;  %v3014_v41 = vpack.c.bf16 %v3000_v37, %v2997_v36  ;;  %1923 = vmatpush.bf16.msra.mxu3 %v1914_v51  ;;  %v3054_v53 = vld [vmem:[%s2892_s27 + $0x78] sm:$0xff]  ;;  %2113 = vmatpush.bf16.msra.mxu0 %v2104_v2  ;;  %v4426_v51 = vrot.slane %v2929_v19, 1  ;;  %v412_v1 = vrot.slane %v2973_v31, 7  ;;  %vm2561_vm8 = vcmask 58368  }
  0x18   : > { %v3018_v42 = vpack.c.bf16 %v3006_v39, %v3003_v38  ;;  %v3021_v43 = vld [vmem:[%s2892_s27 + $0x20] sm:$0xff]  ;;  %v3024_v44 = vld [vmem:[%s2892_s27 + $0x28] sm:$0xff]  ;;  %v3057_v54 = vld [vmem:[%s2892_s27 + $0xb0] sm:$0xff]  ;;  %v3070_v58 = vpack.c.bf16 %v3054_v53, %v3051_v52  ;;  %v1007_v0 = vsel %vm978_vm4, %v948_v46, %v949_v48 }
  0x19   : > { %v3040_v47 = vpack.c.bf16 %v3024_v44, %v3021_v43  ;;  %v3060_v55 = vld [vmem:[%s2892_s27 + $0xb8] sm:$0xff]  ;;  %v3063_v56 = vld [vmem:[%s2892_s27 + $0xf0] sm:$0xff]  ;;  %v1008_v20 = vsel %vm978_vm4, %v4426_v51, %v948_v46  ;;  %v1012_v2 = vsel %vm1010_vm5, %v1007_v0, 0.0  ;;  %v950_v46 = vrot.slane %v2976_v32, 1 }
  0x1a   : > { %v3066_v57 = vld [vmem:[%s2892_s27 + $0xf8] sm:$0xff]  ;;  %4443 = vst [vmem:[#allocation5_spill] sm:$0xff] %v3070_v58  ;;  %v3074_v59 = vpack.c.bf16 %v3060_v55, %v3057_v54  ;;  %v3081_v61 = vld [vmem:[%s2892_s27 + $0x30] sm:$0xff]  ;;  %v951_v0 = vrot.slane %v3021_v43, 1  ;;  %v418_v51 = vrot.slane %v2895_v10, 7 }
  0x1b   : > { %v3078_v60 = vpack.c.bf16 %v3066_v57, %v3063_v56  ;;  %v3084_v62 = vld [vmem:[%s2892_s27 + $0x38] sm:$0xff]  ;;  %v4427_v5 = vrot.slane %v3066_v57, 7 }
  0x1c   : > { %v3094_v63 = vpack.c.bf16 %v3084_v62, %v3081_v61 }
  0x1d   : > { %4444 = vst [vmem:[#allocation6_spill] sm:$0xff] %v3078_v60  ;;  %v471_v7 = vsel %vm441_vm2, %v4427_v5, %v410_v4  ;;  %v413_v4 = vrot.slane %v2976_v32, 7  ;;  %v415_v32 = vrot.slane %v3024_v44, 7 }
  0x1e   : > { %v474_v45 = vsel %vm472_vm3, %v471_v7, 0.0  ;;  %v3139_v7 = vpack.c.bf16 %v1012_v2, %v1008_v20 }
  0x1f   : > { %v537_v49 = vpack.c.bf16 %v470_v9, %v474_v45  ;;  %v469_v9 = vsel %vm441_vm2, %v411_v6, %v412_v1  ;;  %v468_v31 = vsel %vm441_vm2, %v412_v1, %v413_v4  ;;  %v414_v6 = vrot.slane %v3021_v43, 7 }
  0x20   : > { %v476_v45 = vsel %vm472_vm3, %v469_v9, 0.0 }
  0x21   : > { %v3154_v20 = vpack.c.bf16 %v468_v31, %v476_v45  ;;  %v467_v9 = vsel %vm441_vm2, %v413_v4, %v414_v6  ;;  %v955_v31 = vrot.slane %v2895_v10, 1  ;;  %v954_v45 = vrot.slane %v3084_v62, 1 }
  0x22   : > { %v466_v43 = vsel %vm441_vm2, %v414_v6, %v415_v32 }
  0x23   : > { %2665 = vmatmul.msk.bf16.gmra.mxu1 %vm236_vm1, %v2962_v28  ;;  %v1001_v4 = vsel %vm978_vm4, %v954_v45, %v955_v31 }
  0x24   : > { %2669 = vmatmul.msk.bf16.gmra.mxu2 %vm236_vm1, %v2966_v29  ;;  %v1018_v6 = vsel %vm1010_vm5, %v1001_v4, 0.0 }
  0x25   : > { %2673 = vmatmul.msk.bf16.gmra.mxu3 %vm236_vm1, %v2970_v30 }
  0x26   : > { %2661 = vmatmul.msk.bf16.gmra.mxu0 %vm236_vm1, %v2986_v33 }
  0x33   : > { %2666 = vmatmul.msk.bf16.gmra.mxu1 %vm236_vm1, %v3010_v40 }
  0x34   : > { %2670 = vmatmul.msk.bf16.gmra.mxu2 %vm236_vm1, %v3014_v41 }
  0x35   : > { %2674 = vmatmul.msk.bf16.gmra.mxu3 %vm236_vm1, %v3018_v42 }
  0x36   : > { %2662 = vmatmul.msk.bf16.gmra.mxu0 %vm236_vm1, %v3040_v47 }
  0x43   : > { %2667 = vmatmul.msk.bf16.gmra.mxu1 %vm236_vm1, %v3070_v58 }
  0x44   : > { %2671 = vmatmul.msk.bf16.gmra.mxu2 %vm236_vm1, %v3074_v59 }
  0x45   : > { %2675 = vmatmul.msk.bf16.gmra.mxu3 %vm236_vm1, %v3078_v60  ;;  %v430_v60 = vrot.slane %v2997_v36, 7 }
  0x46   : > { %2663 = vmatmul.msk.bf16.gmra.mxu0 %vm236_vm1, %v3094_v63 }
  0x53   : > { %612 = vmatmul.bf16.vlgmr.msrb.gmra.mxu1 %v4424_v8 }
  0x54   : > { %802 = vmatmul.bf16.vlgmr.msrb.gmra.mxu2 %v4424_v8 }
  0x55   : > { %1146 = vmatmul.bf16.vlgmr.msrb.gmra.mxu3 %v4424_v8 }
  0x56   : > { %2724 = vmatmul.msk.bf16.vlgmr.msrb.gmra.mxu0 %vm236_vm1, %v537_v49 }
  0x63   : > { %2676 = vmatmul.msk.bf16.gmra.mxu1 %vm236_vm1, %v537_v49  ;;  %v1006_v49 = vsel %vm978_vm4, %v949_v48, %v950_v46  ;;  %v478_v48 = vsel %vm472_vm3, %v467_v9, 0.0 }
  0x64   : > { %2692 = vmatmul.msk.bf16.gmra.mxu2 %vm236_vm1, %v2938_v21  ;;  %v1005_v21 = vsel %vm978_vm4, %v950_v46, %v951_v0  ;;  %v953_v46 = vrot.slane %v3081_v61, 1 }
  0x65   : > { %2708 = vmatmul.msk.bf16.gmra.mxu3 %vm236_vm1, %v3139_v7  ;;  %v1014_v1 = vsel %vm1010_vm5, %v1005_v21, 0.0  ;;  %v952_v21 = vrot.slane %v3024_v44, 1  ;;  %v419_v44 = vrot.slane %v2898_v11, 7 }
  0x66   : > { %2725 = vmatmul.msk.bf16.gmra.mxu0 %vm236_vm1, %v3154_v20  ;;  %v3166_v2 = vpack.c.bf16 %v1014_v1, %v1006_v49  ;;  %v3186_v49 = vpack.c.bf16 %v466_v43, %v478_v48  ;;  %v1002_v1 = vsel %vm978_vm4, %v953_v46, %v954_v45  ;;  %v416_v43 = vrot.slane %v3081_v61, 7 }
  0x67   : > { %v3192_v8 = vpack.c.bf16 %v1018_v6, %v1002_v1  ;;  %v1003_v9 = vsel %vm978_vm4, %v952_v21, %v953_v46  ;;  %v417_v48 = vrot.slane %v3084_v62, 7  ;;  %v1004_v45 = vsel %vm978_vm4, %v951_v0, %v952_v21 }
  0x68   : > { %v1016_v4 = vsel %vm1010_vm5, %v1003_v9, 0.0  ;;  %v465_v10 = vsel %vm441_vm2, %v415_v32, %v416_v43  ;;  %v462_v46 = vsel %vm441_vm2, %v418_v51, %v419_v44  ;;  %v956_v62 = vrot.slane %v2898_v11, 1 }
  0x69   : > { %v463_v1 = vsel %vm441_vm2, %v417_v48, %v418_v51  ;;  %v3208_v6 = vpack.c.bf16 %v1016_v4, %v1004_v45  ;;  %v957_v0 = vrot.slane %v2943_v22, 1  ;;  %v464_v32 = vsel %vm441_vm2, %v416_v43, %v417_v48 }
  0x6a   : > { %v482_v61 = vsel %vm472_vm3, %v463_v1, 0.0  ;;  %v480_v51 = vsel %vm472_vm3, %v465_v10, 0.0  ;;  %v1000_v45 = vsel %vm978_vm4, %v955_v31, %v956_v62  ;;  %v420_v43 = vrot.slane %v2943_v22, 7 }
  0x6b   : > { %v3218_v21 = vpack.c.bf16 %v462_v46, %v482_v61  ;;  %v999_v11 = vsel %vm978_vm4, %v956_v62, %v957_v0  ;;  %v3232_v9 = vpack.c.bf16 %v464_v32, %v480_v51  ;;  %v421_v48 = vrot.slane %v2946_v23, 7 }
  0x6c   : > { %v1020_v4 = vsel %vm1010_vm5, %v999_v11, 0.0  ;;  %v461_v46 = vsel %vm441_vm2, %v419_v44, %v420_v43  ;;  %v958_v62 = vrot.slane %v2946_v23, 1  ;;  %v959_v32 = vrot.slane %v2991_v34, 1 }
  0x6d   : > { %v3238_v1 = vpack.c.bf16 %v1020_v4, %v1000_v45  ;;  %v460_v31 = vsel %vm441_vm2, %v420_v43, %v421_v48  ;;  %v484_v61 = vsel %vm472_vm3, %v461_v46, 0.0  ;;  %v422_v46 = vrot.slane %v2991_v34, 7 }
  0x6e   : > { %v3253_v51 = vpack.c.bf16 %v460_v31, %v484_v61  ;;  %v997_v44 = vsel %vm978_vm4, %v958_v62, %v959_v32  ;;  %v998_v23 = vsel %vm978_vm4, %v957_v0, %v958_v62  ;;  %v423_v0 = vrot.slane %v2994_v35, 7 }
  0x6f   : > { %v1022_v45 = vsel %vm1010_vm5, %v997_v44, 0.0  ;;  %v459_v44 = vsel %vm441_vm2, %v421_v48, %v422_v46 }
  0x70   : > { %v486_v34 = vsel %vm472_vm3, %v459_v44, 0.0  ;;  %v424_v44 = vrot.slane %v3051_v52, 7 }
  0x73   : > { %2677 = vmatmul.msk.bf16.gmra.mxu1 %vm236_vm1, %v3154_v20 }
  0x74   : > { %2693 = vmatmul.msk.bf16.gmra.mxu2 %vm236_vm1, %v2986_v33 }
  0x75   : > { %2709 = vmatmul.msk.bf16.gmra.mxu3 %vm236_vm1, %v3166_v2 }
  0x76   : > { %2726 = vmatmul.msk.bf16.gmra.mxu0 %vm236_vm1, %v3186_v49 }
  0x83   : > { %2678 = vmatmul.msk.bf16.gmra.mxu1 %vm236_vm1, %v3186_v49 }
  0x84   : > { %2694 = vmatmul.msk.bf16.gmra.mxu2 %vm236_vm1, %v3040_v47 }
  0x85   : > { %2710 = vmatmul.msk.bf16.gmra.mxu3 %vm236_vm1, %v3208_v6 }
  0x86   : > { %2727 = vmatmul.msk.bf16.gmra.mxu0 %vm236_vm1, %v3232_v9 }
  0x90   : > { %v318_v10 = vpop.f32.mrf.mxu1 }
  0x91   : > { %386 = vst.msk [vmem:[#allocation2 + $0x40] sm:$0xff] %vm236_vm1, %v318_v10  ;;  %v3269_v10 = vpack.c.bf16 %v1022_v45, %v998_v23  ;;  %v960_v23 = vrot.slane %v2994_v35, 1  ;;  %v961_v45 = vrot.slane %v3051_v52, 1 }
  0x93   : > { %2679 = vmatmul.msk.bf16.gmra.mxu1 %vm236_vm1, %v3232_v9  ;;  %v298_v22 = vpop.f32.mrf.mxu0 }
  0x94   : > { %2695 = vmatmul.msk.bf16.gmra.mxu2 %vm236_vm1, %v3094_v63  ;;  %378 = vst.msk [vmem:[#allocation2] sm:$0xff] %vm236_vm1, %v298_v22 }
  0x95   : > { %2711 = vmatmul.msk.bf16.gmra.mxu3 %vm236_vm1, %v3192_v8 }
  0x96   : > { %2728 = vmatmul.msk.bf16.gmra.mxu0 %vm236_vm1, %v3218_v21 }
  0x97   : > { %v338_v11 = vpop.f32.mrf.mxu2 }
  0x98   : > { %394 = vst.msk [vmem:[#allocation2 + $0x80] sm:$0xff] %vm236_vm1, %v338_v11  ;;  %v320_v4 = vpop.f32.mrf.mxu1  ;;  %v358_v43 = vpop.f32.mrf.mxu3  ;;  %v458_v11 = vsel %vm441_vm2, %v422_v46, %v423_v0  ;;  %v996_v46 = vsel %vm978_vm4, %v959_v32, %v960_v23  ;;  %v425_v32 = vrot.slane %v3054_v53, 7 }
  0x99   : > { %387 = vst.msk [vmem:[#allocation2 + $0x48] sm:$0xff] %vm236_vm1, %v320_v4  ;;  %v3289_v4 = vpack.c.bf16 %v458_v11, %v486_v34 }
  0x9a   : > { %402 = vst.msk [vmem:[#allocation2 + $0xc0] sm:$0xff] %vm236_vm1, %v358_v43  ;;  %v995_v43 = vsel %vm978_vm4, %v960_v23, %v961_v45 }
  0x9b   : > { %v300_v31 = vpop.f32.mrf.mxu0 }
  0x9c   : > { %379 = vst.msk [vmem:[#allocation2 + $0x8] sm:$0xff] %vm236_vm1, %v300_v31  ;;  %v1024_v31 = vsel %vm1010_vm5, %v995_v43, 0.0  ;;  %v457_v43 = vsel %vm441_vm2, %v423_v0, %v424_v44 }
  0x9d   : > { %v488_v52 = vsel %vm472_vm3, %v457_v43, 0.0  ;;  %v426_v43 = vrot.slane %v2901_v12, 7 }
  0x9f   : > { %v340_v61 = vpop.f32.mrf.mxu2 }
  0xa0   : > { %395 = vst.msk [vmem:[#allocation2 + $0x88] sm:$0xff] %vm236_vm1, %v340_v61  ;;  %v323_v62 = vpop.f32.mrf.mxu1  ;;  %v360_v22 = vpop.f32.mrf.mxu3 }
  0xa1   : > { %388 = vst.msk [vmem:[#allocation2 + $0x50] sm:$0xff] %vm236_vm1, %v323_v62 }
  0xa2   : > { %403 = vst.msk [vmem:[#allocation2 + $0xc8] sm:$0xff] %vm236_vm1, %v360_v22  ;;  %v3305_v22 = vpack.c.bf16 %v1024_v31, %v996_v46  ;;  %v963_v46 = vrot.slane %v2901_v12, 1  ;;  %v962_v31 = vrot.slane %v3054_v53, 1 }
  0xa3   : > { %2680 = vmatmul.msk.bf16.gmra.mxu1 %vm236_vm1, %v3218_v21  ;;  %v303_v48 = vpop.f32.mrf.mxu0 }
  0xa4   : > { %2696 = vmatmul.msk.bf16.gmra.mxu2 %vm236_vm1, %v2905_v13  ;;  %380 = vst.msk [vmem:[#allocation2 + $0x10] sm:$0xff] %vm236_vm1, %v303_v48  ;;  %v994_v53 = vsel %vm978_vm4, %v961_v45, %v962_v31  ;;  %v427_v45 = vrot.slane %v2908_v14, 7 }
  0xa5   : > { %2712 = vmatmul.msk.bf16.gmra.mxu3 %vm236_vm1, %v3238_v1 }
  0xa6   : > { %2729 = vmatmul.msk.bf16.gmra.mxu0 %vm236_vm1, %v3253_v51 }
  0xa7   : > { %v343_v35 = vpop.f32.mrf.mxu2 }
  0xa8   : > { %396 = vst.msk [vmem:[#allocation2 + $0x90] sm:$0xff] %vm236_vm1, %v343_v35  ;;  %v325_v61 = vpop.f32.mrf.mxu1  ;;  %v363_v62 = vpop.f32.mrf.mxu3  ;;  %v456_v35 = vsel %vm441_vm2, %v424_v44, %v425_v32 }
  0xa9   : > { %389 = vst.msk [vmem:[#allocation2 + $0x58] sm:$0xff] %vm236_vm1, %v325_v61  ;;  %v3325_v61 = vpack.c.bf16 %v456_v35, %v488_v52 }
  0xaa   : > { %404 = vst.msk [vmem:[#allocation2 + $0xd0] sm:$0xff] %vm236_vm1, %v363_v62  ;;  %v993_v62 = vsel %vm978_vm4, %v962_v31, %v963_v46 }
  0xab   : > { %v305_v11 = vpop.f32.mrf.mxu0  ;;  %v506_v19 = vld [vmem:[#allocation2 + $0x10] sm:$0xff] }
  0xac   : > { %381 = vst.msk [vmem:[#allocation2 + $0x18] sm:$0xff] %vm236_vm1, %v305_v11  ;;  %v1026_v11 = vsel %vm1010_vm5, %v993_v62, 0.0  ;;  %v455_v62 = vsel %vm441_vm2, %v425_v32, %v426_v43 }
  0xad   : > { %v490_v12 = vsel %vm472_vm3, %v455_v62, 0.0  ;;  %v428_v62 = vrot.slane %v2949_v24, 7 }
  0xaf   : > { %v345_v34 = vpop.f32.mrf.mxu2 }
  0xb0   : > { %397 = vst.msk [vmem:[#allocation2 + $0x98] sm:$0xff] %vm236_vm1, %v345_v34  ;;  %v328_v23 = vpop.f32.mrf.mxu1  ;;  %v365_v48 = vpop.f32.mrf.mxu3 }
  0xb1   : > { %390 = vst.msk [vmem:[#allocation2 + $0x60] sm:$0xff] %vm236_vm1, %v328_v23 }
  0xb2   : > { %405 = vst.msk [vmem:[#allocation2 + $0xd8] sm:$0xff] %vm236_vm1, %v365_v48  ;;  %v3341_v48 = vpack.c.bf16 %v1026_v11, %v994_v53  ;;  %v964_v53 = vrot.slane %v2908_v14, 1  ;;  %v965_v11 = vrot.slane %v2949_v24, 1 }
  0xb3   : > { %2681 = vmatmul.msk.bf16.gmra.mxu1 %vm236_vm1, %v3253_v51  ;;  %v308_v0 = vpop.f32.mrf.mxu0 }
  0xb4   : > { %2697 = vmatmul.msk.bf16.gmra.mxu2 %vm236_vm1, %v2962_v28  ;;  %382 = vst.msk [vmem:[#allocation2 + $0x20] sm:$0xff] %vm236_vm1, %v308_v0 }
  0xb5   : > { %2713 = vmatmul.msk.bf16.gmra.mxu3 %vm236_vm1, %v3269_v10  ;;  %4445 = vst [vmem:[#allocation7_spill] sm:$0xff] %v3341_v48 }
  0xb6   : > { %2730 = vmatmul.msk.bf16.gmra.mxu0 %vm236_vm1, %v3289_v4 }
  0xb7   : > { %v348_v44 = vpop.f32.mrf.mxu2 }
  0xb8   : > { %398 = vst.msk [vmem:[#allocation2 + $0xa0] sm:$0xff] %vm236_vm1, %v348_v44  ;;  %v330_v34 = vpop.f32.mrf.mxu1  ;;  %v368_v23 = vpop.f32.mrf.mxu3  ;;  %v454_v44 = vsel %vm441_vm2, %v426_v43, %v427_v45  ;;  %v992_v43 = vsel %vm978_vm4, %v963_v46, %v964_v53  ;;  %v429_v46 = vrot.slane %v2952_v25, 7 }
  0xb9   : > { %391 = vst.msk [vmem:[#allocation2 + $0x68] sm:$0xff] %vm236_vm1, %v330_v34  ;;  %v3361_v34 = vpack.c.bf16 %v454_v44, %v490_v12 }
  0xba   : > { %406 = vst.msk [vmem:[#allocation2 + $0xe0] sm:$0xff] %vm236_vm1, %v368_v23  ;;  %v991_v23 = vsel %vm978_vm4, %v964_v53, %v965_v11  ;;  %v504_v53 = vld [vmem:[#allocation2] sm:$0xff]  ;;  %v452_v24 = vsel %vm441_vm2, %v428_v62, %v429_v46 }
  0xbb   : > { %v310_v35 = vpop.f32.mrf.mxu0 }
  0xbc   : > { %383 = vst.msk [vmem:[#allocation2 + $0x28] sm:$0xff] %vm236_vm1, %v310_v35  ;;  %v1028_v35 = vsel %vm1010_vm5, %v991_v23, 0.0 }
  0xbf   : > { %v350_v52 = vpop.f32.mrf.mxu2 }
  0xc0   : > { %399 = vst.msk [vmem:[#allocation2 + $0xa8] sm:$0xff] %vm236_vm1, %v350_v52  ;;  %v333_v31 = vpop.f32.mrf.mxu1  ;;  %v370_v0 = vpop.f32.mrf.mxu3 }
  0xc1   : > { %392 = vst.msk [vmem:[#allocation2 + $0x70] sm:$0xff] %vm236_vm1, %v333_v31 }
  0xc2   : > { %407 = vst.msk [vmem:[#allocation2 + $0xe8] sm:$0xff] %vm236_vm1, %v370_v0  ;;  %v3377_v0 = vpack.c.bf16 %v1028_v35, %v992_v43 }
  0xc3   : > { %2682 = vmatmul.msk.bf16.gmra.mxu1 %vm236_vm1, %v3289_v4  ;;  %v313_v32 = vpop.f32.mrf.mxu0 }
  0xc4   : > { %2698 = vmatmul.msk.bf16.gmra.mxu2 %vm236_vm1, %v3010_v40  ;;  %384 = vst.msk [vmem:[#allocation2 + $0x30] sm:$0xff] %vm236_vm1, %v313_v32 }
  0xc5   : > { %2714 = vmatmul.msk.bf16.gmra.mxu3 %vm236_vm1, %v3305_v22  ;;  %4446 = vst [vmem:[#allocation8_spill] sm:$0xff] %v3377_v0 }
  0xc6   : > { %2731 = vmatmul.msk.bf16.gmra.mxu0 %vm236_vm1, %v3325_v61 }
  0xc7   : > { %v353_v14 = vpop.f32.mrf.mxu2 }
  0xc8   : > { %400 = vst.msk [vmem:[#allocation2 + $0xb0] sm:$0xff] %vm236_vm1, %v353_v14  ;;  %v335_v52 = vpop.f32.mrf.mxu1  ;;  %v373_v31 = vpop.f32.mrf.mxu3  ;;  %v453_v14 = vsel %vm441_vm2, %v427_v45, %v428_v62 }
  0xc9   : > { %393 = vst.msk [vmem:[#allocation2 + $0x78] sm:$0xff] %vm236_vm1, %v335_v52  ;;  %v492_v35 = vsel %vm472_vm3, %v453_v14, 0.0  ;;  %v966_v52 = vrot.slane %v2952_v25, 1 }
  0xca   : > { %408 = vst.msk [vmem:[#allocation2 + $0xf0] sm:$0xff] %vm236_vm1, %v373_v31  ;;  %v967_v31 = vrot.slane %v2997_v36, 1 }
  0xcb   : > { %v315_v44 = vpop.f32.mrf.mxu0 }
  0xcc   : > { %385 = vst.msk [vmem:[#allocation2 + $0x38] sm:$0xff] %vm236_vm1, %v315_v44  ;;  %v3396_v44 = vpack.c.bf16 %v452_v24, %v492_v35  ;;  %v989_v62 = vsel %vm978_vm4, %v966_v52, %v967_v31 }
  0xcf   : > { %v355_v12 = vpop.f32.mrf.mxu2 }
  0xd0   : > { %401 = vst.msk [vmem:[#allocation2 + $0xb8] sm:$0xff] %vm236_vm1, %v355_v12  ;;  %v613_v32 = vpop.f32.mrf.mxu1  ;;  %v375_v23 = vpop.f32.mrf.mxu3  ;;  %v990_v12 = vsel %vm978_vm4, %v965_v11, %v966_v52  ;;  %v431_v11 = vrot.slane %v3000_v37, 7 }
  0xd1   : > { %v693_v43 = vadd.f32 %v613_v32, %v504_v53  ;;  %409 = vst.msk [vmem:[#allocation2 + $0xf8] sm:$0xff] %vm236_vm1, %v375_v23  ;;  %v1030_v53 = vsel %vm1010_vm5, %v989_v62, 0.0  ;;  %v505_v32 = vld [vmem:[#allocation2 + $0x8] sm:$0xff] }
  0xd3   : > { %725 = vst.msk [vmem:[#allocation2] sm:$0xff] %vm236_vm1, %v693_v43  ;;  %2683 = vmatmul.msk.bf16.gmra.mxu1 %vm236_vm1, %v3325_v61  ;;  %v1346_v45 = vpop.f32.mrf.mxu0  ;;  %v3411_v43 = vpack.c.bf16 %v1030_v53, %v990_v12 }
  0xd4   : > { %2699 = vmatmul.msk.bf16.gmra.mxu2 %vm236_vm1, %v3070_v58 }
  0xd5   : > { %2715 = vmatmul.msk.bf16.gmra.mxu3 %vm236_vm1, %v3341_v48 }
  0xd6   : > { %2732 = vmatmul.msk.bf16.gmra.mxu0 %vm236_vm1, %v3361_v34 }
  0xd7   : > { %v803_v25 = vpop.f32.mrf.mxu2 }
  0xd8   : > { %v615_v23 = vpop.f32.mrf.mxu1  ;;  %v1147_v14 = vpop.f32.mrf.mxu3 }
  0xd9   : > { %v694_v24 = vadd.f32 %v615_v23, %v505_v32  ;;  %v451_v32 = vsel %vm441_vm2, %v429_v46, %v430_v60 }
  0xda   : > { %v757_v35 = vld [vmem:[#allocation2] sm:$0xff]  ;;  %v494_v36 = vsel %vm472_vm3, %v451_v32, 0.0 }
  0xdb   : > { %v883_v5 = vadd.f32 %v803_v25, %v757_v35  ;;  %726 = vst.msk [vmem:[#allocation2 + $0x8] sm:$0xff] %vm236_vm1, %v694_v24  ;;  %v3419_v52 = vpop.f32.mrf.mxu0  ;;  %v450_v25 = vsel %vm441_vm2, %v430_v60, %v431_v11  ;;  %v968_v24 = vrot.slane %v3000_v37, 1 }
  0xdc   : > { %v3429_v48 = vpack.c.bf16 %v450_v25, %v494_v36 }
  0xdd   : > { %915 = vst.msk [vmem:[#allocation2] sm:$0xff] %vm236_vm1, %v883_v5  ;;  %v4433_v5 = vrot.slane %v3057_v54, 1 }
  0xdf   : > { %v805_v62 = vpop.f32.mrf.mxu2  ;;  %v987_v46 = vsel %vm978_vm4, %v968_v24, %v4433_v5 }
  0xe0   : > { %v618_v12 = vpop.f32.mrf.mxu1  ;;  %v1149_v53 = vpop.f32.mrf.mxu3 }
  0xe1   : > { %v695_v23 = vadd.f32 %v618_v12, %v506_v19  ;;  %v988_v12 = vsel %vm978_vm4, %v967_v31, %v968_v24  ;;  %v433_v31 = vrot.slane %v3060_v55, 7 }
  0xe2   : > { %v758_v35 = vld [vmem:[#allocation2 + $0x8] sm:$0xff] }
  0xe3   : > { %v884_v58 = vadd.f32 %v805_v62, %v758_v35  ;;  %727 = vst.msk [vmem:[#allocation2 + $0x10] sm:$0xff] %vm236_vm1, %v695_v23  ;;  %2684 = vmatmul.msk.bf16.gmra.mxu1 %vm236_vm1, %v3361_v34  ;;  %v3439_v37 = vpop.f32.mrf.mxu0 }
  0xe4   : > { %v1041_v19 = vld [vmem:[#allocation2] sm:$0xff]  ;;  %2700 = vmatmul.msk.bf16.gmra.mxu2 %vm236_vm1, %v2918_v17 }
  0xe5   : > { %v1227_v60 = vadd.f32 %v1147_v14, %v1041_v19  ;;  %916 = vst.msk [vmem:[#allocation2 + $0x8] sm:$0xff] %vm236_vm1, %v884_v58  ;;  %2716 = vmatmul.msk.bf16.gmra.mxu3 %vm236_vm1, %v3377_v0  ;;  %v1032_v14 = vsel %vm1010_vm5, %v987_v46, 0.0  ;;  %v507_v58 = vld [vmem:[#allocation2 + $0x18] sm:$0xff] }
  0xe6   : > { %v3450_v25 = vpack.c.bf16 %v1032_v14, %v988_v12  ;;  %2733 = vmatmul.msk.bf16.gmra.mxu0 %vm236_vm1, %v3396_v44 }
  0xe7   : > { %1259 = vst.msk [vmem:[#allocation2] sm:$0xff] %vm236_vm1, %v1227_v60  ;;  %v808_v62 = vpop.f32.mrf.mxu2  ;;  %v432_v60 = vrot.slane %v3057_v54, 7 }
  0xe8   : > { %v620_v32 = vpop.f32.mrf.mxu1  ;;  %v1152_v23 = vpop.f32.mrf.mxu3 }
  0xe9   : > { %v696_v36 = vadd.f32 %v620_v32, %v507_v58  ;;  %v508_v58 = vld [vmem:[#allocation2 + $0x20] sm:$0xff] }
  0xea   : > { %v759_v35 = vld [vmem:[#allocation2 + $0x10] sm:$0xff] }
  0xeb   : > { %v885_v19 = vadd.f32 %v808_v62, %v759_v35  ;;  %728 = vst.msk [vmem:[#allocation2 + $0x18] sm:$0xff] %vm236_vm1, %v696_v36  ;;  %v3458_v0 = vpop.f32.mrf.mxu0  ;;  %v449_v36 = vsel %vm441_vm2, %v431_v11, %v432_v60 }
  0xec   : > { %v1042_v5 = vld [vmem:[#allocation2 + $0x8] sm:$0xff] }
  0xed   : > { %v1228_v24 = vadd.f32 %v1149_v53, %v1042_v5  ;;  %917 = vst.msk [vmem:[#allocation2 + $0x10] sm:$0xff] %vm236_vm1, %v885_v19  ;;  %v448_v53 = vsel %vm441_vm2, %v432_v60, %v433_v31  ;;  %v496_v5 = vsel %vm472_vm3, %v449_v36, 0.0  ;;  %v4437_v19 = vrot.slane %v2911_v15, 1 }
  0xee   : > { %v1296_v46 = vld [vmem:[#allocation2] sm:$0xff] }
  0xef   : > { %1260 = vst.msk [vmem:[#allocation2 + $0x8] sm:$0xff] %vm236_vm1, %v1228_v24  ;;  %v1426_v12 = vadd.f32 %v1346_v45, %v1296_v46  ;;  %v810_v14 = vpop.f32.mrf.mxu2  ;;  %v970_v45 = vrot.slane %v3060_v55, 1  ;;  %v3470_v46 = vpack.c.bf16 %v448_v53, %v496_v5 }
  0xf0   : > { %v623_v32 = vpop.f32.mrf.mxu1  ;;  %v1154_v62 = vpop.f32.mrf.mxu3 }
  0xf1   : > { %1458 = vst.msk [vmem:[#allocation2] sm:$0xff] %vm236_vm1, %v1426_v12  ;;  %v697_v35 = vadd.f32 %v623_v32, %v508_v58 }
  0xf2   : > { %v760_v24 = vld [vmem:[#allocation2 + $0x18] sm:$0xff] }
  0xf3   : > { %v886_v17 = vadd.f32 %v810_v14, %v760_v24  ;;  %729 = vst.msk [vmem:[#allocation2 + $0x20] sm:$0xff] %vm236_vm1, %v697_v35  ;;  %2685 = vmatmul.msk.bf16.gmra.mxu1 %vm236_vm1, %v3396_v44  ;;  %v3480_v12 = vpop.f32.mrf.mxu0  ;;  %v985_v14 = vsel %vm978_vm4, %v970_v45, %v4437_v19  ;;  %v509_v35 = vld [vmem:[#allocation2 + $0x28] sm:$0xff] }
  0xf4   : > { %v1043_v11 = vld [vmem:[#allocation2 + $0x10] sm:$0xff]  ;;  %2701 = vmatmul.msk.bf16.gmra.mxu2 %vm236_vm1, %v2966_v29  ;;  %v1034_v36 = vsel %vm1010_vm5, %v985_v14, 0.0 }
  0xf5   : > { %v1229_v60 = vadd.f32 %v1152_v23, %v1043_v11  ;;  %918 = vst.msk [vmem:[#allocation2 + $0x18] sm:$0xff] %vm236_vm1, %v886_v17  ;;  %2717 = vmatmul.msk.bf16.gmra.mxu3 %vm236_vm1, %v3411_v43  ;;  %v4447_v23 = vrot.slane %v3057_v54, 1  ;;  %v434_v54 = vrot.slane %v2911_v15, 7 }
  0xf6   : > { %v1297_v55 = vld [vmem:[#allocation2 + $0x8] sm:$0xff]  ;;  %2734 = vmatmul.msk.bf16.gmra.mxu0 %vm236_vm1, %v3429_v48 }
  0xf7   : > { %1261 = vst.msk [vmem:[#allocation2 + $0x10] sm:$0xff] %vm236_vm1, %v1229_v60  ;;  %v1427_v58 = vadd.f32 %v3419_v52, %v1297_v55  ;;  %v813_v32 = vpop.f32.mrf.mxu2  ;;  %v986_v17 = vsel %vm978_vm4, %v4447_v23, %v970_v45  ;;  %v435_v55 = vrot.slane %v2914_v16, 7 }
  0xf8   : > { %v625_v53 = vpop.f32.mrf.mxu1  ;;  %v1157_v5 = vpop.f32.mrf.mxu3  ;;  %v3494_v24 = vpack.c.bf16 %v1034_v36, %v986_v17 }
  0xf9   : > { %1459 = vst.msk [vmem:[#allocation2 + $0x8] sm:$0xff] %vm236_vm1, %v1427_v58  ;;  %v698_v11 = vadd.f32 %v625_v53, %v509_v35  ;;  %v510_v35 = vld [vmem:[#allocation2 + $0x30] sm:$0xff] }
  0xfa   : > { %v761_v52 = vld [vmem:[#allocation2 + $0x20] sm:$0xff] }
  0xfb   : > { %v887_v60 = vadd.f32 %v813_v32, %v761_v52  ;;  %730 = vst.msk [vmem:[#allocation2 + $0x28] sm:$0xff] %vm236_vm1, %v698_v11  ;;  %v3503_v17 = vpop.f32.mrf.mxu0  ;;  %v447_v11 = vsel %vm441_vm2, %v433_v31, %v434_v54 }
  0xfc   : > { %v1044_v45 = vld [vmem:[#allocation2 + $0x18] sm:$0xff] }
  0xfd   : > { %v1230_v14 = vadd.f32 %v1154_v62, %v1044_v45  ;;  %919 = vst.msk [vmem:[#allocation2 + $0x20] sm:$0xff] %vm236_vm1, %v887_v60  ;;  %v446_v62 = vsel %vm441_vm2, %v434_v54, %v435_v55  ;;  %v498_v60 = vsel %vm472_vm3, %v447_v11, 0.0  ;;  %v972_v45 = vrot.slane %v2914_v16, 1 }
  0xfe   : > { %v1298_v23 = vld [vmem:[#allocation2 + $0x10] sm:$0xff] }
  0xff   : > { %1262 = vst.msk [vmem:[#allocation2 + $0x18] sm:$0xff] %vm236_vm1, %v1230_v14  ;;  %v1428_v58 = vadd.f32 %v3439_v37, %v1298_v23  ;;  %v815_v36 = vpop.f32.mrf.mxu2  ;;  %v4438_v37 = vrot.slane %v2955_v26, 1  ;;  %v3516_v23 = vpack.c.bf16 %v446_v62, %v498_v60 }
 0x100   : > { %v628_v32 = vpop.f32.mrf.mxu1  ;;  %v1159_v53 = vpop.f32.mrf.mxu3 }
 0x101   : > { %1460 = vst.msk [vmem:[#allocation2 + $0x10] sm:$0xff] %vm236_vm1, %v1428_v58  ;;  %v699_v52 = vadd.f32 %v628_v32, %v510_v35 }
 0x102   : > { %v762_v14 = vld [vmem:[#allocation2 + $0x28] sm:$0xff] }
 0x103   : > { %v888_v19 = vadd.f32 %v815_v36, %v762_v14  ;;  %731 = vst.msk [vmem:[#allocation2 + $0x30] sm:$0xff] %vm236_vm1, %v699_v52  ;;  %2686 = vmatmul.msk.bf16.gmra.mxu1 %vm236_vm1, %v3429_v48  ;;  %v3526_v58 = vpop.f32.mrf.mxu0  ;;  %v983_v36 = vsel %vm978_vm4, %v972_v45, %v4438_v37  ;;  %v511_v52 = vld [vmem:[#allocation2 + $0x38] sm:$0xff] }
 0x104   : > { %v1045_v31 = vld [vmem:[#allocation2 + $0x20] sm:$0xff]  ;;  %2702 = vmatmul.msk.bf16.gmra.mxu2 %vm236_vm1, %v3014_v41  ;;  %v1036_v11 = vsel %vm1010_vm5, %v983_v36, 0.0 }
 0x105   : > { %v1231_v54 = vadd.f32 %v1157_v5, %v1045_v31  ;;  %920 = vst.msk [vmem:[#allocation2 + $0x28] sm:$0xff] %vm236_vm1, %v888_v19  ;;  %2718 = vmatmul.msk.bf16.gmra.mxu3 %vm236_vm1, %v3450_v25  ;;  %v4448_v5 = vrot.slane %v2911_v15, 1  ;;  %v436_v15 = vrot.slane %v2955_v26, 7 }
 0x106   : > { %v1299_v16 = vld [vmem:[#allocation2 + $0x18] sm:$0xff]  ;;  %2735 = vmatmul.msk.bf16.gmra.mxu0 %vm236_vm1, %v3470_v46 }
 0x107   : > { %1263 = vst.msk [vmem:[#allocation2 + $0x20] sm:$0xff] %vm236_vm1, %v1231_v54  ;;  %v1429_v35 = vadd.f32 %v3458_v0, %v1299_v16  ;;  %v818_v32 = vpop.f32.mrf.mxu2  ;;  %v984_v19 = vsel %vm978_vm4, %v4448_v5, %v972_v45  ;;  %v437_v16 = vrot.slane %v2958_v27, 7 }
 0x108   : > { %v630_v62 = vpop.f32.mrf.mxu1  ;;  %v1162_v60 = vpop.f32.mrf.mxu3  ;;  %v3540_v14 = vpack.c.bf16 %v1036_v11, %v984_v19 }
 0x109   : > { %1461 = vst.msk [vmem:[#allocation2 + $0x18] sm:$0xff] %vm236_vm1, %v1429_v35  ;;  %v700_v31 = vadd.f32 %v630_v62, %v511_v52  ;;  %v512_v52 = vld [vmem:[#allocation2 + $0x40] sm:$0xff] }
 0x10a   : > { %v763_v0 = vld [vmem:[#allocation2 + $0x30] sm:$0xff] }
 0x10b   : > { %v889_v54 = vadd.f32 %v818_v32, %v763_v0  ;;  %732 = vst.msk [vmem:[#allocation2 + $0x38] sm:$0xff] %vm236_vm1, %v700_v31  ;;  %v3549_v19 = vpop.f32.mrf.mxu0  ;;  %v445_v31 = vsel %vm441_vm2, %v435_v55, %v436_v15 }
 0x10c   : > { %v1046_v45 = vld [vmem:[#allocation2 + $0x28] sm:$0xff] }
 0x10d   : > { %v1232_v36 = vadd.f32 %v1159_v53, %v1046_v45  ;;  %921 = vst.msk [vmem:[#allocation2 + $0x30] sm:$0xff] %vm236_vm1, %v889_v54  ;;  %v444_v53 = vsel %vm441_vm2, %v436_v15, %v437_v16  ;;  %v500_v54 = vsel %vm472_vm3, %v445_v31, 0.0  ;;  %v974_v45 = vrot.slane %v2958_v27, 1 }
 0x10e   : > { %v1300_v5 = vld [vmem:[#allocation2 + $0x20] sm:$0xff] }
 0x10f   : > { %1264 = vst.msk [vmem:[#allocation2 + $0x28] sm:$0xff] %vm236_vm1, %v1232_v36  ;;  %v1430_v35 = vadd.f32 %v3480_v12, %v1300_v5  ;;  %v820_v11 = vpop.f32.mrf.mxu2  ;;  %v4439_v12 = vrot.slane %v3003_v38, 1  ;;  %v3562_v5 = vpack.c.bf16 %v444_v53, %v500_v54 }
 0x110   : > { %v633_v32 = vpop.f32.mrf.mxu1  ;;  %v1164_v62 = vpop.f32.mrf.mxu3 }
 0x111   : > { %1462 = vst.msk [vmem:[#allocation2 + $0x20] sm:$0xff] %vm236_vm1, %v1430_v35  ;;  %v701_v0 = vadd.f32 %v633_v32, %v512_v52 }
 0x112   : > { %v764_v36 = vld [vmem:[#allocation2 + $0x38] sm:$0xff] }
 0x113   : > { %v890_v37 = vadd.f32 %v820_v11, %v764_v36  ;;  %733 = vst.msk [vmem:[#allocation2 + $0x40] sm:$0xff] %vm236_vm1, %v701_v0  ;;  %2687 = vmatmul.msk.bf16.gmra.mxu1 %vm236_vm1, %v3470_v46  ;;  %v3572_v35 = vpop.f32.mrf.mxu0  ;;  %v981_v11 = vsel %vm978_vm4, %v974_v45, %v4439_v12  ;;  %v513_v0 = vld [vmem:[#allocation2 + $0x48] sm:$0xff] }
 0x114   : > { %v1047_v55 = vld [vmem:[#allocation2 + $0x30] sm:$0xff]  ;;  %2703 = vmatmul.msk.bf16.gmra.mxu2 %vm236_vm1, %v3074_v59  ;;  %v1038_v31 = vsel %vm1010_vm5, %v981_v11, 0.0 }
 0x115   : > { %v1233_v15 = vadd.f32 %v1162_v60, %v1047_v55  ;;  %922 = vst.msk [vmem:[#allocation2 + $0x38] sm:$0xff] %vm236_vm1, %v890_v37  ;;  %2719 = vmatmul.msk.bf16.gmra.mxu3 %vm236_vm1, %v3494_v24  ;;  %v4449_v60 = vrot.slane %v2955_v26, 1  ;;  %v438_v26 = vrot.slane %v3003_v38, 7 }
 0x116   : > { %v1301_v27 = vld [vmem:[#allocation2 + $0x28] sm:$0xff]  ;;  %2736 = vmatmul.msk.bf16.gmra.mxu0 %vm236_vm1, %v3516_v23 }
 0x117   : > { %1265 = vst.msk [vmem:[#allocation2 + $0x30] sm:$0xff] %vm236_vm1, %v1233_v15  ;;  %v1431_v52 = vadd.f32 %v3503_v17, %v1301_v27  ;;  %v823_v32 = vpop.f32.mrf.mxu2  ;;  %v982_v37 = vsel %vm978_vm4, %v4449_v60, %v974_v45  ;;  %v439_v27 = vrot.slane %v3006_v39, 7 }
 0x118   : > { %v635_v53 = vpop.f32.mrf.mxu1  ;;  %v1167_v54 = vpop.f32.mrf.mxu3  ;;  %v3586_v36 = vpack.c.bf16 %v1038_v31, %v982_v37 }
 0x119   : > { %1463 = vst.msk [vmem:[#allocation2 + $0x28] sm:$0xff] %vm236_vm1, %v1431_v52  ;;  %v702_v55 = vadd.f32 %v635_v53, %v513_v0  ;;  %v514_v0 = vld [vmem:[#allocation2 + $0x50] sm:$0xff] }
 0x11a   : > { %v765_v17 = vld [vmem:[#allocation2 + $0x40] sm:$0xff] }
 0x11b   : > { %v891_v15 = vadd.f32 %v823_v32, %v765_v17  ;;  %734 = vst.msk [vmem:[#allocation2 + $0x48] sm:$0xff] %vm236_vm1, %v702_v55  ;;  %v3595_v37 = vpop.f32.mrf.mxu0  ;;  %v443_v55 = vsel %vm441_vm2, %v437_v16, %v438_v26 }
 0x11c   : > { %v1048_v45 = vld [vmem:[#allocation2 + $0x38] sm:$0xff] }
 0x11d   : > { %v1234_v11 = vadd.f32 %v1164_v62, %v1048_v45  ;;  %923 = vst.msk [vmem:[#allocation2 + $0x40] sm:$0xff] %vm236_vm1, %v891_v15  ;;  %v442_v62 = vsel %vm441_vm2, %v438_v26, %v439_v27  ;;  %v502_v15 = vsel %vm472_vm3, %v443_v55, 0.0  ;;  %v4440_v45 = vrot.slane %v3063_v56, 1 }
 0x11e   : > { %v1302_v60 = vld [vmem:[#allocation2 + $0x30] sm:$0xff] }
 0x11f   : > { %1266 = vst.msk [vmem:[#allocation2 + $0x38] sm:$0xff] %vm236_vm1, %v1234_v11  ;;  %v1432_v52 = vadd.f32 %v3526_v58, %v1302_v60  ;;  %v825_v31 = vpop.f32.mrf.mxu2  ;;  %v976_v58 = vrot.slane %v3006_v39, 1  ;;  %v3610_v60 = vpack.c.bf16 %v442_v62, %v502_v15  ;;  %v515_v62 = vld [vmem:[#allocation2 + $0x58] sm:$0xff] }
 0x120   : > { %v638_v32 = vpop.f32.mrf.mxu1  ;;  %v1169_v53 = vpop.f32.mrf.mxu3 }
 0x121   : > { %1464 = vst.msk [vmem:[#allocation2 + $0x30] sm:$0xff] %vm236_vm1, %v1432_v52  ;;  %v703_v17 = vadd.f32 %v638_v32, %v514_v0 }
 0x122   : > { %v766_v11 = vld [vmem:[#allocation2 + $0x48] sm:$0xff] }
 0x123   : > { %v892_v12 = vadd.f32 %v825_v31, %v766_v11  ;;  %735 = vst.msk [vmem:[#allocation2 + $0x50] sm:$0xff] %vm236_vm1, %v703_v17  ;;  %2688 = vmatmul.msk.bf16.gmra.mxu1 %vm236_vm1, %v3516_v23  ;;  %v3620_v0 = vpop.f32.mrf.mxu0  ;;  %v979_v31 = vsel %vm978_vm4, %v976_v58, %v4440_v45 }
 0x124   : > { %v1049_v16 = vld [vmem:[#allocation2 + $0x40] sm:$0xff]  ;;  %2704 = vmatmul.msk.bf16.gmra.mxu2 %vm236_vm1, %v2924_v18  ;;  %v1040_v17 = vsel %vm1010_vm5, %v979_v31, 0.0 }
 0x125   : > { %v1235_v26 = vadd.f32 %v1167_v54, %v1049_v16  ;;  %924 = vst.msk [vmem:[#allocation2 + $0x48] sm:$0xff] %vm236_vm1, %v892_v12  ;;  %2720 = vmatmul.msk.bf16.gmra.mxu3 %vm236_vm1, %v3540_v14  ;;  %v4450_v54 = vrot.slane %v3003_v38, 1 }
 0x126   : > { %v1303_v52 = vld [vmem:[#allocation2 + $0x38] sm:$0xff]  ;;  %2737 = vmatmul.msk.bf16.gmra.mxu0 %vm236_vm1, %v3562_v5 }
 0x127   : > { %1267 = vst.msk [vmem:[#allocation2 + $0x40] sm:$0xff] %vm236_vm1, %v1235_v26  ;;  %v1433_v32 = vadd.f32 %v3549_v19, %v1303_v52  ;;  %v828_v55 = vpop.f32.mrf.mxu2  ;;  %v980_v12 = vsel %vm978_vm4, %v4450_v54, %v976_v58 }
 0x128   : > { %v640_v15 = vpop.f32.mrf.mxu1  ;;  %v1172_v11 = vpop.f32.mrf.mxu3  ;;  %v3634_v16 = vpack.c.bf16 %v1040_v17, %v980_v12 }
 0x129   : > { %1465 = vst.msk [vmem:[#allocation2 + $0x38] sm:$0xff] %vm236_vm1, %v1433_v32  ;;  %v704_v45 = vadd.f32 %v640_v15, %v515_v62  ;;  %v516_v32 = vld [vmem:[#allocation2 + $0x60] sm:$0xff] }
 0x12a   : > { %v767_v19 = vld [vmem:[#allocation2 + $0x50] sm:$0xff] }
 0x12b   : > { %v893_v26 = vadd.f32 %v828_v55, %v767_v19  ;;  %736 = vst.msk [vmem:[#allocation2 + $0x58] sm:$0xff] %vm236_vm1, %v704_v45  ;;  %v1373_v31 = vpop.f32.mrf.mxu0  ;;  %v1291_v55 = vrot.slane %v3063_v56, 7 }
 0x12c   : > { %v1050_v38 = vld [vmem:[#allocation2 + $0x48] sm:$0xff] }
 0x12d   : > { %v1236_v58 = vadd.f32 %v1169_v53, %v1050_v38  ;;  %925 = vst.msk [vmem:[#allocation2 + $0x50] sm:$0xff] %vm236_vm1, %v893_v26 }
 0x12e   : > { %v1304_v52 = vld [vmem:[#allocation2 + $0x40] sm:$0xff] }
 0x12f   : > { %1268 = vst.msk [vmem:[#allocation2 + $0x48] sm:$0xff] %vm236_vm1, %v1236_v58  ;;  %v1434_v54 = vadd.f32 %v3572_v35, %v1304_v52  ;;  %v830_v12 = vpop.f32.mrf.mxu2  ;;  %v1293_v58 = vsel %vm441_vm2, %v439_v27, %v1291_v55 }
 0x130   : > { %v643_v17 = vpop.f32.mrf.mxu1  ;;  %v1174_v62 = vpop.f32.mrf.mxu3 }
 0x131   : > { %1466 = vst.msk [vmem:[#allocation2 + $0x40] sm:$0xff] %vm236_vm1, %v1434_v54  ;;  %v705_v15 = vadd.f32 %v643_v17, %v516_v32  ;;  %v1294_v32 = vsel %vm472_vm3, %v1293_v58, 0.0  ;;  %v517_v17 = vld [vmem:[#allocation2 + $0x68] sm:$0xff] }
 0x132   : > { %v768_v45 = vld [vmem:[#allocation2 + $0x58] sm:$0xff] }
 0x133   : > { %v894_v19 = vadd.f32 %v830_v12, %v768_v45  ;;  %737 = vst.msk [vmem:[#allocation2 + $0x60] sm:$0xff] %vm236_vm1, %v705_v15  ;;  %2689 = vmatmul.msk.bf16.gmra.mxu1 %vm236_vm1, %v3562_v5  ;;  %v1376_v38 = vpop.f32.mrf.mxu0  ;;  %v4451_v12 = vrot.slane %v3066_v57, 7 }
 0x134   : > { %v1051_v53 = vld [vmem:[#allocation2 + $0x50] sm:$0xff]  ;;  %2705 = vmatmul.msk.bf16.gmra.mxu2 %vm236_vm1, %v2970_v30 }
 0x135   : > { %v1237_v35 = vadd.f32 %v1172_v11, %v1051_v53  ;;  %926 = vst.msk [vmem:[#allocation2 + $0x58] sm:$0xff] %vm236_vm1, %v894_v19  ;;  %2721 = vmatmul.msk.bf16.gmra.mxu3 %vm236_vm1, %v3586_v36  ;;  %v1292_v11 = vsel %vm441_vm2, %v1291_v55, %v4451_v12 }
 0x136   : > { %v1305_v26 = vld [vmem:[#allocation2 + $0x48] sm:$0xff]  ;;  %v3665_v39 = vpack.c.bf16 %v1292_v11, %v1294_v32  ;;  %2738 = vmatmul.msk.bf16.gmra.mxu0 %vm236_vm1, %v3610_v60 }
 0x137   : > { %1269 = vst.msk [vmem:[#allocation2 + $0x50] sm:$0xff] %vm236_vm1, %v1237_v35  ;;  %v1435_v52 = vadd.f32 %v3595_v37, %v1305_v26  ;;  %v833_v54 = vpop.f32.mrf.mxu2 }
 0x138   : > { %v645_v15 = vpop.f32.mrf.mxu1  ;;  %v1177_v45 = vpop.f32.mrf.mxu3 }
 0x139   : > { %1467 = vst.msk [vmem:[#allocation2 + $0x48] sm:$0xff] %vm236_vm1, %v1435_v52  ;;  %v706_v27 = vadd.f32 %v645_v15, %v517_v17  ;;  %v518_v52 = vld [vmem:[#allocation2 + $0x70] sm:$0xff] }
 0x13a   : > { %v769_v37 = vld [vmem:[#allocation2 + $0x60] sm:$0xff] }
 0x13b   : > { %v895_v19 = vadd.f32 %v833_v54, %v769_v37  ;;  %738 = vst.msk [vmem:[#allocation2 + $0x68] sm:$0xff] %vm236_vm1, %v706_v27  ;;  %v1378_v35 = vpop.f32.mrf.mxu0 }
 0x13c   : > { %v1052_v57 = vld [vmem:[#allocation2 + $0x58] sm:$0xff] }
 0x13d   : > { %v1238_v55 = vadd.f32 %v1174_v62, %v1052_v57  ;;  %927 = vst.msk [vmem:[#allocation2 + $0x60] sm:$0xff] %vm236_vm1, %v895_v19  ;;  %v519_v57 = vld [vmem:[#allocation2 + $0x78] sm:$0xff] }
 0x13e   : > { %v1306_v53 = vld [vmem:[#allocation2 + $0x50] sm:$0xff] }
 0x13f   : > { %1270 = vst.msk [vmem:[#allocation2 + $0x58] sm:$0xff] %vm236_vm1, %v1238_v55  ;;  %v1436_v26 = vadd.f32 %v3620_v0, %v1306_v53  ;;  %v835_v58 = vpop.f32.mrf.mxu2 }
 0x140   : > { %v648_v12 = vpop.f32.mrf.mxu1  ;;  %v1179_v11 = vpop.f32.mrf.mxu3 }
 0x141   : > { %1468 = vst.msk [vmem:[#allocation2 + $0x50] sm:$0xff] %vm236_vm1, %v1436_v26  ;;  %v707_v32 = vadd.f32 %v648_v12, %v518_v52 }
 0x142   : > { %v770_v54 = vld [vmem:[#allocation2 + $0x68] sm:$0xff] }
 0x143   : > { %v896_v17 = vadd.f32 %v835_v58, %v770_v54  ;;  %739 = vst.msk [vmem:[#allocation2 + $0x70] sm:$0xff] %vm236_vm1, %v707_v32  ;;  %2690 = vmatmul.msk.bf16.gmra.mxu1 %vm236_vm1, %v3610_v60  ;;  %v1381_v27 = vpop.f32.mrf.mxu0 }
 0x144   : > { %v1053_v62 = vld [vmem:[#allocation2 + $0x60] sm:$0xff]  ;;  %2706 = vmatmul.msk.bf16.gmra.mxu2 %vm236_vm1, %v3018_v42 }
 0x145   : > { %v1239_v15 = vadd.f32 %v1177_v45, %v1053_v62  ;;  %928 = vst.msk [vmem:[#allocation2 + $0x68] sm:$0xff] %vm236_vm1, %v896_v17  ;;  %2722 = vmatmul.msk.bf16.gmra.mxu3 %vm236_vm1, %v3634_v16  ;;  %v520_v62 = vld [vmem:[#allocation2 + $0x80] sm:$0xff] }
 0x146   : > { %v1307_v0 = vld [vmem:[#allocation2 + $0x58] sm:$0xff]  ;;  %2739 = vmatmul.msk.bf16.gmra.mxu0 %vm236_vm1, %v3665_v39 }
 0x147   : > { %1271 = vst.msk [vmem:[#allocation2 + $0x60] sm:$0xff] %vm236_vm1, %v1239_v15  ;;  %v1437_v37 = vadd.f32 %v1373_v31, %v1307_v0  ;;  %v838_v19 = vpop.f32.mrf.mxu2 }
 0x148   : > { %v650_v55 = vpop.f32.mrf.mxu1  ;;  %v1182_v53 = vpop.f32.mrf.mxu3 }
 0x149   : > { %1469 = vst.msk [vmem:[#allocation2 + $0x58] sm:$0xff] %vm236_vm1, %v1437_v37  ;;  %v708_v26 = vadd.f32 %v650_v55, %v519_v57 }
 0x14a   : > { %v771_v45 = vld [vmem:[#allocation2 + $0x70] sm:$0xff] }
 0x14b   : > { %v897_v58 = vadd.f32 %v838_v19, %v771_v45  ;;  %740 = vst.msk [vmem:[#allocation2 + $0x78] sm:$0xff] %vm236_vm1, %v708_v26  ;;  %v1383_v31 = vpop.f32.mrf.mxu0 }
 0x14c   : > { %v1054_v52 = vld [vmem:[#allocation2 + $0x68] sm:$0xff] }
 0x14d   : > { %v1240_v12 = vadd.f32 %v1179_v11, %v1054_v52  ;;  %929 = vst.msk [vmem:[#allocation2 + $0x70] sm:$0xff] %vm236_vm1, %v897_v58  ;;  %v521_v52 = vld [vmem:[#allocation2 + $0x88] sm:$0xff] }
 0x14e   : > { %v1308_v32 = vld [vmem:[#allocation2 + $0x60] sm:$0xff] }
 0x14f   : > { %1272 = vst.msk [vmem:[#allocation2 + $0x68] sm:$0xff] %vm236_vm1, %v1240_v12  ;;  %v1438_v54 = vadd.f32 %v1376_v38, %v1308_v32  ;;  %v840_v17 = vpop.f32.mrf.mxu2 }
 0x150   : > { %v653_v15 = vpop.f32.mrf.mxu1  ;;  %v1184_v0 = vpop.f32.mrf.mxu3 }
 0x151   : > { %1470 = vst.msk [vmem:[#allocation2 + $0x60] sm:$0xff] %vm236_vm1, %v1438_v54  ;;  %v709_v37 = vadd.f32 %v653_v15, %v520_v62 }
 0x152   : > { %v772_v57 = vld [vmem:[#allocation2 + $0x78] sm:$0xff] }
 0x153   : > { %v898_v19 = vadd.f32 %v840_v17, %v772_v57  ;;  %741 = vst.msk [vmem:[#allocation2 + $0x80] sm:$0xff] %vm236_vm1, %v709_v37  ;;  %2741 = vmatmul.msk.bf16.vlgmr.msra.gmra.mxu1 %vm236_vm1, %v3139_v7  ;;  %v1386_v26 = vpop.f32.mrf.mxu0  ;;  %v522_v37 = vld [vmem:[#allocation2 + $0x90] sm:$0xff] }
 0x154   : > { %v1055_v11 = vld [vmem:[#allocation2 + $0x70] sm:$0xff]  ;;  %2758 = vmatmul.msk.bf16.vlgmr.msra.gmra.mxu2 %vm236_vm1, %v3154_v20 }
 0x155   : > { %v1241_v55 = vadd.f32 %v1182_v53, %v1055_v11  ;;  %930 = vst.msk [vmem:[#allocation2 + $0x78] sm:$0xff] %vm236_vm1, %v898_v19  ;;  %2774 = vmatmul.msk.bf16.vlgmr.msra.gmra.mxu3 %vm236_vm1, %v2986_v33 }
 0x156   : > { %v1309_v38 = vld [vmem:[#allocation2 + $0x68] sm:$0xff]  ;;  %2790 = vmatmul.msk.bf16.vlgmr.msra.gmra.mxu0 %vm236_vm1, %v3166_v2 }
 0x157   : > { %1273 = vst.msk [vmem:[#allocation2 + $0x70] sm:$0xff] %vm236_vm1, %v1241_v55  ;;  %v1439_v45 = vadd.f32 %v1378_v35, %v1309_v38  ;;  %v843_v58 = vpop.f32.mrf.mxu2 }
 0x158   : > { %v655_v12 = vpop.f32.mrf.mxu1  ;;  %v1187_v32 = vpop.f32.mrf.mxu3 }
 0x159   : > { %1471 = vst.msk [vmem:[#allocation2 + $0x68] sm:$0xff] %vm236_vm1, %v1439_v45  ;;  %v710_v7 = vadd.f32 %v655_v12, %v521_v52 }
 0x15a   : > { %v773_v20 = vld [vmem:[#allocation2 + $0x80] sm:$0xff] }
 0x15b   : > { %v899_v53 = vadd.f32 %v843_v58, %v773_v20  ;;  %742 = vst.msk [vmem:[#allocation2 + $0x88] sm:$0xff] %vm236_vm1, %v710_v7  ;;  %v1388_v35 = vpop.f32.mrf.mxu0  ;;  %v523_v7 = vld [vmem:[#allocation2 + $0x98] sm:$0xff] }
 0x15c   : > { %v1056_v33 = vld [vmem:[#allocation2 + $0x78] sm:$0xff] }
 0x15d   : > { %v1242_v54 = vadd.f32 %v1184_v0, %v1056_v33  ;;  %931 = vst.msk [vmem:[#allocation2 + $0x80] sm:$0xff] %vm236_vm1, %v899_v53 }
 0x15e   : > { %v1310_v17 = vld [vmem:[#allocation2 + $0x70] sm:$0xff] }
 0x15f   : > { %1274 = vst.msk [vmem:[#allocation2 + $0x78] sm:$0xff] %vm236_vm1, %v1242_v54  ;;  %v1440_v62 = vadd.f32 %v1381_v27, %v1310_v17  ;;  %v845_v15 = vpop.f32.mrf.mxu2 }
 0x160   : > { %v658_v57 = vpop.f32.mrf.mxu1  ;;  %v1189_v19 = vpop.f32.mrf.mxu3 }
 0x161   : > { %1472 = vst.msk [vmem:[#allocation2 + $0x70] sm:$0xff] %vm236_vm1, %v1440_v62  ;;  %v711_v11 = vadd.f32 %v658_v57, %v522_v37 }
 0x162   : > { %v774_v55 = vld [vmem:[#allocation2 + $0x88] sm:$0xff] }
 0x163   : > { %v900_v38 = vadd.f32 %v845_v15, %v774_v55  ;;  %743 = vst.msk [vmem:[#allocation2 + $0x90] sm:$0xff] %vm236_vm1, %v711_v11  ;;  %2742 = vmatmul.msk.bf16.gmra.mxu1 %vm236_vm1, %v3166_v2  ;;  %v1391_v58 = vpop.f32.mrf.mxu0  ;;  %v524_v15 = vld [vmem:[#allocation2 + $0xa0] sm:$0xff] }
 0x164   : > { %v1057_v0 = vld [vmem:[#allocation2 + $0x80] sm:$0xff]  ;;  %2759 = vmatmul.msk.bf16.gmra.mxu2 %vm236_vm1, %v3186_v49 }
 0x165   : > { %v1243_v45 = vadd.f32 %v1187_v32, %v1057_v0  ;;  %932 = vst.msk [vmem:[#allocation2 + $0x88] sm:$0xff] %vm236_vm1, %v900_v38  ;;  %2775 = vmatmul.msk.bf16.gmra.mxu3 %vm236_vm1, %v3040_v47 }
 0x166   : > { %v1311_v27 = vld [vmem:[#allocation2 + $0x78] sm:$0xff]  ;;  %2791 = vmatmul.msk.bf16.gmra.mxu0 %vm236_vm1, %v3208_v6 }
 0x167   : > { %1275 = vst.msk [vmem:[#allocation2 + $0x80] sm:$0xff] %vm236_vm1, %v1243_v45  ;;  %v1441_v52 = vadd.f32 %v1383_v31, %v1311_v27  ;;  %v848_v12 = vpop.f32.mrf.mxu2 }
 0x168   : > { %v660_v20 = vpop.f32.mrf.mxu1  ;;  %v1192_v53 = vpop.f32.mrf.mxu3 }
 0x169   : > { %1473 = vst.msk [vmem:[#allocation2 + $0x78] sm:$0xff] %vm236_vm1, %v1441_v52  ;;  %v712_v2 = vadd.f32 %v660_v20, %v523_v7 }
 0x16a   : > { %v775_v49 = vld [vmem:[#allocation2 + $0x90] sm:$0xff] }
 0x16b   : > { %v901_v32 = vadd.f32 %v848_v12, %v775_v49  ;;  %744 = vst.msk [vmem:[#allocation2 + $0x98] sm:$0xff] %vm236_vm1, %v712_v2  ;;  %v1393_v31 = vpop.f32.mrf.mxu0  ;;  %v525_v12 = vld [vmem:[#allocation2 + $0xa8] sm:$0xff] }
 0x16c   : > { %v1058_v47 = vld [vmem:[#allocation2 + $0x88] sm:$0xff] }
 0x16d   : > { %v1244_v33 = vadd.f32 %v1189_v19, %v1058_v47  ;;  %933 = vst.msk [vmem:[#allocation2 + $0x90] sm:$0xff] %vm236_vm1, %v901_v32 }
 0x16e   : > { %v1312_v54 = vld [vmem:[#allocation2 + $0x80] sm:$0xff] }
 0x16f   : > { %1276 = vst.msk [vmem:[#allocation2 + $0x88] sm:$0xff] %vm236_vm1, %v1244_v33  ;;  %v1442_v17 = vadd.f32 %v1386_v26, %v1312_v54  ;;  %v850_v62 = vpop.f32.mrf.mxu2  ;;  %v526_v33 = vld [vmem:[#allocation2 + $0xb0] sm:$0xff] }
 0x170   : > { %v663_v37 = vpop.f32.mrf.mxu1  ;;  %v1194_v57 = vpop.f32.mrf.mxu3 }
 0x171   : > { %1474 = vst.msk [vmem:[#allocation2 + $0x80] sm:$0xff] %vm236_vm1, %v1442_v17  ;;  %v713_v11 = vadd.f32 %v663_v37, %v524_v15 }
 0x172   : > { %v776_v55 = vld [vmem:[#allocation2 + $0x98] sm:$0xff] }
 0x173   : > { %v902_v38 = vadd.f32 %v850_v62, %v776_v55  ;;  %745 = vst.msk [vmem:[#allocation2 + $0xa0] sm:$0xff] %vm236_vm1, %v713_v11  ;;  %2743 = vmatmul.msk.bf16.gmra.mxu1 %vm236_vm1, %v3208_v6  ;;  %v1396_v45 = vpop.f32.mrf.mxu0 }
 0x174   : > { %v1059_v19 = vld [vmem:[#allocation2 + $0x90] sm:$0xff]  ;;  %2760 = vmatmul.msk.bf16.gmra.mxu2 %vm236_vm1, %v3232_v9 }
 0x175   : > { %v1245_v0 = vadd.f32 %v1192_v53, %v1059_v19  ;;  %934 = vst.msk [vmem:[#allocation2 + $0x98] sm:$0xff] %vm236_vm1, %v902_v38  ;;  %2776 = vmatmul.msk.bf16.gmra.mxu3 %vm236_vm1, %v3094_v63 }
 0x176   : > { %v1313_v26 = vld [vmem:[#allocation2 + $0x88] sm:$0xff]  ;;  %2792 = vmatmul.msk.bf16.gmra.mxu0 %vm236_vm1, %v3192_v8 }
 0x177   : > { %1277 = vst.msk [vmem:[#allocation2 + $0x90] sm:$0xff] %vm236_vm1, %v1245_v0  ;;  %v1443_v27 = vadd.f32 %v1388_v35, %v1313_v26  ;;  %v853_v52 = vpop.f32.mrf.mxu2  ;;  %v527_v0 = vld [vmem:[#allocation2 + $0xb8] sm:$0xff] }
 0x178   : > { %v665_v7 = vpop.f32.mrf.mxu1  ;;  %v1197_v20 = vpop.f32.mrf.mxu3 }
 0x179   : > { %1475 = vst.msk [vmem:[#allocation2 + $0x88] sm:$0xff] %vm236_vm1, %v1443_v27  ;;  %v714_v6 = vadd.f32 %v665_v7, %v525_v12 }
 0x17a   : > { %v777_v9 = vld [vmem:[#allocation2 + $0xa0] sm:$0xff] }
 0x17b   : > { %v903_v53 = vadd.f32 %v853_v52, %v777_v9  ;;  %746 = vst.msk [vmem:[#allocation2 + $0xa8] sm:$0xff] %vm236_vm1, %v714_v6  ;;  %v1398_v35 = vpop.f32.mrf.mxu0  ;;  %v528_v9 = vld [vmem:[#allocation2 + $0xc0] sm:$0xff] }
 0x17c   : > { %v1060_v63 = vld [vmem:[#allocation2 + $0x98] sm:$0xff] }
 0x17d   : > { %v1246_v2 = vadd.f32 %v1194_v57, %v1060_v63  ;;  %935 = vst.msk [vmem:[#allocation2 + $0xa0] sm:$0xff] %vm236_vm1, %v903_v53 }
 0x17e   : > { %v1314_v49 = vld [vmem:[#allocation2 + $0x90] sm:$0xff] }
 0x17f   : > { %1278 = vst.msk [vmem:[#allocation2 + $0x98] sm:$0xff] %vm236_vm1, %v1246_v2  ;;  %v1444_v32 = vadd.f32 %v1391_v58, %v1314_v49  ;;  %v855_v47 = vpop.f32.mrf.mxu2 }
 0x180   : > { %v668_v54 = vpop.f32.mrf.mxu1  ;;  %v1199_v17 = vpop.f32.mrf.mxu3 }
 0x181   : > { %1476 = vst.msk [vmem:[#allocation2 + $0x90] sm:$0xff] %vm236_vm1, %v1444_v32  ;;  %v715_v62 = vadd.f32 %v668_v54, %v526_v33 }
 0x182   : > { %v778_v15 = vld [vmem:[#allocation2 + $0xa8] sm:$0xff] }
 0x183   : > { %v904_v37 = vadd.f32 %v855_v47, %v778_v15  ;;  %747 = vst.msk [vmem:[#allocation2 + $0xb0] sm:$0xff] %vm236_vm1, %v715_v62  ;;  %2744 = vmatmul.msk.bf16.gmra.mxu1 %vm236_vm1, %v3192_v8  ;;  %v1401_v55 = vpop.f32.mrf.mxu0  ;;  %v529_v15 = vld [vmem:[#allocation2 + $0xc8] sm:$0xff] }
 0x184   : > { %v1061_v57 = vld [vmem:[#allocation2 + $0xa0] sm:$0xff]  ;;  %2761 = vmatmul.msk.bf16.gmra.mxu2 %vm236_vm1, %v3218_v21 }
 0x185   : > { %v1247_v11 = vadd.f32 %v1197_v20, %v1061_v57  ;;  %936 = vst.msk [vmem:[#allocation2 + $0xa8] sm:$0xff] %vm236_vm1, %v904_v37  ;;  %2777 = vmatmul.msk.bf16.gmra.mxu3 %vm236_vm1, %v2905_v13 }
 0x186   : > { %v1315_v58 = vld [vmem:[#allocation2 + $0x98] sm:$0xff]  ;;  %2793 = vmatmul.msk.bf16.gmra.mxu0 %vm236_vm1, %v3238_v1 }
 0x187   : > { %1279 = vst.msk [vmem:[#allocation2 + $0xa0] sm:$0xff] %vm236_vm1, %v1247_v11  ;;  %v1445_v38 = vadd.f32 %v1393_v31, %v1315_v58  ;;  %v858_v19 = vpop.f32.mrf.mxu2 }
 0x188   : > { %v670_v26 = vpop.f32.mrf.mxu1  ;;  %v1202_v27 = vpop.f32.mrf.mxu3 }
 0x189   : > { %1477 = vst.msk [vmem:[#allocation2 + $0x98] sm:$0xff] %vm236_vm1, %v1445_v38  ;;  %v716_v8 = vadd.f32 %v670_v26, %v527_v0  ;;  %v530_v26 = vld [vmem:[#allocation2 + $0xd0] sm:$0xff] }
 0x18a   : > { %v779_v21 = vld [vmem:[#allocation2 + $0xb0] sm:$0xff] }
 0x18b   : > { %v905_v52 = vadd.f32 %v858_v19, %v779_v21  ;;  %748 = vst.msk [vmem:[#allocation2 + $0xb8] sm:$0xff] %vm236_vm1, %v716_v8  ;;  %v1403_v31 = vpop.f32.mrf.mxu0 }
 0x18c   : > { %v1062_v13 = vld [vmem:[#allocation2 + $0xa8] sm:$0xff] }
 0x18d   : > { %v1248_v12 = vadd.f32 %v1199_v17, %v1062_v13  ;;  %937 = vst.msk [vmem:[#allocation2 + $0xb0] sm:$0xff] %vm236_vm1, %v905_v52 }
 0x18e   : > { %v1316_v7 = vld [vmem:[#allocation2 + $0xa0] sm:$0xff] }
 0x18f   : > { %1280 = vst.msk [vmem:[#allocation2 + $0xa8] sm:$0xff] %vm236_vm1, %v1248_v12  ;;  %v1446_v20 = vadd.f32 %v1396_v45, %v1316_v7  ;;  %v860_v6 = vpop.f32.mrf.mxu2 }
 0x190   : > { %v673_v53 = vpop.f32.mrf.mxu1  ;;  %v1204_v63 = vpop.f32.mrf.mxu3 }
 0x191   : > { %1478 = vst.msk [vmem:[#allocation2 + $0xa0] sm:$0xff] %vm236_vm1, %v1446_v20  ;;  %v717_v2 = vadd.f32 %v673_v53, %v528_v9  ;;  %v531_v53 = vld [vmem:[#allocation2 + $0xd8] sm:$0xff] }
 0x192   : > { %v780_v49 = vld [vmem:[#allocation2 + $0xb8] sm:$0xff] }
 0x193   : > { %v906_v32 = vadd.f32 %v860_v6, %v780_v49  ;;  %749 = vst.msk [vmem:[#allocation2 + $0xc0] sm:$0xff] %vm236_vm1, %v717_v2  ;;  %2745 = vmatmul.msk.bf16.gmra.mxu1 %vm236_vm1, %v3238_v1  ;;  %v1406_v54 = vpop.f32.mrf.mxu0 }
 0x194   : > { %v1063_v47 = vld [vmem:[#allocation2 + $0xb0] sm:$0xff]  ;;  %2762 = vmatmul.msk.bf16.gmra.mxu2 %vm236_vm1, %v3253_v51 }
 0x195   : > { %v1249_v33 = vadd.f32 %v1202_v27, %v1063_v47  ;;  %938 = vst.msk [vmem:[#allocation2 + $0xb8] sm:$0xff] %vm236_vm1, %v906_v32  ;;  %2778 = vmatmul.msk.bf16.gmra.mxu3 %vm236_vm1, %v2962_v28 }
 0x196   : > { %v1317_v45 = vld [vmem:[#allocation2 + $0xa8] sm:$0xff]  ;;  %2794 = vmatmul.msk.bf16.gmra.mxu0 %vm236_vm1, %v3269_v10 }
 0x197   : > { %1281 = vst.msk [vmem:[#allocation2 + $0xb0] sm:$0xff] %vm236_vm1, %v1249_v33  ;;  %v1447_v17 = vadd.f32 %v1398_v35, %v1317_v45  ;;  %v863_v62 = vpop.f32.mrf.mxu2 }
 0x198   : > { %v675_v37 = vpop.f32.mrf.mxu1  ;;  %v1207_v57 = vpop.f32.mrf.mxu3 }
 0x199   : > { %1479 = vst.msk [vmem:[#allocation2 + $0xa8] sm:$0xff] %vm236_vm1, %v1447_v17  ;;  %v718_v1 = vadd.f32 %v675_v37, %v529_v15  ;;  %v532_v17 = vld [vmem:[#allocation2 + $0xe0] sm:$0xff] }
 0x19a   : > { %v781_v51 = vld [vmem:[#allocation2 + $0xc0] sm:$0xff] }
 0x19b   : > { %v907_v11 = vadd.f32 %v863_v62, %v781_v51  ;;  %750 = vst.msk [vmem:[#allocation2 + $0xc8] sm:$0xff] %vm236_vm1, %v718_v1  ;;  %v1408_v35 = vpop.f32.mrf.mxu0 }
 0x19c   : > { %v1064_v28 = vld [vmem:[#allocation2 + $0xb8] sm:$0xff] }
 0x19d   : > { %v1250_v58 = vadd.f32 %v1204_v63, %v1064_v28  ;;  %939 = vst.msk [vmem:[#allocation2 + $0xc0] sm:$0xff] %vm236_vm1, %v907_v11 }
 0x19e   : > { %v1318_v38 = vld [vmem:[#allocation2 + $0xb0] sm:$0xff] }
 0x19f   : > { %1282 = vst.msk [vmem:[#allocation2 + $0xb8] sm:$0xff] %vm236_vm1, %v1250_v58  ;;  %v1448_v19 = vadd.f32 %v1401_v55, %v1318_v38  ;;  %v865_v0 = vpop.f32.mrf.mxu2 }
 0x1a0   : > { %v678_v27 = vpop.f32.mrf.mxu1  ;;  %v1209_v8 = vpop.f32.mrf.mxu3 }
 0x1a1   : > { %1480 = vst.msk [vmem:[#allocation2 + $0xb0] sm:$0xff] %vm236_vm1, %v1448_v19  ;;  %v719_v21 = vadd.f32 %v678_v27, %v530_v26 }
 0x1a2   : > { %v782_v52 = vld [vmem:[#allocation2 + $0xc8] sm:$0xff] }
 0x1a3   : > { %v908_v13 = vadd.f32 %v865_v0, %v782_v52  ;;  %751 = vst.msk [vmem:[#allocation2 + $0xd0] sm:$0xff] %vm236_vm1, %v719_v21  ;;  %2746 = vmatmul.msk.bf16.gmra.mxu1 %vm236_vm1, %v3269_v10  ;;  %v1411_v20 = vpop.f32.mrf.mxu0  ;;  %v533_v0 = vld [vmem:[#allocation2 + $0xe8] sm:$0xff] }
 0x1a4   : > { %v1065_v12 = vld [vmem:[#allocation2 + $0xc0] sm:$0xff]  ;;  %2763 = vmatmul.msk.bf16.gmra.mxu2 %vm236_vm1, %v3289_v4 }
 0x1a5   : > { %v1251_v7 = vadd.f32 %v1207_v57, %v1065_v12  ;;  %940 = vst.msk [vmem:[#allocation2 + $0xc8] sm:$0xff] %vm236_vm1, %v908_v13  ;;  %2779 = vmatmul.msk.bf16.gmra.mxu3 %vm236_vm1, %v3010_v40 }
 0x1a6   : > { %v1319_v55 = vld [vmem:[#allocation2 + $0xb8] sm:$0xff]  ;;  %2795 = vmatmul.msk.bf16.gmra.mxu0 %vm236_vm1, %v3305_v22 }
 0x1a7   : > { %1283 = vst.msk [vmem:[#allocation2 + $0xc0] sm:$0xff] %vm236_vm1, %v1251_v7  ;;  %v1449_v6 = vadd.f32 %v1403_v31, %v1319_v55  ;;  %v868_v9 = vpop.f32.mrf.mxu2 }
 0x1a8   : > { %v680_v63 = vpop.f32.mrf.mxu1  ;;  %v1212_v2 = vpop.f32.mrf.mxu3 }
 0x1a9   : > { %1481 = vst.msk [vmem:[#allocation2 + $0xb8] sm:$0xff] %vm236_vm1, %v1449_v6  ;;  %v720_v10 = vadd.f32 %v680_v63, %v531_v53  ;;  %v534_v6 = vld [vmem:[#allocation2 + $0xf0] sm:$0xff] }
 0x1aa   : > { %v783_v4 = vld [vmem:[#allocation2 + $0xd0] sm:$0xff] }
 0x1ab   : > { %v909_v49 = vadd.f32 %v868_v9, %v783_v4  ;;  %752 = vst.msk [vmem:[#allocation2 + $0xd8] sm:$0xff] %vm236_vm1, %v720_v10  ;;  %v1413_v31 = vpop.f32.mrf.mxu0 }
 0x1ac   : > { %v1066_v40 = vld [vmem:[#allocation2 + $0xc8] sm:$0xff] }
 0x1ad   : > { %v1252_v32 = vadd.f32 %v1209_v8, %v1066_v40  ;;  %941 = vst.msk [vmem:[#allocation2 + $0xd0] sm:$0xff] %vm236_vm1, %v909_v49  ;;  %v4453_v8 = vld [vmem:[#allocation7_spill] sm:$0xff] }
 0x1ae   : > { %v1320_v47 = vld [vmem:[#allocation2 + $0xc0] sm:$0xff] }
 0x1af   : > { %1284 = vst.msk [vmem:[#allocation2 + $0xc8] sm:$0xff] %vm236_vm1, %v1252_v32  ;;  %v1450_v33 = vadd.f32 %v1406_v54, %v1320_v47  ;;  %v870_v45 = vpop.f32.mrf.mxu2  ;;  %v4452_v54 = vld [vmem:[#allocation5_spill] sm:$0xff] }
 0x1b0   : > { %v683_v62 = vpop.f32.mrf.mxu1  ;;  %v1214_v15 = vpop.f32.mrf.mxu3 }
 0x1b1   : > { %1482 = vst.msk [vmem:[#allocation2 + $0xc0] sm:$0xff] %vm236_vm1, %v1450_v33  ;;  %v721_v37 = vadd.f32 %v683_v62, %v532_v17 }
 0x1b2   : > { %v784_v57 = vld [vmem:[#allocation2 + $0xd8] sm:$0xff] }
 0x1b3   : > { %v910_v1 = vadd.f32 %v870_v45, %v784_v57  ;;  %753 = vst.msk [vmem:[#allocation2 + $0xe0] sm:$0xff] %vm236_vm1, %v721_v37  ;;  %2747 = vmatmul.msk.bf16.gmra.mxu1 %vm236_vm1, %v3305_v22  ;;  %v1416_v58 = vpop.f32.mrf.mxu0  ;;  %v535_v45 = vld [vmem:[#allocation2 + $0xf8] sm:$0xff]  ;;  %v4455_v37 = vld [vmem:[#allocation8_spill] sm:$0xff] }
 0x1b4   : > { %v1067_v51 = vld [vmem:[#allocation2 + $0xd0] sm:$0xff]  ;;  %2764 = vmatmul.msk.bf16.gmra.mxu2 %vm236_vm1, %v3325_v61 }
 0x1b5   : > { %v1253_v11 = vadd.f32 %v1212_v2, %v1067_v51  ;;  %942 = vst.msk [vmem:[#allocation2 + $0xd8] sm:$0xff] %vm236_vm1, %v910_v1  ;;  %2780 = vmatmul.msk.bf16.gmra.mxu3 %vm236_vm1, %v4452_v54 }
 0x1b6   : > { %v1321_v28 = vld [vmem:[#allocation2 + $0xc8] sm:$0xff]  ;;  %2796 = vmatmul.msk.bf16.gmra.mxu0 %vm236_vm1, %v4453_v8 }
 0x1b7   : > { %1285 = vst.msk [vmem:[#allocation2 + $0xd0] sm:$0xff] %vm236_vm1, %v1253_v11  ;;  %v1451_v38 = vadd.f32 %v1408_v35, %v1321_v28  ;;  %v873_v19 = vpop.f32.mrf.mxu2 }
 0x1b8   : > { %v685_v26 = vpop.f32.mrf.mxu1  ;;  %v1217_v27 = vpop.f32.mrf.mxu3 }
 0x1b9   : > { %1483 = vst.msk [vmem:[#allocation2 + $0xc8] sm:$0xff] %vm236_vm1, %v1451_v38  ;;  %v722_v22 = vadd.f32 %v685_v26, %v533_v0  ;;  %v1495_v38 = vld [vmem:[#allocation2] sm:$0xff] }
 0x1ba   : > { %v785_v61 = vld [vmem:[#allocation2 + $0xe0] sm:$0xff] }
 0x1bb   : > { %v911_v21 = vadd.f32 %v873_v19, %v785_v61  ;;  %754 = vst.msk [vmem:[#allocation2 + $0xe8] sm:$0xff] %vm236_vm1, %v722_v22  ;;  %v1418_v35 = vpop.f32.mrf.mxu0 }
 0x1bc   : > { %v1068_v52 = vld [vmem:[#allocation2 + $0xd8] sm:$0xff] }
 0x1bd   : > { %v1254_v13 = vadd.f32 %v1214_v15, %v1068_v52  ;;  %943 = vst.msk [vmem:[#allocation2 + $0xe0] sm:$0xff] %vm236_vm1, %v911_v21 }
 0x1be   : > { %v1322_v12 = vld [vmem:[#allocation2 + $0xd0] sm:$0xff] }
 0x1bf   : > { %1286 = vst.msk [vmem:[#allocation2 + $0xd8] sm:$0xff] %vm236_vm1, %v1254_v13  ;;  %v1452_v7 = vadd.f32 %v1411_v20, %v1322_v12  ;;  %v875_v55 = vpop.f32.mrf.mxu2  ;;  %v4454_v20 = vld [vmem:[#allocation3_spill] sm:$0xff]  ;;  %v1496_v12 = vld [vmem:[#allocation2 + $0x8] sm:$0xff] }
 0x1c0   : > { %v688_v9 = vpop.f32.mrf.mxu1  ;;  %v1219_v53 = vpop.f32.mrf.mxu3 }
 0x1c1   : > { %1484 = vst.msk [vmem:[#allocation2 + $0xd0] sm:$0xff] %vm236_vm1, %v1452_v7  ;;  %v723_v63 = vadd.f32 %v688_v9, %v534_v6 }
 0x1c2   : > { %v786_v2 = vld [vmem:[#allocation2 + $0xe8] sm:$0xff] }
 0x1c3   : > { %v912_v10 = vadd.f32 %v875_v55, %v786_v2  ;;  %755 = vst.msk [vmem:[#allocation2 + $0xf0] sm:$0xff] %vm236_vm1, %v723_v63  ;;  %2748 = vmatmul.msk.bf16.gmra.mxu1 %vm236_vm1, %v4453_v8  ;;  %v1421_v32 = vpop.f32.mrf.mxu0 }
 0x1c4   : > { %v1069_v4 = vld [vmem:[#allocation2 + $0xe0] sm:$0xff]  ;;  %2765 = vmatmul.msk.bf16.gmra.mxu2 %vm236_vm1, %v3361_v34 }
 0x1c5   : > { %v1255_v49 = vadd.f32 %v1217_v27, %v1069_v4  ;;  %944 = vst.msk [vmem:[#allocation2 + $0xe8] sm:$0xff] %vm236_vm1, %v912_v10  ;;  %2781 = vmatmul.msk.bf16.gmra.mxu3 %vm236_vm1, %v4454_v20  ;;  %v1497_v4 = vld [vmem:[#allocation2 + $0x10] sm:$0xff] }
 0x1c6   : > { %v1323_v40 = vld [vmem:[#allocation2 + $0xd8] sm:$0xff]  ;;  %2797 = vmatmul.msk.bf16.gmra.mxu0 %vm236_vm1, %v4455_v37 }
 0x1c7   : > { %1287 = vst.msk [vmem:[#allocation2 + $0xe0] sm:$0xff] %vm236_vm1, %v1255_v49  ;;  %v1453_v47 = vadd.f32 %v1413_v31, %v1323_v40  ;;  %v878_v33 = vpop.f32.mrf.mxu2 }
 0x1c8   : > { %v690_v17 = vpop.f32.mrf.mxu1  ;;  %v1222_v62 = vpop.f32.mrf.mxu3 }
 0x1c9   : > { %1485 = vst.msk [vmem:[#allocation2 + $0xd8] sm:$0xff] %vm236_vm1, %v1453_v47  ;;  %v724_v15 = vadd.f32 %v690_v17, %v535_v45 }
 0x1ca   : > { %v787_v34 = vld [vmem:[#allocation2 + $0xf0] sm:$0xff] }
 0x1cb   : > { %v913_v57 = vadd.f32 %v878_v33, %v787_v34  ;;  %756 = vst.msk [vmem:[#allocation2 + $0xf8] sm:$0xff] %vm236_vm1, %v724_v15  ;;  %v1423_v31 = vpop.f32.mrf.mxu0  ;;  %v1498_v34 = vld [vmem:[#allocation2 + $0x18] sm:$0xff] }
 0x1cc   : > { %v1070_v1 = vld [vmem:[#allocation2 + $0xe8] sm:$0xff] }
 0x1cd   : > { %v1256_v51 = vadd.f32 %v1219_v53, %v1070_v1  ;;  %945 = vst.msk [vmem:[#allocation2 + $0xf0] sm:$0xff] %vm236_vm1, %v913_v57 }
 0x1ce   : > { %v1324_v11 = vld [vmem:[#allocation2 + $0xe0] sm:$0xff] }
 0x1cf   : > { %1288 = vst.msk [vmem:[#allocation2 + $0xe8] sm:$0xff] %vm236_vm1, %v1256_v51  ;;  %v1454_v54 = vadd.f32 %v1416_v58, %v1324_v11  ;;  %v880_v28 = vpop.f32.mrf.mxu2 }
 0x1d0   : > { %v1545_v19 = vpop.f32.mrf.mxu1  ;;  %v1224_v0 = vpop.f32.mrf.mxu3 }
 0x1d1   : > { %1486 = vst.msk [vmem:[#allocation2 + $0xe0] sm:$0xff] %vm236_vm1, %v1454_v54  ;;  %v1625_v26 = vadd.f32 %v1545_v19, %v1495_v38  ;;  %v1499_v19 = vld [vmem:[#allocation2 + $0x20] sm:$0xff] }
 0x1d2   : > { %v788_v27 = vld [vmem:[#allocation2 + $0xf8] sm:$0xff] }
 0x1d3   : > { %v914_v22 = vadd.f32 %v880_v28, %v788_v27  ;;  %1657 = vst.msk [vmem:[#allocation2] sm:$0xff] %vm236_vm1, %v1625_v26  ;;  %2749 = vmatmul.msk.bf16.gmra.mxu1 %vm236_vm1, %v4455_v37  ;;  %v2115_v21 = vpop.f32.mrf.mxu0 }
 0x1d4   : > { %v1071_v8 = vld [vmem:[#allocation2 + $0xf0] sm:$0xff]  ;;  %2766 = vmatmul.msk.bf16.gmra.mxu2 %vm236_vm1, %v3396_v44 }
 0x1d5   : > { %v1257_v61 = vadd.f32 %v1222_v62, %v1071_v8  ;;  %946 = vst.msk [vmem:[#allocation2 + $0xf8] sm:$0xff] %vm236_vm1, %v914_v22  ;;  %2782 = vmatmul.msk.bf16.gmra.mxu3 %vm236_vm1, %v2966_v29 }
 0x1d6   : > { %v1325_v58 = vld [vmem:[#allocation2 + $0xe8] sm:$0xff]  ;;  %2798 = vmatmul.msk.bf16.gmra.mxu0 %vm236_vm1, %v3411_v43 }
 0x1d7   : > { %1289 = vst.msk [vmem:[#allocation2 + $0xf0] sm:$0xff] %vm236_vm1, %v1257_v61  ;;  %v1455_v52 = vadd.f32 %v1418_v35, %v1325_v58  ;;  %v1735_v13 = vpop.f32.mrf.mxu2 }
 0x1d8   : > { %v1547_v7 = vpop.f32.mrf.mxu1  ;;  %v1925_v55 = vpop.f32.mrf.mxu3 }
 0x1d9   : > { %1487 = vst.msk [vmem:[#allocation2 + $0xe8] sm:$0xff] %vm236_vm1, %v1455_v52  ;;  %v1626_v6 = vadd.f32 %v1547_v7, %v1496_v12 }
 0x1da   : > { %v1689_v44 = vld [vmem:[#allocation2] sm:$0xff] }
 0x1db   : > { %v1815_v9 = vadd.f32 %v1735_v13, %v1689_v44  ;;  %1658 = vst.msk [vmem:[#allocation2 + $0x8] sm:$0xff] %vm236_vm1, %v1626_v6  ;;  %v2117_v35 = vpop.f32.mrf.mxu0 }
 0x1dc   : > { %v1072_v29 = vld [vmem:[#allocation2 + $0xf8] sm:$0xff] }
 0x1dd   : > { %v1258_v53 = vadd.f32 %v1224_v0, %v1072_v29  ;;  %1847 = vst.msk [vmem:[#allocation2] sm:$0xff] %vm236_vm1, %v1815_v9 }
 0x1de   : > { %v1326_v63 = vld [vmem:[#allocation2 + $0xf0] sm:$0xff] }
 0x1df   : > { %1290 = vst.msk [vmem:[#allocation2 + $0xf8] sm:$0xff] %vm236_vm1, %v1258_v53  ;;  %v1456_v2 = vadd.f32 %v1421_v32, %v1326_v63  ;;  %v1737_v10 = vpop.f32.mrf.mxu2 }
 0x1e0   : > { %v1550_v49 = vpop.f32.mrf.mxu1  ;;  %v1927_v20 = vpop.f32.mrf.mxu3 }
 0x1e1   : > { %1488 = vst.msk [vmem:[#allocation2 + $0xf0] sm:$0xff] %vm236_vm1, %v1456_v2  ;;  %v1627_v40 = vadd.f32 %v1550_v49, %v1497_v4  ;;  %v1501_v49 = vld [vmem:[#allocation2 + $0x30] sm:$0xff] }
 0x1e2   : > { %v1690_v47 = vld [vmem:[#allocation2 + $0x8] sm:$0xff] }
 0x1e3   : > { %v1816_v33 = vadd.f32 %v1737_v10, %v1690_v47  ;;  %1659 = vst.msk [vmem:[#allocation2 + $0x10] sm:$0xff] %vm236_vm1, %v1627_v40  ;;  %2750 = vmatmul.msk.bf16.gmra.mxu1 %vm236_vm1, %v3411_v43  ;;  %v2120_v62 = vpop.f32.mrf.mxu0 }
 0x1e4   : > { %v1879_v45 = vld [vmem:[#allocation2] sm:$0xff]  ;;  %2767 = vmatmul.msk.bf16.gmra.mxu2 %vm236_vm1, %v3429_v48 }
 0x1e5   : > { %v2005_v17 = vadd.f32 %v1925_v55, %v1879_v45  ;;  %1848 = vst.msk [vmem:[#allocation2 + $0x8] sm:$0xff] %vm236_vm1, %v1816_v33  ;;  %2783 = vmatmul.msk.bf16.gmra.mxu3 %vm236_vm1, %v3014_v41 }
 0x1e6   : > { %v1327_v32 = vld [vmem:[#allocation2 + $0xf8] sm:$0xff]  ;;  %2799 = vmatmul.msk.bf16.gmra.mxu0 %vm236_vm1, %v3450_v25 }
 0x1e7   : > { %2037 = vst.msk [vmem:[#allocation2] sm:$0xff] %vm236_vm1, %v2005_v17  ;;  %v1457_v15 = vadd.f32 %v1423_v31, %v1327_v32  ;;  %v1740_v37 = vpop.f32.mrf.mxu2 }
 0x1e8   : > { %v1552_v57 = vpop.f32.mrf.mxu1  ;;  %v1930_v1 = vpop.f32.mrf.mxu3 }
 0x1e9   : > { %1489 = vst.msk [vmem:[#allocation2 + $0xf8] sm:$0xff] %vm236_vm1, %v1457_v15  ;;  %v1628_v43 = vadd.f32 %v1552_v57, %v1498_v34 }
 0x1ea   : > { %v1691_v48 = vld [vmem:[#allocation2 + $0x10] sm:$0xff] }
 0x1eb   : > { %v1817_v51 = vadd.f32 %v1740_v37, %v1691_v48  ;;  %1660 = vst.msk [vmem:[#allocation2 + $0x18] sm:$0xff] %vm236_vm1, %v1628_v43  ;;  %v3849_v31 = vpop.f32.mrf.mxu0 }
 0x1ec   : > { %v1880_v41 = vld [vmem:[#allocation2 + $0x8] sm:$0xff] }
 0x1ed   : > { %v2006_v11 = vadd.f32 %v1927_v20, %v1880_v41  ;;  %1849 = vst.msk [vmem:[#allocation2 + $0x10] sm:$0xff] %vm236_vm1, %v1817_v51 }
 0x1ee   : > { %v2069_v54 = vld [vmem:[#allocation2] sm:$0xff] }
 0x1ef   : > { %2038 = vst.msk [vmem:[#allocation2 + $0x8] sm:$0xff] %vm236_vm1, %v2006_v11  ;;  %v2195_v28 = vadd.f32 %v2115_v21, %v2069_v54  ;;  %v1742_v38 = vpop.f32.mrf.mxu2 }
 0x1f0   : > { %v1555_v0 = vpop.f32.mrf.mxu1  ;;  %v1932_v26 = vpop.f32.mrf.mxu3 }
 0x1f1   : > { %2227 = vst.msk [vmem:[#allocation2] sm:$0xff] %vm236_vm1, %v2195_v28  ;;  %v1629_v27 = vadd.f32 %v1555_v0, %v1499_v19 }
 0x1f2   : > { %v1692_v22 = vld [vmem:[#allocation2 + $0x18] sm:$0xff] }
 0x1f3   : > { %v1818_v8 = vadd.f32 %v1742_v38, %v1692_v22  ;;  %1661 = vst.msk [vmem:[#allocation2 + $0x20] sm:$0xff] %vm236_vm1, %v1629_v27  ;;  %2751 = vmatmul.msk.bf16.gmra.mxu1 %vm236_vm1, %v3450_v25  ;;  %v3862_v52 = vpop.f32.mrf.mxu0 }
 0x1f4   : > { %v1881_v61 = vld [vmem:[#allocation2 + $0x10] sm:$0xff]  ;;  %2768 = vmatmul.msk.bf16.gmra.mxu2 %vm236_vm1, %v3470_v46  ;;  %v1500_v46 = vld [vmem:[#allocation2 + $0x28] sm:$0xff] }
 0x1f5   : > { %v2007_v58 = vadd.f32 %v1930_v1, %v1881_v61  ;;  %1850 = vst.msk [vmem:[#allocation2 + $0x18] sm:$0xff] %vm236_vm1, %v1818_v8  ;;  %2784 = vmatmul.msk.bf16.gmra.mxu3 %vm236_vm1, %v3074_v59  ;;  %v1502_v1 = vld [vmem:[#allocation2 + $0x38] sm:$0xff] }
 0x1f6   : > { %v2070_v21 = vld [vmem:[#allocation2 + $0x8] sm:$0xff]  ;;  %2800 = vmatmul.msk.bf16.gmra.mxu0 %vm236_vm1, %v3494_v24 }
 0x1f7   : > { %2039 = vst.msk [vmem:[#allocation2 + $0x10] sm:$0xff] %vm236_vm1, %v2007_v58  ;;  %v2196_v13 = vadd.f32 %v2117_v35, %v2070_v21  ;;  %v1745_v12 = vpop.f32.mrf.mxu2 }
 0x1f8   : > { %v3870_v25 = vld [vmem:[#allocation2] sm:$0xff]  ;;  %v1557_v7 = vpop.f32.mrf.mxu1  ;;  %v1935_v55 = vpop.f32.mrf.mxu3 }
 0x1f9   : > { %v2291_v59 = vpack.c.bf16 %v3870_v25, %v3870_v25  ;;  %2228 = vst.msk [vmem:[#allocation2 + $0x8] sm:$0xff] %vm236_vm1, %v2196_v13  ;;  %v1630_v6 = vadd.f32 %v1557_v7, %v1500_v46 }
 0x1fa   : > { %v1693_v44 = vld [vmem:[#allocation2 + $0x20] sm:$0xff] }
 0x1fb   : > { %2324 = vst.msk [vmem:[%s3868_s14] sm:$0xf] %vm2323_vm6, %v2291_v59  ;;  %v1819_v9 = vadd.f32 %v1745_v12, %v1693_v44  ;;  %v3881_v35 = vpop.f32.mrf.mxu0  ;;  %v1504_v59 = vld [vmem:[#allocation2 + $0x48] sm:$0xff] }
 0x1fc   : > { %v1882_v29 = vld [vmem:[#allocation2 + $0x18] sm:$0xff]  ;;  %1662 = vst.msk [vmem:[#allocation2 + $0x28] sm:$0xff] %vm236_vm1, %v1630_v6 }
 0x1fd   : > { %v2008_v53 = vadd.f32 %v1932_v26, %v1882_v29  ;;  %1851 = vst.msk [vmem:[#allocation2 + $0x20] sm:$0xff] %vm236_vm1, %v1819_v9  ;;  %v1503_v26 = vld [vmem:[#allocation2 + $0x40] sm:$0xff] }
 0x1fe   : > { %v2071_v63 = vld [vmem:[#allocation2 + $0x10] sm:$0xff] }
 0x1ff   : > { %2040 = vst.msk [vmem:[#allocation2 + $0x18] sm:$0xff] %vm236_vm1, %v2008_v53  ;;  %v2197_v2 = vadd.f32 %v2120_v62, %v2071_v63  ;;  %v1747_v10 = vpop.f32.mrf.mxu2 }
 0x200   : > { %v3884_v4 = vld [vmem:[#allocation2 + $0x8] sm:$0xff]  ;;  %v1560_v20 = vpop.f32.mrf.mxu1  ;;  %v1937_v40 = vpop.f32.mrf.mxu3 }
 0x201   : > { %v2292_v47 = vpack.c.bf16 %v3884_v4, %v3884_v4  ;;  %2229 = vst.msk [vmem:[#allocation2 + $0x10] sm:$0xff] %vm236_vm1, %v2197_v2  ;;  %v1631_v33 = vadd.f32 %v1560_v20, %v1501_v49  ;;  %v1505_v20 = vld [vmem:[#allocation2 + $0x50] sm:$0xff] }
 0x203   : > { %2325 = vst.msk [vmem:[%s3868_s14 + $0x4] sm:$0xf] %vm2323_vm6, %v2292_v47  ;;  %v1694_v45 = vld [vmem:[#allocation2 + $0x28] sm:$0xff]  ;;  %2752 = vmatmul.msk.bf16.gmra.mxu1 %vm236_vm1, %v3494_v24  ;;  %v3899_v37 = vpop.f32.mrf.mxu0 }
 0x204   : > { %v1883_v17 = vld [vmem:[#allocation2 + $0x20] sm:$0xff]  ;;  %v1820_v32 = vadd.f32 %v1747_v10, %v1694_v45  ;;  %1663 = vst.msk [vmem:[#allocation2 + $0x30] sm:$0xff] %vm236_vm1, %v1631_v33  ;;  %2769 = vmatmul.msk.bf16.gmra.mxu2 %vm236_vm1, %v3516_v23 }
 0x205   : > { %v2009_v62 = vadd.f32 %v1935_v55, %v1883_v17  ;;  %2785 = vmatmul.msk.bf16.gmra.mxu3 %vm236_vm1, %v2924_v18 }
 0x206   : > { %1852 = vst.msk [vmem:[#allocation2 + $0x28] sm:$0xff] %vm236_vm1, %v1820_v32  ;;  %v2072_v15 = vld [vmem:[#allocation2 + $0x18] sm:$0xff]  ;;  %2801 = vmatmul.msk.bf16.gmra.mxu0 %vm236_vm1, %v3540_v14 }
 0x207   : > { %2041 = vst.msk [vmem:[#allocation2 + $0x20] sm:$0xff] %vm236_vm1, %v2009_v62  ;;  %v2198_v24 = vadd.f32 %v3849_v31, %v2072_v15  ;;  %v1750_v34 = vpop.f32.mrf.mxu2 }
 0x208   : > { %v3903_v57 = vld [vmem:[#allocation2 + $0x10] sm:$0xff]  ;;  %v1562_v43 = vpop.f32.mrf.mxu1  ;;  %v1940_v23 = vpop.f32.mrf.mxu3 }
 0x209   : > { %v2293_v48 = vpack.c.bf16 %v3903_v57, %v3903_v57  ;;  %2230 = vst.msk [vmem:[#allocation2 + $0x18] sm:$0xff] %vm236_vm1, %v2198_v24  ;;  %v1632_v18 = vadd.f32 %v1562_v43, %v1502_v1  ;;  %v1506_v43 = vld [vmem:[#allocation2 + $0x58] sm:$0xff] }
 0x20b   : > { %2326 = vst.msk [vmem:[%s3868_s14 + $0x8] sm:$0xf] %vm2323_vm6, %v2293_v48  ;;  %v1695_v51 = vld [vmem:[#allocation2 + $0x30] sm:$0xff]  ;;  %v3914_v28 = vpop.f32.mrf.mxu0 }
 0x20c   : > { %v1821_v41 = vadd.f32 %v1750_v34, %v1695_v51  ;;  %1664 = vst.msk [vmem:[#allocation2 + $0x38] sm:$0xff] %vm236_vm1, %v1632_v18 }
 0x20d   : > { %v1884_v11 = vld [vmem:[#allocation2 + $0x28] sm:$0xff] }
 0x20e   : > { %v2010_v54 = vadd.f32 %v1937_v40, %v1884_v11  ;;  %1853 = vst.msk [vmem:[#allocation2 + $0x30] sm:$0xff] %vm236_vm1, %v1821_v41  ;;  %v2073_v31 = vld [vmem:[#allocation2 + $0x20] sm:$0xff]  ;;  %v2821_v11 = vld [vmem:[%s2892_s27 + $0xf8] sm:$0xff] }
 0x20f   : > { %v2199_v38 = vadd.f32 %v3862_v52, %v2073_v31  ;;  %v1752_v19 = vpop.f32.mrf.mxu2 }
 0x210   : > { %v3917_v0 = vld [vmem:[#allocation2 + $0x18] sm:$0xff]  ;;  %2042 = vst.msk [vmem:[#allocation2 + $0x28] sm:$0xff] %vm236_vm1, %v2010_v54  ;;  %v1565_v27 = vpop.f32.mrf.mxu1  ;;  %v1942_v22 = vpop.f32.mrf.mxu3  ;;  %v1490_v54 = vrot.slane %v2821_v11, 1 }
 0x211   : > { %v2294_v8 = vpack.c.bf16 %v3917_v0, %v3917_v0  ;;  %2231 = vst.msk [vmem:[#allocation2 + $0x20] sm:$0xff] %vm236_vm1, %v2199_v38  ;;  %v1633_v61 = vadd.f32 %v1565_v27, %v1503_v26 }
 0x213   : > { %2327 = vst.msk [vmem:[%s3868_s14 + $0xc] sm:$0xf] %vm2323_vm6, %v2294_v8  ;;  %v1696_v58 = vld [vmem:[#allocation2 + $0x38] sm:$0xff]  ;;  %2753 = vmatmul.msk.bf16.gmra.mxu1 %vm236_vm1, %v3540_v14  ;;  %v3933_v12 = vpop.f32.mrf.mxu0 }
 0x214   : > { %v1822_v21 = vadd.f32 %v1752_v19, %v1696_v58  ;;  %1665 = vst.msk [vmem:[#allocation2 + $0x40] sm:$0xff] %vm236_vm1, %v1633_v61  ;;  %2770 = vmatmul.msk.bf16.gmra.mxu2 %vm236_vm1, %v3562_v5 }
 0x215   : > { %v1885_v52 = vld [vmem:[#allocation2 + $0x30] sm:$0xff]  ;;  %2786 = vmatmul.msk.bf16.gmra.mxu3 %vm236_vm1, %v2970_v30 }
 0x216   : > { %v2011_v13 = vadd.f32 %v1940_v23, %v1885_v52  ;;  %1854 = vst.msk [vmem:[#allocation2 + $0x38] sm:$0xff] %vm236_vm1, %v1822_v21  ;;  %2802 = vmatmul.msk.bf16.gmra.mxu0 %vm236_vm1, %v3586_v36  ;;  %v4456_v52 = vld [vmem:[#allocation4_spill] sm:$0xff] }
 0x217   : > { %v2074_v46 = vld [vmem:[#allocation2 + $0x28] sm:$0xff]  ;;  %v1755_v7 = vpop.f32.mrf.mxu2 }
 0x218   : > { %v3935_v55 = vld [vmem:[#allocation2 + $0x20] sm:$0xff]  ;;  %2043 = vst.msk [vmem:[#allocation2 + $0x30] sm:$0xff] %vm236_vm1, %v2011_v13  ;;  %v2200_v14 = vadd.f32 %v3881_v35, %v2074_v46  ;;  %v1567_v5 = vpop.f32.mrf.mxu1  ;;  %v1945_v6 = vpop.f32.mrf.mxu3  ;;  %v4457_v13 = vrot.slane %v4456_v52, 1 }
 0x219   : > { %v2295_v30 = vpack.c.bf16 %v3935_v55, %v3935_v55  ;;  %v1634_v44 = vadd.f32 %v1567_v5, %v1504_v59  ;;  %v4458_v5 = vrot.slane %v3063_v56, 1 }
 0x21a   : > { %2232 = vst.msk [vmem:[#allocation2 + $0x28] sm:$0xff] %vm236_vm1, %v2200_v14  ;;  %v1492_v46 = vsel %vm978_vm4, %v1490_v54, %v4457_v13 }
 0x21b   : > { %2328 = vst.msk [vmem:[%s3868_s14 + $0x10] sm:$0xf] %vm2323_vm6, %v2295_v30  ;;  %v1697_v9 = vld [vmem:[#allocation2 + $0x40] sm:$0xff]  ;;  %v3948_v35 = vpop.f32.mrf.mxu0  ;;  %v1494_v30 = vsel %vm1010_vm5, %v1492_v46, 0.0 }
 0x21c   : > { %v1823_v29 = vadd.f32 %v1755_v7, %v1697_v9  ;;  %1666 = vst.msk [vmem:[#allocation2 + $0x48] sm:$0xff] %vm236_vm1, %v1634_v44  ;;  %v4459_v9 = vld [vmem:[#allocation6_spill] sm:$0xff] }
 0x21d   : > { %v1886_v53 = vld [vmem:[#allocation2 + $0x38] sm:$0xff] }
 0x21e   : > { %v2012_v63 = vadd.f32 %v1942_v22, %v1886_v53  ;;  %1855 = vst.msk [vmem:[#allocation2 + $0x40] sm:$0xff] %vm236_vm1, %v1823_v29  ;;  %v1507_v22 = vld [vmem:[#allocation2 + $0x60] sm:$0xff]  ;;  %v1508_v53 = vld [vmem:[#allocation2 + $0x68] sm:$0xff] }
 0x21f   : > { %v2075_v2 = vld [vmem:[#allocation2 + $0x30] sm:$0xff]  ;;  %v1757_v10 = vpop.f32.mrf.mxu2 }
 0x220   : > { %2044 = vst.msk [vmem:[#allocation2 + $0x38] sm:$0xff] %vm236_vm1, %v2012_v63  ;;  %v2201_v49 = vadd.f32 %v3899_v37, %v2075_v2  ;;  %v1570_v40 = vpop.f32.mrf.mxu1  ;;  %v1947_v47 = vpop.f32.mrf.mxu3 }
 0x221   : > { %v3952_v33 = vld [vmem:[#allocation2 + $0x28] sm:$0xff]  ;;  %v1635_v45 = vadd.f32 %v1570_v40, %v1505_v20 }
 0x222   : > { %v2296_v17 = vpack.c.bf16 %v3952_v33, %v3952_v33  ;;  %2233 = vst.msk [vmem:[#allocation2 + $0x30] sm:$0xff] %vm236_vm1, %v2201_v49 }
 0x223   : > { %v1698_v32 = vld [vmem:[#allocation2 + $0x48] sm:$0xff]  ;;  %1667 = vst.msk [vmem:[#allocation2 + $0x50] sm:$0xff] %vm236_vm1, %v1635_v45  ;;  %2754 = vmatmul.msk.bf16.gmra.mxu1 %vm236_vm1, %v3586_v36  ;;  %v3967_v24 = vpop.f32.mrf.mxu0 }
 0x224   : > { %2329 = vst.msk [vmem:[%s3868_s14 + $0x14] sm:$0xf] %vm2323_vm6, %v2296_v17  ;;  %v1824_v62 = vadd.f32 %v1757_v10, %v1698_v32  ;;  %2771 = vmatmul.msk.bf16.gmra.mxu2 %vm236_vm1, %v3610_v60 }
 0x225   : > { %v1887_v15 = vld [vmem:[#allocation2 + $0x40] sm:$0xff]  ;;  %2787 = vmatmul.msk.bf16.gmra.mxu3 %vm236_vm1, %v3018_v42 }
 0x226   : > { %v2013_v37 = vadd.f32 %v1945_v6, %v1887_v15  ;;  %1856 = vst.msk [vmem:[#allocation2 + $0x48] sm:$0xff] %vm236_vm1, %v1824_v62  ;;  %2803 = vmatmul.msk.bf16.gmra.mxu0 %vm236_vm1, %v3634_v16  ;;  %v1491_v6 = vsel %vm978_vm4, %v4458_v5, %v1490_v54  ;;  %v1509_v15 = vld [vmem:[#allocation2 + $0x70] sm:$0xff] }
 0x227   : > { %v2076_v34 = vld [vmem:[#allocation2 + $0x38] sm:$0xff]  ;;  %v1760_v1 = vpop.f32.mrf.mxu2  ;;  %v1527_v56 = vpack.c.bf16 %v1494_v30, %v1491_v6 }
 0x228   : > { %2045 = vst.msk [vmem:[#allocation2 + $0x40] sm:$0xff] %vm236_vm1, %v2013_v37  ;;  %v2202_v36 = vadd.f32 %v3914_v28, %v2076_v34  ;;  %v1572_v23 = vpop.f32.mrf.mxu1  ;;  %v1950_v60 = vpop.f32.mrf.mxu3 }
 0x229   : > { %v3971_v48 = vld [vmem:[#allocation2 + $0x30] sm:$0xff]  ;;  %v1636_v18 = vadd.f32 %v1572_v23, %v1506_v43 }
 0x22a   : > { %v2297_v42 = vpack.c.bf16 %v3971_v48, %v3971_v48  ;;  %2234 = vst.msk [vmem:[#allocation2 + $0x38] sm:$0xff] %vm236_vm1, %v2202_v36  ;;  %v1699_v51 = vld [vmem:[#allocation2 + $0x50] sm:$0xff] }
 0x22b   : > { %v1825_v41 = vadd.f32 %v1760_v1, %v1699_v51  ;;  %1668 = vst.msk [vmem:[#allocation2 + $0x58] sm:$0xff] %vm236_vm1, %v1636_v18  ;;  %v3983_v38 = vpop.f32.mrf.mxu0  ;;  %v4460_v18 = vmov 0.0|0.0  }
 0x22c   : > { %2330 = vst.msk [vmem:[%s3868_s14 + $0x18] sm:$0xf] %vm2323_vm6, %v2297_v42 }
 0x22d   : > { %v1888_v31 = vld [vmem:[#allocation2 + $0x48] sm:$0xff]  ;;  %1857 = vst.msk [vmem:[#allocation2 + $0x50] sm:$0xff] %vm236_vm1, %v1825_v41 }
 0x22e   : > { %v2014_v28 = vadd.f32 %v1947_v47, %v1888_v31 }
 0x22f   : > { %v2077_v19 = vld [vmem:[#allocation2 + $0x40] sm:$0xff]  ;;  %v1762_v26 = vpop.f32.mrf.mxu2 }
 0x230   : > { %2046 = vst.msk [vmem:[#allocation2 + $0x48] sm:$0xff] %vm236_vm1, %v2014_v28  ;;  %v2203_v27 = vadd.f32 %v3933_v12, %v2077_v19  ;;  %v1575_v8 = vpop.f32.mrf.mxu1  ;;  %v1952_v61 = vpop.f32.mrf.mxu3  ;;  %v1510_v28 = vld [vmem:[#allocation2 + $0x78] sm:$0xff] }
 0x231   : > { %v3987_v58 = vld [vmem:[#allocation2 + $0x38] sm:$0xff]  ;;  %v1637_v21 = vadd.f32 %v1575_v8, %v1507_v22 }
 0x232   : > { %v2298_v7 = vpack.c.bf16 %v3987_v58, %v3987_v58  ;;  %2235 = vst.msk [vmem:[#allocation2 + $0x40] sm:$0xff] %vm236_vm1, %v2203_v27  ;;  %v1700_v14 = vld [vmem:[#allocation2 + $0x58] sm:$0xff] }
 0x233   : > { %v1826_v59 = vadd.f32 %v1762_v26, %v1700_v14  ;;  %1669 = vst.msk [vmem:[#allocation2 + $0x60] sm:$0xff] %vm236_vm1, %v1637_v21  ;;  %2755 = vmatmul.msk.bf16.gmra.mxu1 %vm236_vm1, %v3634_v16  ;;  %v4012_v16 = vpop.f32.mrf.mxu0 }
 0x234   : > { %2331 = vst.msk [vmem:[%s3868_s14 + $0x1c] sm:$0xf] %vm2323_vm6, %v2298_v7  ;;  %v1889_v12 = vld [vmem:[#allocation2 + $0x50] sm:$0xff]  ;;  %2772 = vmatmul.msk.bf16.gmra.mxu2 %vm236_vm1, %v3665_v39 }
 0x235   : > { %v2015_v44 = vadd.f32 %v1950_v60, %v1889_v12  ;;  %1858 = vst.msk [vmem:[#allocation2 + $0x58] sm:$0xff] %vm236_vm1, %v1826_v59  ;;  %2788 = vmatmul.msk.bf16.gmra.mxu3 %vm236_vm1, %v4459_v9  ;;  %v1511_v59 = vld [vmem:[#allocation2 + $0x80] sm:$0xff] }
 0x236   : > { %2804 = vmatmul.msk.bf16.gmra.mxu0 %vm236_vm1, %v1527_v56 }
 0x237   : > { %2047 = vst.msk [vmem:[#allocation2 + $0x50] sm:$0xff] %vm236_vm1, %v2015_v44  ;;  %v2078_v39 = vld [vmem:[#allocation2 + $0x48] sm:$0xff]  ;;  %v1765_v29 = vpop.f32.mrf.mxu2 }
 0x238   : > { %v2204_v3 = vadd.f32 %v3948_v35, %v2078_v39  ;;  %v1577_v63 = vpop.f32.mrf.mxu1  ;;  %v1955_v50 = vpop.f32.mrf.mxu3 }
 0x239   : > { %v4016_v2 = vld [vmem:[#allocation2 + $0x40] sm:$0xff]  ;;  %v1638_v10 = vadd.f32 %v1577_v63, %v1508_v53 }
 0x23a   : > { %v2299_v49 = vpack.c.bf16 %v4016_v2, %v4016_v2  ;;  %2236 = vst.msk [vmem:[#allocation2 + $0x48] sm:$0xff] %vm236_vm1, %v2204_v3  ;;  %v1701_v20 = vld [vmem:[#allocation2 + $0x60] sm:$0xff] }
 0x23b   : > { %v1827_v40 = vadd.f32 %v1765_v29, %v1701_v20  ;;  %1670 = vst.msk [vmem:[#allocation2 + $0x68] sm:$0xff] %vm236_vm1, %v1638_v10  ;;  %v4026_v17 = vpop.f32.mrf.mxu0 }
 0x23c   : > { %2332 = vst.msk [vmem:[%s3868_s14 + $0x20] sm:$0xf] %vm2323_vm6, %v2299_v49  ;;  %v1890_v35 = vld [vmem:[#allocation2 + $0x58] sm:$0xff] }
 0x23d   : > { %v2016_v47 = vadd.f32 %v1952_v61, %v1890_v35  ;;  %1859 = vst.msk [vmem:[#allocation2 + $0x60] sm:$0xff] %vm236_vm1, %v1827_v40 }
 0x23e   : > { %v2079_v45 = vld [vmem:[#allocation2 + $0x50] sm:$0xff] }
 0x23f   : > { %2048 = vst.msk [vmem:[#allocation2 + $0x58] sm:$0xff] %vm236_vm1, %v2016_v47  ;;  %v2205_v32 = vadd.f32 %v3967_v24, %v2079_v45  ;;  %v1767_v62 = vpop.f32.mrf.mxu2 }
 0x240   : > { %v1580_v37 = vpop.f32.mrf.mxu1  ;;  %v1957_v34 = vpop.f32.mrf.mxu3 }
 0x241   : > { %v4030_v1 = vld [vmem:[#allocation2 + $0x48] sm:$0xff]  ;;  %2237 = vst.msk [vmem:[#allocation2 + $0x50] sm:$0xff] %vm236_vm1, %v2205_v32  ;;  %v1639_v36 = vadd.f32 %v1580_v37, %v1509_v15 }
 0x242   : > { %v2300_v43 = vpack.c.bf16 %v4030_v1, %v4030_v1  ;;  %v1702_v23 = vld [vmem:[#allocation2 + $0x68] sm:$0xff] }
 0x243   : > { %v1828_v60 = vadd.f32 %v1767_v62, %v1702_v23  ;;  %1671 = vst.msk [vmem:[#allocation2 + $0x70] sm:$0xff] %vm236_vm1, %v1639_v36  ;;  %2756 = vmatmul.msk.bf16.gmra.mxu1 %vm236_vm1, %v1527_v56  ;;  %v2150_v41 = vpop.f32.mrf.mxu0  ;;  %v1513_v36 = vld [vmem:[#allocation2 + $0x90] sm:$0xff] }
 0x244   : > { %2333 = vst.msk [vmem:[%s3868_s14 + $0x24] sm:$0xf] %vm2323_vm6, %v2300_v43  ;;  %v1891_v24 = vld [vmem:[#allocation2 + $0x60] sm:$0xff]  ;;  %1809 = vmatmul.bf16.gmra.mxu2 %v4460_v18 }
 0x245   : > { %v2017_v42 = vadd.f32 %v1955_v50, %v1891_v24  ;;  %1860 = vst.msk [vmem:[#allocation2 + $0x68] sm:$0xff] %vm236_vm1, %v1828_v60  ;;  %1999 = vmatmul.bf16.gmra.mxu3 %v4460_v18  ;;  %v1512_v50 = vld [vmem:[#allocation2 + $0x88] sm:$0xff] }
 0x246   : > { %v2080_v51 = vld [vmem:[#allocation2 + $0x58] sm:$0xff]  ;;  %2189 = vmatmul.bf16.gmra.mxu0 %v4460_v18 }
 0x247   : > { %2049 = vst.msk [vmem:[#allocation2 + $0x60] sm:$0xff] %vm236_vm1, %v2017_v42  ;;  %v2206_v11 = vadd.f32 %v3983_v38, %v2080_v51  ;;  %v1770_v54 = vpop.f32.mrf.mxu2 }
 0x248   : > { %v4044_v31 = vld [vmem:[#allocation2 + $0x50] sm:$0xff]  ;;  %v1582_v19 = vpop.f32.mrf.mxu1  ;;  %v1960_v26 = vpop.f32.mrf.mxu3 }
 0x249   : > { %v2301_v27 = vpack.c.bf16 %v4044_v31, %v4044_v31  ;;  %2238 = vst.msk [vmem:[#allocation2 + $0x58] sm:$0xff] %vm236_vm1, %v2206_v11  ;;  %v1640_v22 = vadd.f32 %v1582_v19, %v1510_v28 }
 0x24a   : > { %v1703_v8 = vld [vmem:[#allocation2 + $0x70] sm:$0xff] }
 0x24b   : > { %2334 = vst.msk [vmem:[%s3868_s14 + $0x28] sm:$0xf] %vm2323_vm6, %v2301_v27  ;;  %v1829_v61 = vadd.f32 %v1770_v54, %v1703_v8  ;;  %v2152_v13 = vpop.f32.mrf.mxu0  ;;  %v1514_v27 = vld [vmem:[#allocation2 + $0x98] sm:$0xff] }
 0x24c   : > { %v1892_v21 = vld [vmem:[#allocation2 + $0x68] sm:$0xff]  ;;  %1672 = vst.msk [vmem:[#allocation2 + $0x78] sm:$0xff] %vm236_vm1, %v1640_v22 }
 0x24d   : > { %v2018_v38 = vadd.f32 %v1957_v34, %v1892_v21  ;;  %1861 = vst.msk [vmem:[#allocation2 + $0x70] sm:$0xff] %vm236_vm1, %v1829_v61 }
 0x24e   : > { %v2081_v52 = vld [vmem:[#allocation2 + $0x60] sm:$0xff] }
 0x24f   : > { %2050 = vst.msk [vmem:[#allocation2 + $0x68] sm:$0xff] %vm236_vm1, %v2018_v38  ;;  %v2207_v46 = vadd.f32 %v4012_v16, %v2081_v52  ;;  %v1772_v7 = vpop.f32.mrf.mxu2 }
 0x250   : > { %v4056_v14 = vld [vmem:[#allocation2 + $0x58] sm:$0xff]  ;;  %v1585_v12 = vpop.f32.mrf.mxu1  ;;  %v1962_v5 = vpop.f32.mrf.mxu3 }
 0x251   : > { %v2302_v6 = vpack.c.bf16 %v4056_v14, %v4056_v14  ;;  %2239 = vst.msk [vmem:[#allocation2 + $0x60] sm:$0xff] %vm236_vm1, %v2207_v46  ;;  %v1641_v30 = vadd.f32 %v1585_v12, %v1511_v59 }
 0x253   : > { %2335 = vst.msk [vmem:[%s3868_s14 + $0x2c] sm:$0xf] %vm2323_vm6, %v2302_v6  ;;  %v1704_v44 = vld [vmem:[#allocation2 + $0x78] sm:$0xff]  ;;  %v2155_v56 = vpop.f32.mrf.mxu0  ;;  %v1515_v6 = vld [vmem:[#allocation2 + $0xa0] sm:$0xff] }
 0x254   : > { %v1893_v9 = vld [vmem:[#allocation2 + $0x70] sm:$0xff]  ;;  %v1830_v39 = vadd.f32 %v1772_v7, %v1704_v44  ;;  %1673 = vst.msk [vmem:[#allocation2 + $0x80] sm:$0xff] %vm236_vm1, %v1641_v30 }
 0x255   : > { %v2019_v16 = vadd.f32 %v1960_v26, %v1893_v9 }
 0x256   : > { %1862 = vst.msk [vmem:[#allocation2 + $0x78] sm:$0xff] %vm236_vm1, %v1830_v39  ;;  %v2082_v29 = vld [vmem:[#allocation2 + $0x68] sm:$0xff] }
 0x257   : > { %2051 = vst.msk [vmem:[#allocation2 + $0x70] sm:$0xff] %vm236_vm1, %v2019_v16  ;;  %v2208_v3 = vadd.f32 %v4026_v17, %v2082_v29  ;;  %v1775_v53 = vpop.f32.mrf.mxu2 }
 0x258   : > { %v4067_v63 = vld [vmem:[#allocation2 + $0x60] sm:$0xff]  ;;  %v1587_v10 = vpop.f32.mrf.mxu1  ;;  %v1965_v49 = vpop.f32.mrf.mxu3 }
 0x259   : > { %v2303_v20 = vpack.c.bf16 %v4067_v63, %v4067_v63  ;;  %2240 = vst.msk [vmem:[#allocation2 + $0x68] sm:$0xff] %vm236_vm1, %v2208_v3  ;;  %v1642_v40 = vadd.f32 %v1587_v10, %v1512_v50 }
 0x25b   : > { %2336 = vst.msk [vmem:[%s3868_s14 + $0x30] sm:$0xf] %vm2323_vm6, %v2303_v20  ;;  %v1705_v35 = vld [vmem:[#allocation2 + $0x80] sm:$0xff]  ;;  %v2157_v62 = vpop.f32.mrf.mxu0 }
 0x25c   : > { %v1831_v47 = vadd.f32 %v1775_v53, %v1705_v35  ;;  %1674 = vst.msk [vmem:[#allocation2 + $0x88] sm:$0xff] %vm236_vm1, %v1642_v40  ;;  %v1516_v40 = vld [vmem:[#allocation2 + $0xa8] sm:$0xff] }
 0x25d   : > { %v1894_v45 = vld [vmem:[#allocation2 + $0x78] sm:$0xff] }
 0x25e   : > { %v2020_v17 = vadd.f32 %v1962_v5, %v1894_v45  ;;  %1863 = vst.msk [vmem:[#allocation2 + $0x80] sm:$0xff] %vm236_vm1, %v1831_v47  ;;  %v2083_v32 = vld [vmem:[#allocation2 + $0x70] sm:$0xff] }
 0x25f   : > { %v2209_v15 = vadd.f32 %v2150_v41, %v2083_v32  ;;  %v1777_v37 = vpop.f32.mrf.mxu2 }
 0x260   : > { %v4076_v34 = vld [vmem:[#allocation2 + $0x68] sm:$0xff]  ;;  %2052 = vst.msk [vmem:[#allocation2 + $0x78] sm:$0xff] %vm236_vm1, %v2020_v17  ;;  %v1590_v43 = vpop.f32.mrf.mxu1  ;;  %v1967_v23 = vpop.f32.mrf.mxu3 }
 0x261   : > { %v2304_v60 = vpack.c.bf16 %v4076_v34, %v4076_v34  ;;  %2241 = vst.msk [vmem:[#allocation2 + $0x70] sm:$0xff] %vm236_vm1, %v2209_v15  ;;  %v1643_v24 = vadd.f32 %v1590_v43, %v1513_v36 }
 0x263   : > { %2337 = vst.msk [vmem:[%s3868_s14 + $0x34] sm:$0xf] %vm2323_vm6, %v2304_v60  ;;  %v1706_v18 = vld [vmem:[#allocation2 + $0x88] sm:$0xff]  ;;  %v2160_v11 = vpop.f32.mrf.mxu0 }
 0x264   : > { %v1832_v42 = vadd.f32 %v1777_v37, %v1706_v18  ;;  %1675 = vst.msk [vmem:[#allocation2 + $0x90] sm:$0xff] %vm236_vm1, %v1643_v24  ;;  %v1517_v24 = vld [vmem:[#allocation2 + $0xb0] sm:$0xff] }
 0x265   : > { %v1895_v51 = vld [vmem:[#allocation2 + $0x80] sm:$0xff] }
 0x266   : > { %v2021_v41 = vadd.f32 %v1965_v49, %v1895_v51  ;;  %1864 = vst.msk [vmem:[#allocation2 + $0x88] sm:$0xff] %vm236_vm1, %v1832_v42 }
 0x267   : > { %v2084_v54 = vld [vmem:[#allocation2 + $0x78] sm:$0xff]  ;;  %v1780_v28 = vpop.f32.mrf.mxu2 }
 0x268   : > { %v4086_v19 = vld [vmem:[#allocation2 + $0x70] sm:$0xff]  ;;  %2053 = vst.msk [vmem:[#allocation2 + $0x80] sm:$0xff] %vm236_vm1, %v2021_v41  ;;  %v2210_v26 = vadd.f32 %v2152_v13, %v2084_v54  ;;  %v1592_v22 = vpop.f32.mrf.mxu1  ;;  %v1970_v8 = vpop.f32.mrf.mxu3 }
 0x269   : > { %v2305_v61 = vpack.c.bf16 %v4086_v19, %v4086_v19  ;;  %v1644_v21 = vadd.f32 %v1592_v22, %v1514_v27 }
 0x26a   : > { %2242 = vst.msk [vmem:[#allocation2 + $0x78] sm:$0xff] %vm236_vm1, %v2210_v26 }
 0x26b   : > { %2338 = vst.msk [vmem:[%s3868_s14 + $0x38] sm:$0xf] %vm2323_vm6, %v2305_v61  ;;  %v1707_v38 = vld [vmem:[#allocation2 + $0x90] sm:$0xff]  ;;  %v2162_v13 = vpop.f32.mrf.mxu0 }
 0x26c   : > { %v1833_v52 = vadd.f32 %v1780_v28, %v1707_v38  ;;  %1676 = vst.msk [vmem:[#allocation2 + $0x98] sm:$0xff] %vm236_vm1, %v1644_v21  ;;  %v1518_v38 = vld [vmem:[#allocation2 + $0xb8] sm:$0xff] }
 0x26d   : > { %v1896_v46 = vld [vmem:[#allocation2 + $0x88] sm:$0xff] }
 0x26e   : > { %v2022_v7 = vadd.f32 %v1967_v23, %v1896_v46  ;;  %1865 = vst.msk [vmem:[#allocation2 + $0x90] sm:$0xff] %vm236_vm1, %v1833_v52 }
 0x26f   : > { %v2085_v59 = vld [vmem:[#allocation2 + $0x80] sm:$0xff]  ;;  %v1782_v12 = vpop.f32.mrf.mxu2 }
 0x270   : > { %2054 = vst.msk [vmem:[#allocation2 + $0x88] sm:$0xff] %vm236_vm1, %v2022_v7  ;;  %v2211_v5 = vadd.f32 %v2155_v56, %v2085_v59  ;;  %v1595_v30 = vpop.f32.mrf.mxu1  ;;  %v1972_v44 = vpop.f32.mrf.mxu3 }
 0x271   : > { %v4097_v9 = vld [vmem:[#allocation2 + $0x78] sm:$0xff]  ;;  %v1645_v39 = vadd.f32 %v1595_v30, %v1515_v6 }
 0x272   : > { %v2306_v16 = vpack.c.bf16 %v4097_v9, %v4097_v9  ;;  %2243 = vst.msk [vmem:[#allocation2 + $0x80] sm:$0xff] %vm236_vm1, %v2211_v5 }
 0x273   : > { %v1708_v29 = vld [vmem:[#allocation2 + $0x98] sm:$0xff]  ;;  %1677 = vst.msk [vmem:[#allocation2 + $0xa0] sm:$0xff] %vm236_vm1, %v1645_v39  ;;  %v2165_v49 = vpop.f32.mrf.mxu0 }
 0x274   : > { %2339 = vst.msk [vmem:[%s3868_s14 + $0x3c] sm:$0xf] %vm2323_vm6, %v2306_v16  ;;  %v1834_v3 = vadd.f32 %v1782_v12, %v1708_v29 }
 0x275   : > { %v1897_v53 = vld [vmem:[#allocation2 + $0x90] sm:$0xff] }
 0x276   : > { %v2023_v50 = vadd.f32 %v1970_v8, %v1897_v53  ;;  %1866 = vst.msk [vmem:[#allocation2 + $0x98] sm:$0xff] %vm236_vm1, %v1834_v3  ;;  %v1519_v3 = vld [vmem:[#allocation2 + $0xc0] sm:$0xff] }
 0x277   : > { %v2086_v56 = vld [vmem:[#allocation2 + $0x88] sm:$0xff]  ;;  %v1785_v10 = vpop.f32.mrf.mxu2 }
 0x278   : > { %2055 = vst.msk [vmem:[#allocation2 + $0x90] sm:$0xff] %vm236_vm1, %v2023_v50  ;;  %v2212_v20 = vadd.f32 %v2157_v62, %v2086_v56  ;;  %v1597_v35 = vpop.f32.mrf.mxu1  ;;  %v1975_v47 = vpop.f32.mrf.mxu3 }
 0x279   : > { %v4107_v45 = vld [vmem:[#allocation2 + $0x80] sm:$0xff]  ;;  %v1646_v17 = vadd.f32 %v1597_v35, %v1516_v40 }
 0x27a   : > { %v2307_v32 = vpack.c.bf16 %v4107_v45, %v4107_v45  ;;  %2244 = vst.msk [vmem:[#allocation2 + $0x88] sm:$0xff] %vm236_vm1, %v2212_v20  ;;  %v1709_v15 = vld [vmem:[#allocation2 + $0xa0] sm:$0xff] }
 0x27b   : > { %v1835_v37 = vadd.f32 %v1785_v10, %v1709_v15  ;;  %1678 = vst.msk [vmem:[#allocation2 + $0xa8] sm:$0xff] %vm236_vm1, %v1646_v17  ;;  %v2167_v54 = vpop.f32.mrf.mxu0 }
 0x27c   : > { %2340 = vst.msk [vmem:[%s3868_s14 + $0x40] sm:$0xf] %vm2323_vm6, %v2307_v32 }
 0x27d   : > { %v1898_v36 = vld [vmem:[#allocation2 + $0x98] sm:$0xff]  ;;  %1867 = vst.msk [vmem:[#allocation2 + $0xa0] sm:$0xff] %vm236_vm1, %v1835_v37 }
 0x27e   : > { %v2024_v62 = vadd.f32 %v1972_v44, %v1898_v36 }
 0x27f   : > { %v2087_v43 = vld [vmem:[#allocation2 + $0x90] sm:$0xff]  ;;  %v1787_v23 = vpop.f32.mrf.mxu2 }
 0x280   : > { %2056 = vst.msk [vmem:[#allocation2 + $0x98] sm:$0xff] %vm236_vm1, %v2024_v62  ;;  %v2213_v60 = vadd.f32 %v2160_v11, %v2087_v43  ;;  %v1600_v18 = vpop.f32.mrf.mxu1  ;;  %v1977_v42 = vpop.f32.mrf.mxu3  ;;  %v1520_v62 = vld [vmem:[#allocation2 + $0xc8] sm:$0xff] }
 0x281   : > { %v4117_v51 = vld [vmem:[#allocation2 + $0x88] sm:$0xff]  ;;  %v1647_v41 = vadd.f32 %v1600_v18, %v1517_v24 }
 0x282   : > { %v2308_v28 = vpack.c.bf16 %v4117_v51, %v4117_v51  ;;  %2245 = vst.msk [vmem:[#allocation2 + $0x90] sm:$0xff] %vm236_vm1, %v2213_v60  ;;  %v1710_v26 = vld [vmem:[#allocation2 + $0xa8] sm:$0xff] }
 0x283   : > { %v1836_v27 = vadd.f32 %v1787_v23, %v1710_v26  ;;  %1679 = vst.msk [vmem:[#allocation2 + $0xb0] sm:$0xff] %vm236_vm1, %v1647_v41  ;;  %v2170_v30 = vpop.f32.mrf.mxu0 }
 0x284   : > { %2341 = vst.msk [vmem:[%s3868_s14 + $0x44] sm:$0xf] %vm2323_vm6, %v2308_v28  ;;  %v1899_v22 = vld [vmem:[#allocation2 + $0xa0] sm:$0xff] }
 0x285   : > { %v2025_v11 = vadd.f32 %v1975_v47, %v1899_v22  ;;  %1868 = vst.msk [vmem:[#allocation2 + $0xa8] sm:$0xff] %vm236_vm1, %v1836_v27 }
 0x287   : > { %2057 = vst.msk [vmem:[#allocation2 + $0xa0] sm:$0xff] %vm236_vm1, %v2025_v11  ;;  %v2088_v8 = vld [vmem:[#allocation2 + $0x98] sm:$0xff]  ;;  %v1790_v61 = vpop.f32.mrf.mxu2 }
 0x288   : > { %v2214_v21 = vadd.f32 %v2162_v13, %v2088_v8  ;;  %v1602_v52 = vpop.f32.mrf.mxu1  ;;  %v1980_v46 = vpop.f32.mrf.mxu3  ;;  %v1521_v8 = vld [vmem:[#allocation2 + $0xd0] sm:$0xff] }
 0x289   : > { %v4127_v7 = vld [vmem:[#allocation2 + $0x90] sm:$0xff]  ;;  %v1648_v59 = vadd.f32 %v1602_v52, %v1518_v38 }
 0x28a   : > { %v2309_v12 = vpack.c.bf16 %v4127_v7, %v4127_v7  ;;  %2246 = vst.msk [vmem:[#allocation2 + $0x98] sm:$0xff] %vm236_vm1, %v2214_v21  ;;  %v1711_v5 = vld [vmem:[#allocation2 + $0xb0] sm:$0xff] }
 0x28b   : > { %v1837_v6 = vadd.f32 %v1790_v61, %v1711_v5  ;;  %1680 = vst.msk [vmem:[#allocation2 + $0xb8] sm:$0xff] %vm236_vm1, %v1648_v59  ;;  %v2172_v17 = vpop.f32.mrf.mxu0 }
 0x28c   : > { %2342 = vst.msk [vmem:[%s3868_s14 + $0x48] sm:$0xf] %vm2323_vm6, %v2309_v12  ;;  %v1900_v44 = vld [vmem:[#allocation2 + $0xa8] sm:$0xff] }
 0x28d   : > { %v2026_v13 = vadd.f32 %v1977_v42, %v1900_v44  ;;  %1869 = vst.msk [vmem:[#allocation2 + $0xb0] sm:$0xff] %vm236_vm1, %v1837_v6 }
 0x28e   : > { %v2089_v39 = vld [vmem:[#allocation2 + $0xa0] sm:$0xff] }
 0x28f   : > { %2058 = vst.msk [vmem:[#allocation2 + $0xa8] sm:$0xff] %vm236_vm1, %v2026_v13  ;;  %v2215_v16 = vadd.f32 %v2165_v49, %v2089_v39  ;;  %v1792_v29 = vpop.f32.mrf.mxu2  ;;  %v1522_v39 = vld [vmem:[#allocation2 + $0xd8] sm:$0xff] }
 0x290   : > { %v1605_v53 = vpop.f32.mrf.mxu1  ;;  %v1982_v50 = vpop.f32.mrf.mxu3 }
 0x291   : > { %v4137_v56 = vld [vmem:[#allocation2 + $0x98] sm:$0xff]  ;;  %2247 = vst.msk [vmem:[#allocation2 + $0xa0] sm:$0xff] %vm236_vm1, %v2215_v16  ;;  %v1649_v10 = vadd.f32 %v1605_v53, %v1519_v3 }
 0x292   : > { %v2310_v20 = vpack.c.bf16 %v4137_v56, %v4137_v56  ;;  %v1712_v40 = vld [vmem:[#allocation2 + $0xb8] sm:$0xff] }
 0x293   : > { %v1838_v35 = vadd.f32 %v1792_v29, %v1712_v40  ;;  %1681 = vst.msk [vmem:[#allocation2 + $0xc0] sm:$0xff] %vm236_vm1, %v1649_v10  ;;  %v2175_v22 = vpop.f32.mrf.mxu0 }
 0x294   : > { %2343 = vst.msk [vmem:[%s3868_s14 + $0x4c] sm:$0xf] %vm2323_vm6, %v2310_v20  ;;  %v1901_v47 = vld [vmem:[#allocation2 + $0xb0] sm:$0xff] }
 0x295   : > { %v2027_v49 = vadd.f32 %v1980_v46, %v1901_v47  ;;  %1870 = vst.msk [vmem:[#allocation2 + $0xb8] sm:$0xff] %vm236_vm1, %v1838_v35 }
 0x296   : > { %v2090_v32 = vld [vmem:[#allocation2 + $0xa8] sm:$0xff] }
 0x297   : > { %2059 = vst.msk [vmem:[#allocation2 + $0xb0] sm:$0xff] %vm236_vm1, %v2027_v49  ;;  %v2216_v15 = vadd.f32 %v2167_v54, %v2090_v32  ;;  %v1795_v37 = vpop.f32.mrf.mxu2 }
 0x298   : > { %v4147_v36 = vld [vmem:[#allocation2 + $0xa0] sm:$0xff]  ;;  %v1607_v43 = vpop.f32.mrf.mxu1  ;;  %v1985_v23 = vpop.f32.mrf.mxu3 }
 0x299   : > { %v2311_v60 = vpack.c.bf16 %v4147_v36, %v4147_v36  ;;  %2248 = vst.msk [vmem:[#allocation2 + $0xa8] sm:$0xff] %vm236_vm1, %v2216_v15  ;;  %v1650_v24 = vadd.f32 %v1607_v43, %v1520_v62  ;;  %v1523_v15 = vld [vmem:[#allocation2 + $0xe0] sm:$0xff] }
 0x29a   : > { %v1713_v18 = vld [vmem:[#allocation2 + $0xc0] sm:$0xff] }
 0x29b   : > { %2344 = vst.msk [vmem:[%s3868_s14 + $0x50] sm:$0xf] %vm2323_vm6, %v2311_v60  ;;  %v1839_v42 = vadd.f32 %v1795_v37, %v1713_v18 }
 0x29c   : > { %v1902_v41 = vld [vmem:[#allocation2 + $0xb8] sm:$0xff]  ;;  %1682 = vst.msk [vmem:[#allocation2 + $0xc8] sm:$0xff] %vm236_vm1, %v1650_v24 }
 0x29d   : > { %v2028_v54 = vadd.f32 %v1982_v50, %v1902_v41  ;;  %1871 = vst.msk [vmem:[#allocation2 + $0xc0] sm:$0xff] %vm236_vm1, %v1839_v42  ;;  %v2177_v50 = vpop.f32.mrf.mxu0  ;;  %v2356_v41 = vsel %vm236_vm1, %v3870_v25, 0.0 }
 0x29e   : > { %v2091_v28 = vld [vmem:[#allocation2 + $0xb0] sm:$0xff] }
 0x29f   : > { %2060 = vst.msk [vmem:[#allocation2 + $0xb8] sm:$0xff] %vm236_vm1, %v2028_v54  ;;  %v2217_v26 = vadd.f32 %v2170_v30, %v2091_v28  ;;  %v1797_v27 = vpop.f32.mrf.mxu2  ;;  %v2359_v54 = vsel %vm236_vm1, %v3903_v57, 0.0  ;;  %v2363_v57 = vsel %vm236_vm1, %v3935_v55, 0.0  ;;  %v2367_v55 = vsel %vm236_vm1, %v3971_v48, 0.0 }
 0x2a0   : > { %v4157_v11 = vld [vmem:[#allocation2 + $0xa8] sm:$0xff]  ;;  %v1610_v61 = vpop.f32.mrf.mxu1  ;;  %v1987_v21 = vpop.f32.mrf.mxu3  ;;  %v2371_v48 = vsel %vm236_vm1, %v4016_v2, 0.0 }
 0x2a1   : > { %v2312_v38 = vpack.c.bf16 %v4157_v11, %v4157_v11  ;;  %2249 = vst.msk [vmem:[#allocation2 + $0xb0] sm:$0xff] %vm236_vm1, %v2217_v26  ;;  %v1651_v52 = vadd.f32 %v1610_v61, %v1521_v8 }
 0x2a3   : > { %2345 = vst.msk [vmem:[%s3868_s14 + $0x54] sm:$0xf] %vm2323_vm6, %v2312_v38  ;;  %v1714_v46 = vld [vmem:[#allocation2 + $0xc8] sm:$0xff] }
 0x2a4   : > { %v1903_v59 = vld [vmem:[#allocation2 + $0xc0] sm:$0xff]  ;;  %v1840_v12 = vadd.f32 %v1797_v27, %v1714_v46  ;;  %1683 = vst.msk [vmem:[#allocation2 + $0xd0] sm:$0xff] %vm236_vm1, %v1651_v52  ;;  %v1524_v38 = vld [vmem:[#allocation2 + $0xe8] sm:$0xff] }
 0x2a5   : > { %v2029_v5 = vadd.f32 %v1985_v23, %v1903_v59  ;;  %v2357_v23 = vsel %vm236_vm1, %v3884_v4, 0.0  ;;  %v2180_v18 = vpop.f32.mrf.mxu0  ;;  %v2361_v4 = vsel %vm236_vm1, %v3917_v0, 0.0  ;;  %v2365_v0 = vsel %vm236_vm1, %v3952_v33, 0.0 }
 0x2a6   : > { %1872 = vst.msk [vmem:[#allocation2 + $0xc8] sm:$0xff] %vm236_vm1, %v1840_v12  ;;  %v2092_v6 = vld [vmem:[#allocation2 + $0xb8] sm:$0xff]  ;;  %v2358_v26 = vadd.f32 %v2357_v23, %v2356_v41  ;;  %v2369_v33 = vsel %vm236_vm1, %v3987_v58, 0.0  ;;  %v2377_v41 = vsel %vm236_vm1, %v4056_v14, 0.0 }
 0x2a7   : > { %2061 = vst.msk [vmem:[#allocation2 + $0xc0] sm:$0xff] %vm236_vm1, %v2029_v5  ;;  %v2218_v30 = vadd.f32 %v2172_v17, %v2092_v6  ;;  %v1800_v44 = vpop.f32.mrf.mxu2 }
 0x2a8   : > { %v4167_v13 = vld [vmem:[#allocation2 + $0xb0] sm:$0xff]  ;;  %v1612_v16 = vpop.f32.mrf.mxu1  ;;  %v1990_v53 = vpop.f32.mrf.mxu3  ;;  %v2360_v61 = vadd.f32 %v2359_v54, %v2358_v26 }
 0x2a9   : > { %v2313_v29 = vpack.c.bf16 %v4167_v13, %v4167_v13  ;;  %2250 = vst.msk [vmem:[#allocation2 + $0xb8] sm:$0xff] %vm236_vm1, %v2218_v30  ;;  %v1652_v3 = vadd.f32 %v1612_v16, %v1522_v39 }
 0x2aa   : > { %v2362_v12 = vadd.f32 %v2361_v4, %v2360_v61 }
 0x2ab   : > { %2346 = vst.msk [vmem:[%s3868_s14 + $0x58] sm:$0xf] %vm2323_vm6, %v2313_v29  ;;  %v1715_v10 = vld [vmem:[#allocation2 + $0xd0] sm:$0xff] }
 0x2ac   : > { %v1841_v20 = vadd.f32 %v1800_v44, %v1715_v10  ;;  %1684 = vst.msk [vmem:[#allocation2 + $0xd8] sm:$0xff] %vm236_vm1, %v1652_v3  ;;  %v2364_v6 = vadd.f32 %v2363_v57, %v2362_v12  ;;  %v2381_v12 = vsel %vm236_vm1, %v4076_v34, 0.0 }
 0x2ad   : > { %v1904_v40 = vld [vmem:[#allocation2 + $0xc8] sm:$0xff]  ;;  %v2182_v16 = vpop.f32.mrf.mxu0 }
 0x2ae   : > { %v2030_v35 = vadd.f32 %v1987_v21, %v1904_v40  ;;  %1873 = vst.msk [vmem:[#allocation2 + $0xd0] sm:$0xff] %vm236_vm1, %v1841_v20  ;;  %v2093_v47 = vld [vmem:[#allocation2 + $0xc0] sm:$0xff]  ;;  %v2366_v29 = vadd.f32 %v2365_v0, %v2364_v6  ;;  %v1525_v40 = vld [vmem:[#allocation2 + $0xf0] sm:$0xff]  ;;  %v2383_v6 = vsel %vm236_vm1, %v4086_v19, 0.0 }
 0x2af   : > { %v2219_v49 = vadd.f32 %v2175_v22, %v2093_v47  ;;  %v1802_v17 = vpop.f32.mrf.mxu2 }
 0x2b0   : > { %v4176_v32 = vld [vmem:[#allocation2 + $0xb8] sm:$0xff]  ;;  %2062 = vst.msk [vmem:[#allocation2 + $0xc8] sm:$0xff] %vm236_vm1, %v2030_v35  ;;  %v1615_v37 = vpop.f32.mrf.mxu1  ;;  %v1992_v24 = vpop.f32.mrf.mxu3  ;;  %v2368_v10 = vadd.f32 %v2367_v55, %v2366_v29 }
 0x2b1   : > { %v2314_v62 = vpack.c.bf16 %v4176_v32, %v4176_v32  ;;  %2251 = vst.msk [vmem:[#allocation2 + $0xc0] sm:$0xff] %vm236_vm1, %v2219_v49  ;;  %v1653_v43 = vadd.f32 %v1615_v37, %v1523_v15  ;;  %v2373_v37 = vsel %vm236_vm1, %v4030_v1, 0.0 }
 0x2b3   : > { %2347 = vst.msk [vmem:[%s3868_s14 + $0x5c] sm:$0xf] %vm2323_vm6, %v2314_v62  ;;  %v1716_v60 = vld [vmem:[#allocation2 + $0xd8] sm:$0xff] }
 0x2b4   : > { %v1842_v42 = vadd.f32 %v1802_v17, %v1716_v60  ;;  %1685 = vst.msk [vmem:[#allocation2 + $0xe0] sm:$0xff] %vm236_vm1, %v1653_v43  ;;  %v2370_v17 = vadd.f32 %v2369_v33, %v2368_v10  ;;  %v2375_v60 = vsel %vm236_vm1, %v4044_v31, 0.0  ;;  %v2387_v33 = vsel %vm236_vm1, %v4107_v45, 0.0 }
 0x2b5   : > { %v1905_v28 = vld [vmem:[#allocation2 + $0xd0] sm:$0xff]  ;;  %v2185_v26 = vpop.f32.mrf.mxu0 }
 0x2b6   : > { %v2031_v27 = vadd.f32 %v1990_v53, %v1905_v28  ;;  %1874 = vst.msk [vmem:[#allocation2 + $0xd8] sm:$0xff] %vm236_vm1, %v1842_v42  ;;  %v2372_v43 = vadd.f32 %v2371_v48, %v2370_v17 }
 0x2b7   : > { %v2094_v22 = vld [vmem:[#allocation2 + $0xc8] sm:$0xff]  ;;  %v1805_v8 = vpop.f32.mrf.mxu2 }
 0x2b8   : > { %v4194_v21 = vld [vmem:[#allocation2 + $0xc0] sm:$0xff]  ;;  %2063 = vst.msk [vmem:[#allocation2 + $0xd0] sm:$0xff] %vm236_vm1, %v2031_v27  ;;  %v2220_v25 = vadd.f32 %v2177_v50, %v2094_v22  ;;  %v1617_v52 = vpop.f32.mrf.mxu1  ;;  %v1995_v39 = vpop.f32.mrf.mxu3 }
 0x2b9   : > { %v2315_v46 = vpack.c.bf16 %v4194_v21, %v4194_v21  ;;  %v1654_v59 = vadd.f32 %v1617_v52, %v1524_v38 }
 0x2ba   : > { %2252 = vst.msk [vmem:[#allocation2 + $0xc8] sm:$0xff] %vm236_vm1, %v2220_v25  ;;  %v2379_v25 = vsel %vm236_vm1, %v4067_v63, 0.0 }
 0x2bb   : > { %2348 = vst.msk [vmem:[%s3868_s14 + $0x60] sm:$0xf] %vm2323_vm6, %v2315_v46  ;;  %v1717_v5 = vld [vmem:[#allocation2 + $0xe0] sm:$0xff] }
 0x2bc   : > { %v1843_v30 = vadd.f32 %v1805_v8, %v1717_v5  ;;  %1686 = vst.msk [vmem:[#allocation2 + $0xe8] sm:$0xff] %vm236_vm1, %v1654_v59  ;;  %v1526_v8 = vld [vmem:[#allocation2 + $0xf8] sm:$0xff] }
 0x2bd   : > { %v1906_v44 = vld [vmem:[#allocation2 + $0xd8] sm:$0xff] }
 0x2be   : > { %v2032_v3 = vadd.f32 %v1992_v24, %v1906_v44  ;;  %1875 = vst.msk [vmem:[#allocation2 + $0xe0] sm:$0xff] %vm236_vm1, %v1843_v30 }
 0x2bf   : > { %v2095_v53 = vld [vmem:[#allocation2 + $0xd0] sm:$0xff]  ;;  %v1807_v50 = vpop.f32.mrf.mxu2 }
 0x2c0   : > { %2064 = vst.msk [vmem:[#allocation2 + $0xd8] sm:$0xff] %vm236_vm1, %v2032_v3  ;;  %v2221_v20 = vadd.f32 %v2180_v18, %v2095_v53  ;;  %v1620_v35 = vpop.f32.mrf.mxu1  ;;  %v2374_v18 = vadd.f32 %v2373_v37, %v2372_v43  ;;  %v1997_v28 = vpop.f32.mrf.mxu3 }
 0x2c1   : > { %v4215_v47 = vld [vmem:[#allocation2 + $0xc8] sm:$0xff]  ;;  %v1655_v49 = vadd.f32 %v1620_v35, %v1525_v40 }
 0x2c2   : > { %v2316_v15 = vpack.c.bf16 %v4215_v47, %v4215_v47  ;;  %2253 = vst.msk [vmem:[#allocation2 + $0xd0] sm:$0xff] %vm236_vm1, %v2221_v20  ;;  %v2376_v27 = vadd.f32 %v2375_v60, %v2374_v18  ;;  %v2393_v60 = vsel %vm236_vm1, %v4137_v56, 0.0 }
 0x2c3   : > { %v1718_v62 = vld [vmem:[#allocation2 + $0xe8] sm:$0xff]  ;;  %1687 = vst.msk [vmem:[#allocation2 + $0xf0] sm:$0xff] %vm236_vm1, %v1655_v49  ;;  %v2389_v49 = vsel %vm236_vm1, %v4117_v51, 0.0 }
 0x2c4   : > { %2349 = vst.msk [vmem:[%s3868_s14 + $0x64] sm:$0xf] %vm2323_vm6, %v2316_v15  ;;  %v1844_v23 = vadd.f32 %v1807_v50, %v1718_v62  ;;  %v2378_v57 = vadd.f32 %v2377_v41, %v2376_v27  ;;  %v2187_v50 = vpop.f32.mrf.mxu0  ;;  %v2391_v62 = vsel %vm236_vm1, %v4127_v7, 0.0  ;;  %v2395_v41 = vsel %vm236_vm1, %v4147_v36, 0.0 }
 0x2c5   : > { %v1907_v24 = vld [vmem:[#allocation2 + $0xe0] sm:$0xff]  ;;  %v2397_v27 = vsel %vm236_vm1, %v4157_v11, 0.0 }
 0x2c6   : > { %v2033_v42 = vadd.f32 %v1995_v39, %v1907_v24  ;;  %1876 = vst.msk [vmem:[#allocation2 + $0xe8] sm:$0xff] %vm236_vm1, %v1844_v23  ;;  %v2380_v5 = vadd.f32 %v2379_v25, %v2378_v57  ;;  %v2385_v39 = vsel %vm236_vm1, %v4097_v9, 0.0  ;;  %v2399_v25 = vsel %vm236_vm1, %v4167_v13, 0.0 }
 0x2c7   : > { %v2096_v54 = vld [vmem:[#allocation2 + $0xd8] sm:$0xff]  ;;  %v1810_v22 = vpop.f32.mrf.mxu2 }
 0x2c8   : > { %2065 = vst.msk [vmem:[#allocation2 + $0xe0] sm:$0xff] %vm236_vm1, %v2033_v42  ;;  %v2222_v4 = vadd.f32 %v2182_v16, %v2096_v54  ;;  %v1622_v61 = vpop.f32.mrf.mxu1  ;;  %v2382_v55 = vadd.f32 %v2381_v12, %v2380_v5  ;;  %v2000_v40 = vpop.f32.mrf.mxu3  ;;  %v2403_v5 = vsel %vm236_vm1, %v4194_v21, 0.0 }
 0x2c9   : > { %v4233_v38 = vld [vmem:[#allocation2 + $0xd0] sm:$0xff]  ;;  %v1656_v52 = vadd.f32 %v1622_v61, %v1526_v8 }
 0x2ca   : > { %v2317_v46 = vpack.c.bf16 %v4233_v38, %v4233_v38  ;;  %2254 = vst.msk [vmem:[#allocation2 + $0xd8] sm:$0xff] %vm236_vm1, %v2222_v4  ;;  %v1719_v59 = vld [vmem:[#allocation2 + $0xf0] sm:$0xff]  ;;  %v2384_v29 = vadd.f32 %v2383_v6, %v2382_v55 }
 0x2cb   : > { %v1845_v0 = vadd.f32 %v1810_v22, %v1719_v59  ;;  %1688 = vst.msk [vmem:[#allocation2 + $0xf8] sm:$0xff] %vm236_vm1, %v1656_v52  ;;  %v2401_v59 = vsel %vm236_vm1, %v4176_v32, 0.0 }
 0x2cc   : > { %2350 = vst.msk [vmem:[%s3868_s14 + $0x68] sm:$0xf] %vm2323_vm6, %v2317_v46  ;;  %v2386_v10 = vadd.f32 %v2385_v39, %v2384_v29  ;;  %v2190_v61 = vpop.f32.mrf.mxu0 }
 0x2cd   : > { %v1908_v30 = vld [vmem:[#allocation2 + $0xe8] sm:$0xff]  ;;  %1877 = vst.msk [vmem:[#allocation2 + $0xf0] sm:$0xff] %vm236_vm1, %v1845_v0 }
 0x2ce   : > { %v2034_v44 = vadd.f32 %v1997_v28, %v1908_v30  ;;  %v2388_v15 = vadd.f32 %v2387_v33, %v2386_v10 }
 0x2cf   : > { %v2097_v16 = vld [vmem:[#allocation2 + $0xe0] sm:$0xff]  ;;  %v1812_v48 = vpop.f32.mrf.mxu2 }
 0x2d0   : > { %2066 = vst.msk [vmem:[#allocation2 + $0xe8] sm:$0xff] %vm236_vm1, %v2034_v44  ;;  %v2223_v3 = vadd.f32 %v2185_v26, %v2097_v16  ;;  %v2390_v23 = vadd.f32 %v2389_v49, %v2388_v15  ;;  %v2002_v8 = vpop.f32.mrf.mxu3  ;;  %v2405_v44 = vsel %vm236_vm1, %v4215_v47, 0.0  ;;  %v2407_v16 = vsel %vm236_vm1, %v4233_v38, 0.0 }
 0x2d1   : > { %v4251_v53 = vld [vmem:[#allocation2 + $0xd8] sm:$0xff] }
 0x2d2   : > { %v2318_v20 = vpack.c.bf16 %v4251_v53, %v4251_v53  ;;  %2255 = vst.msk [vmem:[#allocation2 + $0xe0] sm:$0xff] %vm236_vm1, %v2223_v3  ;;  %v1720_v35 = vld [vmem:[#allocation2 + $0xf8] sm:$0xff]  ;;  %v2392_v18 = vadd.f32 %v2391_v62, %v2390_v23 }
 0x2d3   : > { %v1846_v17 = vadd.f32 %v1812_v48, %v1720_v35 }
 0x2d4   : > { %2351 = vst.msk [vmem:[%s3868_s14 + $0x6c] sm:$0xf] %vm2323_vm6, %v2318_v20  ;;  %v1909_v37 = vld [vmem:[#allocation2 + $0xf0] sm:$0xff]  ;;  %v2394_v28 = vadd.f32 %v2393_v60, %v2392_v18  ;;  %v2192_v33 = vpop.f32.mrf.mxu0 }
 0x2d5   : > { %v2035_v43 = vadd.f32 %v2000_v40, %v1909_v37  ;;  %1878 = vst.msk [vmem:[#allocation2 + $0xf8] sm:$0xff] %vm236_vm1, %v1846_v17 }
 0x2d6   : > { %v2396_v4 = vadd.f32 %v2395_v41, %v2394_v28 }
 0x2d7   : > { %2067 = vst.msk [vmem:[#allocation2 + $0xf0] sm:$0xff] %vm236_vm1, %v2035_v43  ;;  %v2098_v24 = vld [vmem:[#allocation2 + $0xe8] sm:$0xff] }
 0x2d8   : > { %v2224_v42 = vadd.f32 %v2187_v50, %v2098_v24  ;;  %v2398_v57 = vadd.f32 %v2397_v27, %v2396_v4  ;;  %v2409_v50 = vsel %vm236_vm1, %v4251_v53, 0.0 }
 0x2d9   : > { %v4268_v54 = vld [vmem:[#allocation2 + $0xe0] sm:$0xff] }
 0x2da   : > { %v2319_v26 = vpack.c.bf16 %v4268_v54, %v4268_v54  ;;  %2256 = vst.msk [vmem:[#allocation2 + $0xe8] sm:$0xff] %vm236_vm1, %v2224_v42  ;;  %v2400_v0 = vadd.f32 %v2399_v25, %v2398_v57  ;;  %v2411_v35 = vsel %vm236_vm1, %v4268_v54, 0.0  ;;  %v2823_v25 = vld [vmem:[#allocation2 + $0x8] sm:$0xff]  ;;  %v2824_v57 = vld [vmem:[#allocation2 + $0x10] sm:$0xff] }
 0x2dc   : > { %2352 = vst.msk [vmem:[%s3868_s14 + $0x70] sm:$0xf] %vm2323_vm6, %v2319_v26  ;;  %v1910_v22 = vld [vmem:[#allocation2 + $0xf8] sm:$0xff]  ;;  %v2402_v30 = vadd.f32 %v2401_v59, %v2400_v0 }
 0x2dd   : > { %v2036_v52 = vadd.f32 %v2002_v8, %v1910_v22  ;;  %v2822_v8 = vld [vmem:[#allocation2] sm:$0xff]  ;;  %v2825_v59 = vld [vmem:[#allocation2 + $0x18] sm:$0xff] }
 0x2de   : > { %v2099_v46 = vld [vmem:[#allocation2 + $0xf0] sm:$0xff]  ;;  %v2404_v39 = vadd.f32 %v2403_v5, %v2402_v30  ;;  %v2826_v30 = vld [vmem:[#allocation2 + $0x20] sm:$0xff] }
 0x2df   : > { %2068 = vst.msk [vmem:[#allocation2 + $0xf8] sm:$0xff] %vm236_vm1, %v2036_v52  ;;  %v2225_v12 = vadd.f32 %v2190_v61, %v2099_v46 }
 0x2e0   : > { %v2406_v29 = vadd.f32 %v2405_v44, %v2404_v39  ;;  %v2827_v39 = vld [vmem:[#allocation2 + $0x28] sm:$0xff] }
 0x2e1   : > { %v4284_v6 = vld [vmem:[#allocation2 + $0xe8] sm:$0xff]  ;;  %2257 = vst.msk [vmem:[#allocation2 + $0xf0] sm:$0xff] %vm236_vm1, %v2225_v12 }
 0x2e2   : > { %v2320_v55 = vpack.c.bf16 %v4284_v6, %v4284_v6  ;;  %v2408_v20 = vadd.f32 %v2407_v16, %v2406_v29  ;;  %v2413_v17 = vsel %vm236_vm1, %v4284_v6, 0.0 }
 0x2e4   : > { %2353 = vst.msk [vmem:[%s3868_s14 + $0x74] sm:$0xf] %vm2323_vm6, %v2320_v55  ;;  %v2410_v49 = vadd.f32 %v2409_v50, %v2408_v20 }
 0x2e6   : > { %v2100_v3 = vld [vmem:[#allocation2 + $0xf8] sm:$0xff]  ;;  %v2412_v15 = vadd.f32 %v2411_v35, %v2410_v49 }
 0x2e7   : > { %v2226_v10 = vadd.f32 %v2192_v33, %v2100_v3 }
 0x2e8   : > { %v4297_v40 = vld [vmem:[#allocation2 + $0xf0] sm:$0xff]  ;;  %v2414_v62 = vadd.f32 %v2413_v17, %v2412_v15 }
 0x2e9   : > { %v2321_v48 = vpack.c.bf16 %v4297_v40, %v4297_v40  ;;  %2258 = vst.msk [vmem:[#allocation2 + $0xf8] sm:$0xff] %vm236_vm1, %v2226_v10  ;;  %v2415_v37 = vsel %vm236_vm1, %v4297_v40, 0.0  ;;  %v2828_v10 = vld [vmem:[#allocation2 + $0x30] sm:$0xff] }
 0x2ea   : > { %v2416_v43 = vadd.f32 %v2415_v37, %v2414_v62 }
 0x2eb   : > { %2354 = vst.msk [vmem:[%s3868_s14 + $0x78] sm:$0xf] %vm2323_vm6, %v2321_v48 }
 0x2f0   : > { %v4310_v23 = vld [vmem:[#allocation2 + $0xf8] sm:$0xff] }
 0x2f1   : > { %v2322_v60 = vpack.c.bf16 %v4310_v23, %v4310_v23  ;;  %v2417_v24 = vsel %vm236_vm1, %v4310_v23, 0.0 }
 0x2f2   : > { %v2418_v18 = vadd.f32 %v2417_v24, %v2416_v43 }
 0x2f3   : > { %2355 = vst.msk [vmem:[%s3868_s14 + $0x7c] sm:$0xf] %vm2323_vm6, %v2322_v60 }
 0x2f4   : > { %v2419_v42 = vrot.slane %v2418_v18, 4 }
 0x2f6   : > { %v2420_v41 = vadd.f32 %v2419_v42, %v2418_v18 }
 0x2f8   : > { %v2421_v28 = vrot.slane %v2420_v41, 2 }
 0x2fa   : > { %v2422_v26 = vadd.f32 %v2421_v28, %v2420_v41 }
 0x2fc   : > { %v2423_v27 = vrot.slane %v2422_v26, 1 }
 0x2fe   : > { %v4318_v4 = vadd.f32 %v2423_v27, %v2422_v26 }
 0x300   : > { %v4321_v22 = vmul.f32 0.00390625, %v4318_v4 }
 0x302   : > { %v2426_v61 = vsub.f32 %v2822_v8, %v4321_v22  ;;  %v2427_v52 = vsub.f32 %v2823_v25, %v4321_v22  ;;  %v2428_v46 = vsub.f32 %v2824_v57, %v4321_v22  ;;  %v2429_v12 = vsub.f32 %v2825_v59, %v4321_v22 }
 0x303   : > { %v2430_v55 = vsub.f32 %v2826_v30, %v4321_v22  ;;  %v2431_v16 = vsub.f32 %v2827_v39, %v4321_v22  ;;  %v2432_v20 = vsub.f32 %v2828_v10, %v4321_v22  ;;  %v2433_v17 = vsub.f32 %v3987_v58, %v4321_v22 }
 0x304   : > { %v2458_v0 = vmul.f32 %v2426_v61, %v2426_v61  ;;  %v2459_v5 = vmul.f32 %v2427_v52, %v2427_v52  ;;  %v2460_v44 = vmul.f32 %v2428_v46, %v2428_v46  ;;  %v2461_v29 = vmul.f32 %v2429_v12, %v2429_v12 }
 0x305   : > { %v2462_v35 = vmul.f32 %v2430_v55, %v2430_v55  ;;  %v2463_v15 = vmul.f32 %v2431_v16, %v2431_v16  ;;  %v2434_v43 = vsub.f32 %v4016_v2, %v4321_v22  ;;  %v2464_v60 = vmul.f32 %v2432_v20, %v2432_v20 }
 0x306   : > { %v2490_v3 = vsel %vm236_vm1, %v2458_v0, 0.0  ;;  %v2491_v33 = vsel %vm236_vm1, %v2459_v5, 0.0  ;;  %v2493_v48 = vsel %vm236_vm1, %v2460_v44, 0.0  ;;  %v2495_v37 = vsel %vm236_vm1, %v2461_v29, 0.0 }
 0x307   : > { %v2492_v50 = vadd.f32 %v2491_v33, %v2490_v3  ;;  %v2497_v24 = vsel %vm236_vm1, %v2462_v35, 0.0  ;;  %v2435_v42 = vsub.f32 %v4030_v1, %v4321_v22  ;;  %v2465_v41 = vmul.f32 %v2433_v17, %v2433_v17 }
 0x308   : > { %v2499_v28 = vsel %vm236_vm1, %v2463_v15, 0.0  ;;  %v2436_v58 = vsub.f32 %v4044_v31, %v4321_v22  ;;  %v2466_v27 = vmul.f32 %v2434_v43, %v2434_v43  ;;  %v2501_v8 = vsel %vm236_vm1, %v2464_v60, 0.0 }
 0x309   : > { %v2494_v49 = vadd.f32 %v2493_v48, %v2492_v50  ;;  %v2437_v2 = vsub.f32 %v4056_v14, %v4321_v22  ;;  %v2467_v25 = vmul.f32 %v2435_v42, %v2435_v42  ;;  %v2503_v52 = vsel %vm236_vm1, %v2465_v41, 0.0 }
 0x30a   : > { %v2438_v1 = vsub.f32 %v4067_v63, %v4321_v22  ;;  %v2468_v46 = vmul.f32 %v2436_v58, %v2436_v58  ;;  %v2505_v59 = vsel %vm236_vm1, %v2466_v27, 0.0  ;;  %v2439_v31 = vsub.f32 %v4076_v34, %v4321_v22 }
 0x30b   : > { %v2496_v62 = vadd.f32 %v2495_v37, %v2494_v49  ;;  %v2469_v0 = vmul.f32 %v2437_v2, %v2437_v2  ;;  %v2507_v5 = vsel %vm236_vm1, %v2467_v25, 0.0  ;;  %v2440_v14 = vsub.f32 %v4086_v19, %v4321_v22 }
 0x30c   : > { %v2470_v55 = vmul.f32 %v2438_v1, %v2438_v1  ;;  %v2509_v44 = vsel %vm236_vm1, %v2468_v46, 0.0  ;;  %v2441_v63 = vsub.f32 %v4097_v9, %v4321_v22  ;;  %v2471_v16 = vmul.f32 %v2439_v31, %v2439_v31 }
 0x30d   : > { %v2498_v18 = vadd.f32 %v2497_v24, %v2496_v62  ;;  %v2511_v29 = vsel %vm236_vm1, %v2469_v0, 0.0  ;;  %v2442_v34 = vsub.f32 %v4107_v45, %v4321_v22  ;;  %v2472_v33 = vmul.f32 %v2440_v14, %v2440_v14 }
 0x30e   : > { %v2513_v50 = vsel %vm236_vm1, %v2470_v55, 0.0  ;;  %v2443_v19 = vsub.f32 %v4117_v51, %v4321_v22  ;;  %v2473_v20 = vmul.f32 %v2441_v63, %v2441_v63  ;;  %v2515_v35 = vsel %vm236_vm1, %v2471_v16, 0.0 }
 0x30f   : > { %v2500_v26 = vadd.f32 %v2499_v28, %v2498_v18  ;;  %v2444_v9 = vsub.f32 %v4127_v7, %v4321_v22  ;;  %v2474_v49 = vmul.f32 %v2442_v34, %v2442_v34  ;;  %v2517_v17 = vsel %vm236_vm1, %v2472_v33, 0.0 }
 0x310   : > { %v2445_v45 = vsub.f32 %v4137_v56, %v4321_v22  ;;  %v2475_v37 = vmul.f32 %v2443_v19, %v2443_v19  ;;  %v2519_v62 = vsel %vm236_vm1, %v2473_v20, 0.0  ;;  %v2446_v51 = vsub.f32 %v4147_v36, %v4321_v22 }
 0x311   : > { %v2502_v61 = vadd.f32 %v2501_v8, %v2500_v26  ;;  %v2476_v60 = vmul.f32 %v2444_v9, %v2444_v9  ;;  %v2521_v24 = vsel %vm236_vm1, %v2474_v49, 0.0  ;;  %v2447_v7 = vsub.f32 %v4157_v11, %v4321_v22 }
 0x312   : > { %v2477_v42 = vmul.f32 %v2445_v45, %v2445_v45  ;;  %v2523_v41 = vsel %vm236_vm1, %v2475_v37, 0.0  ;;  %v2448_v56 = vsub.f32 %v4167_v13, %v4321_v22  ;;  %v2478_v26 = vmul.f32 %v2446_v51, %v2446_v51 }
 0x313   : > { %v2504_v57 = vadd.f32 %v2503_v52, %v2502_v61  ;;  %v2525_v58 = vsel %vm236_vm1, %v2476_v60, 0.0  ;;  %v2449_v36 = vsub.f32 %v4176_v32, %v4321_v22  ;;  %v2479_v8 = vmul.f32 %v2447_v7, %v2447_v7 }
 0x314   : > { %v2527_v61 = vsel %vm236_vm1, %v2477_v42, 0.0  ;;  %v2450_v11 = vsub.f32 %v4194_v21, %v4321_v22  ;;  %v2480_v25 = vmul.f32 %v2448_v56, %v2448_v56  ;;  %v2529_v52 = vsel %vm236_vm1, %v2478_v26, 0.0 }
 0x315   : > { %v2506_v12 = vadd.f32 %v2505_v59, %v2504_v57  ;;  %v2451_v13 = vsub.f32 %v4215_v47, %v4321_v22  ;;  %v2481_v1 = vmul.f32 %v2449_v36, %v2449_v36  ;;  %v2531_v46 = vsel %vm236_vm1, %v2479_v8, 0.0 }
 0x316   : > { %v2452_v32 = vsub.f32 %v4233_v38, %v4321_v22  ;;  %v2533_v31 = vsel %vm236_vm1, %v2480_v25, 0.0  ;;  %v2453_v21 = vsub.f32 %v4251_v53, %v4321_v22  ;;  %v2454_v47 = vsub.f32 %v4268_v54, %v4321_v22 }
 0x317   : > { %v2508_v30 = vadd.f32 %v2507_v5, %v2506_v12  ;;  %v2482_v12 = vmul.f32 %v2450_v11, %v2450_v11  ;;  %v2483_v5 = vmul.f32 %v2451_v13, %v2451_v13  ;;  %v2455_v38 = vsub.f32 %v4284_v6, %v4321_v22 }
 0x318   : > { %v2484_v55 = vmul.f32 %v2452_v32, %v2452_v32  ;;  %v2485_v63 = vmul.f32 %v2453_v21, %v2453_v21  ;;  %v2456_v53 = vsub.f32 %v4297_v40, %v4321_v22  ;;  %v2457_v54 = vsub.f32 %v4310_v23, %v4321_v22 }
 0x319   : > { %v2510_v39 = vadd.f32 %v2509_v44, %v2508_v30  ;;  %v2535_v30 = vsel %vm236_vm1, %v2481_v1, 0.0  ;;  %v2537_v44 = vsel %vm236_vm1, %v2482_v12, 0.0  ;;  %v2539_v16 = vsel %vm236_vm1, %v2483_v5, 0.0 }
 0x31a   : > { %v2541_v34 = vsel %vm236_vm1, %v2484_v55, 0.0  ;;  %v2488_v6 = vmul.f32 %v2456_v53, %v2456_v53 }
 0x31b   : > { %v2512_v3 = vadd.f32 %v2511_v29, %v2510_v39 }
 0x31c   : > { %v2549_v49 = vsel %vm236_vm1, %v2488_v6, 0.0 }
 0x31d   : > { %v2514_v10 = vadd.f32 %v2513_v50, %v2512_v3  ;;  %v2486_v3 = vmul.f32 %v2454_v47, %v2454_v47  ;;  %v2487_v50 = vmul.f32 %v2455_v38, %v2455_v38 }
 0x31f   : > { %v2516_v48 = vadd.f32 %v2515_v35, %v2514_v10  ;;  %v2543_v10 = vsel %vm236_vm1, %v2485_v63, 0.0  ;;  %v2545_v20 = vsel %vm236_vm1, %v2486_v3, 0.0  ;;  %v2547_v9 = vsel %vm236_vm1, %v2487_v50, 0.0 }
 0x321   : > { %v2518_v15 = vadd.f32 %v2517_v17, %v2516_v48  ;;  %v2489_v48 = vmul.f32 %v2457_v54, %v2457_v54 }
 0x323   : > { %v2520_v43 = vadd.f32 %v2519_v62, %v2518_v15  ;;  %v2551_v15 = vsel %vm236_vm1, %v2489_v48, 0.0 }
 0x325   : > { %v2522_v18 = vadd.f32 %v2521_v24, %v2520_v43 }
 0x327   : > { %v2524_v28 = vadd.f32 %v2523_v41, %v2522_v18 }
 0x329   : > { %v2526_v27 = vadd.f32 %v2525_v58, %v2524_v28 }
 0x32b   : > { %v2528_v2 = vadd.f32 %v2527_v61, %v2526_v27 }
 0x32d   : > { %v2530_v57 = vadd.f32 %v2529_v52, %v2528_v2 }
 0x32f   : > { %v2532_v59 = vadd.f32 %v2531_v46, %v2530_v57 }
 0x331   : > { %v2534_v0 = vadd.f32 %v2533_v31, %v2532_v59 }
 0x333   : > { %v2536_v14 = vadd.f32 %v2535_v30, %v2534_v0 }
 0x335   : > { %v2538_v39 = vadd.f32 %v2537_v44, %v2536_v14 }
 0x337   : > { %v2540_v29 = vadd.f32 %v2539_v16, %v2538_v39 }
 0x339   : > { %v2542_v33 = vadd.f32 %v2541_v34, %v2540_v29 }
 0x33b   : > { %v2544_v19 = vadd.f32 %v2543_v10, %v2542_v33 }
 0x33d   : > { %v2546_v35 = vadd.f32 %v2545_v20, %v2544_v19 }
 0x33f   : > { %v2548_v40 = vadd.f32 %v2547_v9, %v2546_v35 }
 0x341   : > { %v2550_v17 = vadd.f32 %v2549_v49, %v2548_v40 }
 0x343   : > { %v2552_v45 = vadd.f32 %v2551_v15, %v2550_v17 }
 0x345   : > { %v2553_v23 = vrot.slane %v2552_v45, 4 }
 0x347   : > { %v2554_v22 = vadd.f32 %v2553_v23, %v2552_v45 }
 0x349   : > { %v2555_v37 = vrot.slane %v2554_v22, 2 }
 0x34b   : > { %v2556_v62 = vadd.f32 %v2555_v37, %v2554_v22 }
 0x34d   : > { %v2557_v43 = vrot.slane %v2556_v62, 1 }
 0x34f   : > { %v2558_v51 = vadd.f32 %v2557_v43, %v2556_v62 }
 0x351   : > { %v2560_v60 = vsel %vm2559_vm7, %v4318_v4, %v2558_v51 }
 0x352   : > { %2562 = vst.msk [vmem:[%s181_s18] sm:$0x3] %vm2561_vm8, %v2560_v60 }
 0x353 PF: > { %s14_s12 = sadd.s32 1, %s2835_s12  }
 0x354   : > { %p11_p4 = scmp.ge.s32.totalorder %s14_s12, 4  }
 0x356   :  { %13 = sbr.rel (!%p11_p4) target bundleno = 1 (0x1), region = 78 }

// kernel: residual_block_forward.4
= control target key start
LH: loop header
LB: loop body
LE: loop exit
PB: predicated region body
PF: predicated region fallthrough
CT: control target
= control target key end

     0   :  { %s3139_s18 = smov 0   ;;  %s4713_s0 = inlined_call_operand.vmem [shape: bf16[2,16,16,8], index: 0, kind: input, shape index: {}]   ;;  %s4714_s1 = inlined_call_operand.vmem [shape: f32[1,8], index: 1, kind: input, shape index: {}]   ;;  %s4715_s2 = inlined_call_operand.vmem [shape: f32[1,8], index: 2, kind: input, shape index: {}]   ;;  %s4716_s3 = inlined_call_operand.vmem [shape: bf16[3,3,8,8], index: 3, kind: input, shape index: {}]   ;;  %s4717_s4 = inlined_call_operand.vmem [shape: bf16[2,16,16,8], index: 4, kind: output, shape index: {0}]   ;;  %s4718_s5 = inlined_call_operand.vmem [shape: f32[2,2,8], index: 5, kind: output, shape index: {1}]  }
   0x1 LB: > { %s2839_s19 = sadd.s32 4294967295, %s3106_s18   ;;  %p2843_p0 = scmp.ge.s32.totalorder %s3106_s18, 1  ;;  %s3106_s18 = sphi %s3139_s18, %s16_s18  }
   0x2   : > { %p190_p1 = scmp.lt.s32.totalorder %s3106_s18, 3 }
   0x4   : > { %p191_p2 = pnand %p2843_p0, %p190_p1 }
   0x6   : > { %194 = sbr.rel (%p191_p2) target bundleno = 859 (0x35b), region = 36 }
   0xb   : > { %v2849_v0 = vld [vmem:[%s4716_s3 + $0x10] sm:$0xf]  ;;  %vm475_vm0 = vcmask 1043456   ;;  %p222_p3 = scmp.lt.s32.totalorder %s2839_s19, 1  ;;  %v742_v2 = vld [vmem:[%s4716_s3] sm:$0xf] }
   0xc   : > { %v477_v1 = vsel %vm475_vm0, %v2849_v0, 0  ;;  %v792_v3 = vsel %vm475_vm0, %v742_v2, 0  ;;  %v2881_v4 = vld [vmem:[%s4716_s3 + $0x4] sm:$0xf]  ;;  %v2897_v5 = vld [vmem:[%s4716_s3 + $0x8] sm:$0xf] }
   0xd   : > { %3078 = vmatpush.bf16.msra.mxu1 %v477_v1  ;;  %3079 = vmatpush.bf16.msra.mxu2 %v477_v1  ;;  %s4759_s19 = smov (!%p222_p3, %s2839_s19), 1  ;;  %v982_v6 = vsel %vm475_vm0, %v2881_v4, 0  ;;  %v1326_v7 = vsel %vm475_vm0, %v2897_v5, 0  ;;  %v2913_v8 = vld [vmem:[%s4716_s3 + $0xc] sm:$0xf]  ;;  %vm426_vm1 = vcmask 64512  }
   0xe   : > { %3080 = vmatpush.bf16.msra.mxu3 %v477_v1  ;;  %486 = vmatpush.bf16.msra.mxu0 %v477_v1  ;;  %s2997_s28 = sshll.u32 %s4759_s19, 7  ;;  %v3179_v9 = vld [vmem:[%s4714_s1] ss:$0 sm:$0xff]  ;;  %v1525_v10 = vsel %vm475_vm0, %v2913_v8, 0  ;;  %vm2513_vm6 = vcmask 60416   ;;  %s2848_s26 = sshll.u32 %s4759_s19, 1 }
   0xf   : > { %s3174_s8 = scalar_lea.vmem %s4713_s0, %s2997_s28  ;;  %v3188_v16 = vld [vmem:[%s4715_s2] ss:$0 sm:$0xff]  ;;  %s4191_s25 = scalar_lea.vmem %s4717_s4, %s2997_s28  ;;  %vm2749_vm7 = vcmask 1040384   ;;  %vm2751_vm8 = vcmask 58368  }
  0x10   : > { %v3066_v11 = vld [vmem:[%s3174_s8 + $0x20] sm:$0xff]   ;;  %v3067_v25 = vld [vmem:[%s3174_s8 + $0x28] sm:$0xff]   ;;  %s235_s29 = scalar_lea.vmem %s4718_s5, %s2848_s26 }
  0x11   : > { %801 = vmatpush.bf16.msrb.mxu1 %v792_v3  ;;  %991 = vmatpush.bf16.msrb.mxu2 %v982_v6  ;;  %v3070_v12 = vld [vmem:[%s3174_s8 + $0x40] sm:$0xff]   ;;  %v3017_v14 = vunpack.c.l.bf16 %v3066_v11  ;;  %v3018_v15 = vunpack.c.h.bf16 %v3066_v11  ;;  %v3021_v34 = vunpack.c.l.bf16 %v3067_v25  ;;  %v3022_v35 = vunpack.c.h.bf16 %v3067_v25  ;;  %v3071_v36 = vld [vmem:[%s3174_s8 + $0x48] sm:$0xff]  }
  0x12   : > { %1335 = vmatpush.bf16.msrb.mxu3 %v1326_v7  ;;  %v3074_v13 = vld [vmem:[%s3174_s8 + $0x60] sm:$0xff]   ;;  %1534 = vmatpush.bf16.msrb.mxu0 %v1525_v10  ;;  %v3033_v17 = vunpack.c.l.bf16 %v3070_v12  ;;  %v3034_v18 = vunpack.c.h.bf16 %v3070_v12  ;;  %v3075_v44 = vld [vmem:[%s3174_s8 + $0x68] sm:$0xff]   ;;  %v3037_v47 = vunpack.c.l.bf16 %v3071_v36  ;;  %v3038_v51 = vunpack.c.h.bf16 %v3071_v36 }
  0x13   : > { %v3049_v19 = vunpack.c.l.bf16 %v3074_v13  ;;  %v3050_v20 = vunpack.c.h.bf16 %v3074_v13  ;;  %v313_v21 = vmul.f32 %v3179_v9, %v3017_v14  ;;  %v314_v22 = vmul.f32 %v3179_v9, %v3018_v15  ;;  %v3000_v43 = vld [vmem:[%s3174_s8] sm:$0xff]   ;;  %v3063_v8 = vld [vmem:[%s3174_s8 + $0x8] sm:$0xff]   ;;  %v3068_v15 = vld [vmem:[%s3174_s8 + $0x30] sm:$0xff]  }
  0x14   : > { %v321_v23 = vmul.f32 %v3179_v9, %v3033_v17  ;;  %v322_v24 = vmul.f32 %v3179_v9, %v3034_v18  ;;  %v315_v49 = vmul.f32 %v3179_v9, %v3021_v34  ;;  %v316_v50 = vmul.f32 %v3179_v9, %v3022_v35 }
  0x15   : > { %v329_v26 = vmul.f32 %v3179_v9, %v3049_v19  ;;  %v330_v27 = vmul.f32 %v3179_v9, %v3050_v20  ;;  %v349_v28 = vadd.f32 %v3188_v16, %v313_v21  ;;  %v350_v29 = vadd.f32 %v3188_v16, %v314_v22  ;;  %v3072_v19 = vld [vmem:[%s3174_s8 + $0x50] sm:$0xff]  }
  0x16   : > { %v357_v30 = vadd.f32 %v3188_v16, %v321_v23  ;;  %v358_v31 = vadd.f32 %v3188_v16, %v322_v24  ;;  %v323_v52 = vmul.f32 %v3179_v9, %v3037_v47  ;;  %v3001_v53 = vunpack.c.l.bf16 %v3000_v43  ;;  %v3076_v22 = vld [vmem:[%s3174_s8 + $0x70] sm:$0xff]  }
  0x17   : > { %v365_v32 = vadd.f32 %v3188_v16, %v329_v26  ;;  %v366_v33 = vadd.f32 %v3188_v16, %v330_v27  ;;  %v3204_v37 = vmax.f32 %v349_v28, 0.0  ;;  %v3206_v38 = vmax.f32 %v350_v29, 0.0 }
  0x18   : > { %v3208_v39 = vmax.f32 %v357_v30, 0.0  ;;  %v3210_v40 = vmax.f32 %v358_v31, 0.0  ;;  %v3002_v54 = vunpack.c.h.bf16 %v3000_v43  ;;  %v3053_v55 = vunpack.c.l.bf16 %v3075_v44 }
  0x19   : > { %v3212_v41 = vmax.f32 %v365_v32, 0.0  ;;  %v3214_v42 = vmax.f32 %v366_v33, 0.0  ;;  %v3220_v45 = vpack.c.bf16 %v3206_v38, %v3204_v37  ;;  %v324_v56 = vmul.f32 %v3179_v9, %v3038_v51 }
  0x1a   : > { %v3224_v46 = vpack.c.bf16 %v3210_v40, %v3208_v39  ;;  %v3054_v57 = vunpack.c.h.bf16 %v3075_v44  ;;  %v305_v58 = vmul.f32 %v3179_v9, %v3001_v53  ;;  %v306_v59 = vmul.f32 %v3179_v9, %v3002_v54 }
  0x1b   : > { %v3228_v48 = vpack.c.bf16 %v3214_v42, %v3212_v41  ;;  %2854 = vmatmul.msk.bf16.vlgmr.msra.gmra.mxu1 %vm426_vm1, %v3220_v45  ;;  %v331_v60 = vmul.f32 %v3179_v9, %v3053_v55  ;;  %v351_v61 = vadd.f32 %v3188_v16, %v315_v49  ;;  %v352_v62 = vadd.f32 %v3188_v16, %v316_v50  ;;  %v3064_v55 = vld [vmem:[%s3174_s8 + $0x10] sm:$0xff]  }
  0x1c   : > { %4737 = vst [vmem:[#allocation3_spill] sm:$0xff] %v3224_v46  ;;  %2858 = vmatmul.msk.bf16.vlgmr.msra.gmra.mxu2 %vm426_vm1, %v3224_v46  ;;  %v332_v63 = vmul.f32 %v3179_v9, %v3054_v57  ;;  %v359_v0 = vadd.f32 %v3188_v16, %v323_v52  ;;  %v360_v1 = vadd.f32 %v3188_v16, %v324_v56  ;;  %v3005_v20 = vunpack.c.l.bf16 %v3063_v8 }
  0x1d   : > { %2862 = vmatmul.msk.bf16.vlgmr.msra.gmra.mxu3 %vm426_vm1, %v3228_v48  ;;  %v341_v2 = vadd.f32 %v3188_v16, %v305_v58  ;;  %v342_v3 = vadd.f32 %v3188_v16, %v306_v59  ;;  %v367_v4 = vadd.f32 %v3188_v16, %v331_v60  ;;  %v3257_v10 = vmax.f32 %v351_v61, 0.0 }
  0x1e   : > { %v368_v5 = vadd.f32 %v3188_v16, %v332_v63  ;;  %v3259_v11 = vmax.f32 %v352_v62, 0.0  ;;  %v3261_v12 = vmax.f32 %v359_v0, 0.0  ;;  %v3263_v13 = vmax.f32 %v360_v1, 0.0 }
  0x1f   : > { %v3252_v6 = vmax.f32 %v341_v2, 0.0  ;;  %v3254_v7 = vmax.f32 %v342_v3, 0.0  ;;  %v3270_v17 = vmax.f32 %v367_v4, 0.0  ;;  %v3006_v21 = vunpack.c.h.bf16 %v3063_v8  ;;  %v3069_v3 = vld [vmem:[%s3174_s8 + $0x38] sm:$0xff]  }
  0x20   : > { %v3272_v18 = vmax.f32 %v368_v5, 0.0  ;;  %v3025_v23 = vunpack.c.l.bf16 %v3068_v15  ;;  %v3026_v24 = vunpack.c.h.bf16 %v3068_v15  ;;  %v307_v25 = vmul.f32 %v3179_v9, %v3005_v20  ;;  %v3073_v8 = vld [vmem:[%s3174_s8 + $0x58] sm:$0xff]  }
  0x21   : > { %4738 = vst [vmem:[#allocation4_spill] sm:$0xff] %v3252_v6  ;;  %v3267_v14 = vpack.c.bf16 %v3254_v7, %v3252_v6  ;;  %v308_v26 = vmul.f32 %v3179_v9, %v3006_v21  ;;  %v3282_v27 = vpack.c.bf16 %v3259_v11, %v3257_v10  ;;  %v3286_v28 = vpack.c.bf16 %v3263_v13, %v3261_v12  ;;  %v3077_v20 = vld [vmem:[%s3174_s8 + $0x78] sm:$0xff]  }
  0x22   : > { %v3041_v29 = vunpack.c.l.bf16 %v3072_v19  ;;  %v3042_v30 = vunpack.c.h.bf16 %v3072_v19  ;;  %v3290_v31 = vpack.c.bf16 %v3272_v18, %v3270_v17  ;;  %v3057_v32 = vunpack.c.l.bf16 %v3076_v22 }
  0x23   : > { %2850 = vmatmul.msk.bf16.vlgmr.msra.gmra.mxu0 %vm426_vm1, %v3267_v14  ;;  %v3058_v33 = vunpack.c.h.bf16 %v3076_v22  ;;  %v343_v34 = vadd.f32 %v3188_v16, %v307_v25  ;;  %v344_v35 = vadd.f32 %v3188_v16, %v308_v26  ;;  %v317_v36 = vmul.f32 %v3179_v9, %v3025_v23 }
  0x24   : > { %v318_v43 = vmul.f32 %v3179_v9, %v3026_v24  ;;  %v325_v44 = vmul.f32 %v3179_v9, %v3041_v29  ;;  %v326_v47 = vmul.f32 %v3179_v9, %v3042_v30  ;;  %v333_v49 = vmul.f32 %v3179_v9, %v3057_v32 }
  0x25   : > { %v334_v50 = vmul.f32 %v3179_v9, %v3058_v33  ;;  %v3306_v51 = vmax.f32 %v343_v34, 0.0  ;;  %v3308_v52 = vmax.f32 %v344_v35, 0.0  ;;  %v353_v53 = vadd.f32 %v3188_v16, %v317_v36 }
  0x26   : > { %v354_v54 = vadd.f32 %v3188_v16, %v318_v43  ;;  %v361_v56 = vadd.f32 %v3188_v16, %v325_v44  ;;  %v362_v57 = vadd.f32 %v3188_v16, %v326_v47  ;;  %v369_v58 = vadd.f32 %v3188_v16, %v333_v49  ;;  %v2930_v47 = vld [vmem:[%s4716_s3 + $0x14] sm:$0xf]  ;;  %v2947_v49 = vld [vmem:[%s4716_s3 + $0x18] sm:$0xf] }
  0x27   : > { %v370_v59 = vadd.f32 %v3188_v16, %v334_v50  ;;  %v3319_v60 = vpack.c.bf16 %v3308_v52, %v3306_v51  ;;  %v3009_v61 = vunpack.c.l.bf16 %v3064_v55  ;;  %v3010_v62 = vunpack.c.h.bf16 %v3064_v55 }
  0x28   : > { %v3321_v63 = vmax.f32 %v353_v53, 0.0  ;;  %v3323_v0 = vmax.f32 %v354_v54, 0.0  ;;  %v3325_v1 = vmax.f32 %v361_v56, 0.0  ;;  %v3327_v2 = vmax.f32 %v362_v57, 0.0  ;;  %v2963_v56 = vld [vmem:[%s4716_s3 + $0x1c] sm:$0xf] }
  0x29   : > { %v3330_v4 = vmax.f32 %v369_v58, 0.0  ;;  %v3332_v5 = vmax.f32 %v370_v59, 0.0  ;;  %v309_v15 = vmul.f32 %v3179_v9, %v3009_v61  ;;  %v310_v19 = vmul.f32 %v3179_v9, %v3010_v62  ;;  %v3065_v61 = vld [vmem:[%s3174_s8 + $0x18] sm:$0xff]  }
  0x2a   : > { %v3342_v21 = vpack.c.bf16 %v3323_v0, %v3321_v63  ;;  %v3029_v22 = vunpack.c.l.bf16 %v3069_v3  ;;  %v3346_v23 = vpack.c.bf16 %v3327_v2, %v3325_v1  ;;  %v3030_v24 = vunpack.c.h.bf16 %v3069_v3 }
  0x2b   : > { %2855 = vmatmul.msk.bf16.gmra.mxu1 %vm426_vm1, %v3282_v27  ;;  %v3045_v25 = vunpack.c.l.bf16 %v3073_v8  ;;  %v3046_v26 = vunpack.c.h.bf16 %v3073_v8  ;;  %v3350_v29 = vpack.c.bf16 %v3332_v5, %v3330_v4  ;;  %v3061_v30 = vunpack.c.l.bf16 %v3077_v20 }
  0x2c   : > { %2859 = vmatmul.msk.bf16.gmra.mxu2 %vm426_vm1, %v3286_v28  ;;  %v3062_v32 = vunpack.c.h.bf16 %v3077_v20  ;;  %v345_v33 = vadd.f32 %v3188_v16, %v309_v15  ;;  %v346_v34 = vadd.f32 %v3188_v16, %v310_v19  ;;  %v319_v35 = vmul.f32 %v3179_v9, %v3029_v22 }
  0x2d   : > { %2863 = vmatmul.msk.bf16.gmra.mxu3 %vm426_vm1, %v3290_v31  ;;  %v320_v36 = vmul.f32 %v3179_v9, %v3030_v24  ;;  %v327_v43 = vmul.f32 %v3179_v9, %v3045_v25  ;;  %v328_v44 = vmul.f32 %v3179_v9, %v3046_v26  ;;  %v335_v50 = vmul.f32 %v3179_v9, %v3061_v30 }
  0x2e   : > { %v336_v53 = vmul.f32 %v3179_v9, %v3062_v32  ;;  %v1724_v54 = vsel %vm475_vm0, %v2930_v47, 0  ;;  %v1914_v55 = vsel %vm475_vm0, %v2947_v49, 0  ;;  %v3377_v57 = vmax.f32 %v345_v33, 0.0 }
  0x2f   : > { %v3379_v58 = vmax.f32 %v346_v34, 0.0  ;;  %1733 = vmatpush.bf16.msra.mxu1 %v1724_v54  ;;  %1923 = vmatpush.bf16.msra.mxu2 %v1914_v55  ;;  %v2104_v59 = vsel %vm475_vm0, %v2963_v56, 0  ;;  %v355_v62 = vadd.f32 %v3188_v16, %v319_v35  ;;  %v356_v3 = vadd.f32 %v3188_v16, %v320_v36 }
  0x30   : > { %2113 = vmatpush.bf16.msra.mxu3 %v2104_v59  ;;  %v363_v8 = vadd.f32 %v3188_v16, %v327_v43  ;;  %v364_v15 = vadd.f32 %v3188_v16, %v328_v44  ;;  %v371_v19 = vadd.f32 %v3188_v16, %v335_v50  ;;  %v372_v20 = vadd.f32 %v3188_v16, %v336_v53 }
  0x31   : > { %v3391_v22 = vpack.c.bf16 %v3379_v58, %v3377_v57  ;;  %v3013_v24 = vunpack.c.l.bf16 %v3065_v61  ;;  %v3014_v25 = vunpack.c.h.bf16 %v3065_v61  ;;  %v3393_v26 = vmax.f32 %v355_v62, 0.0 }
  0x32   : > { %v3395_v30 = vmax.f32 %v356_v3, 0.0  ;;  %v3397_v32 = vmax.f32 %v363_v8, 0.0  ;;  %v3399_v33 = vmax.f32 %v364_v15, 0.0  ;;  %v3401_v34 = vmax.f32 %v371_v19, 0.0 }
  0x33   : > { %2851 = vmatmul.msk.bf16.gmra.mxu0 %vm426_vm1, %v3319_v60  ;;  %v3403_v35 = vmax.f32 %v372_v20, 0.0  ;;  %v311_v36 = vmul.f32 %v3179_v9, %v3013_v24  ;;  %v312_v43 = vmul.f32 %v3179_v9, %v3014_v25  ;;  %v2979_v9 = vld [vmem:[%s4716_s3 + $0x20] sm:$0xf]  ;;  %v405_v59 = vlaneseq }
  0x34   : > { %v3411_v44 = vpack.c.bf16 %v3395_v30, %v3393_v26  ;;  %v3415_v47 = vpack.c.bf16 %v3399_v33, %v3397_v32  ;;  %v2294_v56 = vsel %vm475_vm0, %v2979_v9, 0  ;;  %v600_v62 = vrot.slane %v3252_v6, 7 }
  0x35   : > { %v3419_v49 = vpack.c.bf16 %v3403_v35, %v3401_v34  ;;  %v347_v50 = vadd.f32 %v3188_v16, %v311_v36  ;;  %v348_v53 = vadd.f32 %v3188_v16, %v312_v43  ;;  %2303 = vmatpush.bf16.msra.mxu0 %v2294_v56  ;;  %v3443_v61 = vshrl.u32 %v405_v59, 7 }
  0x36   : > { %v4722_v3 = vrot.slane %v3403_v35, 7  ;;  %v4719_v8 = vmov 0.0|0.0   ;;  %v601_v15 = vrot.slane %v3254_v7, 7  ;;  %v1138_v24 = vrot.slane %v3254_v7, 1 }
  0x37   : > { %4739 = vst [vmem:[#allocation5_spill] sm:$0xff] %v3419_v49  ;;  %v3432_v54 = vmax.f32 %v347_v50, 0.0  ;;  %v3434_v55 = vmax.f32 %v348_v53, 0.0  ;;  %vm631_vm2 = vcmp.lt.s32.totalorder %v3443_v61, 1  ;;  %vm662_vm3 = vcmp.ge.s32.totalorder %v3443_v61, 1 }
  0x38   : > { %v661_v19 = vsel %vm631_vm2, %v4722_v3, %v600_v62  ;;  %v3458_v20 = vadd.s32 8, %v3443_v61  ;;  %v1139_v25 = vrot.slane %v3306_v51, 1  ;;  %vm1168_vm4 = vcmp.lt.s32.totalorder %v3443_v61, 7 }
  0x39   : > { %v3439_v16 = vpack.c.bf16 %v3434_v55, %v3432_v54  ;;  %v660_v36 = vsel %vm631_vm2, %v600_v62, %v601_v15  ;;  %v664_v43 = vsel %vm662_vm3, %v661_v19, 0.0  ;;  %v4721_v50 = vrot.slane %v3252_v6, 1 }
  0x3a   : > { %v1197_v53 = vsel %vm1168_vm4, %v1138_v24, %v1139_v25  ;;  %vm1200_vm5 = vcmp.le.s32.totalorder %v3458_v20, 14  ;;  %v727_v9 = vpack.c.bf16 %v660_v36, %v664_v43  ;;  %v602_v62 = vrot.slane %v3306_v51, 7 }
  0x3b   : > { %2856 = vmatmul.msk.bf16.gmra.mxu1 %vm426_vm1, %v3342_v21  ;;  %v1198_v7 = vsel %vm1168_vm4, %v4721_v50, %v1138_v24  ;;  %v1202_v56 = vsel %vm1200_vm5, %v1197_v53, 0.0  ;;  %v603_v19 = vrot.slane %v3308_v52, 7  ;;  %v1140_v36 = vrot.slane %v3308_v52, 1 }
  0x3c   : > { %2860 = vmatmul.msk.bf16.gmra.mxu2 %vm426_vm1, %v3346_v23  ;;  %v3478_v59 = vpack.c.bf16 %v1202_v56, %v1198_v7  ;;  %v659_v24 = vsel %vm631_vm2, %v601_v15, %v602_v62  ;;  %v1141_v43 = vrot.slane %v3377_v57, 1  ;;  %v604_v56 = vrot.slane %v3377_v57, 7 }
  0x3d   : > { %2864 = vmatmul.msk.bf16.gmra.mxu3 %vm426_vm1, %v3350_v29  ;;  %v658_v51 = vsel %vm631_vm2, %v602_v62, %v603_v19  ;;  %v666_v53 = vsel %vm662_vm3, %v659_v24, 0.0  ;;  %v1196_v7 = vsel %vm1168_vm4, %v1139_v25, %v1140_v36  ;;  %v605_v25 = vrot.slane %v3379_v58, 7 }
  0x3e   : > { %v657_v62 = vsel %vm631_vm2, %v603_v19, %v604_v56  ;;  %v1142_v24 = vrot.slane %v3379_v58, 1 }
  0x3f   : > { %v656_v57 = vsel %vm631_vm2, %v604_v56, %v605_v25 }
  0x43   : > { %2852 = vmatmul.msk.bf16.gmra.mxu0 %vm426_vm1, %v3391_v22 }
  0x4b   : > { %2857 = vmatmul.msk.bf16.gmra.mxu1 %vm426_vm1, %v3411_v44 }
  0x4c   : > { %2861 = vmatmul.msk.bf16.gmra.mxu2 %vm426_vm1, %v3415_v47 }
  0x4d   : > { %2865 = vmatmul.msk.bf16.gmra.mxu3 %vm426_vm1, %v3419_v49 }
  0x53   : > { %2853 = vmatmul.msk.bf16.gmra.mxu0 %vm426_vm1, %v3439_v16 }
  0x5b   : > { %802 = vmatmul.bf16.vlgmr.msrb.gmra.mxu1 %v4719_v8 }
  0x5c   : > { %992 = vmatmul.bf16.vlgmr.msrb.gmra.mxu2 %v4719_v8 }
  0x5d   : > { %1336 = vmatmul.bf16.vlgmr.msrb.gmra.mxu3 %v4719_v8 }
  0x63   : > { %2914 = vmatmul.msk.bf16.vlgmr.msrb.gmra.mxu0 %vm426_vm1, %v727_v9 }
  0x6b   : > { %2866 = vmatmul.msk.bf16.gmra.mxu1 %vm426_vm1, %v727_v9  ;;  %v3497_v9 = vpack.c.bf16 %v658_v51, %v666_v53  ;;  %v668_v51 = vsel %vm662_vm3, %v657_v62, 0.0  ;;  %v1144_v62 = vrot.slane %v3434_v55, 1 }
  0x6c   : > { %2882 = vmatmul.msk.bf16.gmra.mxu2 %vm426_vm1, %v3267_v14  ;;  %v1195_v14 = vsel %vm1168_vm4, %v1140_v36, %v1141_v43  ;;  %v1143_v36 = vrot.slane %v3432_v54, 1 }
  0x6d   : > { %2898 = vmatmul.msk.bf16.gmra.mxu3 %vm426_vm1, %v3478_v59  ;;  %v1204_v15 = vsel %vm1200_vm5, %v1195_v14, 0.0  ;;  %v3525_v14 = vpack.c.bf16 %v656_v57, %v668_v51 }
  0x6e   : > { %v3505_v52 = vpack.c.bf16 %v1204_v15, %v1196_v7  ;;  %v1193_v53 = vsel %vm1168_vm4, %v1142_v24, %v1143_v36  ;;  %v1194_v7 = vsel %vm1168_vm4, %v1141_v43, %v1142_v24  ;;  %v606_v15 = vrot.slane %v3432_v54, 7 }
  0x6f   : > { %v1206_v19 = vsel %vm1200_vm5, %v1193_v53, 0.0  ;;  %v607_v43 = vrot.slane %v3434_v55, 7  ;;  %v1145_v24 = vrot.slane %v3204_v37, 1 }
  0x70   : > { %v3533_v58 = vpack.c.bf16 %v1206_v19, %v1194_v7  ;;  %v655_v56 = vsel %vm631_vm2, %v605_v25, %v606_v15  ;;  %v1192_v7 = vsel %vm1168_vm4, %v1143_v36, %v1144_v62  ;;  %v609_v36 = vrot.slane %v3206_v38, 7 }
  0x71   : > { %v654_v54 = vsel %vm631_vm2, %v606_v15, %v607_v43  ;;  %v670_v57 = vsel %vm662_vm3, %v655_v56, 0.0  ;;  %v1191_v51 = vsel %vm1168_vm4, %v1144_v62, %v1145_v24  ;;  %v608_v15 = vrot.slane %v3204_v37, 7 }
  0x72   : > { %v3553_v53 = vpack.c.bf16 %v654_v54, %v670_v57  ;;  %v1208_v25 = vsel %vm1200_vm5, %v1191_v51, 0.0  ;;  %v1146_v54 = vrot.slane %v3206_v38, 1  ;;  %v1147_v57 = vrot.slane %v3257_v10, 1 }
  0x73   : > { %2915 = vmatmul.msk.bf16.gmra.mxu0 %vm426_vm1, %v3497_v9  ;;  %v3561_v19 = vpack.c.bf16 %v1208_v25, %v1192_v7  ;;  %v653_v56 = vsel %vm631_vm2, %v607_v43, %v608_v15  ;;  %v652_v7 = vsel %vm631_vm2, %v608_v15, %v609_v36 }
  0x74   : > { %v672_v25 = vsel %vm662_vm3, %v653_v56, 0.0  ;;  %v1189_v38 = vsel %vm1168_vm4, %v1146_v54, %v1147_v57 }
  0x7b   : > { %2867 = vmatmul.msk.bf16.gmra.mxu1 %vm426_vm1, %v3497_v9 }
  0x7c   : > { %2883 = vmatmul.msk.bf16.gmra.mxu2 %vm426_vm1, %v3319_v60 }
  0x7d   : > { %2899 = vmatmul.msk.bf16.gmra.mxu3 %vm426_vm1, %v3505_v52 }
  0x83   : > { %2916 = vmatmul.msk.bf16.gmra.mxu0 %vm426_vm1, %v3525_v14 }
  0x8b   : > { %2868 = vmatmul.msk.bf16.gmra.mxu1 %vm426_vm1, %v3525_v14 }
  0x8c   : > { %2884 = vmatmul.msk.bf16.gmra.mxu2 %vm426_vm1, %v3391_v22 }
  0x8d   : > { %2900 = vmatmul.msk.bf16.gmra.mxu3 %vm426_vm1, %v3533_v58 }
  0x93   : > { %2917 = vmatmul.msk.bf16.gmra.mxu0 %vm426_vm1, %v3553_v53 }
  0x98   : > { %v508_v55 = vpop.f32.mrf.mxu1 }
  0x99   : > { %576 = vst.msk [vmem:[#allocation2 + $0x40] sm:$0xff] %vm426_vm1, %v508_v55  ;;  %v3585_v55 = vpack.c.bf16 %v652_v7, %v672_v25  ;;  %v610_v25 = vrot.slane %v3257_v10, 7  ;;  %v1148_v10 = vrot.slane %v3259_v11, 1 }
  0x9b   : > { %2869 = vmatmul.msk.bf16.gmra.mxu1 %vm426_vm1, %v3553_v53 }
  0x9c   : > { %2885 = vmatmul.msk.bf16.gmra.mxu2 %vm426_vm1, %v3439_v16 }
  0x9d   : > { %2901 = vmatmul.msk.bf16.gmra.mxu3 %vm426_vm1, %v3561_v19 }
  0x9f   : > { %v528_v62 = vpop.f32.mrf.mxu2 }
  0xa0   : > { %584 = vst.msk [vmem:[#allocation2 + $0x80] sm:$0xff] %vm426_vm1, %v528_v62  ;;  %v548_v37 = vpop.f32.mrf.mxu3  ;;  %v510_v51 = vpop.f32.mrf.mxu1  ;;  %v1190_v62 = vsel %vm1168_vm4, %v1145_v24, %v1146_v54  ;;  %v611_v54 = vrot.slane %v3259_v11, 7 }
  0xa1   : > { %592 = vst.msk [vmem:[#allocation2 + $0xc0] sm:$0xff] %vm426_vm1, %v548_v37  ;;  %v488_v43 = vpop.f32.mrf.mxu0  ;;  %v1210_v37 = vsel %vm1200_vm5, %v1189_v38, 0.0 }
  0xa2   : > { %577 = vst.msk [vmem:[#allocation2 + $0x48] sm:$0xff] %vm426_vm1, %v510_v51  ;;  %v3596_v7 = vpack.c.bf16 %v1210_v37, %v1190_v62  ;;  %v1149_v62 = vrot.slane %v3321_v63, 1 }
  0xa3   : > { %568 = vst.msk [vmem:[#allocation2] sm:$0xff] %vm426_vm1, %v488_v43  ;;  %2918 = vmatmul.msk.bf16.gmra.mxu0 %vm426_vm1, %v3585_v55  ;;  %v651_v43 = vsel %vm631_vm2, %v609_v36, %v610_v25 }
  0xa4   : > { %v1187_v11 = vsel %vm1168_vm4, %v1148_v10, %v1149_v62 }
  0xa7   : > { %v530_v15 = vpop.f32.mrf.mxu2 }
  0xa8   : > { %585 = vst.msk [vmem:[#allocation2 + $0x88] sm:$0xff] %vm426_vm1, %v530_v15  ;;  %v550_v56 = vpop.f32.mrf.mxu3  ;;  %v513_v51 = vpop.f32.mrf.mxu1 }
  0xa9   : > { %593 = vst.msk [vmem:[#allocation2 + $0xc8] sm:$0xff] %vm426_vm1, %v550_v56  ;;  %v490_v24 = vpop.f32.mrf.mxu0  ;;  %v650_v56 = vsel %vm631_vm2, %v610_v25, %v611_v54 }
  0xaa   : > { %578 = vst.msk [vmem:[#allocation2 + $0x50] sm:$0xff] %vm426_vm1, %v513_v51  ;;  %v674_v51 = vsel %vm662_vm3, %v651_v43, 0.0 }
  0xab   : > { %2870 = vmatmul.msk.bf16.gmra.mxu1 %vm426_vm1, %v3585_v55  ;;  %569 = vst.msk [vmem:[#allocation2 + $0x8] sm:$0xff] %vm426_vm1, %v490_v24  ;;  %v3621_v24 = vpack.c.bf16 %v650_v56, %v674_v51  ;;  %v612_v51 = vrot.slane %v3321_v63, 7  ;;  %v1150_v63 = vrot.slane %v3323_v0, 1 }
  0xac   : > { %2886 = vmatmul.msk.bf16.gmra.mxu2 %vm426_vm1, %v3220_v45 }
  0xad   : > { %2902 = vmatmul.msk.bf16.gmra.mxu3 %vm426_vm1, %v3596_v7 }
  0xaf   : > { %v533_v38 = vpop.f32.mrf.mxu2 }
  0xb0   : > { %586 = vst.msk [vmem:[#allocation2 + $0x90] sm:$0xff] %vm426_vm1, %v533_v38  ;;  %v553_v37 = vpop.f32.mrf.mxu3  ;;  %v515_v15 = vpop.f32.mrf.mxu1  ;;  %v1188_v38 = vsel %vm1168_vm4, %v1147_v57, %v1148_v10  ;;  %v613_v10 = vrot.slane %v3323_v0, 7 }
  0xb1   : > { %594 = vst.msk [vmem:[#allocation2 + $0xd0] sm:$0xff] %vm426_vm1, %v553_v37  ;;  %v493_v36 = vpop.f32.mrf.mxu0  ;;  %v1212_v37 = vsel %vm1200_vm5, %v1187_v11, 0.0 }
  0xb2   : > { %579 = vst.msk [vmem:[#allocation2 + $0x58] sm:$0xff] %vm426_vm1, %v515_v15  ;;  %v3632_v56 = vpack.c.bf16 %v1212_v37, %v1188_v38  ;;  %v1151_v38 = vrot.slane %v3393_v26, 1 }
  0xb3   : > { %570 = vst.msk [vmem:[#allocation2 + $0x10] sm:$0xff] %vm426_vm1, %v493_v36  ;;  %2919 = vmatmul.msk.bf16.gmra.mxu0 %vm426_vm1, %v3621_v24  ;;  %v649_v36 = vsel %vm631_vm2, %v611_v54, %v612_v51 }
  0xb4   : > { %v1185_v0 = vsel %vm1168_vm4, %v1150_v63, %v1151_v38 }
  0xb7   : > { %v535_v25 = vpop.f32.mrf.mxu2 }
  0xb8   : > { %587 = vst.msk [vmem:[#allocation2 + $0x98] sm:$0xff] %vm426_vm1, %v535_v25  ;;  %v555_v43 = vpop.f32.mrf.mxu3  ;;  %v518_v15 = vpop.f32.mrf.mxu1 }
  0xb9   : > { %595 = vst.msk [vmem:[#allocation2 + $0xd8] sm:$0xff] %vm426_vm1, %v555_v43  ;;  %v495_v57 = vpop.f32.mrf.mxu0  ;;  %v648_v43 = vsel %vm631_vm2, %v612_v51, %v613_v10 }
  0xba   : > { %580 = vst.msk [vmem:[#allocation2 + $0x60] sm:$0xff] %vm426_vm1, %v518_v15  ;;  %v676_v15 = vsel %vm662_vm3, %v649_v36, 0.0 }
  0xbb   : > { %2871 = vmatmul.msk.bf16.gmra.mxu1 %vm426_vm1, %v3621_v24  ;;  %571 = vst.msk [vmem:[#allocation2 + $0x18] sm:$0xff] %vm426_vm1, %v495_v57  ;;  %v3657_v57 = vpack.c.bf16 %v648_v43, %v676_v15  ;;  %v614_v15 = vrot.slane %v3393_v26, 7 }
  0xbc   : > { %2887 = vmatmul.msk.bf16.gmra.mxu2 %vm426_vm1, %v3282_v27 }
  0xbd   : > { %2903 = vmatmul.msk.bf16.gmra.mxu3 %vm426_vm1, %v3632_v56 }
  0xbf   : > { %v538_v11 = vpop.f32.mrf.mxu2 }
  0xc0   : > { %588 = vst.msk [vmem:[#allocation2 + $0xa0] sm:$0xff] %vm426_vm1, %v538_v11  ;;  %v558_v37 = vpop.f32.mrf.mxu3  ;;  %v520_v25 = vpop.f32.mrf.mxu1  ;;  %v1186_v11 = vsel %vm1168_vm4, %v1149_v62, %v1150_v63  ;;  %v615_v63 = vrot.slane %v3395_v30, 7 }
  0xc1   : > { %596 = vst.msk [vmem:[#allocation2 + $0xe0] sm:$0xff] %vm426_vm1, %v558_v37  ;;  %v498_v54 = vpop.f32.mrf.mxu0  ;;  %v1214_v37 = vsel %vm1200_vm5, %v1185_v0, 0.0  ;;  %v1153_v0 = vrot.slane %v3208_v39, 1 }
  0xc2   : > { %581 = vst.msk [vmem:[#allocation2 + $0x68] sm:$0xff] %vm426_vm1, %v520_v25  ;;  %v3668_v43 = vpack.c.bf16 %v1214_v37, %v1186_v11  ;;  %v1152_v11 = vrot.slane %v3395_v30, 1 }
  0xc3   : > { %572 = vst.msk [vmem:[#allocation2 + $0x20] sm:$0xff] %vm426_vm1, %v498_v54  ;;  %2920 = vmatmul.msk.bf16.gmra.mxu0 %vm426_vm1, %v3657_v57  ;;  %v647_v54 = vsel %vm631_vm2, %v613_v10, %v614_v15 }
  0xc4   : > { %v1184_v30 = vsel %vm1168_vm4, %v1151_v38, %v1152_v11 }
  0xc7   : > { %v540_v51 = vpop.f32.mrf.mxu2 }
  0xc8   : > { %589 = vst.msk [vmem:[#allocation2 + $0xa8] sm:$0xff] %vm426_vm1, %v540_v51  ;;  %v560_v36 = vpop.f32.mrf.mxu3  ;;  %v523_v25 = vpop.f32.mrf.mxu1 }
  0xc9   : > { %597 = vst.msk [vmem:[#allocation2 + $0xe8] sm:$0xff] %vm426_vm1, %v560_v36  ;;  %v500_v62 = vpop.f32.mrf.mxu0  ;;  %v646_v36 = vsel %vm631_vm2, %v614_v15, %v615_v63 }
  0xca   : > { %582 = vst.msk [vmem:[#allocation2 + $0x70] sm:$0xff] %vm426_vm1, %v523_v25  ;;  %v678_v25 = vsel %vm662_vm3, %v647_v54, 0.0 }
  0xcb   : > { %2872 = vmatmul.msk.bf16.gmra.mxu1 %vm426_vm1, %v3657_v57  ;;  %573 = vst.msk [vmem:[#allocation2 + $0x28] sm:$0xff] %vm426_vm1, %v500_v62  ;;  %v1183_v62 = vsel %vm1168_vm4, %v1152_v11, %v1153_v0  ;;  %v3693_v8 = vpack.c.bf16 %v646_v36, %v678_v25  ;;  %v617_v11 = vrot.slane %v3210_v40, 7 }
  0xcc   : > { %2888 = vmatmul.msk.bf16.gmra.mxu2 %vm426_vm1, %v3342_v21 }
  0xcd   : > { %2904 = vmatmul.msk.bf16.gmra.mxu3 %vm426_vm1, %v3668_v43 }
  0xcf   : > { %v543_v26 = vpop.f32.mrf.mxu2 }
  0xd0   : > { %590 = vst.msk [vmem:[#allocation2 + $0xb0] sm:$0xff] %vm426_vm1, %v543_v26  ;;  %v563_v37 = vpop.f32.mrf.mxu3  ;;  %v525_v51 = vpop.f32.mrf.mxu1  ;;  %v1216_v26 = vsel %vm1200_vm5, %v1183_v62, 0.0 }
  0xd1   : > { %598 = vst.msk [vmem:[#allocation2 + $0xf0] sm:$0xff] %vm426_vm1, %v563_v37  ;;  %v503_v10 = vpop.f32.mrf.mxu0  ;;  %v694_v37 = vld [vmem:[#allocation2] sm:$0xff]  ;;  %v3704_v36 = vpack.c.bf16 %v1216_v26, %v1184_v30  ;;  %v1154_v26 = vrot.slane %v3210_v40, 1 }
  0xd2   : > { %583 = vst.msk [vmem:[#allocation2 + $0x78] sm:$0xff] %vm426_vm1, %v525_v51 }
  0xd3   : > { %574 = vst.msk [vmem:[#allocation2 + $0x30] sm:$0xff] %vm426_vm1, %v503_v10  ;;  %2921 = vmatmul.msk.bf16.gmra.mxu0 %vm426_vm1, %v3693_v8  ;;  %v616_v10 = vrot.slane %v3208_v39, 7  ;;  %v1155_v39 = vrot.slane %v3261_v12, 1  ;;  %v1182_v40 = vsel %vm1168_vm4, %v1153_v0, %v1154_v26 }
  0xd4   : > { %4740 = vst [vmem:[#allocation6_spill] sm:$0xff] %v3704_v36 }
  0xd5   : > { %v645_v62 = vsel %vm631_vm2, %v615_v63, %v616_v10  ;;  %v1181_v63 = vsel %vm1168_vm4, %v1154_v26, %v1155_v39  ;;  %v619_v26 = vrot.slane %v3263_v13, 7 }
  0xd7   : > { %v545_v15 = vpop.f32.mrf.mxu2 }
  0xd8   : > { %591 = vst.msk [vmem:[#allocation2 + $0xb8] sm:$0xff] %vm426_vm1, %v545_v15  ;;  %v565_v54 = vpop.f32.mrf.mxu3  ;;  %v803_v51 = vpop.f32.mrf.mxu1 }
  0xd9   : > { %599 = vst.msk [vmem:[#allocation2 + $0xf8] sm:$0xff] %vm426_vm1, %v565_v54  ;;  %v883_v25 = vadd.f32 %v803_v51, %v694_v37  ;;  %v505_v38 = vpop.f32.mrf.mxu0  ;;  %v695_v54 = vld [vmem:[#allocation2 + $0x8] sm:$0xff]  ;;  %v644_v51 = vsel %vm631_vm2, %v616_v10, %v617_v11  ;;  %v1218_v10 = vsel %vm1200_vm5, %v1181_v63, 0.0  ;;  %v4731_v63 = vrot.slane %v3325_v1, 1 }
  0xda   : > { %575 = vst.msk [vmem:[#allocation2 + $0x38] sm:$0xff] %vm426_vm1, %v505_v38 }
  0xdb   : > { %915 = vst.msk [vmem:[#allocation2] sm:$0xff] %vm426_vm1, %v883_v25  ;;  %2873 = vmatmul.msk.bf16.gmra.mxu1 %vm426_vm1, %v3693_v8  ;;  %v680_v25 = vsel %vm662_vm3, %v645_v62, 0.0 }
  0xdc   : > { %2889 = vmatmul.msk.bf16.gmra.mxu2 %vm426_vm1, %v3411_v44  ;;  %v3727_v49 = vpack.c.bf16 %v644_v51, %v680_v25  ;;  %v618_v51 = vrot.slane %v3261_v12, 7 }
  0xdd   : > { %2905 = vmatmul.msk.bf16.gmra.mxu3 %vm426_vm1, %v3704_v36 }
  0xde   : > { %4741 = vst [vmem:[#allocation7_spill] sm:$0xff] %v3727_v49  ;;  %v643_v12 = vsel %vm631_vm2, %v617_v11, %v618_v51 }
  0xdf   : > { %v993_v30 = vpop.f32.mrf.mxu2 }
  0xe0   : > { %v1337_v15 = vpop.f32.mrf.mxu3  ;;  %v805_v37 = vpop.f32.mrf.mxu1 }
  0xe1   : > { %v884_v38 = vadd.f32 %v805_v37, %v695_v54  ;;  %v1536_v3 = vpop.f32.mrf.mxu0  ;;  %v696_v37 = vld [vmem:[#allocation2 + $0x10] sm:$0xff] }
  0xe2   : > { %v947_v50 = vld [vmem:[#allocation2] sm:$0xff] }
  0xe3   : > { %v1073_v6 = vadd.f32 %v993_v30, %v947_v50  ;;  %916 = vst.msk [vmem:[#allocation2 + $0x8] sm:$0xff] %vm426_vm1, %v884_v38  ;;  %2922 = vmatmul.msk.bf16.gmra.mxu0 %vm426_vm1, %v3727_v49  ;;  %v3736_v50 = vpack.c.bf16 %v1218_v10, %v1182_v40  ;;  %v1156_v10 = vrot.slane %v3263_v13, 1 }
  0xe5   : > { %1105 = vst.msk [vmem:[#allocation2] sm:$0xff] %vm426_vm1, %v1073_v6  ;;  %v1179_v11 = vsel %vm1168_vm4, %v1156_v10, %v4731_v63 }
  0xe6   : > { %4742 = vst [vmem:[#allocation8_spill] sm:$0xff] %v3736_v50 }
  0xe7   : > { %v995_v62 = vpop.f32.mrf.mxu2 }
  0xe8   : > { %v1339_v54 = vpop.f32.mrf.mxu3  ;;  %v808_v36 = vpop.f32.mrf.mxu1 }
  0xe9   : > { %v885_v30 = vadd.f32 %v808_v36, %v696_v37  ;;  %v1538_v6 = vpop.f32.mrf.mxu0  ;;  %v697_v37 = vld [vmem:[#allocation2 + $0x18] sm:$0xff] }
  0xea   : > { %v948_v25 = vld [vmem:[#allocation2 + $0x8] sm:$0xff] }
  0xeb   : > { %v1074_v38 = vadd.f32 %v995_v62, %v948_v25  ;;  %917 = vst.msk [vmem:[#allocation2 + $0x10] sm:$0xff] %vm426_vm1, %v885_v30  ;;  %2874 = vmatmul.msk.bf16.gmra.mxu1 %vm426_vm1, %v3727_v49  ;;  %v642_v25 = vsel %vm631_vm2, %v618_v51, %v619_v26  ;;  %v1180_v51 = vsel %vm1168_vm4, %v1155_v39, %v1156_v10  ;;  %v620_v39 = vrot.slane %v3325_v1, 7 }
  0xec   : > { %2890 = vmatmul.msk.bf16.gmra.mxu2 %vm426_vm1, %v3224_v46  ;;  %v1231_v0 = vld [vmem:[#allocation2] sm:$0xff] }
  0xed   : > { %2906 = vmatmul.msk.bf16.gmra.mxu3 %vm426_vm1, %v3736_v50  ;;  %v1417_v36 = vadd.f32 %v1337_v15, %v1231_v0  ;;  %1106 = vst.msk [vmem:[#allocation2 + $0x8] sm:$0xff] %vm426_vm1, %v1074_v38  ;;  %v682_v15 = vsel %vm662_vm3, %v643_v12, 0.0  ;;  %v1220_v12 = vsel %vm1200_vm5, %v1179_v11, 0.0 }
  0xef   : > { %v998_v40 = vpop.f32.mrf.mxu2  ;;  %1449 = vst.msk [vmem:[#allocation2] sm:$0xff] %vm426_vm1, %v1417_v36  ;;  %v3762_v36 = vpack.c.bf16 %v642_v25, %v682_v15  ;;  %v698_v15 = vld [vmem:[#allocation2 + $0x20] sm:$0xff] }
  0xf0   : > { %v1342_v62 = vpop.f32.mrf.mxu3  ;;  %v810_v30 = vpop.f32.mrf.mxu1 }
  0xf1   : > { %v886_v38 = vadd.f32 %v810_v30, %v697_v37  ;;  %v1541_v50 = vpop.f32.mrf.mxu0 }
  0xf2   : > { %v949_v0 = vld [vmem:[#allocation2 + $0x10] sm:$0xff] }
  0xf3   : > { %v1075_v13 = vadd.f32 %v998_v40, %v949_v0  ;;  %918 = vst.msk [vmem:[#allocation2 + $0x18] sm:$0xff] %vm426_vm1, %v886_v38  ;;  %2923 = vmatmul.msk.bf16.gmra.mxu0 %vm426_vm1, %v3762_v36 }
  0xf4   : > { %v1232_v46 = vld [vmem:[#allocation2 + $0x8] sm:$0xff] }
  0xf5   : > { %v1418_v49 = vadd.f32 %v1339_v54, %v1232_v46  ;;  %1107 = vst.msk [vmem:[#allocation2 + $0x10] sm:$0xff] %vm426_vm1, %v1075_v13  ;;  %v3772_v46 = vpack.c.bf16 %v1220_v12, %v1180_v51  ;;  %v641_v51 = vsel %vm631_vm2, %v619_v26, %v620_v39  ;;  %v4732_v12 = vrot.slane %v3397_v32, 1 }
  0xf6   : > { %v1486_v37 = vld [vmem:[#allocation2] sm:$0xff] }
  0xf7   : > { %v1000_v30 = vpop.f32.mrf.mxu2  ;;  %1450 = vst.msk [vmem:[#allocation2 + $0x8] sm:$0xff] %vm426_vm1, %v1418_v49  ;;  %v1616_v40 = vadd.f32 %v1536_v3, %v1486_v37  ;;  %v621_v3 = vrot.slane %v3327_v2, 7 }
  0xf8   : > { %v1344_v25 = vpop.f32.mrf.mxu3  ;;  %v813_v38 = vpop.f32.mrf.mxu1 }
  0xf9   : > { %1648 = vst.msk [vmem:[#allocation2] sm:$0xff] %vm426_vm1, %v1616_v40  ;;  %v887_v54 = vadd.f32 %v813_v38, %v698_v15  ;;  %v3776_v0 = vpop.f32.mrf.mxu0  ;;  %v1158_v40 = vrot.slane %v3327_v2, 1 }
  0xfa   : > { %v950_v10 = vld [vmem:[#allocation2 + $0x18] sm:$0xff] }
  0xfb   : > { %v1076_v11 = vadd.f32 %v1000_v30, %v950_v10  ;;  %919 = vst.msk [vmem:[#allocation2 + $0x20] sm:$0xff] %vm426_vm1, %v887_v54  ;;  %2875 = vmatmul.msk.bf16.gmra.mxu1 %vm426_vm1, %v3762_v36  ;;  %v699_v54 = vld [vmem:[#allocation2 + $0x28] sm:$0xff]  ;;  %v1177_v2 = vsel %vm1168_vm4, %v1158_v40, %v4732_v12 }
  0xfc   : > { %2891 = vmatmul.msk.bf16.gmra.mxu2 %vm426_vm1, %v3286_v28  ;;  %v1233_v49 = vld [vmem:[#allocation2 + $0x10] sm:$0xff] }
  0xfd   : > { %2907 = vmatmul.msk.bf16.gmra.mxu3 %vm426_vm1, %v3772_v46  ;;  %v1419_v13 = vadd.f32 %v1342_v62, %v1233_v49  ;;  %1108 = vst.msk [vmem:[#allocation2 + $0x18] sm:$0xff] %vm426_vm1, %v1076_v11  ;;  %v640_v62 = vsel %vm631_vm2, %v620_v39, %v621_v3  ;;  %v684_v11 = vsel %vm662_vm3, %v641_v51, 0.0  ;;  %v4743_v51 = vrot.slane %v3325_v1, 1 }
  0xfe   : > { %v1487_v37 = vld [vmem:[#allocation2 + $0x8] sm:$0xff] }
  0xff   : > { %v1003_v30 = vpop.f32.mrf.mxu2  ;;  %1451 = vst.msk [vmem:[#allocation2 + $0x10] sm:$0xff] %vm426_vm1, %v1419_v13  ;;  %v1617_v15 = vadd.f32 %v1538_v6, %v1487_v37  ;;  %v3802_v13 = vpack.c.bf16 %v640_v62, %v684_v11 }
 0x100   : > { %v1347_v38 = vpop.f32.mrf.mxu3  ;;  %v815_v10 = vpop.f32.mrf.mxu1 }
 0x101   : > { %1649 = vst.msk [vmem:[#allocation2 + $0x8] sm:$0xff] %vm426_vm1, %v1617_v15  ;;  %v888_v26 = vadd.f32 %v815_v10, %v699_v54  ;;  %v1546_v63 = vpop.f32.mrf.mxu0  ;;  %v1178_v15 = vsel %vm1168_vm4, %v4743_v51, %v1158_v40  ;;  %v1222_v54 = vsel %vm1200_vm5, %v1177_v2, 0.0  ;;  %v622_v40 = vrot.slane %v3397_v32, 7 }
 0x102   : > { %v951_v49 = vld [vmem:[#allocation2 + $0x20] sm:$0xff] }
 0x103   : > { %v1077_v6 = vadd.f32 %v1003_v30, %v951_v49  ;;  %920 = vst.msk [vmem:[#allocation2 + $0x28] sm:$0xff] %vm426_vm1, %v888_v26  ;;  %2924 = vmatmul.msk.bf16.gmra.mxu0 %vm426_vm1, %v3802_v13  ;;  %v3814_v49 = vpack.c.bf16 %v1222_v54, %v1178_v15  ;;  %v639_v15 = vsel %vm631_vm2, %v621_v3, %v622_v40  ;;  %v4733_v54 = vrot.slane %v3212_v41, 1 }
 0x104   : > { %v1234_v37 = vld [vmem:[#allocation2 + $0x18] sm:$0xff] }
 0x105   : > { %v1420_v39 = vadd.f32 %v1344_v25, %v1234_v37  ;;  %1109 = vst.msk [vmem:[#allocation2 + $0x20] sm:$0xff] %vm426_vm1, %v1077_v6  ;;  %v700_v25 = vld [vmem:[#allocation2 + $0x30] sm:$0xff] }
 0x106   : > { %v1488_v30 = vld [vmem:[#allocation2 + $0x10] sm:$0xff] }
 0x107   : > { %v1005_v10 = vpop.f32.mrf.mxu2  ;;  %1452 = vst.msk [vmem:[#allocation2 + $0x18] sm:$0xff] %vm426_vm1, %v1420_v39  ;;  %v1618_v62 = vadd.f32 %v1541_v50, %v1488_v30  ;;  %v623_v39 = vrot.slane %v3399_v33, 7 }
 0x108   : > { %v1349_v11 = vpop.f32.mrf.mxu3  ;;  %v818_v26 = vpop.f32.mrf.mxu1 }
 0x109   : > { %1650 = vst.msk [vmem:[#allocation2 + $0x10] sm:$0xff] %vm426_vm1, %v1618_v62  ;;  %v889_v1 = vadd.f32 %v818_v26, %v700_v25  ;;  %v3818_v2 = vpop.f32.mrf.mxu0  ;;  %v1160_v62 = vrot.slane %v3399_v33, 1 }
 0x10a   : > { %v952_v6 = vld [vmem:[#allocation2 + $0x28] sm:$0xff] }
 0x10b   : > { %v1078_v37 = vadd.f32 %v1005_v10, %v952_v6  ;;  %921 = vst.msk [vmem:[#allocation2 + $0x30] sm:$0xff] %vm426_vm1, %v889_v1  ;;  %2876 = vmatmul.msk.bf16.gmra.mxu1 %vm426_vm1, %v3802_v13  ;;  %v701_v1 = vld [vmem:[#allocation2 + $0x38] sm:$0xff]  ;;  %v1175_v33 = vsel %vm1168_vm4, %v1160_v62, %v4733_v54 }
 0x10c   : > { %2892 = vmatmul.msk.bf16.gmra.mxu2 %vm426_vm1, %v3346_v23  ;;  %v1235_v50 = vld [vmem:[#allocation2 + $0x20] sm:$0xff] }
 0x10d   : > { %2908 = vmatmul.msk.bf16.gmra.mxu3 %vm426_vm1, %v3814_v49  ;;  %v1421_v51 = vadd.f32 %v1347_v38, %v1235_v50  ;;  %1110 = vst.msk [vmem:[#allocation2 + $0x28] sm:$0xff] %vm426_vm1, %v1078_v37  ;;  %v638_v38 = vsel %vm631_vm2, %v622_v40, %v623_v39  ;;  %v686_v37 = vsel %vm662_vm3, %v639_v15, 0.0  ;;  %v4744_v15 = vrot.slane %v3397_v32, 1 }
 0x10e   : > { %v1489_v30 = vld [vmem:[#allocation2 + $0x18] sm:$0xff] }
 0x10f   : > { %v1008_v10 = vpop.f32.mrf.mxu2  ;;  %1453 = vst.msk [vmem:[#allocation2 + $0x20] sm:$0xff] %vm426_vm1, %v1421_v51  ;;  %v1619_v25 = vadd.f32 %v3776_v0, %v1489_v30  ;;  %v3845_v51 = vpack.c.bf16 %v638_v38, %v686_v37 }
 0x110   : > { %v1352_v26 = vpop.f32.mrf.mxu3  ;;  %v820_v6 = vpop.f32.mrf.mxu1 }
 0x111   : > { %1651 = vst.msk [vmem:[#allocation2 + $0x18] sm:$0xff] %vm426_vm1, %v1619_v25  ;;  %v890_v3 = vadd.f32 %v820_v6, %v701_v1  ;;  %v1551_v12 = vpop.f32.mrf.mxu0  ;;  %v1176_v25 = vsel %vm1168_vm4, %v4744_v15, %v1160_v62  ;;  %v1224_v1 = vsel %vm1200_vm5, %v1175_v33, 0.0  ;;  %v624_v62 = vrot.slane %v3212_v41, 7 }
 0x112   : > { %v953_v50 = vld [vmem:[#allocation2 + $0x30] sm:$0xff] }
 0x113   : > { %v1079_v0 = vadd.f32 %v1008_v10, %v953_v50  ;;  %922 = vst.msk [vmem:[#allocation2 + $0x38] sm:$0xff] %vm426_vm1, %v890_v3  ;;  %2925 = vmatmul.msk.bf16.gmra.mxu0 %vm426_vm1, %v3845_v51  ;;  %v3857_v50 = vpack.c.bf16 %v1224_v1, %v1176_v25  ;;  %v637_v25 = vsel %vm631_vm2, %v623_v39, %v624_v62  ;;  %v4734_v1 = vrot.slane %v3270_v17, 1 }
 0x114   : > { %v1236_v30 = vld [vmem:[#allocation2 + $0x28] sm:$0xff] }
 0x115   : > { %v1422_v40 = vadd.f32 %v1349_v11, %v1236_v30  ;;  %1111 = vst.msk [vmem:[#allocation2 + $0x30] sm:$0xff] %vm426_vm1, %v1079_v0  ;;  %v702_v11 = vld [vmem:[#allocation2 + $0x40] sm:$0xff] }
 0x116   : > { %v1490_v10 = vld [vmem:[#allocation2 + $0x20] sm:$0xff] }
 0x117   : > { %v1010_v6 = vpop.f32.mrf.mxu2  ;;  %1454 = vst.msk [vmem:[#allocation2 + $0x28] sm:$0xff] %vm426_vm1, %v1422_v40  ;;  %v1620_v38 = vadd.f32 %v1546_v63, %v1490_v10  ;;  %v625_v40 = vrot.slane %v3214_v42, 7 }
 0x118   : > { %v1354_v37 = vpop.f32.mrf.mxu3  ;;  %v823_v3 = vpop.f32.mrf.mxu1 }
 0x119   : > { %1652 = vst.msk [vmem:[#allocation2 + $0x20] sm:$0xff] %vm426_vm1, %v1620_v38  ;;  %v891_v32 = vadd.f32 %v823_v3, %v702_v11  ;;  %v3861_v33 = vpop.f32.mrf.mxu0  ;;  %v1162_v38 = vrot.slane %v3214_v42, 1 }
 0x11a   : > { %v954_v0 = vld [vmem:[#allocation2 + $0x38] sm:$0xff] }
 0x11b   : > { %v1080_v30 = vadd.f32 %v1010_v6, %v954_v0  ;;  %923 = vst.msk [vmem:[#allocation2 + $0x40] sm:$0xff] %vm426_vm1, %v891_v32  ;;  %2877 = vmatmul.msk.bf16.gmra.mxu1 %vm426_vm1, %v3845_v51  ;;  %v703_v32 = vld [vmem:[#allocation2 + $0x48] sm:$0xff]  ;;  %v1173_v42 = vsel %vm1168_vm4, %v1162_v38, %v4734_v1 }
 0x11c   : > { %2893 = vmatmul.msk.bf16.gmra.mxu2 %vm426_vm1, %v3415_v47  ;;  %v1237_v63 = vld [vmem:[#allocation2 + $0x30] sm:$0xff] }
 0x11d   : > { %2909 = vmatmul.msk.bf16.gmra.mxu3 %vm426_vm1, %v3857_v50  ;;  %v1423_v15 = vadd.f32 %v1352_v26, %v1237_v63  ;;  %1112 = vst.msk [vmem:[#allocation2 + $0x38] sm:$0xff] %vm426_vm1, %v1080_v30  ;;  %v636_v26 = vsel %vm631_vm2, %v624_v62, %v625_v40  ;;  %v688_v30 = vsel %vm662_vm3, %v637_v25, 0.0  ;;  %v4745_v25 = vrot.slane %v3212_v41, 1 }
 0x11e   : > { %v1491_v10 = vld [vmem:[#allocation2 + $0x28] sm:$0xff] }
 0x11f   : > { %v1013_v6 = vpop.f32.mrf.mxu2  ;;  %1455 = vst.msk [vmem:[#allocation2 + $0x30] sm:$0xff] %vm426_vm1, %v1423_v15  ;;  %v1621_v11 = vadd.f32 %v3818_v2, %v1491_v10  ;;  %v3888_v15 = vpack.c.bf16 %v636_v26, %v688_v30 }
 0x120   : > { %v1357_v3 = vpop.f32.mrf.mxu3  ;;  %v825_v0 = vpop.f32.mrf.mxu1 }
 0x121   : > { %1653 = vst.msk [vmem:[#allocation2 + $0x28] sm:$0xff] %vm426_vm1, %v1621_v11  ;;  %v892_v39 = vadd.f32 %v825_v0, %v703_v32  ;;  %v1556_v54 = vpop.f32.mrf.mxu0  ;;  %v1174_v11 = vsel %vm1168_vm4, %v4745_v25, %v1162_v38  ;;  %v1226_v32 = vsel %vm1200_vm5, %v1173_v42, 0.0  ;;  %v626_v38 = vrot.slane %v3270_v17, 7 }
 0x122   : > { %v955_v63 = vld [vmem:[#allocation2 + $0x40] sm:$0xff] }
 0x123   : > { %v1081_v2 = vadd.f32 %v1013_v6, %v955_v63  ;;  %924 = vst.msk [vmem:[#allocation2 + $0x48] sm:$0xff] %vm426_vm1, %v892_v39  ;;  %2926 = vmatmul.msk.bf16.gmra.mxu0 %vm426_vm1, %v3888_v15  ;;  %v3900_v63 = vpack.c.bf16 %v1226_v32, %v1174_v11  ;;  %v635_v11 = vsel %vm631_vm2, %v625_v40, %v626_v38  ;;  %v4735_v32 = vrot.slane %v3330_v4, 1 }
 0x124   : > { %v1238_v10 = vld [vmem:[#allocation2 + $0x38] sm:$0xff] }
 0x125   : > { %v1424_v62 = vadd.f32 %v1354_v37, %v1238_v10  ;;  %1113 = vst.msk [vmem:[#allocation2 + $0x40] sm:$0xff] %vm426_vm1, %v1081_v2  ;;  %v704_v37 = vld [vmem:[#allocation2 + $0x50] sm:$0xff] }
 0x126   : > { %v1492_v6 = vld [vmem:[#allocation2 + $0x30] sm:$0xff] }
 0x127   : > { %v1015_v0 = vpop.f32.mrf.mxu2  ;;  %1456 = vst.msk [vmem:[#allocation2 + $0x38] sm:$0xff] %vm426_vm1, %v1424_v62  ;;  %v1622_v26 = vadd.f32 %v1551_v12, %v1492_v6  ;;  %v627_v62 = vrot.slane %v3272_v18, 7 }
 0x128   : > { %v1359_v30 = vpop.f32.mrf.mxu3  ;;  %v828_v39 = vpop.f32.mrf.mxu1 }
 0x129   : > { %1654 = vst.msk [vmem:[#allocation2 + $0x30] sm:$0xff] %vm426_vm1, %v1622_v26  ;;  %v893_v41 = vadd.f32 %v828_v39, %v704_v37  ;;  %v3904_v42 = vpop.f32.mrf.mxu0  ;;  %v1164_v26 = vrot.slane %v3272_v18, 1 }
 0x12a   : > { %v956_v2 = vld [vmem:[#allocation2 + $0x48] sm:$0xff] }
 0x12b   : > { %v1082_v10 = vadd.f32 %v1015_v0, %v956_v2  ;;  %925 = vst.msk [vmem:[#allocation2 + $0x50] sm:$0xff] %vm426_vm1, %v893_v41  ;;  %2878 = vmatmul.msk.bf16.gmra.mxu1 %vm426_vm1, %v3888_v15  ;;  %v705_v41 = vld [vmem:[#allocation2 + $0x58] sm:$0xff]  ;;  %v1171_v18 = vsel %vm1168_vm4, %v1164_v26, %v4735_v32 }
 0x12c   : > { %2894 = vmatmul.msk.bf16.gmra.mxu2 %vm426_vm1, %v3228_v48  ;;  %v1239_v12 = vld [vmem:[#allocation2 + $0x40] sm:$0xff] }
 0x12d   : > { %2910 = vmatmul.msk.bf16.gmra.mxu3 %vm426_vm1, %v3900_v63  ;;  %v1425_v25 = vadd.f32 %v1357_v3, %v1239_v12  ;;  %1114 = vst.msk [vmem:[#allocation2 + $0x48] sm:$0xff] %vm426_vm1, %v1082_v10  ;;  %v634_v3 = vsel %vm631_vm2, %v626_v38, %v627_v62  ;;  %v690_v10 = vsel %vm662_vm3, %v635_v11, 0.0  ;;  %v4746_v11 = vrot.slane %v3270_v17, 1 }
 0x12e   : > { %v1493_v6 = vld [vmem:[#allocation2 + $0x38] sm:$0xff] }
 0x12f   : > { %v1018_v0 = vpop.f32.mrf.mxu2  ;;  %1457 = vst.msk [vmem:[#allocation2 + $0x40] sm:$0xff] %vm426_vm1, %v1425_v25  ;;  %v1623_v37 = vadd.f32 %v3861_v33, %v1493_v6  ;;  %v3931_v25 = vpack.c.bf16 %v634_v3, %v690_v10 }
 0x130   : > { %v1362_v39 = vpop.f32.mrf.mxu3  ;;  %v830_v2 = vpop.f32.mrf.mxu1 }
 0x131   : > { %1655 = vst.msk [vmem:[#allocation2 + $0x38] sm:$0xff] %vm426_vm1, %v1623_v37  ;;  %v894_v40 = vadd.f32 %v830_v2, %v705_v41  ;;  %v1561_v1 = vpop.f32.mrf.mxu0  ;;  %v1172_v37 = vsel %vm1168_vm4, %v4746_v11, %v1164_v26  ;;  %v1228_v41 = vsel %vm1200_vm5, %v1171_v18, 0.0  ;;  %v628_v26 = vrot.slane %v3330_v4, 7 }
 0x132   : > { %v957_v12 = vld [vmem:[#allocation2 + $0x50] sm:$0xff] }
 0x133   : > { %v1083_v33 = vadd.f32 %v1018_v0, %v957_v12  ;;  %926 = vst.msk [vmem:[#allocation2 + $0x58] sm:$0xff] %vm426_vm1, %v894_v40  ;;  %2927 = vmatmul.msk.bf16.gmra.mxu0 %vm426_vm1, %v3931_v25  ;;  %v3943_v12 = vpack.c.bf16 %v1228_v41, %v1172_v37  ;;  %v633_v37 = vsel %vm631_vm2, %v627_v62, %v628_v26  ;;  %v4736_v41 = vrot.slane %v3401_v34, 1 }
 0x134   : > { %v1240_v6 = vld [vmem:[#allocation2 + $0x48] sm:$0xff] }
 0x135   : > { %v1426_v38 = vadd.f32 %v1359_v30, %v1240_v6  ;;  %1115 = vst.msk [vmem:[#allocation2 + $0x50] sm:$0xff] %vm426_vm1, %v1083_v33  ;;  %v706_v30 = vld [vmem:[#allocation2 + $0x60] sm:$0xff] }
 0x136   : > { %v1494_v0 = vld [vmem:[#allocation2 + $0x40] sm:$0xff] }
 0x137   : > { %v1020_v2 = vpop.f32.mrf.mxu2  ;;  %1458 = vst.msk [vmem:[#allocation2 + $0x48] sm:$0xff] %vm426_vm1, %v1426_v38  ;;  %v1624_v3 = vadd.f32 %v1556_v54, %v1494_v0  ;;  %v629_v38 = vrot.slane %v3332_v5, 7 }
 0x138   : > { %v1364_v10 = vpop.f32.mrf.mxu3  ;;  %v833_v40 = vpop.f32.mrf.mxu1 }
 0x139   : > { %1656 = vst.msk [vmem:[#allocation2 + $0x40] sm:$0xff] %vm426_vm1, %v1624_v3  ;;  %v895_v17 = vadd.f32 %v833_v40, %v706_v30  ;;  %v3947_v18 = vpop.f32.mrf.mxu0  ;;  %v1166_v3 = vrot.slane %v3332_v5, 1 }
 0x13a   : > { %v958_v33 = vld [vmem:[#allocation2 + $0x58] sm:$0xff] }
 0x13b   : > { %v1084_v6 = vadd.f32 %v1020_v2, %v958_v33  ;;  %927 = vst.msk [vmem:[#allocation2 + $0x60] sm:$0xff] %vm426_vm1, %v895_v17  ;;  %2879 = vmatmul.msk.bf16.gmra.mxu1 %vm426_vm1, %v3931_v25  ;;  %v707_v17 = vld [vmem:[#allocation2 + $0x68] sm:$0xff]  ;;  %v1169_v5 = vsel %vm1168_vm4, %v1166_v3, %v4736_v41 }
 0x13c   : > { %2895 = vmatmul.msk.bf16.gmra.mxu2 %vm426_vm1, %v3290_v31  ;;  %v1241_v54 = vld [vmem:[#allocation2 + $0x50] sm:$0xff] }
 0x13d   : > { %2911 = vmatmul.msk.bf16.gmra.mxu3 %vm426_vm1, %v3943_v12  ;;  %v1427_v11 = vadd.f32 %v1362_v39, %v1241_v54  ;;  %1116 = vst.msk [vmem:[#allocation2 + $0x58] sm:$0xff] %vm426_vm1, %v1084_v6  ;;  %v632_v39 = vsel %vm631_vm2, %v628_v26, %v629_v38  ;;  %v692_v6 = vsel %vm662_vm3, %v633_v37, 0.0  ;;  %v4747_v37 = vrot.slane %v3330_v4, 1 }
 0x13e   : > { %v1495_v0 = vld [vmem:[#allocation2 + $0x48] sm:$0xff] }
 0x13f   : > { %v1023_v2 = vpop.f32.mrf.mxu2  ;;  %1459 = vst.msk [vmem:[#allocation2 + $0x50] sm:$0xff] %vm426_vm1, %v1427_v11  ;;  %v1625_v30 = vadd.f32 %v3904_v42, %v1495_v0  ;;  %v3974_v11 = vpack.c.bf16 %v632_v39, %v692_v6 }
 0x140   : > { %v1367_v40 = vpop.f32.mrf.mxu3  ;;  %v835_v33 = vpop.f32.mrf.mxu1 }
 0x141   : > { %1657 = vst.msk [vmem:[#allocation2 + $0x48] sm:$0xff] %vm426_vm1, %v1625_v30  ;;  %v896_v62 = vadd.f32 %v835_v33, %v707_v17  ;;  %v1566_v32 = vpop.f32.mrf.mxu0  ;;  %v1170_v30 = vsel %vm1168_vm4, %v4747_v37, %v1166_v3  ;;  %v1230_v17 = vsel %vm1200_vm5, %v1169_v5, 0.0 }
 0x142   : > { %v959_v54 = vld [vmem:[#allocation2 + $0x60] sm:$0xff]  ;;  %v3987_v4 = vpack.c.bf16 %v1230_v17, %v1170_v30 }
 0x143   : > { %v1085_v42 = vadd.f32 %v1023_v2, %v959_v54  ;;  %928 = vst.msk [vmem:[#allocation2 + $0x68] sm:$0xff] %vm426_vm1, %v896_v62  ;;  %2928 = vmatmul.msk.bf16.gmra.mxu0 %vm426_vm1, %v3974_v11  ;;  %v708_v62 = vld [vmem:[#allocation2 + $0x70] sm:$0xff] }
 0x144   : > { %v1242_v0 = vld [vmem:[#allocation2 + $0x58] sm:$0xff] }
 0x145   : > { %v1428_v26 = vadd.f32 %v1364_v10, %v1242_v0  ;;  %1117 = vst.msk [vmem:[#allocation2 + $0x60] sm:$0xff] %vm426_vm1, %v1085_v42  ;;  %v1481_v10 = vrot.slane %v3401_v34, 7 }
 0x146   : > { %v1496_v2 = vld [vmem:[#allocation2 + $0x50] sm:$0xff] }
 0x147   : > { %v1025_v33 = vpop.f32.mrf.mxu2  ;;  %1460 = vst.msk [vmem:[#allocation2 + $0x58] sm:$0xff] %vm426_vm1, %v1428_v26  ;;  %v1626_v39 = vadd.f32 %v1561_v1, %v1496_v2  ;;  %v1483_v1 = vsel %vm631_vm2, %v629_v38, %v1481_v10  ;;  %v4748_v2 = vrot.slane %v3403_v35, 7 }
 0x148   : > { %v1369_v6 = vpop.f32.mrf.mxu3  ;;  %v838_v54 = vpop.f32.mrf.mxu1 }
 0x149   : > { %1658 = vst.msk [vmem:[#allocation2 + $0x50] sm:$0xff] %vm426_vm1, %v1626_v39  ;;  %v897_v3 = vadd.f32 %v838_v54, %v708_v62  ;;  %v1568_v5 = vpop.f32.mrf.mxu0  ;;  %v1484_v39 = vsel %vm662_vm3, %v1483_v1, 0.0  ;;  %v709_v54 = vld [vmem:[#allocation2 + $0x78] sm:$0xff] }
 0x14a   : > { %v960_v42 = vld [vmem:[#allocation2 + $0x68] sm:$0xff] }
 0x14b   : > { %v1086_v0 = vadd.f32 %v1025_v33, %v960_v42  ;;  %929 = vst.msk [vmem:[#allocation2 + $0x70] sm:$0xff] %vm426_vm1, %v897_v3  ;;  %2880 = vmatmul.msk.bf16.gmra.mxu1 %vm426_vm1, %v3974_v11  ;;  %v1482_v33 = vsel %vm631_vm2, %v1481_v10, %v4748_v2 }
 0x14c   : > { %2896 = vmatmul.msk.bf16.gmra.mxu2 %vm426_vm1, %v3350_v29  ;;  %v1243_v26 = vld [vmem:[#allocation2 + $0x60] sm:$0xff]  ;;  %v4009_v42 = vpack.c.bf16 %v1482_v33, %v1484_v39 }
 0x14d   : > { %2912 = vmatmul.msk.bf16.gmra.mxu3 %vm426_vm1, %v3987_v4  ;;  %v1429_v37 = vadd.f32 %v1367_v40, %v1243_v26  ;;  %1118 = vst.msk [vmem:[#allocation2 + $0x68] sm:$0xff] %vm426_vm1, %v1086_v0  ;;  %v710_v33 = vld [vmem:[#allocation2 + $0x80] sm:$0xff] }
 0x14e   : > { %v1497_v30 = vld [vmem:[#allocation2 + $0x58] sm:$0xff] }
 0x14f   : > { %v1028_v17 = vpop.f32.mrf.mxu2  ;;  %1461 = vst.msk [vmem:[#allocation2 + $0x60] sm:$0xff] %vm426_vm1, %v1429_v37  ;;  %v1627_v38 = vadd.f32 %v3947_v18, %v1497_v30 }
 0x150   : > { %v1372_v62 = vpop.f32.mrf.mxu3  ;;  %v840_v3 = vpop.f32.mrf.mxu1 }
 0x151   : > { %1659 = vst.msk [vmem:[#allocation2 + $0x58] sm:$0xff] %vm426_vm1, %v1627_v38  ;;  %v898_v40 = vadd.f32 %v840_v3, %v709_v54  ;;  %v1571_v26 = vpop.f32.mrf.mxu0 }
 0x152   : > { %v961_v0 = vld [vmem:[#allocation2 + $0x70] sm:$0xff] }
 0x153   : > { %v1087_v41 = vadd.f32 %v1028_v17, %v961_v0  ;;  %930 = vst.msk [vmem:[#allocation2 + $0x78] sm:$0xff] %vm426_vm1, %v898_v40  ;;  %2929 = vmatmul.msk.bf16.gmra.mxu0 %vm426_vm1, %v4009_v42 }
 0x154   : > { %v1244_v10 = vld [vmem:[#allocation2 + $0x68] sm:$0xff] }
 0x155   : > { %v1430_v2 = vadd.f32 %v1369_v6, %v1244_v10  ;;  %1119 = vst.msk [vmem:[#allocation2 + $0x70] sm:$0xff] %vm426_vm1, %v1087_v41 }
 0x156   : > { %v1498_v18 = vld [vmem:[#allocation2 + $0x60] sm:$0xff] }
 0x157   : > { %v1030_v1 = vpop.f32.mrf.mxu2  ;;  %1462 = vst.msk [vmem:[#allocation2 + $0x68] sm:$0xff] %vm426_vm1, %v1430_v2  ;;  %v1628_v37 = vadd.f32 %v1566_v32, %v1498_v18  ;;  %v711_v2 = vld [vmem:[#allocation2 + $0x88] sm:$0xff] }
 0x158   : > { %v1374_v30 = vpop.f32.mrf.mxu3  ;;  %v843_v39 = vpop.f32.mrf.mxu1 }
 0x159   : > { %1660 = vst.msk [vmem:[#allocation2 + $0x60] sm:$0xff] %vm426_vm1, %v1628_v37  ;;  %v899_v17 = vadd.f32 %v843_v39, %v710_v33  ;;  %v1573_v54 = vpop.f32.mrf.mxu0 }
 0x15a   : > { %v962_v38 = vld [vmem:[#allocation2 + $0x78] sm:$0xff] }
 0x15b   : > { %v1088_v3 = vadd.f32 %v1030_v1, %v962_v38  ;;  %931 = vst.msk [vmem:[#allocation2 + $0x80] sm:$0xff] %vm426_vm1, %v899_v17  ;;  %2931 = vmatmul.msk.bf16.vlgmr.msra.gmra.mxu1 %vm426_vm1, %v3478_v59  ;;  %v712_v38 = vld [vmem:[#allocation2 + $0x90] sm:$0xff] }
 0x15c   : > { %2948 = vmatmul.msk.bf16.vlgmr.msra.gmra.mxu2 %vm426_vm1, %v3497_v9  ;;  %v1245_v41 = vld [vmem:[#allocation2 + $0x70] sm:$0xff] }
 0x15d   : > { %2964 = vmatmul.msk.bf16.vlgmr.msra.gmra.mxu3 %vm426_vm1, %v3319_v60  ;;  %v1431_v32 = vadd.f32 %v1372_v62, %v1245_v41  ;;  %1120 = vst.msk [vmem:[#allocation2 + $0x78] sm:$0xff] %vm426_vm1, %v1088_v3 }
 0x15e   : > { %v1499_v6 = vld [vmem:[#allocation2 + $0x68] sm:$0xff] }
 0x15f   : > { %v1033_v40 = vpop.f32.mrf.mxu2  ;;  %1463 = vst.msk [vmem:[#allocation2 + $0x70] sm:$0xff] %vm426_vm1, %v1431_v32  ;;  %v1629_v0 = vadd.f32 %v1568_v5, %v1499_v6 }
 0x160   : > { %v1377_v10 = vpop.f32.mrf.mxu3  ;;  %v845_v18 = vpop.f32.mrf.mxu1 }
 0x161   : > { %1661 = vst.msk [vmem:[#allocation2 + $0x68] sm:$0xff] %vm426_vm1, %v1629_v0  ;;  %v900_v59 = vadd.f32 %v845_v18, %v711_v2  ;;  %v1576_v9 = vpop.f32.mrf.mxu0 }
 0x162   : > { %v963_v1 = vld [vmem:[#allocation2 + $0x80] sm:$0xff] }
 0x163   : > { %v1089_v37 = vadd.f32 %v1033_v40, %v963_v1  ;;  %932 = vst.msk [vmem:[#allocation2 + $0x88] sm:$0xff] %vm426_vm1, %v900_v59  ;;  %2980 = vmatmul.msk.bf16.vlgmr.msra.gmra.mxu0 %vm426_vm1, %v3505_v52  ;;  %v713_v1 = vld [vmem:[#allocation2 + $0x98] sm:$0xff] }
 0x164   : > { %v1246_v60 = vld [vmem:[#allocation2 + $0x78] sm:$0xff] }
 0x165   : > { %v1432_v62 = vadd.f32 %v1374_v30, %v1246_v60  ;;  %1121 = vst.msk [vmem:[#allocation2 + $0x80] sm:$0xff] %vm426_vm1, %v1089_v37 }
 0x166   : > { %v1500_v33 = vld [vmem:[#allocation2 + $0x70] sm:$0xff] }
 0x167   : > { %v1035_v5 = vpop.f32.mrf.mxu2  ;;  %1464 = vst.msk [vmem:[#allocation2 + $0x78] sm:$0xff] %vm426_vm1, %v1432_v62  ;;  %v1630_v39 = vadd.f32 %v1571_v26, %v1500_v33 }
 0x168   : > { %v1379_v17 = vpop.f32.mrf.mxu3  ;;  %v848_v3 = vpop.f32.mrf.mxu1 }
 0x169   : > { %1662 = vst.msk [vmem:[#allocation2 + $0x70] sm:$0xff] %vm426_vm1, %v1630_v39  ;;  %v901_v41 = vadd.f32 %v848_v3, %v712_v38  ;;  %v1578_v6 = vpop.f32.mrf.mxu0  ;;  %v714_v38 = vld [vmem:[#allocation2 + $0xa0] sm:$0xff] }
 0x16a   : > { %v964_v32 = vld [vmem:[#allocation2 + $0x88] sm:$0xff] }
 0x16b   : > { %v1090_v40 = vadd.f32 %v1035_v5, %v964_v32  ;;  %933 = vst.msk [vmem:[#allocation2 + $0x90] sm:$0xff] %vm426_vm1, %v901_v41  ;;  %2932 = vmatmul.msk.bf16.gmra.mxu1 %vm426_vm1, %v3505_v52 }
 0x16c   : > { %2949 = vmatmul.msk.bf16.gmra.mxu2 %vm426_vm1, %v3525_v14  ;;  %v1247_v30 = vld [vmem:[#allocation2 + $0x80] sm:$0xff] }
 0x16d   : > { %2965 = vmatmul.msk.bf16.gmra.mxu3 %vm426_vm1, %v3391_v22  ;;  %v1433_v26 = vadd.f32 %v1377_v10, %v1247_v30  ;;  %1122 = vst.msk [vmem:[#allocation2 + $0x88] sm:$0xff] %vm426_vm1, %v1090_v40 }
 0x16e   : > { %v1501_v0 = vld [vmem:[#allocation2 + $0x78] sm:$0xff] }
 0x16f   : > { %v1038_v2 = vpop.f32.mrf.mxu2  ;;  %1465 = vst.msk [vmem:[#allocation2 + $0x80] sm:$0xff] %vm426_vm1, %v1433_v26  ;;  %v1631_v18 = vadd.f32 %v1573_v54, %v1501_v0 }
 0x170   : > { %v1382_v59 = vpop.f32.mrf.mxu3  ;;  %v850_v37 = vpop.f32.mrf.mxu1 }
 0x171   : > { %1663 = vst.msk [vmem:[#allocation2 + $0x78] sm:$0xff] %vm426_vm1, %v1631_v18  ;;  %v902_v52 = vadd.f32 %v850_v37, %v713_v1  ;;  %v1581_v14 = vpop.f32.mrf.mxu0  ;;  %v715_v1 = vld [vmem:[#allocation2 + $0xa8] sm:$0xff] }
 0x172   : > { %v965_v60 = vld [vmem:[#allocation2 + $0x90] sm:$0xff] }
 0x173   : > { %v1091_v62 = vadd.f32 %v1038_v2, %v965_v60  ;;  %934 = vst.msk [vmem:[#allocation2 + $0x98] sm:$0xff] %vm426_vm1, %v902_v52  ;;  %2981 = vmatmul.msk.bf16.gmra.mxu0 %vm426_vm1, %v3533_v58 }
 0x174   : > { %v1248_v22 = vld [vmem:[#allocation2 + $0x88] sm:$0xff] }
 0x175   : > { %v1434_v10 = vadd.f32 %v1379_v17, %v1248_v22  ;;  %1123 = vst.msk [vmem:[#allocation2 + $0x90] sm:$0xff] %vm426_vm1, %v1091_v62 }
 0x176   : > { %v1502_v33 = vld [vmem:[#allocation2 + $0x80] sm:$0xff] }
 0x177   : > { %v1040_v54 = vpop.f32.mrf.mxu2  ;;  %1466 = vst.msk [vmem:[#allocation2 + $0x88] sm:$0xff] %vm426_vm1, %v1434_v10  ;;  %v1632_v5 = vadd.f32 %v1576_v9, %v1502_v33  ;;  %v716_v33 = vld [vmem:[#allocation2 + $0xb0] sm:$0xff] }
 0x178   : > { %v1384_v39 = vpop.f32.mrf.mxu3  ;;  %v853_v3 = vpop.f32.mrf.mxu1 }
 0x179   : > { %1664 = vst.msk [vmem:[#allocation2 + $0x80] sm:$0xff] %vm426_vm1, %v1632_v5  ;;  %v903_v41 = vadd.f32 %v853_v3, %v714_v38  ;;  %v1583_v40 = vpop.f32.mrf.mxu0 }
 0x17a   : > { %v966_v32 = vld [vmem:[#allocation2 + $0x98] sm:$0xff] }
 0x17b   : > { %v1092_v30 = vadd.f32 %v1040_v54, %v966_v32  ;;  %935 = vst.msk [vmem:[#allocation2 + $0xa0] sm:$0xff] %vm426_vm1, %v903_v41  ;;  %2933 = vmatmul.msk.bf16.gmra.mxu1 %vm426_vm1, %v3533_v58 }
 0x17c   : > { %2950 = vmatmul.msk.bf16.gmra.mxu2 %vm426_vm1, %v3553_v53  ;;  %v1249_v17 = vld [vmem:[#allocation2 + $0x90] sm:$0xff] }
 0x17d   : > { %2966 = vmatmul.msk.bf16.gmra.mxu3 %vm426_vm1, %v3439_v16  ;;  %v1435_v9 = vadd.f32 %v1382_v59, %v1249_v17  ;;  %1124 = vst.msk [vmem:[#allocation2 + $0x98] sm:$0xff] %vm426_vm1, %v1092_v30 }
 0x17e   : > { %v1503_v26 = vld [vmem:[#allocation2 + $0x88] sm:$0xff] }
 0x17f   : > { %v1043_v0 = vpop.f32.mrf.mxu2  ;;  %1467 = vst.msk [vmem:[#allocation2 + $0x90] sm:$0xff] %vm426_vm1, %v1435_v9  ;;  %v1633_v2 = vadd.f32 %v1578_v6, %v1503_v26  ;;  %v717_v26 = vld [vmem:[#allocation2 + $0xb8] sm:$0xff] }
 0x180   : > { %v1387_v18 = vpop.f32.mrf.mxu3  ;;  %v855_v37 = vpop.f32.mrf.mxu1 }
 0x181   : > { %1665 = vst.msk [vmem:[#allocation2 + $0x88] sm:$0xff] %vm426_vm1, %v1633_v2  ;;  %v904_v58 = vadd.f32 %v855_v37, %v715_v1  ;;  %v1586_v53 = vpop.f32.mrf.mxu0 }
 0x182   : > { %v967_v52 = vld [vmem:[#allocation2 + $0xa0] sm:$0xff] }
 0x183   : > { %v1093_v60 = vadd.f32 %v1043_v0, %v967_v52  ;;  %936 = vst.msk [vmem:[#allocation2 + $0xa8] sm:$0xff] %vm426_vm1, %v904_v58  ;;  %2982 = vmatmul.msk.bf16.gmra.mxu0 %vm426_vm1, %v3561_v19 }
 0x184   : > { %v1250_v16 = vld [vmem:[#allocation2 + $0x98] sm:$0xff] }
 0x185   : > { %v1436_v59 = vadd.f32 %v1384_v39, %v1250_v16  ;;  %1125 = vst.msk [vmem:[#allocation2 + $0xa0] sm:$0xff] %vm426_vm1, %v1093_v60  ;;  %v718_v60 = vld [vmem:[#allocation2 + $0xc0] sm:$0xff] }
 0x186   : > { %v1504_v62 = vld [vmem:[#allocation2 + $0x90] sm:$0xff] }
 0x187   : > { %v1045_v6 = vpop.f32.mrf.mxu2  ;;  %1468 = vst.msk [vmem:[#allocation2 + $0x98] sm:$0xff] %vm426_vm1, %v1436_v59  ;;  %v1634_v22 = vadd.f32 %v1581_v14, %v1504_v62 }
 0x188   : > { %v1389_v10 = vpop.f32.mrf.mxu3  ;;  %v858_v54 = vpop.f32.mrf.mxu1 }
 0x189   : > { %1666 = vst.msk [vmem:[#allocation2 + $0x90] sm:$0xff] %vm426_vm1, %v1634_v22  ;;  %v905_v5 = vadd.f32 %v858_v54, %v716_v33  ;;  %v1588_v3 = vpop.f32.mrf.mxu0 }
 0x18a   : > { %v968_v38 = vld [vmem:[#allocation2 + $0xa8] sm:$0xff] }
 0x18b   : > { %v1094_v41 = vadd.f32 %v1045_v6, %v968_v38  ;;  %937 = vst.msk [vmem:[#allocation2 + $0xb0] sm:$0xff] %vm426_vm1, %v905_v5  ;;  %2934 = vmatmul.msk.bf16.gmra.mxu1 %vm426_vm1, %v3561_v19 }
 0x18c   : > { %2951 = vmatmul.msk.bf16.gmra.mxu2 %vm426_vm1, %v3585_v55  ;;  %v1251_v39 = vld [vmem:[#allocation2 + $0xa0] sm:$0xff] }
 0x18d   : > { %2967 = vmatmul.msk.bf16.gmra.mxu3 %vm426_vm1, %v3220_v45  ;;  %v1437_v14 = vadd.f32 %v1387_v18, %v1251_v39  ;;  %1126 = vst.msk [vmem:[#allocation2 + $0xa8] sm:$0xff] %vm426_vm1, %v1094_v41  ;;  %v719_v41 = vld [vmem:[#allocation2 + $0xc8] sm:$0xff] }
 0x18e   : > { %v1505_v32 = vld [vmem:[#allocation2 + $0x98] sm:$0xff] }
 0x18f   : > { %v1048_v30 = vpop.f32.mrf.mxu2  ;;  %1469 = vst.msk [vmem:[#allocation2 + $0xa0] sm:$0xff] %vm426_vm1, %v1437_v14  ;;  %v1635_v17 = vadd.f32 %v1583_v40, %v1505_v32 }
 0x190   : > { %v1392_v9 = vpop.f32.mrf.mxu3  ;;  %v860_v0 = vpop.f32.mrf.mxu1 }
 0x191   : > { %1667 = vst.msk [vmem:[#allocation2 + $0x98] sm:$0xff] %vm426_vm1, %v1635_v17  ;;  %v906_v19 = vadd.f32 %v860_v0, %v717_v26  ;;  %v1591_v55 = vpop.f32.mrf.mxu0  ;;  %v720_v0 = vld [vmem:[#allocation2 + $0xd0] sm:$0xff] }
 0x192   : > { %v969_v2 = vld [vmem:[#allocation2 + $0xb0] sm:$0xff] }
 0x193   : > { %v1095_v1 = vadd.f32 %v1048_v30, %v969_v2  ;;  %938 = vst.msk [vmem:[#allocation2 + $0xb8] sm:$0xff] %vm426_vm1, %v906_v19  ;;  %2983 = vmatmul.msk.bf16.gmra.mxu0 %vm426_vm1, %v3596_v7 }
 0x194   : > { %v1252_v45 = vld [vmem:[#allocation2 + $0xa8] sm:$0xff] }
 0x195   : > { %v1438_v18 = vadd.f32 %v1389_v10, %v1252_v45  ;;  %1127 = vst.msk [vmem:[#allocation2 + $0xb0] sm:$0xff] %vm426_vm1, %v1095_v1 }
 0x196   : > { %v1506_v37 = vld [vmem:[#allocation2 + $0xa0] sm:$0xff] }
 0x197   : > { %v1050_v40 = vpop.f32.mrf.mxu2  ;;  %1470 = vst.msk [vmem:[#allocation2 + $0xa8] sm:$0xff] %vm426_vm1, %v1438_v18  ;;  %v1636_v58 = vadd.f32 %v1586_v53, %v1506_v37 }
 0x198   : > { %v1394_v52 = vpop.f32.mrf.mxu3  ;;  %v863_v16 = vpop.f32.mrf.mxu1 }
 0x199   : > { %1668 = vst.msk [vmem:[#allocation2 + $0xa0] sm:$0xff] %vm426_vm1, %v1636_v58  ;;  %v907_v59 = vadd.f32 %v863_v16, %v718_v60  ;;  %v1593_v6 = vpop.f32.mrf.mxu0  ;;  %v721_v16 = vld [vmem:[#allocation2 + $0xd8] sm:$0xff] }
 0x19a   : > { %v970_v62 = vld [vmem:[#allocation2 + $0xb8] sm:$0xff] }
 0x19b   : > { %v1096_v22 = vadd.f32 %v1050_v40, %v970_v62  ;;  %939 = vst.msk [vmem:[#allocation2 + $0xc0] sm:$0xff] %vm426_vm1, %v907_v59  ;;  %2935 = vmatmul.msk.bf16.gmra.mxu1 %vm426_vm1, %v3596_v7 }
 0x19c   : > { %2952 = vmatmul.msk.bf16.gmra.mxu2 %vm426_vm1, %v3621_v24  ;;  %v1253_v10 = vld [vmem:[#allocation2 + $0xb0] sm:$0xff] }
 0x19d   : > { %2968 = vmatmul.msk.bf16.gmra.mxu3 %vm426_vm1, %v3282_v27  ;;  %v1439_v53 = vadd.f32 %v1392_v9, %v1253_v10  ;;  %1128 = vst.msk [vmem:[#allocation2 + $0xb8] sm:$0xff] %vm426_vm1, %v1096_v22 }
 0x19e   : > { %v1507_v33 = vld [vmem:[#allocation2 + $0xa8] sm:$0xff] }
 0x19f   : > { %v1053_v54 = vpop.f32.mrf.mxu2  ;;  %1471 = vst.msk [vmem:[#allocation2 + $0xb0] sm:$0xff] %vm426_vm1, %v1439_v53  ;;  %v1637_v5 = vadd.f32 %v1588_v3, %v1507_v33 }
 0x1a0   : > { %v1397_v38 = vpop.f32.mrf.mxu3  ;;  %v865_v39 = vpop.f32.mrf.mxu1 }
 0x1a1   : > { %1669 = vst.msk [vmem:[#allocation2 + $0xa8] sm:$0xff] %vm426_vm1, %v1637_v5  ;;  %v908_v7 = vadd.f32 %v865_v39, %v719_v41  ;;  %v1596_v24 = vpop.f32.mrf.mxu0  ;;  %v722_v5 = vld [vmem:[#allocation2 + $0xe0] sm:$0xff] }
 0x1a2   : > { %v971_v14 = vld [vmem:[#allocation2 + $0xc0] sm:$0xff] }
 0x1a3   : > { %v1097_v32 = vadd.f32 %v1053_v54, %v971_v14  ;;  %940 = vst.msk [vmem:[#allocation2 + $0xc8] sm:$0xff] %vm426_vm1, %v908_v7  ;;  %2984 = vmatmul.msk.bf16.gmra.mxu0 %vm426_vm1, %v3632_v56 }
 0x1a4   : > { %v1254_v27 = vld [vmem:[#allocation2 + $0xb8] sm:$0xff] }
 0x1a5   : > { %v1440_v30 = vadd.f32 %v1394_v52, %v1254_v27  ;;  %1129 = vst.msk [vmem:[#allocation2 + $0xc0] sm:$0xff] %vm426_vm1, %v1097_v32 }
 0x1a6   : > { %v1508_v17 = vld [vmem:[#allocation2 + $0xb0] sm:$0xff] }
 0x1a7   : > { %v1055_v3 = vpop.f32.mrf.mxu2  ;;  %1472 = vst.msk [vmem:[#allocation2 + $0xb8] sm:$0xff] %vm426_vm1, %v1440_v30  ;;  %v1638_v9 = vadd.f32 %v1591_v55, %v1508_v17 }
 0x1a8   : > { %v1399_v26 = vpop.f32.mrf.mxu3  ;;  %v868_v19 = vpop.f32.mrf.mxu1 }
 0x1a9   : > { %1670 = vst.msk [vmem:[#allocation2 + $0xb0] sm:$0xff] %vm426_vm1, %v1638_v9  ;;  %v909_v2 = vadd.f32 %v868_v19, %v720_v0  ;;  %v1598_v45 = vpop.f32.mrf.mxu0  ;;  %v723_v9 = vld [vmem:[#allocation2 + $0xe8] sm:$0xff] }
 0x1aa   : > { %v972_v1 = vld [vmem:[#allocation2 + $0xc8] sm:$0xff] }
 0x1ab   : > { %v1098_v18 = vadd.f32 %v1055_v3, %v972_v1  ;;  %941 = vst.msk [vmem:[#allocation2 + $0xd0] sm:$0xff] %vm426_vm1, %v909_v2  ;;  %2936 = vmatmul.msk.bf16.gmra.mxu1 %vm426_vm1, %v3632_v56  ;;  %v4749_v1 = vld [vmem:[#allocation6_spill] sm:$0xff] }
 0x1ac   : > { %2953 = vmatmul.msk.bf16.gmra.mxu2 %vm426_vm1, %v3657_v57  ;;  %v1255_v37 = vld [vmem:[#allocation2 + $0xc0] sm:$0xff] }
 0x1ad   : > { %2969 = vmatmul.msk.bf16.gmra.mxu3 %vm426_vm1, %v3342_v21  ;;  %v1441_v55 = vadd.f32 %v1397_v38, %v1255_v37  ;;  %1130 = vst.msk [vmem:[#allocation2 + $0xc8] sm:$0xff] %vm426_vm1, %v1098_v18 }
 0x1ae   : > { %v1509_v40 = vld [vmem:[#allocation2 + $0xb8] sm:$0xff] }
 0x1af   : > { %v1058_v58 = vpop.f32.mrf.mxu2  ;;  %1473 = vst.msk [vmem:[#allocation2 + $0xc0] sm:$0xff] %vm426_vm1, %v1441_v55  ;;  %v1639_v52 = vadd.f32 %v1593_v6, %v1509_v40  ;;  %v724_v40 = vld [vmem:[#allocation2 + $0xf0] sm:$0xff] }
 0x1b0   : > { %v1402_v60 = vpop.f32.mrf.mxu3  ;;  %v870_v59 = vpop.f32.mrf.mxu1 }
 0x1b1   : > { %1671 = vst.msk [vmem:[#allocation2 + $0xb8] sm:$0xff] %vm426_vm1, %v1639_v52  ;;  %v910_v56 = vadd.f32 %v870_v59, %v721_v16  ;;  %v1601_v57 = vpop.f32.mrf.mxu0 }
 0x1b2   : > { %v973_v62 = vld [vmem:[#allocation2 + $0xd0] sm:$0xff] }
 0x1b3   : > { %v1099_v22 = vadd.f32 %v1058_v58, %v973_v62  ;;  %942 = vst.msk [vmem:[#allocation2 + $0xd8] sm:$0xff] %vm426_vm1, %v910_v56  ;;  %2985 = vmatmul.msk.bf16.gmra.mxu0 %vm426_vm1, %v3668_v43  ;;  %v4750_v56 = vld [vmem:[#allocation7_spill] sm:$0xff] }
 0x1b4   : > { %v1256_v21 = vld [vmem:[#allocation2 + $0xc8] sm:$0xff] }
 0x1b5   : > { %v1442_v10 = vadd.f32 %v1399_v26, %v1256_v21  ;;  %1131 = vst.msk [vmem:[#allocation2 + $0xd0] sm:$0xff] %vm426_vm1, %v1099_v22  ;;  %v4751_v22 = vld [vmem:[#allocation3_spill] sm:$0xff] }
 0x1b6   : > { %v1510_v53 = vld [vmem:[#allocation2 + $0xc0] sm:$0xff] }
 0x1b7   : > { %v1060_v6 = vpop.f32.mrf.mxu2  ;;  %1474 = vst.msk [vmem:[#allocation2 + $0xc8] sm:$0xff] %vm426_vm1, %v1442_v10  ;;  %v1640_v33 = vadd.f32 %v1596_v24, %v1510_v53 }
 0x1b8   : > { %v1404_v54 = vpop.f32.mrf.mxu3  ;;  %v873_v38 = vpop.f32.mrf.mxu1 }
 0x1b9   : > { %1672 = vst.msk [vmem:[#allocation2 + $0xc0] sm:$0xff] %vm426_vm1, %v1640_v33  ;;  %v911_v41 = vadd.f32 %v873_v38, %v722_v5  ;;  %v1603_v7 = vpop.f32.mrf.mxu0  ;;  %v725_v33 = vld [vmem:[#allocation2 + $0xf8] sm:$0xff] }
 0x1ba   : > { %v974_v39 = vld [vmem:[#allocation2 + $0xd8] sm:$0xff] }
 0x1bb   : > { %v1100_v14 = vadd.f32 %v1060_v6, %v974_v39  ;;  %943 = vst.msk [vmem:[#allocation2 + $0xe0] sm:$0xff] %vm426_vm1, %v911_v41  ;;  %2937 = vmatmul.msk.bf16.gmra.mxu1 %vm426_vm1, %v3668_v43 }
 0x1bc   : > { %2954 = vmatmul.msk.bf16.gmra.mxu2 %vm426_vm1, %v3693_v8  ;;  %v1257_v32 = vld [vmem:[#allocation2 + $0xd0] sm:$0xff] }
 0x1bd   : > { %2970 = vmatmul.msk.bf16.gmra.mxu3 %vm426_vm1, %v3411_v44  ;;  %v1443_v24 = vadd.f32 %v1402_v60, %v1257_v32  ;;  %1132 = vst.msk [vmem:[#allocation2 + $0xd8] sm:$0xff] %vm426_vm1, %v1100_v14 }
 0x1be   : > { %v1511_v27 = vld [vmem:[#allocation2 + $0xc8] sm:$0xff] }
 0x1bf   : > { %v1063_v30 = vpop.f32.mrf.mxu2  ;;  %1475 = vst.msk [vmem:[#allocation2 + $0xd0] sm:$0xff] %vm426_vm1, %v1443_v24  ;;  %v1641_v17 = vadd.f32 %v1598_v45, %v1511_v27  ;;  %v4752_v24 = vld [vmem:[#allocation8_spill] sm:$0xff] }
 0x1c0   : > { %v1407_v3 = vpop.f32.mrf.mxu3  ;;  %v875_v26 = vpop.f32.mrf.mxu1 }
 0x1c1   : > { %1673 = vst.msk [vmem:[#allocation2 + $0xc8] sm:$0xff] %vm426_vm1, %v1641_v17  ;;  %v912_v43 = vadd.f32 %v875_v26, %v723_v9  ;;  %v1606_v8 = vpop.f32.mrf.mxu0 }
 0x1c2   : > { %v975_v0 = vld [vmem:[#allocation2 + $0xe0] sm:$0xff] }
 0x1c3   : > { %v1101_v19 = vadd.f32 %v1063_v30, %v975_v0  ;;  %944 = vst.msk [vmem:[#allocation2 + $0xe8] sm:$0xff] %vm426_vm1, %v912_v43  ;;  %2986 = vmatmul.msk.bf16.gmra.mxu0 %vm426_vm1, %v4749_v1 }
 0x1c4   : > { %v1258_v44 = vld [vmem:[#allocation2 + $0xd8] sm:$0xff] }
 0x1c5   : > { %v1444_v2 = vadd.f32 %v1404_v54, %v1258_v44  ;;  %1133 = vst.msk [vmem:[#allocation2 + $0xe0] sm:$0xff] %vm426_vm1, %v1101_v19 }
 0x1c6   : > { %v1512_v18 = vld [vmem:[#allocation2 + $0xd0] sm:$0xff] }
 0x1c7   : > { %v1065_v45 = vpop.f32.mrf.mxu2  ;;  %1476 = vst.msk [vmem:[#allocation2 + $0xd8] sm:$0xff] %vm426_vm1, %v1444_v2  ;;  %v1642_v37 = vadd.f32 %v1601_v57, %v1512_v18 }
 0x1c8   : > { %v1409_v55 = vpop.f32.mrf.mxu3  ;;  %v878_v58 = vpop.f32.mrf.mxu1 }
 0x1c9   : > { %1674 = vst.msk [vmem:[#allocation2 + $0xd0] sm:$0xff] %vm426_vm1, %v1642_v37  ;;  %v913_v52 = vadd.f32 %v878_v58, %v724_v40  ;;  %v1608_v16 = vpop.f32.mrf.mxu0  ;;  %v1686_v37 = vld [vmem:[#allocation2 + $0x8] sm:$0xff] }
 0x1ca   : > { %v976_v60 = vld [vmem:[#allocation2 + $0xe8] sm:$0xff] }
 0x1cb   : > { %v1102_v59 = vadd.f32 %v1065_v45, %v976_v60  ;;  %945 = vst.msk [vmem:[#allocation2 + $0xf0] sm:$0xff] %vm426_vm1, %v913_v52  ;;  %2938 = vmatmul.msk.bf16.gmra.mxu1 %vm426_vm1, %v4749_v1 }
 0x1cc   : > { %2955 = vmatmul.msk.bf16.gmra.mxu2 %vm426_vm1, %v4750_v56  ;;  %v1259_v62 = vld [vmem:[#allocation2 + $0xe0] sm:$0xff] }
 0x1cd   : > { %2971 = vmatmul.msk.bf16.gmra.mxu3 %vm426_vm1, %v4751_v22  ;;  %v1445_v57 = vadd.f32 %v1407_v3, %v1259_v62  ;;  %1134 = vst.msk [vmem:[#allocation2 + $0xe8] sm:$0xff] %vm426_vm1, %v1102_v59  ;;  %v1685_v3 = vld [vmem:[#allocation2] sm:$0xff]  ;;  %v1687_v22 = vld [vmem:[#allocation2 + $0x10] sm:$0xff] }
 0x1ce   : > { %v1513_v21 = vld [vmem:[#allocation2 + $0xd8] sm:$0xff] }
 0x1cf   : > { %v1068_v10 = vpop.f32.mrf.mxu2  ;;  %1477 = vst.msk [vmem:[#allocation2 + $0xe0] sm:$0xff] %vm426_vm1, %v1445_v57  ;;  %v1643_v53 = vadd.f32 %v1603_v7, %v1513_v21 }
 0x1d0   : > { %v1412_v6 = vpop.f32.mrf.mxu3  ;;  %v880_v54 = vpop.f32.mrf.mxu1 }
 0x1d1   : > { %1675 = vst.msk [vmem:[#allocation2 + $0xd8] sm:$0xff] %vm426_vm1, %v1643_v53  ;;  %v914_v5 = vadd.f32 %v880_v54, %v725_v33  ;;  %v1611_v41 = vpop.f32.mrf.mxu0 }
 0x1d2   : > { %v977_v38 = vld [vmem:[#allocation2 + $0xf0] sm:$0xff] }
 0x1d3   : > { %v1103_v39 = vadd.f32 %v1068_v10, %v977_v38  ;;  %946 = vst.msk [vmem:[#allocation2 + $0xf8] sm:$0xff] %vm426_vm1, %v914_v5  ;;  %2987 = vmatmul.msk.bf16.gmra.mxu0 %vm426_vm1, %v4752_v24 }
 0x1d4   : > { %v1260_v14 = vld [vmem:[#allocation2 + $0xe8] sm:$0xff] }
 0x1d5   : > { %v1446_v32 = vadd.f32 %v1409_v55, %v1260_v14  ;;  %1135 = vst.msk [vmem:[#allocation2 + $0xf0] sm:$0xff] %vm426_vm1, %v1103_v39  ;;  %v1688_v14 = vld [vmem:[#allocation2 + $0x18] sm:$0xff] }
 0x1d6   : > { %v1514_v27 = vld [vmem:[#allocation2 + $0xe0] sm:$0xff] }
 0x1d7   : > { %v1070_v7 = vpop.f32.mrf.mxu2  ;;  %1478 = vst.msk [vmem:[#allocation2 + $0xe8] sm:$0xff] %vm426_vm1, %v1446_v32  ;;  %v1644_v30 = vadd.f32 %v1606_v8, %v1514_v27 }
 0x1d8   : > { %v1414_v17 = vpop.f32.mrf.mxu3  ;;  %v1735_v9 = vpop.f32.mrf.mxu1 }
 0x1d9   : > { %1676 = vst.msk [vmem:[#allocation2 + $0xe0] sm:$0xff] %vm426_vm1, %v1644_v30  ;;  %v1815_v26 = vadd.f32 %v1735_v9, %v1685_v3  ;;  %v1613_v0 = vpop.f32.mrf.mxu0 }
 0x1da   : > { %v978_v43 = vld [vmem:[#allocation2 + $0xf8] sm:$0xff] }
 0x1db   : > { %v1104_v19 = vadd.f32 %v1070_v7, %v978_v43  ;;  %1847 = vst.msk [vmem:[#allocation2] sm:$0xff] %vm426_vm1, %v1815_v26  ;;  %2939 = vmatmul.msk.bf16.gmra.mxu1 %vm426_vm1, %v4752_v24  ;;  %v1689_v26 = vld [vmem:[#allocation2 + $0x20] sm:$0xff] }
 0x1dc   : > { %2956 = vmatmul.msk.bf16.gmra.mxu2 %vm426_vm1, %v3762_v36  ;;  %v1261_v44 = vld [vmem:[#allocation2 + $0xf0] sm:$0xff] }
 0x1dd   : > { %2972 = vmatmul.msk.bf16.gmra.mxu3 %vm426_vm1, %v3286_v28  ;;  %v1447_v8 = vadd.f32 %v1412_v6, %v1261_v44  ;;  %1136 = vst.msk [vmem:[#allocation2 + $0xf8] sm:$0xff] %vm426_vm1, %v1104_v19 }
 0x1de   : > { %v1515_v2 = vld [vmem:[#allocation2 + $0xe8] sm:$0xff] }
 0x1df   : > { %v1925_v1 = vpop.f32.mrf.mxu2  ;;  %1479 = vst.msk [vmem:[#allocation2 + $0xf0] sm:$0xff] %vm426_vm1, %v1447_v8  ;;  %v1645_v18 = vadd.f32 %v1608_v16, %v1515_v2 }
 0x1e0   : > { %v2115_v45 = vpop.f32.mrf.mxu3  ;;  %v1737_v55 = vpop.f32.mrf.mxu1 }
 0x1e1   : > { %1677 = vst.msk [vmem:[#allocation2 + $0xe8] sm:$0xff] %vm426_vm1, %v1645_v18  ;;  %v1816_v40 = vadd.f32 %v1737_v55, %v1686_v37  ;;  %v2305_v36 = vpop.f32.mrf.mxu0 }
 0x1e2   : > { %v1879_v58 = vld [vmem:[#allocation2] sm:$0xff] }
 0x1e3   : > { %v2005_v52 = vadd.f32 %v1925_v1, %v1879_v58  ;;  %1848 = vst.msk [vmem:[#allocation2 + $0x8] sm:$0xff] %vm426_vm1, %v1816_v40  ;;  %2988 = vmatmul.msk.bf16.gmra.mxu0 %vm426_vm1, %v3772_v46 }
 0x1e4   : > { %v1262_v28 = vld [vmem:[#allocation2 + $0xf8] sm:$0xff] }
 0x1e5   : > { %v1448_v60 = vadd.f32 %v1414_v17, %v1262_v28  ;;  %2037 = vst.msk [vmem:[#allocation2] sm:$0xff] %vm426_vm1, %v2005_v52 }
 0x1e6   : > { %v1516_v59 = vld [vmem:[#allocation2 + $0xf0] sm:$0xff] }
 0x1e7   : > { %v1927_v16 = vpop.f32.mrf.mxu2  ;;  %1480 = vst.msk [vmem:[#allocation2 + $0xf8] sm:$0xff] %vm426_vm1, %v1448_v60  ;;  %v1646_v56 = vadd.f32 %v1611_v41, %v1516_v59 }
 0x1e8   : > { %v2117_v62 = vpop.f32.mrf.mxu3  ;;  %v1740_v57 = vpop.f32.mrf.mxu1 }
 0x1e9   : > { %1678 = vst.msk [vmem:[#allocation2 + $0xf0] sm:$0xff] %vm426_vm1, %v1646_v56  ;;  %v1817_v21 = vadd.f32 %v1740_v57, %v1687_v22  ;;  %v2307_v53 = vpop.f32.mrf.mxu0 }
 0x1ea   : > { %v1880_v10 = vld [vmem:[#allocation2 + $0x8] sm:$0xff] }
 0x1eb   : > { %v2006_v6 = vadd.f32 %v1927_v16, %v1880_v10  ;;  %1849 = vst.msk [vmem:[#allocation2 + $0x10] sm:$0xff] %vm426_vm1, %v1817_v21  ;;  %2940 = vmatmul.msk.bf16.gmra.mxu1 %vm426_vm1, %v3772_v46  ;;  %v1691_v21 = vld [vmem:[#allocation2 + $0x30] sm:$0xff] }
 0x1ec   : > { %2957 = vmatmul.msk.bf16.gmra.mxu2 %vm426_vm1, %v3802_v13  ;;  %v2069_v33 = vld [vmem:[#allocation2] sm:$0xff] }
 0x1ed   : > { %2973 = vmatmul.msk.bf16.gmra.mxu3 %vm426_vm1, %v3346_v23  ;;  %v2195_v54 = vadd.f32 %v2115_v45, %v2069_v33  ;;  %2038 = vst.msk [vmem:[#allocation2 + $0x8] sm:$0xff] %vm426_vm1, %v2006_v6 }
 0x1ee   : > { %v1517_v5 = vld [vmem:[#allocation2 + $0xf8] sm:$0xff] }
 0x1ef   : > { %v1930_v38 = vpop.f32.mrf.mxu2  ;;  %2227 = vst.msk [vmem:[#allocation2] sm:$0xff] %vm426_vm1, %v2195_v54  ;;  %v1647_v41 = vadd.f32 %v1613_v0, %v1517_v5 }
 0x1f0   : > { %v2120_v39 = vpop.f32.mrf.mxu3  ;;  %v1742_v32 = vpop.f32.mrf.mxu1 }
 0x1f1   : > { %1679 = vst.msk [vmem:[#allocation2 + $0xf8] sm:$0xff] %vm426_vm1, %v1647_v41  ;;  %v1818_v46 = vadd.f32 %v1742_v32, %v1688_v14  ;;  %v2310_v13 = vpop.f32.mrf.mxu0 }
 0x1f2   : > { %v1881_v24 = vld [vmem:[#allocation2 + $0x10] sm:$0xff] }
 0x1f3   : > { %v2007_v27 = vadd.f32 %v1930_v38, %v1881_v24  ;;  %1850 = vst.msk [vmem:[#allocation2 + $0x18] sm:$0xff] %vm426_vm1, %v1818_v46  ;;  %2989 = vmatmul.msk.bf16.gmra.mxu0 %vm426_vm1, %v3814_v49 }
 0x1f4   : > { %v2070_v23 = vld [vmem:[#allocation2 + $0x8] sm:$0xff] }
 0x1f5   : > { %v2196_v7 = vadd.f32 %v2117_v62, %v2070_v23  ;;  %2039 = vst.msk [vmem:[#allocation2 + $0x10] sm:$0xff] %vm426_vm1, %v2007_v27 }
 0x1f6   : > { %v2259_v30 = vld [vmem:[#allocation2] sm:$0xff] }
 0x1f7   : > { %v1932_v17 = vpop.f32.mrf.mxu2  ;;  %2228 = vst.msk [vmem:[#allocation2 + $0x8] sm:$0xff] %vm426_vm1, %v2196_v7  ;;  %v2385_v3 = vadd.f32 %v2305_v36, %v2259_v30 }
 0x1f8   : > { %v2122_v9 = vpop.f32.mrf.mxu3  ;;  %v1745_v43 = vpop.f32.mrf.mxu1 }
 0x1f9   : > { %2417 = vst.msk [vmem:[#allocation2] sm:$0xff] %vm426_vm1, %v2385_v3  ;;  %v1819_v0 = vadd.f32 %v1745_v43, %v1689_v26  ;;  %v2312_v44 = vpop.f32.mrf.mxu0 }
 0x1fa   : > { %v1882_v19 = vld [vmem:[#allocation2 + $0x18] sm:$0xff] }
 0x1fb   : > { %v2008_v8 = vadd.f32 %v1932_v17, %v1882_v19  ;;  %1851 = vst.msk [vmem:[#allocation2 + $0x20] sm:$0xff] %vm426_vm1, %v1819_v0  ;;  %2941 = vmatmul.msk.bf16.gmra.mxu1 %vm426_vm1, %v3814_v49  ;;  %v1693_v19 = vld [vmem:[#allocation2 + $0x40] sm:$0xff] }
 0x1fc   : > { %2958 = vmatmul.msk.bf16.gmra.mxu2 %vm426_vm1, %v3845_v51  ;;  %v2071_v2 = vld [vmem:[#allocation2 + $0x10] sm:$0xff] }
 0x1fd   : > { %2974 = vmatmul.msk.bf16.gmra.mxu3 %vm426_vm1, %v3415_v47  ;;  %v2197_v1 = vadd.f32 %v2120_v39, %v2071_v2  ;;  %2040 = vst.msk [vmem:[#allocation2 + $0x18] sm:$0xff] %vm426_vm1, %v2008_v8  ;;  %v1690_v47 = vld [vmem:[#allocation2 + $0x28] sm:$0xff] }
 0x1fe   : > { %v2260_v18 = vld [vmem:[#allocation2 + $0x8] sm:$0xff] }
 0x1ff   : > { %v1935_v45 = vpop.f32.mrf.mxu2  ;;  %2229 = vst.msk [vmem:[#allocation2 + $0x10] sm:$0xff] %vm426_vm1, %v2197_v1  ;;  %v2386_v37 = vadd.f32 %v2307_v53, %v2260_v18 }
 0x200   : > { %v2125_v55 = vpop.f32.mrf.mxu3  ;;  %v4193_v49 = vld [vmem:[#allocation2] sm:$0xff]  ;;  %v1747_v51 = vpop.f32.mrf.mxu1 }
 0x201   : > { %v2481_v40 = vpack.c.bf16 %v4193_v49, %v4193_v49  ;;  %2418 = vst.msk [vmem:[#allocation2 + $0x8] sm:$0xff] %vm426_vm1, %v2386_v37  ;;  %v1820_v58 = vadd.f32 %v1747_v51, %v1690_v47  ;;  %v2315_v52 = vpop.f32.mrf.mxu0 }
 0x202   : > { %v1883_v36 = vld [vmem:[#allocation2 + $0x20] sm:$0xff] }
 0x203   : > { %2514 = vst.msk [vmem:[%s4191_s25] sm:$0xf] %vm2513_vm6, %v2481_v40  ;;  %v2009_v28 = vadd.f32 %v1935_v45, %v1883_v36  ;;  %2990 = vmatmul.msk.bf16.gmra.mxu0 %vm426_vm1, %v3857_v50 }
 0x204   : > { %v2072_v60 = vld [vmem:[#allocation2 + $0x18] sm:$0xff]  ;;  %1852 = vst.msk [vmem:[#allocation2 + $0x28] sm:$0xff] %vm426_vm1, %v1820_v58 }
 0x205   : > { %v2198_v59 = vadd.f32 %v2122_v9, %v2072_v60  ;;  %2041 = vst.msk [vmem:[#allocation2 + $0x20] sm:$0xff] %vm426_vm1, %v2009_v28 }
 0x206   : > { %v2261_v16 = vld [vmem:[#allocation2 + $0x10] sm:$0xff] }
 0x207   : > { %v1937_v56 = vpop.f32.mrf.mxu2  ;;  %2230 = vst.msk [vmem:[#allocation2 + $0x18] sm:$0xff] %vm426_vm1, %v2198_v59  ;;  %v2387_v62 = vadd.f32 %v2310_v13, %v2261_v16 }
 0x208   : > { %v2127_v22 = vpop.f32.mrf.mxu3  ;;  %v4205_v57 = vld [vmem:[#allocation2 + $0x8] sm:$0xff]  ;;  %v1750_v10 = vpop.f32.mrf.mxu1 }
 0x209   : > { %v2482_v53 = vpack.c.bf16 %v4205_v57, %v4205_v57  ;;  %2419 = vst.msk [vmem:[#allocation2 + $0x10] sm:$0xff] %vm426_vm1, %v2387_v62  ;;  %v1821_v6 = vadd.f32 %v1750_v10, %v1691_v21  ;;  %v2317_v33 = vpop.f32.mrf.mxu0 }
 0x20b   : > { %2515 = vst.msk [vmem:[%s4191_s25 + $0x4] sm:$0xf] %vm2513_vm6, %v2482_v53  ;;  %v1884_v54 = vld [vmem:[#allocation2 + $0x28] sm:$0xff]  ;;  %2942 = vmatmul.msk.bf16.gmra.mxu1 %vm426_vm1, %v3857_v50  ;;  %v1695_v53 = vld [vmem:[#allocation2 + $0x50] sm:$0xff] }
 0x20c   : > { %2959 = vmatmul.msk.bf16.gmra.mxu2 %vm426_vm1, %v3888_v15  ;;  %v2073_v5 = vld [vmem:[#allocation2 + $0x20] sm:$0xff]  ;;  %v2010_v38 = vadd.f32 %v1937_v56, %v1884_v54  ;;  %1853 = vst.msk [vmem:[#allocation2 + $0x30] sm:$0xff] %vm426_vm1, %v1821_v6  ;;  %v1692_v15 = vld [vmem:[#allocation2 + $0x38] sm:$0xff] }
 0x20d   : > { %2975 = vmatmul.msk.bf16.gmra.mxu3 %vm426_vm1, %v3228_v48  ;;  %v2199_v41 = vadd.f32 %v2125_v55, %v2073_v5 }
 0x20e   : > { %2042 = vst.msk [vmem:[#allocation2 + $0x28] sm:$0xff] %vm426_vm1, %v2010_v38  ;;  %v2262_v39 = vld [vmem:[#allocation2 + $0x18] sm:$0xff] }
 0x20f   : > { %v1940_v14 = vpop.f32.mrf.mxu2  ;;  %2231 = vst.msk [vmem:[#allocation2 + $0x20] sm:$0xff] %vm426_vm1, %v2199_v41  ;;  %v2388_v32 = vadd.f32 %v2312_v44, %v2262_v39 }
 0x210   : > { %v2130_v50 = vpop.f32.mrf.mxu3  ;;  %v4221_v46 = vld [vmem:[#allocation2 + $0x10] sm:$0xff]  ;;  %v1752_v24 = vpop.f32.mrf.mxu1 }
 0x211   : > { %v2483_v13 = vpack.c.bf16 %v4221_v46, %v4221_v46  ;;  %2420 = vst.msk [vmem:[#allocation2 + $0x18] sm:$0xff] %vm426_vm1, %v2388_v32  ;;  %v1822_v27 = vadd.f32 %v1752_v24, %v1692_v15  ;;  %v2320_v48 = vpop.f32.mrf.mxu0 }
 0x213   : > { %2516 = vst.msk [vmem:[%s4191_s25 + $0x8] sm:$0xf] %vm2513_vm6, %v2483_v13  ;;  %v1885_v23 = vld [vmem:[#allocation2 + $0x30] sm:$0xff]  ;;  %2991 = vmatmul.msk.bf16.gmra.mxu0 %vm426_vm1, %v3900_v63  ;;  %v1696_v13 = vld [vmem:[#allocation2 + $0x58] sm:$0xff] }
 0x214   : > { %v2011_v7 = vadd.f32 %v1940_v14, %v1885_v23  ;;  %1854 = vst.msk [vmem:[#allocation2 + $0x38] sm:$0xff] %vm426_vm1, %v1822_v27 }
 0x215   : > { %v2074_v30 = vld [vmem:[#allocation2 + $0x28] sm:$0xff] }
 0x216   : > { %v2200_v17 = vadd.f32 %v2127_v22, %v2074_v30  ;;  %2043 = vst.msk [vmem:[#allocation2 + $0x30] sm:$0xff] %vm426_vm1, %v2011_v7  ;;  %v2263_v3 = vld [vmem:[#allocation2 + $0x20] sm:$0xff] }
 0x217   : > { %v1942_v9 = vpop.f32.mrf.mxu2  ;;  %v2389_v26 = vadd.f32 %v2315_v52, %v2263_v3 }
 0x218   : > { %v2132_v43 = vpop.f32.mrf.mxu3  ;;  %v4232_v0 = vld [vmem:[#allocation2 + $0x18] sm:$0xff]  ;;  %2232 = vst.msk [vmem:[#allocation2 + $0x28] sm:$0xff] %vm426_vm1, %v2200_v17  ;;  %v1755_v44 = vpop.f32.mrf.mxu1 }
 0x219   : > { %v2484_v8 = vpack.c.bf16 %v4232_v0, %v4232_v0  ;;  %2421 = vst.msk [vmem:[#allocation2 + $0x20] sm:$0xff] %vm426_vm1, %v2389_v26  ;;  %v1823_v2 = vadd.f32 %v1755_v44, %v1693_v19  ;;  %v2322_v1 = vpop.f32.mrf.mxu0  ;;  %v1697_v44 = vld [vmem:[#allocation2 + $0x60] sm:$0xff] }
 0x21b   : > { %2517 = vst.msk [vmem:[%s4191_s25 + $0xc] sm:$0xf] %vm2513_vm6, %v2484_v8  ;;  %v1886_v18 = vld [vmem:[#allocation2 + $0x38] sm:$0xff]  ;;  %2943 = vmatmul.msk.bf16.gmra.mxu1 %vm426_vm1, %v3900_v63 }
 0x21c   : > { %2960 = vmatmul.msk.bf16.gmra.mxu2 %vm426_vm1, %v3931_v25  ;;  %v2012_v45 = vadd.f32 %v1942_v9, %v1886_v18  ;;  %1855 = vst.msk [vmem:[#allocation2 + $0x40] sm:$0xff] %vm426_vm1, %v1823_v2  ;;  %v1694_v25 = vld [vmem:[#allocation2 + $0x48] sm:$0xff]  ;;  %v1680_v18 = vrot.slane %v3403_v35, 1  ;;  %v4753_v35 = vld [vmem:[#allocation5_spill] sm:$0xff] }
 0x21d   : > { %2976 = vmatmul.msk.bf16.gmra.mxu3 %vm426_vm1, %v3290_v31  ;;  %v2075_v37 = vld [vmem:[#allocation2 + $0x30] sm:$0xff] }
 0x21e   : > { %v2201_v55 = vadd.f32 %v2130_v50, %v2075_v37  ;;  %2044 = vst.msk [vmem:[#allocation2 + $0x38] sm:$0xff] %vm426_vm1, %v2012_v45 }
 0x21f   : > { %v1945_v47 = vpop.f32.mrf.mxu2  ;;  %v2264_v51 = vld [vmem:[#allocation2 + $0x28] sm:$0xff] }
 0x220   : > { %v2135_v40 = vpop.f32.mrf.mxu3  ;;  %v4248_v58 = vld [vmem:[#allocation2 + $0x20] sm:$0xff]  ;;  %2233 = vst.msk [vmem:[#allocation2 + $0x30] sm:$0xff] %vm426_vm1, %v2201_v55  ;;  %v2390_v63 = vadd.f32 %v2317_v33, %v2264_v51  ;;  %v1757_v36 = vpop.f32.mrf.mxu1 }
 0x221   : > { %v2485_v52 = vpack.c.bf16 %v4248_v58, %v4248_v58  ;;  %v1824_v28 = vadd.f32 %v1757_v36, %v1694_v25  ;;  %v2325_v31 = vpop.f32.mrf.mxu0 }
 0x222   : > { %2422 = vst.msk [vmem:[#allocation2 + $0x28] sm:$0xff] %vm426_vm1, %v2390_v63  ;;  %v4754_v63 = vld [vmem:[#allocation4_spill] sm:$0xff] }
 0x223   : > { %2518 = vst.msk [vmem:[%s4191_s25 + $0x10] sm:$0xf] %vm2513_vm6, %v2485_v52  ;;  %v1887_v60 = vld [vmem:[#allocation2 + $0x40] sm:$0xff]  ;;  %2992 = vmatmul.msk.bf16.gmra.mxu0 %vm426_vm1, %v3943_v12  ;;  %v4755_v25 = vrot.slane %v4754_v63, 1 }
 0x224   : > { %v2013_v59 = vadd.f32 %v1945_v47, %v1887_v60  ;;  %1856 = vst.msk [vmem:[#allocation2 + $0x48] sm:$0xff] %vm426_vm1, %v1824_v28 }
 0x225   : > { %v2076_v16 = vld [vmem:[#allocation2 + $0x38] sm:$0xff]  ;;  %v1682_v36 = vsel %vm1168_vm4, %v1680_v18, %v4755_v25 }
 0x226   : > { %v2202_v56 = vadd.f32 %v2132_v43, %v2076_v16  ;;  %2045 = vst.msk [vmem:[#allocation2 + $0x40] sm:$0xff] %vm426_vm1, %v2013_v59  ;;  %v4756_v59 = vrot.slane %v3401_v34, 1 }
 0x227   : > { %v1947_v62 = vpop.f32.mrf.mxu2  ;;  %v2265_v22 = vld [vmem:[#allocation2 + $0x30] sm:$0xff] }
 0x228   : > { %v2137_v21 = vpop.f32.mrf.mxu3  ;;  %2234 = vst.msk [vmem:[#allocation2 + $0x38] sm:$0xff] %vm426_vm1, %v2202_v56  ;;  %v2391_v10 = vadd.f32 %v2320_v48, %v2265_v22  ;;  %v1760_v6 = vpop.f32.mrf.mxu1  ;;  %v1681_v16 = vsel %vm1168_vm4, %v4756_v59, %v1680_v18  ;;  %v1684_v56 = vsel %vm1200_vm5, %v1682_v36, 0.0 }
 0x229   : > { %v4261_v33 = vld [vmem:[#allocation2 + $0x28] sm:$0xff]  ;;  %v1825_v54 = vadd.f32 %v1760_v6, %v1695_v53  ;;  %v2327_v38 = vpop.f32.mrf.mxu0  ;;  %v1717_v34 = vpack.c.bf16 %v1684_v56, %v1681_v16 }
 0x22a   : > { %v2486_v5 = vpack.c.bf16 %v4261_v33, %v4261_v33  ;;  %2423 = vst.msk [vmem:[#allocation2 + $0x30] sm:$0xff] %vm426_vm1, %v2391_v10 }
 0x22b   : > { %v1888_v41 = vld [vmem:[#allocation2 + $0x48] sm:$0xff]  ;;  %1857 = vst.msk [vmem:[#allocation2 + $0x50] sm:$0xff] %vm426_vm1, %v1825_v54  ;;  %2944 = vmatmul.msk.bf16.gmra.mxu1 %vm426_vm1, %v3943_v12 }
 0x22c   : > { %2961 = vmatmul.msk.bf16.gmra.mxu2 %vm426_vm1, %v3974_v11  ;;  %2519 = vst.msk [vmem:[%s4191_s25 + $0x14] sm:$0xf] %vm2513_vm6, %v2486_v5  ;;  %v2014_v39 = vadd.f32 %v1947_v62, %v1888_v41 }
 0x22d   : > { %2977 = vmatmul.msk.bf16.gmra.mxu3 %vm426_vm1, %v3350_v29  ;;  %v2077_v14 = vld [vmem:[#allocation2 + $0x40] sm:$0xff] }
 0x22e   : > { %v2203_v32 = vadd.f32 %v2135_v40, %v2077_v14  ;;  %2046 = vst.msk [vmem:[#allocation2 + $0x48] sm:$0xff] %vm426_vm1, %v2014_v39  ;;  %v1699_v39 = vld [vmem:[#allocation2 + $0x70] sm:$0xff] }
 0x22f   : > { %v1950_v50 = vpop.f32.mrf.mxu2  ;;  %v2266_v15 = vld [vmem:[#allocation2 + $0x38] sm:$0xff] }
 0x230   : > { %v2140_v24 = vpop.f32.mrf.mxu3  ;;  %2235 = vst.msk [vmem:[#allocation2 + $0x40] sm:$0xff] %vm426_vm1, %v2203_v32  ;;  %v2392_v12 = vadd.f32 %v2322_v1, %v2266_v15  ;;  %v1762_v27 = vpop.f32.mrf.mxu1 }
 0x231   : > { %v4277_v11 = vld [vmem:[#allocation2 + $0x30] sm:$0xff]  ;;  %v1826_v48 = vadd.f32 %v1762_v27, %v1696_v13  ;;  %v2330_v7 = vpop.f32.mrf.mxu0  ;;  %v4757_v27 = vmov 0.0|0.0  }
 0x232   : > { %v2487_v23 = vpack.c.bf16 %v4277_v11, %v4277_v11  ;;  %2424 = vst.msk [vmem:[#allocation2 + $0x38] sm:$0xff] %vm426_vm1, %v2392_v12  ;;  %v1889_v29 = vld [vmem:[#allocation2 + $0x50] sm:$0xff] }
 0x233   : > { %v2015_v30 = vadd.f32 %v1950_v50, %v1889_v29  ;;  %1858 = vst.msk [vmem:[#allocation2 + $0x58] sm:$0xff] %vm426_vm1, %v1826_v48  ;;  %2993 = vmatmul.msk.bf16.gmra.mxu0 %vm426_vm1, %v3987_v4 }
 0x234   : > { %2520 = vst.msk [vmem:[%s4191_s25 + $0x18] sm:$0xf] %vm2513_vm6, %v2487_v23 }
 0x235   : > { %v2078_v17 = vld [vmem:[#allocation2 + $0x48] sm:$0xff]  ;;  %2047 = vst.msk [vmem:[#allocation2 + $0x50] sm:$0xff] %vm426_vm1, %v2015_v30 }
 0x236   : > { %v2204_v3 = vadd.f32 %v2137_v21, %v2078_v17 }
 0x237   : > { %v1952_v9 = vpop.f32.mrf.mxu2  ;;  %v2267_v26 = vld [vmem:[#allocation2 + $0x40] sm:$0xff] }
 0x238   : > { %v2142_v43 = vpop.f32.mrf.mxu3  ;;  %2236 = vst.msk [vmem:[#allocation2 + $0x48] sm:$0xff] %vm426_vm1, %v2204_v3  ;;  %v2393_v19 = vadd.f32 %v2325_v31, %v2267_v26  ;;  %v1765_v8 = vpop.f32.mrf.mxu1  ;;  %v1698_v31 = vld [vmem:[#allocation2 + $0x68] sm:$0xff] }
 0x239   : > { %v4289_v2 = vld [vmem:[#allocation2 + $0x38] sm:$0xff]  ;;  %v1827_v1 = vadd.f32 %v1765_v8, %v1697_v44  ;;  %v2332_v55 = vpop.f32.mrf.mxu0 }
 0x23a   : > { %v2488_v45 = vpack.c.bf16 %v4289_v2, %v4289_v2  ;;  %2425 = vst.msk [vmem:[#allocation2 + $0x40] sm:$0xff] %vm426_vm1, %v2393_v19  ;;  %v1890_v37 = vld [vmem:[#allocation2 + $0x58] sm:$0xff] }
 0x23b   : > { %v2016_v47 = vadd.f32 %v1952_v9, %v1890_v37  ;;  %1859 = vst.msk [vmem:[#allocation2 + $0x60] sm:$0xff] %vm426_vm1, %v1827_v1  ;;  %2945 = vmatmul.msk.bf16.gmra.mxu1 %vm426_vm1, %v3987_v4  ;;  %v1700_v9 = vld [vmem:[#allocation2 + $0x78] sm:$0xff] }
 0x23c   : > { %2962 = vmatmul.msk.bf16.gmra.mxu2 %vm426_vm1, %v4009_v42  ;;  %2521 = vst.msk [vmem:[%s4191_s25 + $0x1c] sm:$0xf] %vm2513_vm6, %v2488_v45  ;;  %v2079_v51 = vld [vmem:[#allocation2 + $0x50] sm:$0xff] }
 0x23d   : > { %2978 = vmatmul.msk.bf16.gmra.mxu3 %vm426_vm1, %v4753_v35  ;;  %v2205_v40 = vadd.f32 %v2140_v24, %v2079_v51  ;;  %2048 = vst.msk [vmem:[#allocation2 + $0x58] sm:$0xff] %vm426_vm1, %v2016_v47 }
 0x23f   : > { %v1955_v52 = vpop.f32.mrf.mxu2  ;;  %2237 = vst.msk [vmem:[#allocation2 + $0x50] sm:$0xff] %vm426_vm1, %v2205_v40  ;;  %v2268_v4 = vld [vmem:[#allocation2 + $0x48] sm:$0xff]  ;;  %v1701_v40 = vld [vmem:[#allocation2 + $0x80] sm:$0xff] }
 0x240   : > { %v2145_v42 = vpop.f32.mrf.mxu3  ;;  %v2394_v28 = vadd.f32 %v2327_v38, %v2268_v4  ;;  %v1767_v60 = vpop.f32.mrf.mxu1 }
 0x241   : > { %v4316_v62 = vld [vmem:[#allocation2 + $0x40] sm:$0xff]  ;;  %v1828_v22 = vadd.f32 %v1767_v60, %v1698_v31  ;;  %v2335_v53 = vpop.f32.mrf.mxu0 }
 0x242   : > { %v2489_v21 = vpack.c.bf16 %v4316_v62, %v4316_v62  ;;  %2426 = vst.msk [vmem:[#allocation2 + $0x48] sm:$0xff] %vm426_vm1, %v2394_v28  ;;  %v1891_v10 = vld [vmem:[#allocation2 + $0x60] sm:$0xff] }
 0x243   : > { %v2017_v6 = vadd.f32 %v1955_v52, %v1891_v10  ;;  %1860 = vst.msk [vmem:[#allocation2 + $0x68] sm:$0xff] %vm426_vm1, %v1828_v22  ;;  %2994 = vmatmul.msk.bf16.gmra.mxu0 %vm426_vm1, %v1717_v34 }
 0x244   : > { %2522 = vst.msk [vmem:[%s4191_s25 + $0x20] sm:$0xf] %vm2513_vm6, %v2489_v21  ;;  %v2080_v61 = vld [vmem:[#allocation2 + $0x58] sm:$0xff]  ;;  %v1702_v21 = vld [vmem:[#allocation2 + $0x88] sm:$0xff] }
 0x245   : > { %v2206_v54 = vadd.f32 %v2142_v43, %v2080_v61  ;;  %2049 = vst.msk [vmem:[#allocation2 + $0x60] sm:$0xff] %vm426_vm1, %v2017_v6 }
 0x246   : > { %v2269_v20 = vld [vmem:[#allocation2 + $0x50] sm:$0xff] }
 0x247   : > { %v1957_v5 = vpop.f32.mrf.mxu2  ;;  %2238 = vst.msk [vmem:[#allocation2 + $0x58] sm:$0xff] %vm426_vm1, %v2206_v54  ;;  %v2395_v38 = vadd.f32 %v2330_v7, %v2269_v20 }
 0x248   : > { %v2147_v41 = vpop.f32.mrf.mxu3  ;;  %v1770_v14 = vpop.f32.mrf.mxu1 }
 0x249   : > { %v4327_v32 = vld [vmem:[#allocation2 + $0x48] sm:$0xff]  ;;  %2427 = vst.msk [vmem:[#allocation2 + $0x50] sm:$0xff] %vm426_vm1, %v2395_v38  ;;  %v1829_v50 = vadd.f32 %v1770_v14, %v1699_v39  ;;  %v2337_v12 = vpop.f32.mrf.mxu0 }
 0x24a   : > { %v2490_v15 = vpack.c.bf16 %v4327_v32, %v4327_v32  ;;  %v1892_v24 = vld [vmem:[#allocation2 + $0x68] sm:$0xff] }
 0x24b   : > { %v2018_v13 = vadd.f32 %v1957_v5, %v1892_v24  ;;  %1861 = vst.msk [vmem:[#allocation2 + $0x70] sm:$0xff] %vm426_vm1, %v1829_v50  ;;  %2946 = vmatmul.msk.bf16.gmra.mxu1 %vm426_vm1, %v1717_v34 }
 0x24c   : > { %1999 = vmatmul.bf16.gmra.mxu2 %v4757_v27  ;;  %2523 = vst.msk [vmem:[%s4191_s25 + $0x24] sm:$0xf] %vm2513_vm6, %v2490_v15  ;;  %v2081_v48 = vld [vmem:[#allocation2 + $0x60] sm:$0xff]  ;;  %v1703_v15 = vld [vmem:[#allocation2 + $0x90] sm:$0xff] }
 0x24d   : > { %2189 = vmatmul.bf16.gmra.mxu3 %v4757_v27  ;;  %v2207_v23 = vadd.f32 %v2145_v42, %v2081_v48  ;;  %2050 = vst.msk [vmem:[#allocation2 + $0x68] sm:$0xff] %vm426_vm1, %v2018_v13 }
 0x24e   : > { %v2270_v29 = vld [vmem:[#allocation2 + $0x58] sm:$0xff] }
 0x24f   : > { %v1960_v7 = vpop.f32.mrf.mxu2  ;;  %2239 = vst.msk [vmem:[#allocation2 + $0x60] sm:$0xff] %vm426_vm1, %v2207_v23  ;;  %v2396_v30 = vadd.f32 %v2332_v55, %v2270_v29 }
 0x250   : > { %v2150_v17 = vpop.f32.mrf.mxu3  ;;  %v4340_v3 = vld [vmem:[#allocation2 + $0x50] sm:$0xff]  ;;  %v1772_v26 = vpop.f32.mrf.mxu1 }
 0x251   : > { %v2491_v43 = vpack.c.bf16 %v4340_v3, %v4340_v3  ;;  %2428 = vst.msk [vmem:[#allocation2 + $0x58] sm:$0xff] %vm426_vm1, %v2396_v30  ;;  %v1830_v19 = vadd.f32 %v1772_v26, %v1700_v9  ;;  %v2340_v8 = vpop.f32.mrf.mxu0 }
 0x252   : > { %v1893_v44 = vld [vmem:[#allocation2 + $0x70] sm:$0xff] }
 0x253   : > { %2524 = vst.msk [vmem:[%s4191_s25 + $0x28] sm:$0xf] %vm2513_vm6, %v2491_v43  ;;  %v2019_v1 = vadd.f32 %v1960_v7, %v1893_v44  ;;  %2379 = vmatmul.bf16.gmra.mxu0 %v4757_v27 }
 0x254   : > { %v2082_v18 = vld [vmem:[#allocation2 + $0x68] sm:$0xff]  ;;  %1862 = vst.msk [vmem:[#allocation2 + $0x78] sm:$0xff] %vm426_vm1, %v1830_v19  ;;  %v1704_v19 = vld [vmem:[#allocation2 + $0x98] sm:$0xff] }
 0x255   : > { %v2208_v45 = vadd.f32 %v2147_v41, %v2082_v18  ;;  %2051 = vst.msk [vmem:[#allocation2 + $0x70] sm:$0xff] %vm426_vm1, %v2019_v1 }
 0x256   : > { %v2271_v37 = vld [vmem:[#allocation2 + $0x60] sm:$0xff] }
 0x257   : > { %v1962_v55 = vpop.f32.mrf.mxu2  ;;  %2240 = vst.msk [vmem:[#allocation2 + $0x68] sm:$0xff] %vm426_vm1, %v2208_v45  ;;  %v2397_v47 = vadd.f32 %v2335_v53, %v2271_v37 }
 0x258   : > { %v2152_v51 = vpop.f32.mrf.mxu3  ;;  %v4351_v35 = vld [vmem:[#allocation2 + $0x58] sm:$0xff]  ;;  %v1775_v63 = vpop.f32.mrf.mxu1 }
 0x259   : > { %v2492_v25 = vpack.c.bf16 %v4351_v35, %v4351_v35  ;;  %2429 = vst.msk [vmem:[#allocation2 + $0x60] sm:$0xff] %vm426_vm1, %v2397_v47  ;;  %v1831_v36 = vadd.f32 %v1775_v63, %v1701_v40  ;;  %v2342_v52 = vpop.f32.mrf.mxu0 }
 0x25b   : > { %2525 = vst.msk [vmem:[%s4191_s25 + $0x2c] sm:$0xf] %vm2513_vm6, %v2492_v25  ;;  %v1894_v4 = vld [vmem:[#allocation2 + $0x78] sm:$0xff] }
 0x25c   : > { %v2083_v42 = vld [vmem:[#allocation2 + $0x70] sm:$0xff]  ;;  %v2020_v28 = vadd.f32 %v1962_v55, %v1894_v4  ;;  %1863 = vst.msk [vmem:[#allocation2 + $0x80] sm:$0xff] %vm426_vm1, %v1831_v36  ;;  %v1705_v36 = vld [vmem:[#allocation2 + $0xa0] sm:$0xff] }
 0x25d   : > { %v2209_v31 = vadd.f32 %v2150_v17, %v2083_v42 }
 0x25e   : > { %2052 = vst.msk [vmem:[#allocation2 + $0x78] sm:$0xff] %vm426_vm1, %v2020_v28  ;;  %v2272_v60 = vld [vmem:[#allocation2 + $0x68] sm:$0xff] }
 0x25f   : > { %v1965_v59 = vpop.f32.mrf.mxu2  ;;  %2241 = vst.msk [vmem:[#allocation2 + $0x70] sm:$0xff] %vm426_vm1, %v2209_v31  ;;  %v2398_v16 = vadd.f32 %v2337_v12, %v2272_v60 }
 0x260   : > { %v2155_v56 = vpop.f32.mrf.mxu3  ;;  %v4361_v22 = vld [vmem:[#allocation2 + $0x60] sm:$0xff]  ;;  %v1777_v10 = vpop.f32.mrf.mxu1 }
 0x261   : > { %v2493_v53 = vpack.c.bf16 %v4361_v22, %v4361_v22  ;;  %2430 = vst.msk [vmem:[#allocation2 + $0x68] sm:$0xff] %vm426_vm1, %v2398_v16  ;;  %v1832_v6 = vadd.f32 %v1777_v10, %v1702_v21  ;;  %v2345_v34 = vpop.f32.mrf.mxu0 }
 0x263   : > { %2526 = vst.msk [vmem:[%s4191_s25 + $0x30] sm:$0xf] %vm2513_vm6, %v2493_v53  ;;  %v1895_v61 = vld [vmem:[#allocation2 + $0x80] sm:$0xff] }
 0x264   : > { %v2021_v54 = vadd.f32 %v1965_v59, %v1895_v61  ;;  %1864 = vst.msk [vmem:[#allocation2 + $0x88] sm:$0xff] %vm426_vm1, %v1832_v6 }
 0x265   : > { %v2084_v20 = vld [vmem:[#allocation2 + $0x78] sm:$0xff] }
 0x266   : > { %v2210_v5 = vadd.f32 %v2152_v51, %v2084_v20  ;;  %2053 = vst.msk [vmem:[#allocation2 + $0x80] sm:$0xff] %vm426_vm1, %v2021_v54  ;;  %v2273_v38 = vld [vmem:[#allocation2 + $0x70] sm:$0xff] }
 0x267   : > { %v1967_v41 = vpop.f32.mrf.mxu2  ;;  %v2399_v39 = vadd.f32 %v2340_v8, %v2273_v38 }
 0x268   : > { %v2157_v14 = vpop.f32.mrf.mxu3  ;;  %v4370_v50 = vld [vmem:[#allocation2 + $0x68] sm:$0xff]  ;;  %2242 = vst.msk [vmem:[#allocation2 + $0x78] sm:$0xff] %vm426_vm1, %v2210_v5  ;;  %v1780_v24 = vpop.f32.mrf.mxu1 }
 0x269   : > { %v2494_v12 = vpack.c.bf16 %v4370_v50, %v4370_v50  ;;  %2431 = vst.msk [vmem:[#allocation2 + $0x70] sm:$0xff] %vm426_vm1, %v2399_v39  ;;  %v1833_v13 = vadd.f32 %v1780_v24, %v1703_v15  ;;  %v2347_v27 = vpop.f32.mrf.mxu0 }
 0x26b   : > { %2527 = vst.msk [vmem:[%s4191_s25 + $0x34] sm:$0xf] %vm2513_vm6, %v2494_v12  ;;  %v1896_v48 = vld [vmem:[#allocation2 + $0x88] sm:$0xff] }
 0x26c   : > { %v2022_v23 = vadd.f32 %v1967_v41, %v1896_v48  ;;  %1865 = vst.msk [vmem:[#allocation2 + $0x90] sm:$0xff] %vm426_vm1, %v1833_v13  ;;  %v1707_v48 = vld [vmem:[#allocation2 + $0xb0] sm:$0xff] }
 0x26d   : > { %v2085_v29 = vld [vmem:[#allocation2 + $0x80] sm:$0xff] }
 0x26e   : > { %v2211_v7 = vadd.f32 %v2155_v56, %v2085_v29  ;;  %2054 = vst.msk [vmem:[#allocation2 + $0x88] sm:$0xff] %vm426_vm1, %v2022_v23 }
 0x26f   : > { %v1970_v30 = vpop.f32.mrf.mxu2  ;;  %v2274_v17 = vld [vmem:[#allocation2 + $0x78] sm:$0xff] }
 0x270   : > { %v2160_v9 = vpop.f32.mrf.mxu3  ;;  %v4380_v26 = vld [vmem:[#allocation2 + $0x70] sm:$0xff]  ;;  %2243 = vst.msk [vmem:[#allocation2 + $0x80] sm:$0xff] %vm426_vm1, %v2211_v7  ;;  %v2400_v43 = vadd.f32 %v2342_v52, %v2274_v17  ;;  %v1782_v44 = vpop.f32.mrf.mxu1 }
 0x271   : > { %v2495_v8 = vpack.c.bf16 %v4380_v26, %v4380_v26  ;;  %v1834_v1 = vadd.f32 %v1782_v44, %v1704_v19  ;;  %v2350_v18 = vpop.f32.mrf.mxu0 }
 0x272   : > { %2432 = vst.msk [vmem:[#allocation2 + $0x78] sm:$0xff] %vm426_vm1, %v2400_v43 }
 0x273   : > { %2528 = vst.msk [vmem:[%s4191_s25 + $0x38] sm:$0xf] %vm2513_vm6, %v2495_v8  ;;  %v1897_v45 = vld [vmem:[#allocation2 + $0x90] sm:$0xff] }
 0x274   : > { %v2023_v37 = vadd.f32 %v1970_v30, %v1897_v45  ;;  %1866 = vst.msk [vmem:[#allocation2 + $0x98] sm:$0xff] %vm426_vm1, %v1834_v1 }
 0x275   : > { %v2086_v55 = vld [vmem:[#allocation2 + $0x88] sm:$0xff] }
 0x276   : > { %v2212_v47 = vadd.f32 %v2157_v14, %v2086_v55  ;;  %2055 = vst.msk [vmem:[#allocation2 + $0x90] sm:$0xff] %vm426_vm1, %v2023_v37  ;;  %v1708_v37 = vld [vmem:[#allocation2 + $0xb8] sm:$0xff] }
 0x277   : > { %v1972_v51 = vpop.f32.mrf.mxu2  ;;  %v2275_v40 = vld [vmem:[#allocation2 + $0x80] sm:$0xff] }
 0x278   : > { %v2162_v63 = vpop.f32.mrf.mxu3  ;;  %2244 = vst.msk [vmem:[#allocation2 + $0x88] sm:$0xff] %vm426_vm1, %v2212_v47  ;;  %v2401_v25 = vadd.f32 %v2345_v34, %v2275_v40  ;;  %v1785_v52 = vpop.f32.mrf.mxu1  ;;  %v1706_v34 = vld [vmem:[#allocation2 + $0xa8] sm:$0xff] }
 0x279   : > { %v4391_v4 = vld [vmem:[#allocation2 + $0x78] sm:$0xff]  ;;  %v1835_v42 = vadd.f32 %v1785_v52, %v1705_v36  ;;  %v2352_v31 = vpop.f32.mrf.mxu0 }
 0x27a   : > { %v2496_v28 = vpack.c.bf16 %v4391_v4, %v4391_v4  ;;  %2433 = vst.msk [vmem:[#allocation2 + $0x80] sm:$0xff] %vm426_vm1, %v2401_v25 }
 0x27b   : > { %v1898_v60 = vld [vmem:[#allocation2 + $0x98] sm:$0xff]  ;;  %1867 = vst.msk [vmem:[#allocation2 + $0xa0] sm:$0xff] %vm426_vm1, %v1835_v42 }
 0x27c   : > { %2529 = vst.msk [vmem:[%s4191_s25 + $0x3c] sm:$0xf] %vm2513_vm6, %v2496_v28  ;;  %v2024_v59 = vadd.f32 %v1972_v51, %v1898_v60 }
 0x27d   : > { %v2087_v16 = vld [vmem:[#allocation2 + $0x90] sm:$0xff] }
 0x27e   : > { %v2213_v56 = vadd.f32 %v2160_v9, %v2087_v16  ;;  %2056 = vst.msk [vmem:[#allocation2 + $0x98] sm:$0xff] %vm426_vm1, %v2024_v59  ;;  %v1709_v16 = vld [vmem:[#allocation2 + $0xc0] sm:$0xff] }
 0x27f   : > { %v1975_v21 = vpop.f32.mrf.mxu2  ;;  %v2276_v10 = vld [vmem:[#allocation2 + $0x88] sm:$0xff] }
 0x280   : > { %v2165_v53 = vpop.f32.mrf.mxu3  ;;  %2245 = vst.msk [vmem:[#allocation2 + $0x90] sm:$0xff] %vm426_vm1, %v2213_v56  ;;  %v2402_v6 = vadd.f32 %v2347_v27, %v2276_v10  ;;  %v1787_v61 = vpop.f32.mrf.mxu1 }
 0x281   : > { %v4401_v54 = vld [vmem:[#allocation2 + $0x80] sm:$0xff]  ;;  %v1836_v20 = vadd.f32 %v1787_v61, %v1706_v34  ;;  %v2355_v41 = vpop.f32.mrf.mxu0 }
 0x282   : > { %v2497_v5 = vpack.c.bf16 %v4401_v54, %v4401_v54  ;;  %2434 = vst.msk [vmem:[#allocation2 + $0x88] sm:$0xff] %vm426_vm1, %v2402_v6  ;;  %v1899_v38 = vld [vmem:[#allocation2 + $0xa0] sm:$0xff] }
 0x283   : > { %v2025_v39 = vadd.f32 %v1975_v21, %v1899_v38  ;;  %1868 = vst.msk [vmem:[#allocation2 + $0xa8] sm:$0xff] %vm426_vm1, %v1836_v20 }
 0x284   : > { %2530 = vst.msk [vmem:[%s4191_s25 + $0x40] sm:$0xf] %vm2513_vm6, %v2497_v5 }
 0x285   : > { %v2088_v14 = vld [vmem:[#allocation2 + $0x98] sm:$0xff]  ;;  %2057 = vst.msk [vmem:[#allocation2 + $0xa0] sm:$0xff] %vm426_vm1, %v2025_v39 }
 0x286   : > { %v2214_v15 = vadd.f32 %v2162_v63, %v2088_v14 }
 0x287   : > { %v1977_v24 = vpop.f32.mrf.mxu2  ;;  %v2277_v12 = vld [vmem:[#allocation2 + $0x90] sm:$0xff] }
 0x288   : > { %v2167_v13 = vpop.f32.mrf.mxu3  ;;  %2246 = vst.msk [vmem:[#allocation2 + $0x98] sm:$0xff] %vm426_vm1, %v2214_v15  ;;  %v2403_v27 = vadd.f32 %v2350_v18, %v2277_v12  ;;  %v1790_v23 = vpop.f32.mrf.mxu1 }
 0x289   : > { %v4411_v29 = vld [vmem:[#allocation2 + $0x88] sm:$0xff]  ;;  %v1837_v7 = vadd.f32 %v1790_v23, %v1707_v48  ;;  %v2357_v9 = vpop.f32.mrf.mxu0 }
 0x28a   : > { %v2498_v30 = vpack.c.bf16 %v4411_v29, %v4411_v29  ;;  %2435 = vst.msk [vmem:[#allocation2 + $0x90] sm:$0xff] %vm426_vm1, %v2403_v27  ;;  %v1900_v17 = vld [vmem:[#allocation2 + $0xa8] sm:$0xff] }
 0x28b   : > { %v2026_v43 = vadd.f32 %v1977_v24, %v1900_v17  ;;  %1869 = vst.msk [vmem:[#allocation2 + $0xb0] sm:$0xff] %vm426_vm1, %v1837_v7  ;;  %v1710_v24 = vld [vmem:[#allocation2 + $0xc8] sm:$0xff] }
 0x28c   : > { %2531 = vst.msk [vmem:[%s4191_s25 + $0x44] sm:$0xf] %vm2513_vm6, %v2498_v30  ;;  %v2089_v19 = vld [vmem:[#allocation2 + $0xa0] sm:$0xff] }
 0x28d   : > { %v2215_v44 = vadd.f32 %v2165_v53, %v2089_v19  ;;  %2058 = vst.msk [vmem:[#allocation2 + $0xa8] sm:$0xff] %vm426_vm1, %v2026_v43 }
 0x28f   : > { %v1980_v8 = vpop.f32.mrf.mxu2  ;;  %2247 = vst.msk [vmem:[#allocation2 + $0xa0] sm:$0xff] %vm426_vm1, %v2215_v44  ;;  %v2278_v1 = vld [vmem:[#allocation2 + $0x98] sm:$0xff] }
 0x290   : > { %v2170_v18 = vpop.f32.mrf.mxu3  ;;  %v2404_v45 = vadd.f32 %v2352_v31, %v2278_v1  ;;  %v1792_v55 = vpop.f32.mrf.mxu1  ;;  %v1711_v1 = vld [vmem:[#allocation2 + $0xd0] sm:$0xff] }
 0x291   : > { %v4421_v47 = vld [vmem:[#allocation2 + $0x90] sm:$0xff]  ;;  %v1838_v51 = vadd.f32 %v1792_v55, %v1708_v37  ;;  %v2360_v36 = vpop.f32.mrf.mxu0 }
 0x292   : > { %v2499_v40 = vpack.c.bf16 %v4421_v47, %v4421_v47  ;;  %2436 = vst.msk [vmem:[#allocation2 + $0x98] sm:$0xff] %vm426_vm1, %v2404_v45  ;;  %v1901_v63 = vld [vmem:[#allocation2 + $0xb0] sm:$0xff] }
 0x293   : > { %v2027_v25 = vadd.f32 %v1980_v8, %v1901_v63  ;;  %1870 = vst.msk [vmem:[#allocation2 + $0xb8] sm:$0xff] %vm426_vm1, %v1838_v51 }
 0x294   : > { %2532 = vst.msk [vmem:[%s4191_s25 + $0x48] sm:$0xf] %vm2513_vm6, %v2499_v40  ;;  %v2090_v52 = vld [vmem:[#allocation2 + $0xa8] sm:$0xff] }
 0x295   : > { %v2216_v42 = vadd.f32 %v2167_v13, %v2090_v52  ;;  %2059 = vst.msk [vmem:[#allocation2 + $0xb0] sm:$0xff] %vm426_vm1, %v2027_v25 }
 0x296   : > { %v2279_v28 = vld [vmem:[#allocation2 + $0xa0] sm:$0xff] }
 0x297   : > { %v1982_v31 = vpop.f32.mrf.mxu2  ;;  %2248 = vst.msk [vmem:[#allocation2 + $0xa8] sm:$0xff] %vm426_vm1, %v2216_v42  ;;  %v2405_v60 = vadd.f32 %v2355_v41, %v2279_v28  ;;  %v1712_v28 = vld [vmem:[#allocation2 + $0xd8] sm:$0xff] }
 0x298   : > { %v2172_v59 = vpop.f32.mrf.mxu3  ;;  %v1795_v56 = vpop.f32.mrf.mxu1 }
 0x299   : > { %v4431_v21 = vld [vmem:[#allocation2 + $0x98] sm:$0xff]  ;;  %2437 = vst.msk [vmem:[#allocation2 + $0xa0] sm:$0xff] %vm426_vm1, %v2405_v60  ;;  %v1839_v10 = vadd.f32 %v1795_v56, %v1709_v16  ;;  %v2362_v5 = vpop.f32.mrf.mxu0 }
 0x29a   : > { %v2500_v53 = vpack.c.bf16 %v4431_v21, %v4431_v21  ;;  %v1902_v6 = vld [vmem:[#allocation2 + $0xb8] sm:$0xff] }
 0x29b   : > { %v2028_v34 = vadd.f32 %v1982_v31, %v1902_v6  ;;  %1871 = vst.msk [vmem:[#allocation2 + $0xc0] sm:$0xff] %vm426_vm1, %v1839_v10 }
 0x29c   : > { %2533 = vst.msk [vmem:[%s4191_s25 + $0x4c] sm:$0xf] %vm2513_vm6, %v2500_v53  ;;  %v2091_v61 = vld [vmem:[#allocation2 + $0xb0] sm:$0xff] }
 0x29d   : > { %v2217_v20 = vadd.f32 %v2170_v18, %v2091_v61  ;;  %2060 = vst.msk [vmem:[#allocation2 + $0xb8] sm:$0xff] %vm426_vm1, %v2028_v34 }
 0x29e   : > { %v2280_v38 = vld [vmem:[#allocation2 + $0xa8] sm:$0xff] }
 0x29f   : > { %v1985_v41 = vpop.f32.mrf.mxu2  ;;  %2249 = vst.msk [vmem:[#allocation2 + $0xb0] sm:$0xff] %vm426_vm1, %v2217_v20  ;;  %v2406_v39 = vadd.f32 %v2357_v9, %v2280_v38 }
 0x2a0   : > { %v2175_v14 = vpop.f32.mrf.mxu3  ;;  %v4441_v15 = vld [vmem:[#allocation2 + $0xa0] sm:$0xff]  ;;  %v1797_v12 = vpop.f32.mrf.mxu1 }
 0x2a1   : > { %v2501_v13 = vpack.c.bf16 %v4441_v15, %v4441_v15  ;;  %2438 = vst.msk [vmem:[#allocation2 + $0xa8] sm:$0xff] %vm426_vm1, %v2406_v39  ;;  %v1840_v27 = vadd.f32 %v1797_v12, %v1710_v24  ;;  %v2365_v44 = vpop.f32.mrf.mxu0  ;;  %v2547_v12 = vsel %vm426_vm1, %v4205_v57, 0.0 }
 0x2a2   : > { %v1903_v48 = vld [vmem:[#allocation2 + $0xc0] sm:$0xff] }
 0x2a3   : > { %2534 = vst.msk [vmem:[%s4191_s25 + $0x50] sm:$0xf] %vm2513_vm6, %v2501_v13  ;;  %v2029_v23 = vadd.f32 %v1985_v41, %v1903_v48  ;;  %v1713_v41 = vld [vmem:[#allocation2 + $0xe0] sm:$0xff] }
 0x2a4   : > { %v2092_v7 = vld [vmem:[#allocation2 + $0xb8] sm:$0xff]  ;;  %1872 = vst.msk [vmem:[#allocation2 + $0xc8] sm:$0xff] %vm426_vm1, %v1840_v27 }
 0x2a5   : > { %v2218_v30 = vadd.f32 %v2172_v59, %v2092_v7  ;;  %2061 = vst.msk [vmem:[#allocation2 + $0xc0] sm:$0xff] %vm426_vm1, %v2029_v23  ;;  %v2546_v7 = vsel %vm426_vm1, %v4193_v49, 0.0 }
 0x2a6   : > { %v2281_v17 = vld [vmem:[#allocation2 + $0xb0] sm:$0xff] }
 0x2a7   : > { %v1987_v9 = vpop.f32.mrf.mxu2  ;;  %2250 = vst.msk [vmem:[#allocation2 + $0xb8] sm:$0xff] %vm426_vm1, %v2218_v30  ;;  %v2407_v43 = vadd.f32 %v2360_v36, %v2281_v17  ;;  %v2549_v30 = vsel %vm426_vm1, %v4221_v46, 0.0  ;;  %v2553_v46 = vsel %vm426_vm1, %v4248_v58, 0.0  ;;  %v2557_v58 = vsel %vm426_vm1, %v4277_v11, 0.0 }
 0x2a8   : > { %v2177_v19 = vpop.f32.mrf.mxu3  ;;  %v4451_v8 = vld [vmem:[#allocation2 + $0xa8] sm:$0xff]  ;;  %v1800_v18 = vpop.f32.mrf.mxu1  ;;  %v2561_v11 = vsel %vm426_vm1, %v4316_v62, 0.0 }
 0x2a9   : > { %v2502_v45 = vpack.c.bf16 %v4451_v8, %v4451_v8  ;;  %2439 = vst.msk [vmem:[#allocation2 + $0xb0] sm:$0xff] %vm426_vm1, %v2407_v43  ;;  %v1841_v37 = vadd.f32 %v1800_v18, %v1711_v1  ;;  %v2367_v56 = vpop.f32.mrf.mxu0 }
 0x2ab   : > { %2535 = vst.msk [vmem:[%s4191_s25 + $0x54] sm:$0xf] %vm2513_vm6, %v2502_v45  ;;  %v1904_v55 = vld [vmem:[#allocation2 + $0xc8] sm:$0xff] }
 0x2ac   : > { %v2093_v51 = vld [vmem:[#allocation2 + $0xc0] sm:$0xff]  ;;  %v2030_v40 = vadd.f32 %v1987_v9, %v1904_v55  ;;  %1873 = vst.msk [vmem:[#allocation2 + $0xd0] sm:$0xff] %vm426_vm1, %v1841_v37  ;;  %v2548_v9 = vadd.f32 %v2547_v12, %v2546_v7  ;;  %v1714_v45 = vld [vmem:[#allocation2 + $0xe8] sm:$0xff]  ;;  %v2565_v12 = vsel %vm426_vm1, %v4340_v3, 0.0 }
 0x2ad   : > { %v2219_v63 = vadd.f32 %v2175_v14, %v2093_v51 }
 0x2ae   : > { %2062 = vst.msk [vmem:[#allocation2 + $0xc8] sm:$0xff] %vm426_vm1, %v2030_v40  ;;  %v2282_v25 = vld [vmem:[#allocation2 + $0xb8] sm:$0xff]  ;;  %v2550_v1 = vadd.f32 %v2549_v30, %v2548_v9 }
 0x2af   : > { %v1990_v36 = vpop.f32.mrf.mxu2  ;;  %2251 = vst.msk [vmem:[#allocation2 + $0xc0] sm:$0xff] %vm426_vm1, %v2219_v63  ;;  %v2408_v52 = vadd.f32 %v2362_v5, %v2282_v25 }
 0x2b0   : > { %v4461_v42 = vld [vmem:[#allocation2 + $0xb0] sm:$0xff]  ;;  %v1802_v31 = vpop.f32.mrf.mxu1  ;;  %v2180_v16 = vpop.f32.mrf.mxu3 }
 0x2b1   : > { %v2503_v60 = vpack.c.bf16 %v4461_v42, %v4461_v42  ;;  %2440 = vst.msk [vmem:[#allocation2 + $0xb8] sm:$0xff] %vm426_vm1, %v2408_v52  ;;  %v1842_v59 = vadd.f32 %v1802_v31, %v1712_v28  ;;  %v2370_v48 = vpop.f32.mrf.mxu0 }
 0x2b3   : > { %2536 = vst.msk [vmem:[%s4191_s25 + $0x58] sm:$0xf] %vm2513_vm6, %v2503_v60  ;;  %v1905_v10 = vld [vmem:[#allocation2 + $0xd0] sm:$0xff] }
 0x2b4   : > { %v2031_v53 = vadd.f32 %v1990_v36, %v1905_v10  ;;  %1874 = vst.msk [vmem:[#allocation2 + $0xd8] sm:$0xff] %vm426_vm1, %v1842_v59 }
 0x2b5   : > { %v2094_v6 = vld [vmem:[#allocation2 + $0xc8] sm:$0xff] }
 0x2b6   : > { %v2220_v34 = vadd.f32 %v2177_v19, %v2094_v6  ;;  %2063 = vst.msk [vmem:[#allocation2 + $0xd0] sm:$0xff] %vm426_vm1, %v2031_v53  ;;  %v2283_v61 = vld [vmem:[#allocation2 + $0xc0] sm:$0xff]  ;;  %v2551_v19 = vsel %vm426_vm1, %v4232_v0, 0.0  ;;  %v2555_v0 = vsel %vm426_vm1, %v4261_v33, 0.0  ;;  %v2559_v33 = vsel %vm426_vm1, %v4289_v2, 0.0  ;;  %v1715_v6 = vld [vmem:[#allocation2 + $0xf0] sm:$0xff] }
 0x2b7   : > { %v1992_v20 = vpop.f32.mrf.mxu2  ;;  %v2409_v5 = vadd.f32 %v2365_v44, %v2283_v61  ;;  %v2552_v40 = vadd.f32 %v2551_v19, %v2550_v1  ;;  %v2563_v2 = vsel %vm426_vm1, %v4327_v32, 0.0  ;;  %v1716_v19 = vld [vmem:[#allocation2 + $0xf8] sm:$0xff]  ;;  %v2569_v1 = vsel %vm426_vm1, %v4361_v22, 0.0 }
 0x2b8   : > { %v4470_v38 = vld [vmem:[#allocation2 + $0xb8] sm:$0xff]  ;;  %2252 = vst.msk [vmem:[#allocation2 + $0xc8] sm:$0xff] %vm426_vm1, %v2220_v34  ;;  %v1805_v39 = vpop.f32.mrf.mxu1  ;;  %v2182_v27 = vpop.f32.mrf.mxu3 }
 0x2b9   : > { %v2504_v14 = vpack.c.bf16 %v4470_v38, %v4470_v38  ;;  %2441 = vst.msk [vmem:[#allocation2 + $0xc0] sm:$0xff] %vm426_vm1, %v2409_v5  ;;  %v1843_v24 = vadd.f32 %v1805_v39, %v1713_v41  ;;  %v2554_v25 = vadd.f32 %v2553_v46, %v2552_v40  ;;  %v2372_v31 = vpop.f32.mrf.mxu0 }
 0x2bb   : > { %2537 = vst.msk [vmem:[%s4191_s25 + $0x5c] sm:$0xf] %vm2513_vm6, %v2504_v14  ;;  %v1906_v13 = vld [vmem:[#allocation2 + $0xd8] sm:$0xff]  ;;  %v2556_v60 = vadd.f32 %v2555_v0, %v2554_v25 }
 0x2bc   : > { %v2032_v23 = vadd.f32 %v1992_v20, %v1906_v13  ;;  %1875 = vst.msk [vmem:[#allocation2 + $0xe0] sm:$0xff] %vm426_vm1, %v1843_v24 }
 0x2bd   : > { %v2095_v17 = vld [vmem:[#allocation2 + $0xd0] sm:$0xff]  ;;  %v2558_v10 = vadd.f32 %v2557_v58, %v2556_v60 }
 0x2be   : > { %v2221_v43 = vadd.f32 %v2180_v16, %v2095_v17  ;;  %2064 = vst.msk [vmem:[#allocation2 + $0xd8] sm:$0xff] %vm426_vm1, %v2032_v23  ;;  %v2567_v23 = vsel %vm426_vm1, %v4351_v35, 0.0 }
 0x2bf   : > { %v1995_v57 = vpop.f32.mrf.mxu2  ;;  %v2284_v44 = vld [vmem:[#allocation2 + $0xc8] sm:$0xff]  ;;  %v2560_v5 = vadd.f32 %v2559_v33, %v2558_v10 }
 0x2c0   : > { %v4488_v18 = vld [vmem:[#allocation2 + $0xc0] sm:$0xff]  ;;  %2253 = vst.msk [vmem:[#allocation2 + $0xd0] sm:$0xff] %vm426_vm1, %v2221_v43  ;;  %v2410_v49 = vadd.f32 %v2367_v56, %v2284_v44  ;;  %v1807_v37 = vpop.f32.mrf.mxu1  ;;  %v2185_v28 = vpop.f32.mrf.mxu3 }
 0x2c1   : > { %v2505_v55 = vpack.c.bf16 %v4488_v18, %v4488_v18  ;;  %v1844_v51 = vadd.f32 %v1807_v37, %v1714_v45  ;;  %v2562_v14 = vadd.f32 %v2561_v11, %v2560_v5  ;;  %v2375_v17 = vpop.f32.mrf.mxu0  ;;  %v2579_v11 = vsel %vm426_vm1, %v4411_v29, 0.0 }
 0x2c2   : > { %2442 = vst.msk [vmem:[#allocation2 + $0xc8] sm:$0xff] %vm426_vm1, %v2410_v49 }
 0x2c3   : > { %2538 = vst.msk [vmem:[%s4191_s25 + $0x60] sm:$0xf] %vm2513_vm6, %v2505_v55  ;;  %v1907_v63 = vld [vmem:[#allocation2 + $0xe0] sm:$0xff] }
 0x2c4   : > { %v2033_v36 = vadd.f32 %v1995_v57, %v1907_v63  ;;  %1876 = vst.msk [vmem:[#allocation2 + $0xe8] sm:$0xff] %vm426_vm1, %v1844_v51  ;;  %v2571_v51 = vsel %vm426_vm1, %v4370_v50, 0.0  ;;  %v2573_v63 = vsel %vm426_vm1, %v4380_v26, 0.0 }
 0x2c5   : > { %v2096_v52 = vld [vmem:[#allocation2 + $0xd8] sm:$0xff] }
 0x2c6   : > { %v2222_v59 = vadd.f32 %v2182_v27, %v2096_v52  ;;  %2065 = vst.msk [vmem:[#allocation2 + $0xe0] sm:$0xff] %vm426_vm1, %v2033_v36  ;;  %v2564_v27 = vadd.f32 %v2563_v2, %v2562_v14  ;;  %v2575_v52 = vsel %vm426_vm1, %v4391_v4, 0.0  ;;  %v2581_v2 = vsel %vm426_vm1, %v4421_v47, 0.0 }
 0x2c7   : > { %v1997_v16 = vpop.f32.mrf.mxu2  ;;  %v2285_v56 = vld [vmem:[#allocation2 + $0xd0] sm:$0xff] }
 0x2c8   : > { %2254 = vst.msk [vmem:[#allocation2 + $0xd8] sm:$0xff] %vm426_vm1, %v2222_v59  ;;  %v2411_v53 = vadd.f32 %v2370_v48, %v2285_v56  ;;  %v1810_v34 = vpop.f32.mrf.mxu1  ;;  %v2187_v30 = vpop.f32.mrf.mxu3  ;;  %v2566_v9 = vadd.f32 %v2565_v12, %v2564_v27  ;;  %v2577_v59 = vsel %vm426_vm1, %v4401_v54, 0.0 }
 0x2c9   : > { %v4509_v61 = vld [vmem:[#allocation2 + $0xc8] sm:$0xff]  ;;  %v1845_v20 = vadd.f32 %v1810_v34, %v1715_v6  ;;  %v2377_v33 = vpop.f32.mrf.mxu0 }
 0x2ca   : > { %v2506_v41 = vpack.c.bf16 %v4509_v61, %v4509_v61  ;;  %2443 = vst.msk [vmem:[#allocation2 + $0xd0] sm:$0xff] %vm426_vm1, %v2411_v53  ;;  %v2568_v37 = vadd.f32 %v2567_v23, %v2566_v9 }
 0x2cb   : > { %v1908_v39 = vld [vmem:[#allocation2 + $0xe8] sm:$0xff]  ;;  %1877 = vst.msk [vmem:[#allocation2 + $0xf0] sm:$0xff] %vm426_vm1, %v1845_v20 }
 0x2cc   : > { %2539 = vst.msk [vmem:[%s4191_s25 + $0x64] sm:$0xf] %vm2513_vm6, %v2506_v41  ;;  %v2034_v24 = vadd.f32 %v1997_v16, %v1908_v39  ;;  %v2570_v0 = vadd.f32 %v2569_v1, %v2568_v37 }
 0x2cd   : > { %v2097_v13 = vld [vmem:[#allocation2 + $0xe0] sm:$0xff] }
 0x2ce   : > { %v2223_v48 = vadd.f32 %v2185_v28, %v2097_v13  ;;  %2066 = vst.msk [vmem:[#allocation2 + $0xe8] sm:$0xff] %vm426_vm1, %v2034_v24  ;;  %v2572_v36 = vadd.f32 %v2571_v51, %v2570_v0  ;;  %v2583_v24 = vsel %vm426_vm1, %v4431_v21, 0.0 }
 0x2cf   : > { %v2286_v7 = vld [vmem:[#allocation2 + $0xd8] sm:$0xff]  ;;  %v2000_v57 = vpop.f32.mrf.mxu2 }
 0x2d0   : > { %2255 = vst.msk [vmem:[#allocation2 + $0xe0] sm:$0xff] %vm426_vm1, %v2223_v48  ;;  %v2412_v43 = vadd.f32 %v2372_v31, %v2286_v7  ;;  %v1812_v44 = vpop.f32.mrf.mxu1  ;;  %v2574_v31 = vadd.f32 %v2573_v63, %v2572_v36  ;;  %v2190_v53 = vpop.f32.mrf.mxu3  ;;  %v2585_v48 = vsel %vm426_vm1, %v4441_v15, 0.0  ;;  %v2595_v36 = vsel %vm426_vm1, %v4509_v61, 0.0 }
 0x2d1   : > { %v4527_v49 = vld [vmem:[#allocation2 + $0xd0] sm:$0xff]  ;;  %v1846_v45 = vadd.f32 %v1812_v44, %v1716_v19  ;;  %v2380_v19 = vpop.f32.mrf.mxu0  ;;  %v2589_v44 = vsel %vm426_vm1, %v4461_v42, 0.0 }
 0x2d2   : > { %v2507_v46 = vpack.c.bf16 %v4527_v49, %v4527_v49  ;;  %2444 = vst.msk [vmem:[#allocation2 + $0xd8] sm:$0xff] %vm426_vm1, %v2412_v43  ;;  %v1909_v55 = vld [vmem:[#allocation2 + $0xf0] sm:$0xff]  ;;  %v2576_v56 = vadd.f32 %v2575_v52, %v2574_v31  ;;  %v2597_v52 = vsel %vm426_vm1, %v4527_v49, 0.0 }
 0x2d3   : > { %v2035_v40 = vadd.f32 %v2000_v57, %v1909_v55  ;;  %1878 = vst.msk [vmem:[#allocation2 + $0xf8] sm:$0xff] %vm426_vm1, %v1846_v45 }
 0x2d4   : > { %2540 = vst.msk [vmem:[%s4191_s25 + $0x68] sm:$0xf] %vm2513_vm6, %v2507_v46  ;;  %v2578_v5 = vadd.f32 %v2577_v59, %v2576_v56  ;;  %v2591_v46 = vsel %vm426_vm1, %v4470_v38, 0.0 }
 0x2d5   : > { %v2098_v25 = vld [vmem:[#allocation2 + $0xe8] sm:$0xff]  ;;  %2067 = vst.msk [vmem:[#allocation2 + $0xf0] sm:$0xff] %vm426_vm1, %v2035_v40  ;;  %v2593_v40 = vsel %vm426_vm1, %v4488_v18, 0.0 }
 0x2d6   : > { %v2224_v58 = vadd.f32 %v2187_v30, %v2098_v25  ;;  %v2580_v14 = vadd.f32 %v2579_v11, %v2578_v5 }
 0x2d7   : > { %v2287_v28 = vld [vmem:[#allocation2 + $0xe0] sm:$0xff]  ;;  %v2002_v34 = vpop.f32.mrf.mxu2 }
 0x2d8   : > { %2256 = vst.msk [vmem:[#allocation2 + $0xe8] sm:$0xff] %vm426_vm1, %v2224_v58  ;;  %v2413_v60 = vadd.f32 %v2375_v17, %v2287_v28  ;;  %v2582_v13 = vadd.f32 %v2581_v2, %v2580_v14  ;;  %v2587_v17 = vsel %vm426_vm1, %v4451_v8, 0.0  ;;  %v2192_v57 = vpop.f32.mrf.mxu3 }
 0x2d9   : > { %v4545_v16 = vld [vmem:[#allocation2 + $0xd8] sm:$0xff] }
 0x2da   : > { %v2508_v10 = vpack.c.bf16 %v4545_v16, %v4545_v16  ;;  %2445 = vst.msk [vmem:[#allocation2 + $0xe0] sm:$0xff] %vm426_vm1, %v2413_v60  ;;  %v1910_v6 = vld [vmem:[#allocation2 + $0xf8] sm:$0xff]  ;;  %v2584_v7 = vadd.f32 %v2583_v24, %v2582_v13  ;;  %v2382_v60 = vpop.f32.mrf.mxu0  ;;  %v2599_v59 = vsel %vm426_vm1, %v4545_v16, 0.0 }
 0x2db   : > { %v2036_v20 = vadd.f32 %v2002_v34, %v1910_v6 }
 0x2dc   : > { %2541 = vst.msk [vmem:[%s4191_s25 + $0x6c] sm:$0xf] %vm2513_vm6, %v2508_v10  ;;  %v2099_v41 = vld [vmem:[#allocation2 + $0xf0] sm:$0xff]  ;;  %v2586_v9 = vadd.f32 %v2585_v48, %v2584_v7 }
 0x2dd   : > { %v2225_v39 = vadd.f32 %v2190_v53, %v2099_v41  ;;  %2068 = vst.msk [vmem:[#allocation2 + $0xf8] sm:$0xff] %vm426_vm1, %v2036_v20 }
 0x2de   : > { %v2588_v45 = vadd.f32 %v2587_v17, %v2586_v9 }
 0x2df   : > { %2257 = vst.msk [vmem:[#allocation2 + $0xf0] sm:$0xff] %vm426_vm1, %v2225_v39  ;;  %v2288_v12 = vld [vmem:[#allocation2 + $0xe8] sm:$0xff] }
 0x2e0   : > { %v2414_v27 = vadd.f32 %v2377_v33, %v2288_v12  ;;  %v2590_v51 = vadd.f32 %v2589_v44, %v2588_v45 }
 0x2e1   : > { %v4562_v23 = vld [vmem:[#allocation2 + $0xe0] sm:$0xff] }
 0x2e2   : > { %v2509_v30 = vpack.c.bf16 %v4562_v23, %v4562_v23  ;;  %2446 = vst.msk [vmem:[#allocation2 + $0xe8] sm:$0xff] %vm426_vm1, %v2414_v27  ;;  %v2592_v63 = vadd.f32 %v2591_v46, %v2590_v51  ;;  %v2601_v53 = vsel %vm426_vm1, %v4562_v23, 0.0 }
 0x2e4   : > { %2542 = vst.msk [vmem:[%s4191_s25 + $0x70] sm:$0xf] %vm2513_vm6, %v2509_v30  ;;  %v2100_v43 = vld [vmem:[#allocation2 + $0xf8] sm:$0xff]  ;;  %v2594_v58 = vadd.f32 %v2593_v40, %v2592_v63  ;;  %v3096_v40 = vld [vmem:[#allocation2 + $0x20] sm:$0xff] }
 0x2e5   : > { %v2226_v1 = vadd.f32 %v2192_v57, %v2100_v43  ;;  %v3092_v43 = vld [vmem:[#allocation2] sm:$0xff] }
 0x2e6   : > { %v2289_v37 = vld [vmem:[#allocation2 + $0xf0] sm:$0xff]  ;;  %v2596_v28 = vadd.f32 %v2595_v36, %v2594_v58  ;;  %v3097_v36 = vld [vmem:[#allocation2 + $0x28] sm:$0xff] }
 0x2e7   : > { %2258 = vst.msk [vmem:[#allocation2 + $0xf8] sm:$0xff] %vm426_vm1, %v2226_v1  ;;  %v2415_v55 = vadd.f32 %v2380_v19, %v2289_v37  ;;  %v3093_v19 = vld [vmem:[#allocation2 + $0x8] sm:$0xff]  ;;  %v3094_v1 = vld [vmem:[#allocation2 + $0x10] sm:$0xff]  ;;  %v3095_v37 = vld [vmem:[#allocation2 + $0x18] sm:$0xff] }
 0x2e8   : > { %v2598_v56 = vadd.f32 %v2597_v52, %v2596_v28 }
 0x2e9   : > { %v4578_v0 = vld [vmem:[#allocation2 + $0xe8] sm:$0xff]  ;;  %2447 = vst.msk [vmem:[#allocation2 + $0xf0] sm:$0xff] %vm426_vm1, %v2415_v55 }
 0x2ea   : > { %v2510_v25 = vpack.c.bf16 %v4578_v0, %v4578_v0  ;;  %v2600_v34 = vadd.f32 %v2599_v59, %v2598_v56  ;;  %v2603_v11 = vsel %vm426_vm1, %v4578_v0, 0.0  ;;  %v3098_v59 = vld [vmem:[#allocation2 + $0x30] sm:$0xff] }
 0x2ec   : > { %2543 = vst.msk [vmem:[%s4191_s25 + $0x74] sm:$0xf] %vm2513_vm6, %v2510_v25  ;;  %v2602_v20 = vadd.f32 %v2601_v53, %v2600_v34  ;;  %v3099_v34 = vld [vmem:[#allocation2 + $0x38] sm:$0xff] }
 0x2ee   : > { %v2290_v31 = vld [vmem:[#allocation2 + $0xf8] sm:$0xff]  ;;  %v2604_v41 = vadd.f32 %v2603_v11, %v2602_v20 }
 0x2ef   : > { %v2416_v33 = vadd.f32 %v2382_v60, %v2290_v31 }
 0x2f0   : > { %v4591_v10 = vld [vmem:[#allocation2 + $0xf0] sm:$0xff] }
 0x2f1   : > { %v2511_v6 = vpack.c.bf16 %v4591_v10, %v4591_v10  ;;  %2448 = vst.msk [vmem:[#allocation2 + $0xf8] sm:$0xff] %vm426_vm1, %v2416_v33  ;;  %v2605_v5 = vsel %vm426_vm1, %v4591_v10, 0.0 }
 0x2f2   : > { %v2606_v2 = vadd.f32 %v2605_v5, %v2604_v41 }
 0x2f3   : > { %2544 = vst.msk [vmem:[%s4191_s25 + $0x78] sm:$0xf] %vm2513_vm6, %v2511_v6 }
 0x2f8   : > { %v4604_v39 = vld [vmem:[#allocation2 + $0xf8] sm:$0xff] }
 0x2f9   : > { %v2512_v14 = vpack.c.bf16 %v4604_v39, %v4604_v39  ;;  %v2607_v24 = vsel %vm426_vm1, %v4604_v39, 0.0 }
 0x2fa   : > { %v2608_v12 = vadd.f32 %v2607_v24, %v2606_v2 }
 0x2fb   : > { %2545 = vst.msk [vmem:[%s4191_s25 + $0x7c] sm:$0xf] %vm2513_vm6, %v2512_v14 }
 0x2fc   : > { %v2609_v13 = vrot.slane %v2608_v12, 4 }
 0x2fe   : > { %v2610_v27 = vadd.f32 %v2609_v13, %v2608_v12 }
 0x300   : > { %v2611_v48 = vrot.slane %v2610_v27, 2 }
 0x302   : > { %v2612_v7 = vadd.f32 %v2611_v48, %v2610_v27 }
 0x304   : > { %v2613_v30 = vrot.slane %v2612_v7, 1 }
 0x306   : > { %v4612_v17 = vadd.f32 %v2613_v30, %v2612_v7 }
 0x308   : > { %v4615_v9 = vmul.f32 0.00390625, %v4612_v17 }
 0x30a   : > { %v2616_v57 = vsub.f32 %v3092_v43, %v4615_v9  ;;  %v2617_v44 = vsub.f32 %v3093_v19, %v4615_v9  ;;  %v2618_v45 = vsub.f32 %v3094_v1, %v4615_v9  ;;  %v2619_v46 = vsub.f32 %v3095_v37, %v4615_v9 }
 0x30b   : > { %v2620_v63 = vsub.f32 %v3096_v40, %v4615_v9  ;;  %v2621_v58 = vsub.f32 %v3097_v36, %v4615_v9  ;;  %v2622_v33 = vsub.f32 %v3098_v59, %v4615_v9  ;;  %v2623_v11 = vsub.f32 %v3099_v34, %v4615_v9 }
 0x30c   : > { %v2648_v55 = vmul.f32 %v2616_v57, %v2616_v57  ;;  %v2649_v51 = vmul.f32 %v2617_v44, %v2617_v44  ;;  %v2650_v25 = vmul.f32 %v2618_v45, %v2618_v45  ;;  %v2651_v52 = vmul.f32 %v2619_v46, %v2619_v46 }
 0x30d   : > { %v2652_v56 = vmul.f32 %v2620_v63, %v2620_v63  ;;  %v2653_v20 = vmul.f32 %v2621_v58, %v2621_v58  ;;  %v2624_v2 = vsub.f32 %v4316_v62, %v4615_v9  ;;  %v2654_v14 = vmul.f32 %v2622_v33, %v2622_v33 }
 0x30e   : > { %v2680_v28 = vsel %vm426_vm1, %v2648_v55, 0.0  ;;  %v2681_v31 = vsel %vm426_vm1, %v2649_v51, 0.0  ;;  %v2683_v53 = vsel %vm426_vm1, %v2650_v25, 0.0  ;;  %v2685_v5 = vsel %vm426_vm1, %v2651_v52, 0.0 }
 0x30f   : > { %v2682_v60 = vadd.f32 %v2681_v31, %v2680_v28  ;;  %v2687_v24 = vsel %vm426_vm1, %v2652_v56, 0.0  ;;  %v2625_v13 = vsub.f32 %v4327_v32, %v4615_v9  ;;  %v2655_v27 = vmul.f32 %v2623_v11, %v2623_v11 }
 0x310   : > { %v2689_v48 = vsel %vm426_vm1, %v2653_v20, 0.0  ;;  %v2626_v30 = vsub.f32 %v4340_v3, %v4615_v9  ;;  %v2656_v43 = vmul.f32 %v2624_v2, %v2624_v2  ;;  %v2691_v57 = vsel %vm426_vm1, %v2654_v14, 0.0 }
 0x311   : > { %v2684_v6 = vadd.f32 %v2683_v53, %v2682_v60  ;;  %v2627_v62 = vsub.f32 %v4351_v35, %v4615_v9  ;;  %v2657_v44 = vmul.f32 %v2625_v13, %v2625_v13  ;;  %v2693_v1 = vsel %vm426_vm1, %v2655_v27, 0.0 }
 0x312   : > { %v2628_v32 = vsub.f32 %v4361_v22, %v4615_v9  ;;  %v2658_v37 = vmul.f32 %v2626_v30, %v2626_v30  ;;  %v2695_v46 = vsel %vm426_vm1, %v2656_v43, 0.0  ;;  %v2629_v3 = vsub.f32 %v4370_v50, %v4615_v9 }
 0x313   : > { %v2686_v41 = vadd.f32 %v2685_v5, %v2684_v6  ;;  %v2659_v51 = vmul.f32 %v2627_v62, %v2627_v62  ;;  %v2697_v40 = vsel %vm426_vm1, %v2657_v44, 0.0  ;;  %v2630_v35 = vsub.f32 %v4380_v26, %v4615_v9 }
 0x314   : > { %v2660_v25 = vmul.f32 %v2628_v32, %v2628_v32  ;;  %v2699_v36 = vsel %vm426_vm1, %v2658_v37, 0.0  ;;  %v2631_v22 = vsub.f32 %v4391_v4, %v4615_v9  ;;  %v2661_v52 = vmul.f32 %v2629_v3, %v2629_v3 }
 0x315   : > { %v2688_v12 = vadd.f32 %v2687_v24, %v2686_v41  ;;  %v2701_v28 = vsel %vm426_vm1, %v2659_v51, 0.0  ;;  %v2632_v50 = vsub.f32 %v4401_v54, %v4615_v9  ;;  %v2662_v60 = vmul.f32 %v2630_v35, %v2630_v35 }
 0x316   : > { %v2703_v59 = vsel %vm426_vm1, %v2660_v25, 0.0  ;;  %v2633_v26 = vsub.f32 %v4411_v29, %v4615_v9  ;;  %v2663_v56 = vmul.f32 %v2631_v22, %v2631_v22  ;;  %v2705_v53 = vsel %vm426_vm1, %v2661_v52, 0.0 }
 0x317   : > { %v2690_v7 = vadd.f32 %v2689_v48, %v2688_v12  ;;  %v2634_v4 = vsub.f32 %v4421_v47, %v4615_v9  ;;  %v2664_v34 = vmul.f32 %v2632_v50, %v2632_v50  ;;  %v2707_v11 = vsel %vm426_vm1, %v2662_v60, 0.0 }
 0x318   : > { %v2635_v54 = vsub.f32 %v4431_v21, %v4615_v9  ;;  %v2665_v5 = vmul.f32 %v2633_v26, %v2633_v26  ;;  %v2709_v41 = vsel %vm426_vm1, %v2663_v56, 0.0  ;;  %v2636_v29 = vsub.f32 %v4441_v15, %v4615_v9 }
 0x319   : > { %v2692_v19 = vadd.f32 %v2691_v57, %v2690_v7  ;;  %v2666_v14 = vmul.f32 %v2634_v4, %v2634_v4  ;;  %v2711_v24 = vsel %vm426_vm1, %v2664_v34, 0.0  ;;  %v2637_v47 = vsub.f32 %v4451_v8, %v4615_v9 }
 0x31a   : > { %v2667_v13 = vmul.f32 %v2635_v54, %v2635_v54  ;;  %v2713_v27 = vsel %vm426_vm1, %v2665_v5, 0.0  ;;  %v2638_v21 = vsub.f32 %v4461_v42, %v4615_v9  ;;  %v2668_v7 = vmul.f32 %v2636_v29, %v2636_v29 }
 0x31b   : > { %v2694_v45 = vadd.f32 %v2693_v1, %v2692_v19  ;;  %v2715_v30 = vsel %vm426_vm1, %v2666_v14, 0.0  ;;  %v2639_v15 = vsub.f32 %v4470_v38, %v4615_v9  ;;  %v2669_v57 = vmul.f32 %v2637_v47, %v2637_v47 }
 0x31c   : > { %v2717_v19 = vsel %vm426_vm1, %v2667_v13, 0.0  ;;  %v2640_v8 = vsub.f32 %v4488_v18, %v4615_v9  ;;  %v2670_v44 = vmul.f32 %v2638_v21, %v2638_v21  ;;  %v2719_v1 = vsel %vm426_vm1, %v2668_v7, 0.0 }
 0x31d   : > { %v2696_v55 = vadd.f32 %v2695_v46, %v2694_v45  ;;  %v2641_v42 = vsub.f32 %v4509_v61, %v4615_v9  ;;  %v2671_v32 = vmul.f32 %v2639_v15, %v2639_v15  ;;  %v2721_v37 = vsel %vm426_vm1, %v2669_v57, 0.0 }
 0x31e   : > { %v2642_v38 = vsub.f32 %v4527_v49, %v4615_v9  ;;  %v2723_v3 = vsel %vm426_vm1, %v2670_v44, 0.0  ;;  %v2643_v18 = vsub.f32 %v4545_v16, %v4615_v9  ;;  %v2644_v61 = vsub.f32 %v4562_v23, %v4615_v9 }
 0x31f   : > { %v2698_v63 = vadd.f32 %v2697_v40, %v2696_v55  ;;  %v2672_v55 = vmul.f32 %v2640_v8, %v2640_v8  ;;  %v2673_v40 = vmul.f32 %v2641_v42, %v2641_v42  ;;  %v2645_v49 = vsub.f32 %v4578_v0, %v4615_v9 }
 0x320   : > { %v2674_v25 = vmul.f32 %v2642_v38, %v2642_v38  ;;  %v2675_v22 = vmul.f32 %v2643_v18, %v2643_v18  ;;  %v2646_v16 = vsub.f32 %v4591_v10, %v4615_v9  ;;  %v2647_v23 = vsub.f32 %v4604_v39, %v4615_v9 }
 0x321   : > { %v2700_v58 = vadd.f32 %v2699_v36, %v2698_v63  ;;  %v2725_v63 = vsel %vm426_vm1, %v2671_v32, 0.0  ;;  %v2727_v36 = vsel %vm426_vm1, %v2672_v55, 0.0  ;;  %v2729_v52 = vsel %vm426_vm1, %v2673_v40, 0.0 }
 0x322   : > { %v2731_v50 = vsel %vm426_vm1, %v2674_v25, 0.0  ;;  %v2678_v0 = vmul.f32 %v2646_v16, %v2646_v16 }
 0x323   : > { %v2702_v31 = vadd.f32 %v2701_v28, %v2700_v58 }
 0x324   : > { %v2739_v34 = vsel %vm426_vm1, %v2678_v0, 0.0 }
 0x325   : > { %v2704_v33 = vadd.f32 %v2703_v59, %v2702_v31  ;;  %v2676_v31 = vmul.f32 %v2644_v61, %v2644_v61  ;;  %v2677_v59 = vmul.f32 %v2645_v49, %v2645_v49 }
 0x327   : > { %v2706_v6 = vadd.f32 %v2705_v53, %v2704_v33  ;;  %v2733_v33 = vsel %vm426_vm1, %v2675_v22, 0.0  ;;  %v2735_v56 = vsel %vm426_vm1, %v2676_v31, 0.0  ;;  %v2737_v4 = vsel %vm426_vm1, %v2677_v59, 0.0 }
 0x329   : > { %v2708_v20 = vadd.f32 %v2707_v11, %v2706_v6  ;;  %v2679_v6 = vmul.f32 %v2647_v23, %v2647_v23 }
 0x32b   : > { %v2710_v2 = vadd.f32 %v2709_v41, %v2708_v20  ;;  %v2741_v20 = vsel %vm426_vm1, %v2679_v6, 0.0 }
 0x32d   : > { %v2712_v12 = vadd.f32 %v2711_v24, %v2710_v2 }
 0x32f   : > { %v2714_v48 = vadd.f32 %v2713_v27, %v2712_v12 }
 0x331   : > { %v2716_v43 = vadd.f32 %v2715_v30, %v2714_v48 }
 0x333   : > { %v2718_v62 = vadd.f32 %v2717_v19, %v2716_v43 }
 0x335   : > { %v2720_v45 = vadd.f32 %v2719_v1, %v2718_v62 }
 0x337   : > { %v2722_v46 = vadd.f32 %v2721_v37, %v2720_v45 }
 0x339   : > { %v2724_v51 = vadd.f32 %v2723_v3, %v2722_v46 }
 0x33b   : > { %v2726_v35 = vadd.f32 %v2725_v63, %v2724_v51 }
 0x33d   : > { %v2728_v58 = vadd.f32 %v2727_v36, %v2726_v35 }
 0x33f   : > { %v2730_v28 = vadd.f32 %v2729_v52, %v2728_v58 }
 0x341   : > { %v2732_v60 = vadd.f32 %v2731_v50, %v2730_v28 }
 0x343   : > { %v2734_v26 = vadd.f32 %v2733_v33, %v2732_v60 }
 0x345   : > { %v2736_v53 = vadd.f32 %v2735_v56, %v2734_v26 }
 0x347   : > { %v2738_v10 = vadd.f32 %v2737_v4, %v2736_v53 }
 0x349   : > { %v2740_v11 = vadd.f32 %v2739_v34, %v2738_v10 }
 0x34b   : > { %v2742_v54 = vadd.f32 %v2741_v20, %v2740_v11 }
 0x34d   : > { %v2743_v39 = vrot.slane %v2742_v54, 4 }
 0x34f   : > { %v2744_v9 = vadd.f32 %v2743_v39, %v2742_v54 }
 0x351   : > { %v2745_v5 = vrot.slane %v2744_v9, 2 }
 0x353   : > { %v2746_v41 = vadd.f32 %v2745_v5, %v2744_v9 }
 0x355   : > { %v2747_v2 = vrot.slane %v2746_v41, 1 }
 0x357   : > { %v2748_v29 = vadd.f32 %v2747_v2, %v2746_v41 }
 0x359   : > { %v2750_v14 = vsel %vm2749_vm7, %v4612_v17, %v2748_v29 }
 0x35a   : > { %2752 = vst.msk [vmem:[%s235_s29] sm:$0x3] %vm2751_vm8, %v2750_v14 }
 0x35b PF: > { %s16_s18 = sadd.s32 1, %s3106_s18  }
 0x35c   : > { %p13_p4 = scmp.ge.s32.totalorder %s16_s18, 4  }
 0x35e   :  { %15 = sbr.rel (!%p13_p4) target bundleno = 1 (0x1), region = 86 }

</bundles_post_ra>
